<compile_context>
chip_gen: v5e
topology: v5e:2x2
jax: 0.10.0
libtpu: 0.0.40
codegen_flags: <defaults>
</compile_context>

<pallas_src>
import jax
import jax.numpy as jnp
from jax.experimental import pallas as pl
from jax.experimental.pallas import tpu as pltpu


# --------------------------------------------------------------------------
# Model configuration (fc1..fc7 of the PyTorch MLP). BN+ReLU on fc1..fc6.
# --------------------------------------------------------------------------
LAYER_DIMS = [
    (512, 1024),   # fc1
    (1024, 1024),  # fc2
    (1024, 512),   # fc3
    (512, 256),    # fc4
    (256, 128),    # fc5
    (128, 64),     # fc6
    (64, 4),       # fc7 (no BN / ReLU)
]
OUT_CHANNEL = 4
BN_EPS = 1e-5
LANE = 128
BF16_SUBLANE = 16          # bf16 packs 16 rows per vreg
MAX_BATCH_TILE = 256       # fills the 256x256 MXU on v6e/v7x


def _round_up(n, m):
    return ((n + m - 1) // m) * m


# --------------------------------------------------------------------------
# Fused kernel: 7 x (MXU matmul + folded-BN shift [+ ReLU]) per batch tile.
# x_ref is already bf16; weights are bf16; accumulation + epilogue in f32.
# --------------------------------------------------------------------------
def _fused_mlp_kernel(x_ref, *refs):
    o_ref = refs[-1]
    wrefs = refs[:-1]                      # (w1, s1, w2, s2, ..., w7, s7)
    n_layers = len(wrefs) // 2

    h = x_ref[...]                         # bf16 activations
    for li in range(n_layers):
        w_ref = wrefs[2 * li]
        s_ref = wrefs[2 * li + 1]
        z = jnp.dot(h, w_ref[...], preferred_element_type=jnp.float32)
        z = z + s_ref[...]                 # folded BN + bias shift (f32 epilogue)
        if li < n_layers - 1:
            h = jnp.maximum(z, 0.0).astype(jnp.bfloat16)
        else:
            o_ref[...] = z.astype(o_ref.dtype)


# --------------------------------------------------------------------------
# Parameter construction (deterministic, synthetic). BN is eval-mode and is
# folded into the weights / shift at build time.
# --------------------------------------------------------------------------
def make_params(key):
    folded = []
    for li, (fin, fout) in enumerate(LAYER_DIMS):
        k = jax.random.fold_in(key, li)
        kw, kb, kg, kbt, km, kv = jax.random.split(k, 6)
        w = jax.random.normal(kw, (fin, fout), jnp.float32) / jnp.sqrt(fin)
        b = 0.01 * jax.random.normal(kb, (fout,), jnp.float32)
        if li < len(LAYER_DIMS) - 1:       # Linear + BatchNorm1d + ReLU
            gamma = 1.0 + 0.01 * jax.random.normal(kg, (fout,), jnp.float32)
            beta = 0.01 * jax.random.normal(kbt, (fout,), jnp.float32)
            mean = 0.01 * jax.random.normal(km, (fout,), jnp.float32)
            var = 1.0 + 0.1 * jax.random.uniform(kv, (fout,), jnp.float32)
            scale = gamma / jnp.sqrt(var + BN_EPS)
            w_f = w * scale[None, :]           # fold BN scale into weight cols
            shift = beta + (b - mean) * scale  # folded BN + bias shift
        else:                               # fc7: plain Linear
            w_f = w
            shift = b
        folded.append((w_f, shift))
    return folded


def pack_kernel_params(folded):
    """Lane-pad narrow layers to 128 and cast weights to bf16 for the MXU."""
    packed = []
    for w, shift in folded:
        fin, fout = w.shape
        fin_p, fout_p = _round_up(fin, LANE), _round_up(fout, LANE)
        wp = jnp.zeros((fin_p, fout_p), jnp.float32).at[:fin, :fout].set(w)
        sp = jnp.zeros((1, fout_p), jnp.float32).at[0, :fout].set(shift)
        packed.append((wp.astype(jnp.bfloat16), sp))
    return packed


# --------------------------------------------------------------------------
# MLP_features forward (x.shape[2] == 512 branch: flatten -> fc1..fc7)
# --------------------------------------------------------------------------
# TODO(synk): the x.shape[2] != 512 branch (flatten to 1024, skip fc1) is not
# implemented; only the fc1 path required by the demo input is covered.
# TODO(synk): for the absolute tiny-batch latency floor (B~2), weights could
# be moved to memory_space=pl.ANY and manually double-buffered per layer with
# pltpu.make_async_copy; skipped here since the batch-grid version amortizes
# the weight stream and is the realistic-throughput path.
@jax.jit
def mlp_features_forward(x, packed_params):
    B = x.shape[0]
    x2 = x.reshape(B, -1).astype(jnp.float32)      # x.view(x.size(0), -1)
    assert x2.shape[1] == LAYER_DIMS[0][0], "wrapper implements the 512-feature branch"
    d_in = x2.shape[1]

    # Batch tile: multiple of 16 (bf16 sublane packing), capped at 256 rows.
    tb = min(MAX_BATCH_TILE, _round_up(max(B, BF16_SUBLANE), BF16_SUBLANE))
    b_pad = _round_up(max(B, tb), tb)
    n_tiles = b_pad // tb

    # Pre-cast to bf16 in the wrapper (halves activation DMA, removes the
    # in-kernel full-tile cast).
    x_pad = jnp.zeros((b_pad, d_in), jnp.bfloat16).at[:B].set(
        x2.astype(jnp.bfloat16))

    flat_args = []
    # x tile marches along the batch axis; weights/shifts pinned to block
    # (0, 0) so they stay VMEM-resident across all batch tiles.
    in_specs = [pl.BlockSpec((tb, d_in), lambda i: (i, 0))]
    for w, s in packed_params:
        flat_args += [w, s]
        in_specs += [
            pl.BlockSpec(w.shape, lambda i: (0, 0)),
            pl.BlockSpec(s.shape, lambda i: (0, 0)),
        ]
    out_p = packed_params[-1][0].shape[1]          # lane-padded output width (128)

    out = pl.pallas_call(
        _fused_mlp_kernel,
        out_shape=jax.ShapeDtypeStruct((b_pad, out_p), jnp.float32),
        grid=(n_tiles,),
        in_specs=in_specs,
        out_specs=pl.BlockSpec((tb, out_p), lambda i: (i, 0)),
        compiler_params=pltpu.CompilerParams(
            dimension_semantics=("parallel",),      # shard batch tiles on v7x
            vmem_limit_bytes=32 * 1024 * 1024,
        ),
    )(x_pad, *flat_args)
    return out[:B, :OUT_CHANNEL]


# --------------------------------------------------------------------------
# Numerics-matched JAX reference (same bf16 operands / f32 accumulation).
# Note: results intentionally drift ~1e-3 from a pure-f32 PyTorch MLP because
# weights/activations are bf16 on the MXU; this reference matches the kernel's
# numerics choice exactly.
# --------------------------------------------------------------------------
def mlp_features_reference(x, folded_params):
    out = x.reshape(x.shape[0], -1).astype(jnp.float32)
    n = len(folded_params)
    for li, (w, shift) in enumerate(folded_params):
        z = jnp.dot(out.astype(jnp.bfloat16), w.astype(jnp.bfloat16),
                    preferred_element_type=jnp.float32) + shift[None, :]
        out = jnp.maximum(z, 0.0) if li < n - 1 else z
    return out


if __name__ == "__main__":
    key = jax.random.PRNGKey(0)
    kx, kp = jax.random.split(key)
    # PyTorch input: (B, 1, 512) so that x.shape[2] == 512 (fc1 branch)
    x = jax.random.normal(kx, (2, 1, 512), jnp.float32)

    folded = make_params(kp)
    packed = pack_kernel_params(folded)

    y = mlp_features_forward(x, packed)
    y = jax.block_until_ready(y)

    y_ref = mlp_features_reference(x, folded)
    assert y.shape == (2, OUT_CHANNEL), y.shape
    assert jnp.allclose(y, y_ref, atol=5e-3, rtol=5e-3), \
        "mismatch vs numerics-matched JAX reference"

    # Sanity-check the multi-tile (large-batch) path as well.
    xb = jax.random.normal(jax.random.fold_in(kx, 1), (300, 1, 512), jnp.float32)
    yb = jax.block_until_ready(mlp_features_forward(xb, packed))
    yb_ref = mlp_features_reference(xb, folded)
    assert yb.shape == (300, OUT_CHANNEL), yb.shape
    assert jnp.allclose(yb, yb_ref, atol=5e-3, rtol=5e-3), \
        "large-batch mismatch vs numerics-matched JAX reference"

    print("KERNEL_OK")
</pallas_src>

<mosaic_0001>
module attributes {stable_mosaic.version = 11 : i64} {
  func.func @_fused_mlp_kernel(%arg0: i32, %arg1: memref<16x512xbf16, #tpu.memory_space<vmem>>, %arg2: memref<512x1024xbf16, #tpu.memory_space<vmem>>, %arg3: memref<1x1024xf32, #tpu.memory_space<vmem>>, %arg4: memref<1024x1024xbf16, #tpu.memory_space<vmem>>, %arg5: memref<1x1024xf32, #tpu.memory_space<vmem>>, %arg6: memref<1024x512xbf16, #tpu.memory_space<vmem>>, %arg7: memref<1x512xf32, #tpu.memory_space<vmem>>, %arg8: memref<512x256xbf16, #tpu.memory_space<vmem>>, %arg9: memref<1x256xf32, #tpu.memory_space<vmem>>, %arg10: memref<256x128xbf16, #tpu.memory_space<vmem>>, %arg11: memref<1x128xf32, #tpu.memory_space<vmem>>, %arg12: memref<128x128xbf16, #tpu.memory_space<vmem>>, %arg13: memref<1x128xf32, #tpu.memory_space<vmem>>, %arg14: memref<128x128xbf16, #tpu.memory_space<vmem>>, %arg15: memref<1x128xf32, #tpu.memory_space<vmem>>, %arg16: memref<16x128xf32, #tpu.memory_space<vmem>>) attributes {dimension_semantics = [#tpu.dimension_semantics<parallel>], iteration_bounds = array<i64: 1>, scalar_prefetch = 0 : i64, scratch_operands = 0 : i64, tpu.core_type = #tpu.core_type<tc>, window_params = [{transform_indices = @transform_0, window_bounds = array<i64: 16, 512>}, {pipeline_mode = #tpu.pipeline_mode<synchronous>, transform_indices = @transform_1, window_bounds = array<i64: 512, 1024>}, {pipeline_mode = #tpu.pipeline_mode<synchronous>, transform_indices = @transform_2, window_bounds = array<i64: 1, 1024>}, {pipeline_mode = #tpu.pipeline_mode<synchronous>, transform_indices = @transform_3, window_bounds = array<i64: 1024, 1024>}, {pipeline_mode = #tpu.pipeline_mode<synchronous>, transform_indices = @transform_4, window_bounds = array<i64: 1, 1024>}, {pipeline_mode = #tpu.pipeline_mode<synchronous>, transform_indices = @transform_5, window_bounds = array<i64: 1024, 512>}, {pipeline_mode = #tpu.pipeline_mode<synchronous>, transform_indices = @transform_6, window_bounds = array<i64: 1, 512>}, {pipeline_mode = #tpu.pipeline_mode<synchronous>, transform_indices = @transform_7, window_bounds = array<i64: 512, 256>}, {pipeline_mode = #tpu.pipeline_mode<synchronous>, transform_indices = @transform_8, window_bounds = array<i64: 1, 256>}, {pipeline_mode = #tpu.pipeline_mode<synchronous>, transform_indices = @transform_9, window_bounds = array<i64: 256, 128>}, {pipeline_mode = #tpu.pipeline_mode<synchronous>, transform_indices = @transform_10, window_bounds = array<i64: 1, 128>}, {pipeline_mode = #tpu.pipeline_mode<synchronous>, transform_indices = @transform_11, window_bounds = array<i64: 128, 128>}, {pipeline_mode = #tpu.pipeline_mode<synchronous>, transform_indices = @transform_12, window_bounds = array<i64: 1, 128>}, {pipeline_mode = #tpu.pipeline_mode<synchronous>, transform_indices = @transform_13, window_bounds = array<i64: 128, 128>}, {pipeline_mode = #tpu.pipeline_mode<synchronous>, transform_indices = @transform_14, window_bounds = array<i64: 1, 128>}, {transform_indices = @transform_15, window_bounds = array<i64: 16, 128>}]} {
    %c0 = arith.constant 0 : index
    %c0_0 = arith.constant 0 : index
    %0 = vector.load %arg1[%c0, %c0_0] : memref<16x512xbf16, #tpu.memory_space<vmem>>, vector<16x512xbf16>
    %c0_1 = arith.constant 0 : index
    %c0_2 = arith.constant 0 : index
    %1 = vector.load %arg2[%c0_1, %c0_2] : memref<512x1024xbf16, #tpu.memory_space<vmem>>, vector<512x1024xbf16>
    %cst = arith.constant dense<0.000000e+00> : vector<16x1024xf32>
    %2 = tpu.matmul %0, %1, %cst {dimension_numbers = #tpu.dot_dimension_numbers<[1], [0], [0], [1], [0, 0, 1, 1], [], []>} : vector<16x512xbf16>, vector<512x1024xbf16>, vector<16x1024xf32> -> vector<16x1024xf32>
    %c0_3 = arith.constant 0 : index
    %c0_4 = arith.constant 0 : index
    %3 = vector.load %arg3[%c0_3, %c0_4] : memref<1x1024xf32, #tpu.memory_space<vmem>>, vector<1x1024xf32>
    %4 = vector.broadcast %3 : vector<1x1024xf32> to vector<16x1024xf32>
    %5 = arith.addf %2, %4 : vector<16x1024xf32>
    %cst_5 = arith.constant 0.000000e+00 : f32
    %6 = vector.broadcast %cst_5 : f32 to vector<16x1024xf32>
    %7 = arith.maximumf %5, %6 : vector<16x1024xf32>
    %8 = arith.truncf %7 : vector<16x1024xf32> to vector<16x1024xbf16>
    %c0_6 = arith.constant 0 : index
    %c0_7 = arith.constant 0 : index
    %9 = vector.load %arg4[%c0_6, %c0_7] : memref<1024x1024xbf16, #tpu.memory_space<vmem>>, vector<1024x1024xbf16>
    %cst_8 = arith.constant dense<0.000000e+00> : vector<16x1024xf32>
    %10 = tpu.matmul %8, %9, %cst_8 {dimension_numbers = #tpu.dot_dimension_numbers<[1], [0], [0], [1], [0, 0, 1, 1], [], []>} : vector<16x1024xbf16>, vector<1024x1024xbf16>, vector<16x1024xf32> -> vector<16x1024xf32>
    %c0_9 = arith.constant 0 : index
    %c0_10 = arith.constant 0 : index
    %11 = vector.load %arg5[%c0_9, %c0_10] : memref<1x1024xf32, #tpu.memory_space<vmem>>, vector<1x1024xf32>
    %12 = vector.broadcast %11 : vector<1x1024xf32> to vector<16x1024xf32>
    %13 = arith.addf %10, %12 : vector<16x1024xf32>
    %cst_11 = arith.constant 0.000000e+00 : f32
    %14 = vector.broadcast %cst_11 : f32 to vector<16x1024xf32>
    %15 = arith.maximumf %13, %14 : vector<16x1024xf32>
    %16 = arith.truncf %15 : vector<16x1024xf32> to vector<16x1024xbf16>
    %c0_12 = arith.constant 0 : index
    %c0_13 = arith.constant 0 : index
    %17 = vector.load %arg6[%c0_12, %c0_13] : memref<1024x512xbf16, #tpu.memory_space<vmem>>, vector<1024x512xbf16>
    %cst_14 = arith.constant dense<0.000000e+00> : vector<16x512xf32>
    %18 = tpu.matmul %16, %17, %cst_14 {dimension_numbers = #tpu.dot_dimension_numbers<[1], [0], [0], [1], [0, 0, 1, 1], [], []>} : vector<16x1024xbf16>, vector<1024x512xbf16>, vector<16x512xf32> -> vector<16x512xf32>
    %c0_15 = arith.constant 0 : index
    %c0_16 = arith.constant 0 : index
    %19 = vector.load %arg7[%c0_15, %c0_16] : memref<1x512xf32, #tpu.memory_space<vmem>>, vector<1x512xf32>
    %20 = vector.broadcast %19 : vector<1x512xf32> to vector<16x512xf32>
    %21 = arith.addf %18, %20 : vector<16x512xf32>
    %cst_17 = arith.constant 0.000000e+00 : f32
    %22 = vector.broadcast %cst_17 : f32 to vector<16x512xf32>
    %23 = arith.maximumf %21, %22 : vector<16x512xf32>
    %24 = arith.truncf %23 : vector<16x512xf32> to vector<16x512xbf16>
    %c0_18 = arith.constant 0 : index
    %c0_19 = arith.constant 0 : index
    %25 = vector.load %arg8[%c0_18, %c0_19] : memref<512x256xbf16, #tpu.memory_space<vmem>>, vector<512x256xbf16>
    %cst_20 = arith.constant dense<0.000000e+00> : vector<16x256xf32>
    %26 = tpu.matmul %24, %25, %cst_20 {dimension_numbers = #tpu.dot_dimension_numbers<[1], [0], [0], [1], [0, 0, 1, 1], [], []>} : vector<16x512xbf16>, vector<512x256xbf16>, vector<16x256xf32> -> vector<16x256xf32>
    %c0_21 = arith.constant 0 : index
    %c0_22 = arith.constant 0 : index
    %27 = vector.load %arg9[%c0_21, %c0_22] : memref<1x256xf32, #tpu.memory_space<vmem>>, vector<1x256xf32>
    %28 = vector.broadcast %27 : vector<1x256xf32> to vector<16x256xf32>
    %29 = arith.addf %26, %28 : vector<16x256xf32>
    %cst_23 = arith.constant 0.000000e+00 : f32
    %30 = vector.broadcast %cst_23 : f32 to vector<16x256xf32>
    %31 = arith.maximumf %29, %30 : vector<16x256xf32>
    %32 = arith.truncf %31 : vector<16x256xf32> to vector<16x256xbf16>
    %c0_24 = arith.constant 0 : index
    %c0_25 = arith.constant 0 : index
    %33 = vector.load %arg10[%c0_24, %c0_25] : memref<256x128xbf16, #tpu.memory_space<vmem>>, vector<256x128xbf16>
    %cst_26 = arith.constant dense<0.000000e+00> : vector<16x128xf32>
    %34 = tpu.matmul %32, %33, %cst_26 {dimension_numbers = #tpu.dot_dimension_numbers<[1], [0], [0], [1], [0, 0, 1, 1], [], []>} : vector<16x256xbf16>, vector<256x128xbf16>, vector<16x128xf32> -> vector<16x128xf32>
    %c0_27 = arith.constant 0 : index
    %c0_28 = arith.constant 0 : index
    %35 = vector.load %arg11[%c0_27, %c0_28] : memref<1x128xf32, #tpu.memory_space<vmem>>, vector<1x128xf32>
    %36 = vector.broadcast %35 : vector<1x128xf32> to vector<16x128xf32>
    %37 = arith.addf %34, %36 : vector<16x128xf32>
    %cst_29 = arith.constant 0.000000e+00 : f32
    %38 = vector.broadcast %cst_29 : f32 to vector<16x128xf32>
    %39 = arith.maximumf %37, %38 : vector<16x128xf32>
    %40 = arith.truncf %39 : vector<16x128xf32> to vector<16x128xbf16>
    %c0_30 = arith.constant 0 : index
    %c0_31 = arith.constant 0 : index
    %41 = vector.load %arg12[%c0_30, %c0_31] : memref<128x128xbf16, #tpu.memory_space<vmem>>, vector<128x128xbf16>
    %cst_32 = arith.constant dense<0.000000e+00> : vector<16x128xf32>
    %42 = tpu.matmul %40, %41, %cst_32 {dimension_numbers = #tpu.dot_dimension_numbers<[1], [0], [0], [1], [0, 0, 1, 1], [], []>} : vector<16x128xbf16>, vector<128x128xbf16>, vector<16x128xf32> -> vector<16x128xf32>
    %c0_33 = arith.constant 0 : index
    %c0_34 = arith.constant 0 : index
    %43 = vector.load %arg13[%c0_33, %c0_34] : memref<1x128xf32, #tpu.memory_space<vmem>>, vector<1x128xf32>
    %44 = vector.broadcast %43 : vector<1x128xf32> to vector<16x128xf32>
    %45 = arith.addf %42, %44 : vector<16x128xf32>
    %cst_35 = arith.constant 0.000000e+00 : f32
    %46 = vector.broadcast %cst_35 : f32 to vector<16x128xf32>
    %47 = arith.maximumf %45, %46 : vector<16x128xf32>
    %48 = arith.truncf %47 : vector<16x128xf32> to vector<16x128xbf16>
    %c0_36 = arith.constant 0 : index
    %c0_37 = arith.constant 0 : index
    %49 = vector.load %arg14[%c0_36, %c0_37] : memref<128x128xbf16, #tpu.memory_space<vmem>>, vector<128x128xbf16>
    %cst_38 = arith.constant dense<0.000000e+00> : vector<16x128xf32>
    %50 = tpu.matmul %48, %49, %cst_38 {dimension_numbers = #tpu.dot_dimension_numbers<[1], [0], [0], [1], [0, 0, 1, 1], [], []>} : vector<16x128xbf16>, vector<128x128xbf16>, vector<16x128xf32> -> vector<16x128xf32>
    %c0_39 = arith.constant 0 : index
    %c0_40 = arith.constant 0 : index
    %51 = vector.load %arg15[%c0_39, %c0_40] : memref<1x128xf32, #tpu.memory_space<vmem>>, vector<1x128xf32>
    %52 = vector.broadcast %51 : vector<1x128xf32> to vector<16x128xf32>
    %53 = arith.addf %50, %52 : vector<16x128xf32>
    %c0_41 = arith.constant 0 : index
    %c0_42 = arith.constant 0 : index
    %54 = vector.load %arg16[%c0_41, %c0_42] : memref<16x128xf32, #tpu.memory_space<vmem>>, vector<16x128xf32>
    tpu.vector_store %arg16[%c0_41, %c0_42], %53 {strides = array<i32>} : memref<16x128xf32, #tpu.memory_space<vmem>>, vector<16x128xf32>,
    return
  }
  func.func @transform_0(%arg0: i32) -> (i32, i32) {
    %c0_i32 = arith.constant 0 : i32
    %c0_i32_0 = arith.constant 0 : i32
    return %arg0, %c0_i32 : i32, i32
  }
  func.func @transform_1(%arg0: i32) -> (i32, i32) {
    %c0_i32 = arith.constant 0 : i32
    %c0_i32_0 = arith.constant 0 : i32
    %c0_i32_1 = arith.constant 0 : i32
    return %c0_i32, %c0_i32_0 : i32, i32
  }
  func.func @transform_2(%arg0: i32) -> (i32, i32) {
    %c0_i32 = arith.constant 0 : i32
    %c0_i32_0 = arith.constant 0 : i32
    %c0_i32_1 = arith.constant 0 : i32
    return %c0_i32, %c0_i32_0 : i32, i32
  }
  func.func @transform_3(%arg0: i32) -> (i32, i32) {
    %c0_i32 = arith.constant 0 : i32
    %c0_i32_0 = arith.constant 0 : i32
    %c0_i32_1 = arith.constant 0 : i32
    return %c0_i32, %c0_i32_0 : i32, i32
  }
  func.func @transform_4(%arg0: i32) -> (i32, i32) {
    %c0_i32 = arith.constant 0 : i32
    %c0_i32_0 = arith.constant 0 : i32
    %c0_i32_1 = arith.constant 0 : i32
    return %c0_i32, %c0_i32_0 : i32, i32
  }
  func.func @transform_5(%arg0: i32) -> (i32, i32) {
    %c0_i32 = arith.constant 0 : i32
    %c0_i32_0 = arith.constant 0 : i32
    %c0_i32_1 = arith.constant 0 : i32
    return %c0_i32, %c0_i32_0 : i32, i32
  }
  func.func @transform_6(%arg0: i32) -> (i32, i32) {
    %c0_i32 = arith.constant 0 : i32
    %c0_i32_0 = arith.constant 0 : i32
    %c0_i32_1 = arith.constant 0 : i32
    return %c0_i32, %c0_i32_0 : i32, i32
  }
  func.func @transform_7(%arg0: i32) -> (i32, i32) {
    %c0_i32 = arith.constant 0 : i32
    %c0_i32_0 = arith.constant 0 : i32
    %c0_i32_1 = arith.constant 0 : i32
    return %c0_i32, %c0_i32_0 : i32, i32
  }
  func.func @transform_8(%arg0: i32) -> (i32, i32) {
    %c0_i32 = arith.constant 0 : i32
    %c0_i32_0 = arith.constant 0 : i32
    %c0_i32_1 = arith.constant 0 : i32
    return %c0_i32, %c0_i32_0 : i32, i32
  }
  func.func @transform_9(%arg0: i32) -> (i32, i32) {
    %c0_i32 = arith.constant 0 : i32
    %c0_i32_0 = arith.constant 0 : i32
    %c0_i32_1 = arith.constant 0 : i32
    return %c0_i32, %c0_i32_0 : i32, i32
  }
  func.func @transform_10(%arg0: i32) -> (i32, i32) {
    %c0_i32 = arith.constant 0 : i32
    %c0_i32_0 = arith.constant 0 : i32
    %c0_i32_1 = arith.constant 0 : i32
    return %c0_i32, %c0_i32_0 : i32, i32
  }
  func.func @transform_11(%arg0: i32) -> (i32, i32) {
    %c0_i32 = arith.constant 0 : i32
    %c0_i32_0 = arith.constant 0 : i32
    %c0_i32_1 = arith.constant 0 : i32
    return %c0_i32, %c0_i32_0 : i32, i32
  }
  func.func @transform_12(%arg0: i32) -> (i32, i32) {
    %c0_i32 = arith.constant 0 : i32
    %c0_i32_0 = arith.constant 0 : i32
    %c0_i32_1 = arith.constant 0 : i32
    return %c0_i32, %c0_i32_0 : i32, i32
  }
  func.func @transform_13(%arg0: i32) -> (i32, i32) {
    %c0_i32 = arith.constant 0 : i32
    %c0_i32_0 = arith.constant 0 : i32
    %c0_i32_1 = arith.constant 0 : i32
    return %c0_i32, %c0_i32_0 : i32, i32
  }
  func.func @transform_14(%arg0: i32) -> (i32, i32) {
    %c0_i32 = arith.constant 0 : i32
    %c0_i32_0 = arith.constant 0 : i32
    %c0_i32_1 = arith.constant 0 : i32
    return %c0_i32, %c0_i32_0 : i32, i32
  }
  func.func @transform_15(%arg0: i32) -> (i32, i32) {
    %c0_i32 = arith.constant 0 : i32
    %c0_i32_0 = arith.constant 0 : i32
    return %arg0, %c0_i32 : i32, i32
  }
}

</mosaic_0001>

<bundles_post_ra>
// kernel: mlp_features_forward.1
= control target key start
LH: loop header
LB: loop body
LE: loop exit
PB: predicated region body
PF: predicated region fallthrough
CT: control target
= control target key end

     0   :  { %20 = vsyncpa [#allocation3], 0  ;;  %s15857_s0 = inlined_call_operand.vmem [shape: bf16[16,512], index: 0, kind: input, shape index: {}]   ;;  %s15858_s1 = inlined_call_operand.hbm [shape: bf16[512,1024], index: 1, kind: input, shape index: {}]   ;;  %s15859_s2 = inlined_call_operand.hbm [shape: f32[1,1024], index: 2, kind: input, shape index: {}]   ;;  %s15860_s3 = inlined_call_operand.hbm [shape: bf16[1024,1024], index: 3, kind: input, shape index: {}]   ;;  %s15861_s4 = inlined_call_operand.hbm [shape: f32[1,1024], index: 4, kind: input, shape index: {}]   ;;  %s15862_s5 = inlined_call_operand.hbm [shape: bf16[1024,512], index: 5, kind: input, shape index: {}]   ;;  %s15863_s6 = inlined_call_operand.hbm [shape: f32[1,512], index: 6, kind: input, shape index: {}]   ;;  %s15864_s7 = inlined_call_operand.hbm [shape: bf16[512,256], index: 7, kind: input, shape index: {}]   ;;  %s15865_s8 = inlined_call_operand.hbm [shape: f32[1,256], index: 8, kind: input, shape index: {}]   ;;  %s15866_s9 = inlined_call_operand.hbm [shape: bf16[256,128], index: 9, kind: input, shape index: {}]   ;;  %s15867_s10 = inlined_call_operand.hbm [shape: f32[1,128], index: 10, kind: input, shape index: {}]   ;;  %s15868_s11 = inlined_call_operand.hbm [shape: bf16[128,128], index: 11, kind: input, shape index: {}]   ;;  %s15869_s12 = inlined_call_operand.hbm [shape: f32[1,128], index: 12, kind: input, shape index: {}]   ;;  %s15870_s13 = inlined_call_operand.hbm [shape: bf16[128,128], index: 13, kind: input, shape index: {}]   ;;  %s15871_s14 = inlined_call_operand.hbm [shape: f32[1,128], index: 14, kind: input, shape index: {}]   ;;  %s15872_s15 = inlined_call_operand.vmem [shape: f32[16,128], index: 15, kind: output, shape index: {}]  }
   0x1   :  { %21 = vsyncpa [#allocation5], 0 }
   0x2   :  { %22 = vsyncpa [#allocation8], 0 }
   0x3   :  { %23 = vsyncpa [#allocation11], 0 }
   0x4   :  { %24 = vsyncpa [#allocation14], 0 }
   0x5   :  { %25 = vsyncpa [#allocation17], 0 }
   0x6   :  { %26 = vsyncpa [#allocation20], 0  ;;  %s48_s20 = sshll.u32 %s15859_s2, 4  ;;  %s49_s20 = int_to_ptr.hbm [resolvable:$true] %s48_s20 }
   0x7   :  { %27 = vsyncpa [#allocation23], 0  ;;  %s15173_s21 = smov [#allocation4]   ;;  %s72_s25 = sshll.u32 %s15861_s4, 4  ;;  %s73_s25 = int_to_ptr.hbm [resolvable:$true] %s72_s25 }
   0x8   :  { %s50_s22 = sshll.u32 %s15173_s21, 4  ;;  %s15174_s26 = smov [#allocation7]   ;;  %s51_s22 = int_to_ptr.vmem [resolvable:$true] %s50_s22 }
   0x9   :  { %53 = dma.hbm_to_vmem [thread:$0]  %s49_s20, 128, %s51_s22, [#allocation5]  }
   0xa   :  { %s74_s27 = sshll.u32 %s15174_s26, 4  ;;  %s96_s30 = sshll.u32 %s15863_s6, 4  ;;  %s75_s27 = int_to_ptr.vmem [resolvable:$true] %s74_s27  ;;  %s97_s30 = int_to_ptr.hbm [resolvable:$true] %s96_s30 }
   0xb   :  { %77 = dma.hbm_to_vmem [thread:$0]  %s73_s25, 128, %s75_s27, [#allocation8]  }
   0xc   :  { %s120_s17 = sshll.u32 %s15865_s8, 4  ;;  %s15175_s18 = smov [#allocation10]   ;;  %s121_s17 = int_to_ptr.hbm [resolvable:$true] %s120_s17 }
   0xd   :  { %s98_s19 = sshll.u32 %s15175_s18, 4  ;;  %s15176_s4 = smov [#allocation13]   ;;  %s99_s19 = int_to_ptr.vmem [resolvable:$true] %s98_s19 }
   0xe   :  { %101 = dma.hbm_to_vmem [thread:$0]  %s97_s30, 64, %s99_s19, [#allocation11]  }
   0xf   :  { %s122_s20 = sshll.u32 %s15176_s4, 4  ;;  %s144_s23 = sshll.u32 %s15867_s10, 4  ;;  %s123_s20 = int_to_ptr.vmem [resolvable:$true] %s122_s20  ;;  %s145_s23 = int_to_ptr.hbm [resolvable:$true] %s144_s23 }
  0x10   :  { %125 = dma.hbm_to_vmem [thread:$0]  %s121_s17, 32, %s123_s20, [#allocation14]  }
  0x11   :  { %s168_s25 = sshll.u32 %s15869_s12, 4  ;;  %s15177_s26 = smov [#allocation16]   ;;  %s169_s25 = int_to_ptr.hbm [resolvable:$true] %s168_s25 }
  0x12   :  { %s146_s8 = sshll.u32 %s15177_s26, 4  ;;  %s15178_s27 = smov [#allocation19]   ;;  %s147_s8 = int_to_ptr.vmem [resolvable:$true] %s146_s8 }
  0x13   :  { %149 = dma.hbm_to_vmem [thread:$0]  %s145_s23, 16, %s147_s8, [#allocation17]  }
  0x14   :  { %s170_s28 = sshll.u32 %s15178_s27, 4  ;;  %s34_s2 = sshll.u32 %s15858_s1, 4  ;;  %s171_s28 = int_to_ptr.vmem [resolvable:$true] %s170_s28  ;;  %s35_s2 = int_to_ptr.hbm [resolvable:$true] %s34_s2 }
  0x15   :  { %173 = dma.hbm_to_vmem [thread:$0]  %s169_s25, 16, %s171_s28, [#allocation20]  }
  0x16   :  { %s15179_s10 = smov [#allocation2]   ;;  %s58_s12 = sshll.u32 %s15860_s3, 4  ;;  %s59_s12 = int_to_ptr.hbm [resolvable:$true] %s58_s12 }
  0x17   :  { %s36_s16 = sshll.u32 %s15179_s10, 4  ;;  %s15180_s19 = smov 512   ;;  %s37_s16 = int_to_ptr.vmem [resolvable:$true] %s36_s16 }
  0x18   :  { %s15181_s4 = smov 32   ;;  %s15182_s20 = smov [#allocation6]  }
  0x19   :  { %42 = dma.hbm_to_vmem [thread:$0]  %s35_s2, 32768, %s37_s16, [#allocation3], %s15180_s19, %s15180_s19, %s15181_s4  }
  0x1a   :  { %s60_s21 = sshll.u32 %s15182_s20, 4  ;;  %s82_s1 = sshll.u32 %s15862_s5, 4  ;;  %s61_s21 = int_to_ptr.vmem [resolvable:$true] %s60_s21  ;;  %s83_s1 = int_to_ptr.hbm [resolvable:$true] %s82_s1 }
  0x1b   :  { %66 = dma.hbm_to_vmem [thread:$0]  %s59_s12, 65536, %s61_s21, [#allocation5], %s15180_s19, %s15180_s19, %s15181_s4  }
  0x1c   :  { %s15183_s6 = smov [#allocation9]   ;;  %s106_s3 = sshll.u32 %s15864_s7, 4  ;;  %s107_s3 = int_to_ptr.hbm [resolvable:$true] %s106_s3 }
  0x1d   :  { %s84_s24 = sshll.u32 %s15183_s6, 4  ;;  %s15184_s8 = smov 256   ;;  %s85_s24 = int_to_ptr.vmem [resolvable:$true] %s84_s24 }
  0x1e   :  { %s15185_s27 = smov 16   ;;  %s15186_s28 = smov [#allocation12]  }
  0x1f   :  { %90 = dma.hbm_to_vmem [thread:$0]  %s83_s1, 32768, %s85_s24, [#allocation8], %s15184_s8, %s15184_s8, %s15185_s27  }
  0x20   :  { %s108_s29 = sshll.u32 %s15186_s28, 4  ;;  %s15187_s30 = smov 128   ;;  %s109_s29 = int_to_ptr.vmem [resolvable:$true] %s108_s29 }
  0x21   :  { %s15188_s2 = smov 8   ;;  %s130_s16 = sshll.u32 %s15866_s9, 4  ;;  %s131_s16 = int_to_ptr.hbm [resolvable:$true] %s130_s16 }
  0x22   :  { %114 = dma.hbm_to_vmem [thread:$0]  %s107_s3, 8192, %s109_s29, [#allocation11], %s15187_s30, %s15187_s30, %s15188_s2  }
  0x23   :  { %s15189_s17 = smov [#allocation15]   ;;  %s154_s19 = sshll.u32 %s15868_s11, 4  ;;  %s155_s19 = int_to_ptr.hbm [resolvable:$true] %s154_s19 }
  0x24   :  { %s132_s18 = sshll.u32 %s15189_s17, 4  ;;  %s15190_s4 = smov 64   ;;  %s133_s18 = int_to_ptr.vmem [resolvable:$true] %s132_s18 }
  0x25   :  { %s15191_s20 = smov 4   ;;  %s15192_s21 = smov [#allocation18]  }
  0x26   :  { %138 = dma.hbm_to_vmem [thread:$0]  %s131_s16, 2048, %s133_s18, [#allocation14], %s15190_s4, %s15190_s4, %s15191_s20  }
  0x27   :  { %s156_s22 = sshll.u32 %s15192_s21, 4  ;;  %s178_s6 = sshll.u32 %s15870_s13, 4  ;;  %s157_s22 = int_to_ptr.vmem [resolvable:$true] %s156_s22  ;;  %s179_s6 = int_to_ptr.hbm [resolvable:$true] %s178_s6 }
  0x28   :  { %162 = dma.hbm_to_vmem [thread:$0]  %s155_s19, 1024, %s157_s22, [#allocation17], %s15190_s4, %s15190_s4, %s15191_s20  }
  0x29   :  { %s192_s25 = sshll.u32 %s15871_s14, 4  ;;  %s15193_s26 = smov [#allocation21]   ;;  %s193_s25 = int_to_ptr.hbm [resolvable:$true] %s192_s25 }
  0x2a   :  { %s180_s3 = sshll.u32 %s15193_s26, 4  ;;  %s15194_s11 = smov [#allocation22]   ;;  %s181_s3 = int_to_ptr.vmem [resolvable:$true] %s180_s3 }
  0x2b   :  { %186 = dma.hbm_to_vmem [thread:$0]  %s179_s6, 1024, %s181_s3, [#allocation20], %s15190_s4, %s15190_s4, %s15191_s20  }
  0x2c   :  { %s194_s8 = sshll.u32 %s15194_s11, 4  ;;  %s195_s8 = int_to_ptr.vmem [resolvable:$true] %s194_s8 }
  0x2d   :  { %197 = dma.hbm_to_vmem [thread:$0]  %s193_s25, 16, %s195_s8, [#allocation23]  }
  0x2e   :  { %15157 = dma.done.wait [#allocation3], 32768  }
  0x2f   :  { %15158 = vsyncadd [#allocation3], 4294934528 }
  0x30   :  { %15159 = dma.done.wait [#allocation5], 65664  }
  0x31   :  { %15160 = vsyncadd [#allocation5], 4294901632 }
  0x32   :  { %15161 = dma.done.wait [#allocation8], 32896  }
  0x33   :  { %15162 = vsyncadd [#allocation8], 4294934400 }
  0x34   :  { %15163 = dma.done.wait [#allocation11], 8256  }
  0x35   :  { %15164 = vsyncadd [#allocation11], 4294959040 }
  0x36   :  { %15165 = dma.done.wait [#allocation14], 2080  }
  0x37   :  { %15166 = vsyncadd [#allocation14], 4294965216 }
  0x38   :  { %15167 = dma.done.wait [#allocation17], 1040  }
  0x39   :  { %15168 = vsyncadd [#allocation17], 4294966256 }
  0x3a   :  { %15169 = dma.done.wait [#allocation20], 1040  }
  0x3b   :  { %15170 = vsyncadd [#allocation20], 4294966256 }
  0x3c   :  { %15171 = dma.done.wait [#allocation23], 16  }
  0x3d   :  { %15172 = vsyncadd [#allocation23], 4294967280  ;;  %v9414_v0 = vld [vmem:[#allocation2 + $0x1c0] sm:$0xf] }
  0x3e   :  { %v13732_v1 = vld [vmem:[#allocation2 + $0x1dc] sm:$0xf0] }
  0x3f   :  { %v9670_v2 = vld [vmem:[#allocation2 + $0x3c0] sm:$0xf]  ;;  %v9415_v3 = vor.u32 %v13732_v1, %v9414_v0 }
  0x40   :  { %v13796_v4 = vld [vmem:[#allocation2 + $0x3dc] sm:$0xf0] }
  0x41   :  { %v9926_v5 = vld [vmem:[#allocation2 + $0x5c0] sm:$0xf]  ;;  %v9671_v7 = vor.u32 %v13796_v4, %v9670_v2  ;;  %1832 = vmatpush.bf16.msra.mxu0 %v9415_v3 }
  0x42   :  { %v13860_v6 = vld [vmem:[#allocation2 + $0x5dc] sm:$0xf0] }
  0x43   :  { %v9927_v8 = vor.u32 %v13860_v6, %v9926_v5  ;;  %v10182_v9 = vld [vmem:[#allocation2 + $0x7c0] sm:$0xf]  ;;  %1846 = vmatpush.bf16.msra.mxu1 %v9671_v7 }
  0x44   :  { %v13924_v10 = vld [vmem:[#allocation2 + $0x7dc] sm:$0xf0] }
  0x45   :  { %v9382_v11 = vld [vmem:[#allocation2 + $0x180] sm:$0xf]  ;;  %v10183_v12 = vor.u32 %v13924_v10, %v10182_v9  ;;  %1860 = vmatpush.bf16.msra.mxu2 %v9927_v8 }
  0x46   :  { %v13724_v13 = vld [vmem:[#allocation2 + $0x19c] sm:$0xf0] }
  0x47   :  { %v9638_v14 = vld [vmem:[#allocation2 + $0x380] sm:$0xf]  ;;  %v9383_v16 = vor.u32 %v13724_v13, %v9382_v11  ;;  %1874 = vmatpush.bf16.msra.mxu3 %v10183_v12 }
  0x48   :  { %v13788_v15 = vld [vmem:[#allocation2 + $0x39c] sm:$0xf0] }
  0x49   :  { %v9639_v17 = vor.u32 %v13788_v15, %v9638_v14  ;;  %v9894_v18 = vld [vmem:[#allocation2 + $0x580] sm:$0xf]  ;;  %1833 = vmatpush.bf16.msra.mxu0 %v9383_v16 }
  0x4a   :  { %v13852_v19 = vld [vmem:[#allocation2 + $0x59c] sm:$0xf0] }
  0x4b   :  { %v10150_v20 = vld [vmem:[#allocation2 + $0x780] sm:$0xf]  ;;  %v9895_v21 = vor.u32 %v13852_v19, %v9894_v18  ;;  %1847 = vmatpush.bf16.msra.mxu1 %v9639_v17 }
  0x4c   :  { %v13916_v22 = vld [vmem:[#allocation2 + $0x79c] sm:$0xf0] }
  0x4d   :  { %v9350_v23 = vld [vmem:[#allocation2 + $0x140] sm:$0xf]  ;;  %v10151_v25 = vor.u32 %v13916_v22, %v10150_v20  ;;  %1861 = vmatpush.bf16.msra.mxu2 %v9895_v21 }
  0x4e   :  { %v13716_v24 = vld [vmem:[#allocation2 + $0x15c] sm:$0xf0] }
  0x4f   :  { %v9606_v26 = vld [vmem:[#allocation2 + $0x340] sm:$0xf]  ;;  %v9351_v29 = vor.u32 %v13716_v24, %v9350_v23  ;;  %1875 = vmatpush.bf16.msra.mxu3 %v10151_v25 }
  0x50   :  { %v13780_v27 = vld [vmem:[#allocation2 + $0x35c] sm:$0xf0] }
  0x51   :  { %v9862_v28 = vld [vmem:[#allocation2 + $0x540] sm:$0xf]  ;;  %v9607_v33 = vor.u32 %v13780_v27, %v9606_v26  ;;  %1834 = vmatpush.bf16.msra.mxu0 %v9351_v29  ;;  %v9416_v29 = vld [vmem:[#allocation2 + $0x1e0] sm:$0xf0] }
  0x52   :  { %v13844_v30 = vld [vmem:[#allocation2 + $0x55c] sm:$0xf0] }
  0x53   :  { %v10118_v31 = vld [vmem:[#allocation2 + $0x740] sm:$0xf]  ;;  %v9863_v34 = vor.u32 %v13844_v30, %v9862_v28  ;;  %1848 = vmatpush.bf16.msra.mxu1 %v9607_v33  ;;  %v13728_v28 = vld [vmem:[#allocation2 + $0x1c4] sm:$0xf] }
  0x54   :  { %v13908_v32 = vld [vmem:[#allocation2 + $0x75c] sm:$0xf0]  ;;  %v13792_v30 = vld [vmem:[#allocation2 + $0x3c4] sm:$0xf] }
  0x55   :  { %v9318_v35 = vld [vmem:[#allocation2 + $0x100] sm:$0xf]  ;;  %v10119_v38 = vor.u32 %v13908_v32, %v10118_v31  ;;  %1862 = vmatpush.bf16.msra.mxu2 %v9863_v34  ;;  %v9672_v32 = vld [vmem:[#allocation2 + $0x3e0] sm:$0xf0] }
  0x56   :  { %v13708_v36 = vld [vmem:[#allocation2 + $0x11c] sm:$0xf0]  ;;  %v13856_v33 = vld [vmem:[#allocation2 + $0x5c4] sm:$0xf] }
  0x57   :  { %v9574_v37 = vld [vmem:[#allocation2 + $0x300] sm:$0xf]  ;;  %v9319_v44 = vor.u32 %v13708_v36, %v9318_v35  ;;  %1876 = vmatpush.bf16.msra.mxu3 %v10119_v38  ;;  %v9928_v34 = vld [vmem:[#allocation2 + $0x5e0] sm:$0xf0] }
  0x58   :  { %v13772_v39 = vld [vmem:[#allocation2 + $0x31c] sm:$0xf0]  ;;  %v10184_v38 = vld [vmem:[#allocation2 + $0x7e0] sm:$0xf0] }
  0x59   :  { %v9830_v40 = vld [vmem:[#allocation2 + $0x500] sm:$0xf]  ;;  %v9575_v45 = vor.u32 %v13772_v39, %v9574_v37  ;;  %1835 = vmatpush.bf16.msra.mxu0 %v9319_v44  ;;  %v13920_v37 = vld [vmem:[#allocation2 + $0x7c4] sm:$0xf] }
  0x5a   :  { %v13836_v41 = vld [vmem:[#allocation2 + $0x51c] sm:$0xf0]  ;;  %v9384_v44 = vld [vmem:[#allocation2 + $0x1a0] sm:$0xf0] }
  0x5b   :  { %v10086_v42 = vld [vmem:[#allocation2 + $0x700] sm:$0xf]  ;;  %v9831_v46 = vor.u32 %v13836_v41, %v9830_v40  ;;  %1849 = vmatpush.bf16.msra.mxu1 %v9575_v45  ;;  %v9419_v40 = vor.u32 %v13728_v28, %v9416_v29  ;;  %v9675_v41 = vor.u32 %v13792_v30, %v9672_v32  ;;  %v13784_v45 = vld [vmem:[#allocation2 + $0x384] sm:$0xf]  ;;  %v9176_v28 = vld [vmem:[%s15857_s0 + $0x10] sm:$0xf0] }
  0x5c   :  { %v13900_v43 = vld [vmem:[#allocation2 + $0x71c] sm:$0xf0]  ;;  %v9544_v30 = vld [vmem:[#allocation2 + $0x2e0] sm:$0xf0] }
  0x5d   :  { %v9286_v47 = vld [vmem:[#allocation2 + $0xc0] sm:$0xf]  ;;  %v10087_v50 = vor.u32 %v13900_v43, %v10086_v42  ;;  %1863 = vmatpush.bf16.msra.mxu2 %v9831_v46  ;;  %v9931_v42 = vor.u32 %v13856_v33, %v9928_v34  ;;  %v13720_v43 = vld [vmem:[#allocation2 + $0x184] sm:$0xf]  ;;  %v10187_v46 = vor.u32 %v13920_v37, %v10184_v38 }
  0x5e   :  { %v13700_v48 = vld [vmem:[#allocation2 + $0xdc] sm:$0xf0]  ;;  %v9800_v32 = vld [vmem:[#allocation2 + $0x4e0] sm:$0xf0] }
  0x5f   :  { %v9542_v49 = vld [vmem:[#allocation2 + $0x2c0] sm:$0xf]  ;;  %v9287_v56 = vor.u32 %v13700_v48, %v9286_v47  ;;  %1877 = vmatpush.bf16.msra.mxu3 %v10087_v50  ;;  %v9640_v47 = vld [vmem:[#allocation2 + $0x3a0] sm:$0xf0] }
  0x60   :  { %v13764_v51 = vld [vmem:[#allocation2 + $0x2dc] sm:$0xf0]  ;;  %v13848_v48 = vld [vmem:[#allocation2 + $0x584] sm:$0xf] }
  0x61   :  { %v9798_v52 = vld [vmem:[#allocation2 + $0x4c0] sm:$0xf]  ;;  %v9543_v57 = vor.u32 %v13764_v51, %v9542_v49  ;;  %1836 = vmatpush.bf16.msra.mxu0 %v9287_v56  ;;  %v9896_v49 = vld [vmem:[#allocation2 + $0x5a0] sm:$0xf0] }
  0x62   :  { %v13828_v53 = vld [vmem:[#allocation2 + $0x4dc] sm:$0xf0]  ;;  %v13912_v50 = vld [vmem:[#allocation2 + $0x784] sm:$0xf] }
  0x63   :  { %v10054_v54 = vld [vmem:[#allocation2 + $0x6c0] sm:$0xf]  ;;  %v9799_v58 = vor.u32 %v13828_v53, %v9798_v52  ;;  %1850 = vmatpush.bf16.msra.mxu1 %v9543_v57  ;;  %v10152_v51 = vld [vmem:[#allocation2 + $0x7a0] sm:$0xf0]  ;;  %v9387_v52 = vor.u32 %v13720_v43, %v9384_v44 }
  0x64   :  { %v13892_v55 = vld [vmem:[#allocation2 + $0x6dc] sm:$0xf0]  ;;  %v13712_v53 = vld [vmem:[#allocation2 + $0x144] sm:$0xf] }
  0x65   :  { %v9254_v59 = vld [vmem:[#allocation2 + $0x80] sm:$0xf]  ;;  %v10055_v62 = vor.u32 %v13892_v55, %v10054_v54  ;;  %1864 = vmatpush.bf16.msra.mxu2 %v9799_v58  ;;  %v9643_v54 = vor.u32 %v13784_v45, %v9640_v47  ;;  %v9899_v55 = vor.u32 %v13848_v48, %v9896_v49  ;;  %v9352_v56 = vld [vmem:[#allocation2 + $0x160] sm:$0xf0] }
  0x66   :  { %v13692_v60 = vld [vmem:[#allocation2 + $0x9c] sm:$0xf0]  ;;  %v13776_v57 = vld [vmem:[#allocation2 + $0x344] sm:$0xf] }
  0x67   :  { %v9510_v61 = vld [vmem:[#allocation2 + $0x280] sm:$0xf]  ;;  %v9255_v4 = vor.u32 %v13692_v60, %v9254_v59  ;;  %1878 = vmatpush.bf16.msra.mxu3 %v10055_v62  ;;  %v9608_v58 = vld [vmem:[#allocation2 + $0x360] sm:$0xf0]  ;;  %v10155_v59 = vor.u32 %v13912_v50, %v10152_v51 }
  0x68   :  { %v13756_v63 = vld [vmem:[#allocation2 + $0x29c] sm:$0xf0]  ;;  %v13840_v60 = vld [vmem:[#allocation2 + $0x544] sm:$0xf] }
  0x69   :  { %v9766_v0 = vld [vmem:[#allocation2 + $0x480] sm:$0xf]  ;;  %v9511_v5 = vor.u32 %v13756_v63, %v9510_v61  ;;  %1837 = vmatpush.bf16.msra.mxu0 %v9255_v4  ;;  %v9864_v61 = vld [vmem:[#allocation2 + $0x560] sm:$0xf0] }
  0x6a   :  { %v13820_v1 = vld [vmem:[#allocation2 + $0x49c] sm:$0xf0]  ;;  %v13904_v62 = vld [vmem:[#allocation2 + $0x744] sm:$0xf] }
  0x6b   :  { %v10022_v2 = vld [vmem:[#allocation2 + $0x680] sm:$0xf]  ;;  %v9767_v6 = vor.u32 %v13820_v1, %v9766_v0  ;;  %1851 = vmatpush.bf16.msra.mxu1 %v9511_v5  ;;  %v10120_v63 = vld [vmem:[#allocation2 + $0x760] sm:$0xf0]  ;;  %v9182_v5 = vld [vmem:[%s15857_s0 + $0x8] sm:$0xf] }
  0x6c   :  { %v13884_v3 = vld [vmem:[#allocation2 + $0x69c] sm:$0xf0]  ;;  %v13704_v0 = vld [vmem:[#allocation2 + $0x104] sm:$0xf] }
  0x6d   :  { %v9222_v7 = vld [vmem:[#allocation2 + $0x40] sm:$0xf]  ;;  %v10023_v10 = vor.u32 %v13884_v3, %v10022_v2  ;;  %1865 = vmatpush.bf16.msra.mxu2 %v9767_v6  ;;  %v9320_v1 = vld [vmem:[#allocation2 + $0x120] sm:$0xf0]  ;;  %v9355_v2 = vor.u32 %v13712_v53, %v9352_v56  ;;  %v13671_v6 = vld [vmem:[%s15857_s0 + $0x14] sm:$0xf0] }
  0x6e   :  { %v13684_v8 = vld [vmem:[#allocation2 + $0x5c] sm:$0xf0]  ;;  %v13768_v3 = vld [vmem:[#allocation2 + $0x304] sm:$0xf] }
  0x6f   :  { %v9478_v9 = vld [vmem:[#allocation2 + $0x240] sm:$0xf]  ;;  %v9223_v16 = vor.u32 %v13684_v8, %v9222_v7  ;;  %1879 = vmatpush.bf16.msra.mxu3 %v10023_v10  ;;  %v9576_v4 = vld [vmem:[#allocation2 + $0x320] sm:$0xf0]  ;;  %v9611_v7 = vor.u32 %v13776_v57, %v9608_v58  ;;  %v9867_v8 = vor.u32 %v13840_v60, %v9864_v61 }
  0x70   :  { %v13748_v11 = vld [vmem:[#allocation2 + $0x25c] sm:$0xf0]  ;;  %v13888_v34 = vld [vmem:[#allocation2 + $0x6c4] sm:$0xf] }
  0x71   :  { %v9734_v12 = vld [vmem:[#allocation2 + $0x440] sm:$0xf]  ;;  %v9479_v19 = vor.u32 %v13748_v11, %v9478_v9  ;;  %1838 = vmatpush.bf16.msra.mxu0 %v9223_v16  ;;  %v15323_v9 = vor.u32 %v13671_v6, %v9182_v5  ;;  %v13670_v11 = vld [vmem:[%s15857_s0 + $0xc] sm:$0xf0]  ;;  %v9512_v43 = vld [vmem:[#allocation2 + $0x2a0] sm:$0xf0] }
  0x72   :  { %v13812_v13 = vld [vmem:[#allocation2 + $0x45c] sm:$0xf0]  ;;  %v13816_v44 = vld [vmem:[#allocation2 + $0x484] sm:$0xf] }
  0x73   :  { %v9990_v14 = vld [vmem:[#allocation2 + $0x640] sm:$0xf]  ;;  %v9735_v20 = vor.u32 %v13812_v13, %v9734_v12  ;;  %1852 = vmatpush.bf16.msra.mxu1 %v9479_v19  ;;  %v13669_v12 = vld [vmem:[%s15857_s0 + $0xc] sm:$0xf]  ;;  %v10123_v13 = vor.u32 %v13904_v62, %v10120_v63  ;;  %v10088_v19 = vld [vmem:[#allocation2 + $0x720] sm:$0xf0] }
  0x74   :  { %v13876_v15 = vld [vmem:[#allocation2 + $0x65c] sm:$0xf0]  ;;  %v9768_v45 = vld [vmem:[#allocation2 + $0x4a0] sm:$0xf0] }
  0x75   :  { %v9190_v17 = vld [vmem:[#allocation2] sm:$0xf]  ;;  %v9991_v24 = vor.u32 %v13876_v15, %v9990_v14  ;;  %1866 = vmatpush.bf16.msra.mxu2 %v9735_v20  ;;  %v13832_v14 = vld [vmem:[#allocation2 + $0x504] sm:$0xf]  ;;  %v9771_v50 = vor.u32 %v13816_v44, %v9768_v45  ;;  %v9870_v44 = vld [vmem:[#allocation2 + $0x548] sm:$0xf] }
  0x76   :  { %v13676_v18 = vld [vmem:[#allocation2 + $0x1c] sm:$0xf0]  ;;  %v9832_v15 = vld [vmem:[#allocation2 + $0x520] sm:$0xf0]  ;;  %v13845_v45 = vld [vmem:[#allocation2 + $0x564] sm:$0xf0] }
  0x77   :  { %v9446_v21 = vld [vmem:[#allocation2 + $0x200] sm:$0xf]  ;;  %v9191_v31 = vor.u32 %v13676_v18, %v9190_v17  ;;  %1880 = vmatpush.bf16.msra.mxu3 %v9991_v24  ;;  %v9184_v17 = vld [vmem:[%s15857_s0 + $0x18] sm:$0xf0]  ;;  %v13896_v18 = vld [vmem:[#allocation2 + $0x704] sm:$0xf]  ;;  %v9579_v24 = vor.u32 %v13768_v3, %v9576_v4 }
  0x78   :  { %v13740_v22 = vld [vmem:[#allocation2 + $0x21c] sm:$0xf0]  ;;  %v15340_v20 = vor.u32 %v13669_v12, %v9184_v17  ;;  %v10091_v29 = vor.u32 %v13896_v18, %v10088_v19  ;;  %v10024_v47 = vld [vmem:[#allocation2 + $0x6a0] sm:$0xf0]  ;;  %v10190_v19 = vld [vmem:[#allocation2 + $0x7c8] sm:$0xf] }
  0x79   :  { %v9702_v23 = vld [vmem:[#allocation2 + $0x400] sm:$0xf]  ;;  %v9447_v35 = vor.u32 %v13740_v22, %v9446_v21  ;;  %1839 = vmatpush.bf16.msra.mxu0 %v9191_v31  ;;  %v9323_v21 = vor.u32 %v13704_v0, %v9320_v1  ;;  %v13696_v22 = vld [vmem:[#allocation2 + $0xc4] sm:$0xf] }
  0x7a   :  { %v13804_v25 = vld [vmem:[#allocation2 + $0x41c] sm:$0xf0]  ;;  %v13824_v31 = vld [vmem:[#allocation2 + $0x4c4] sm:$0xf] }
  0x7b   :  { %v9958_v26 = vld [vmem:[#allocation2 + $0x600] sm:$0xf]  ;;  %v9703_v36 = vor.u32 %v13804_v25, %v9702_v23  ;;  %1853 = vmatpush.bf16.msra.mxu1 %v9447_v35  ;;  %v9288_v23 = vld [vmem:[#allocation2 + $0xe0] sm:$0xf0]  ;;  %v9835_v25 = vor.u32 %v13832_v14, %v9832_v15  ;;  %v9803_v38 = vor.u32 %v13824_v31, %v9800_v32  ;;  %v9934_v14 = vld [vmem:[#allocation2 + $0x5c8] sm:$0xf] }
  0x7c   :  { %v13868_v27 = vld [vmem:[#allocation2 + $0x61c] sm:$0xf0]  ;;  %v10056_v35 = vld [vmem:[#allocation2 + $0x6e0] sm:$0xf0]  ;;  %v13861_v15 = vld [vmem:[#allocation2 + $0x5e4] sm:$0xf0] }
  0x7d   :  { %v9959_v39 = vor.u32 %v13868_v27, %v9958_v26  ;;  %1867 = vmatpush.bf16.msra.mxu2 %v9703_v36  ;;  %1888 = vmatpush.bf16.msrb.mxu0 %v9419_v40  ;;  %v9174_v10 = vld [vmem:[%s15857_s0] sm:$0xf]  ;;  %v13760_v26 = vld [vmem:[#allocation2 + $0x2c4] sm:$0xf]  ;;  %v9291_v36 = vor.u32 %v13696_v22, %v9288_v23  ;;  %v9902_v31 = vld [vmem:[#allocation2 + $0x588] sm:$0xf] }
  0x7e   :  { %v15334_v16 = vor.u32 %v13670_v11, %v9174_v10  ;;  %v13668_v27 = vld [vmem:[%s15857_s0 + $0x4] sm:$0xf]  ;;  %v9547_v37 = vor.u32 %v13760_v26, %v9544_v30  ;;  %v13733_v10 = vld [vmem:[#allocation2 + $0x1e4] sm:$0xf0] }
  0x7f   :  { %1881 = vmatpush.bf16.msra.mxu3 %v9959_v39  ;;  %1902 = vmatpush.bf16.msrb.mxu1 %v9675_v41  ;;  %v15349_v33 = vor.u32 %v13668_v27, %v9176_v28  ;;  %v13688_v39 = vld [vmem:[#allocation2 + $0x84] sm:$0xf]  ;;  %v9678_v11 = vld [vmem:[#allocation2 + $0x3c8] sm:$0xf] }
  0x80   :  { %1868 = vmatmul.bf16.vlgmr.msra.gmra.mxu2 %v15323_v9  ;;  %1840 = vmatmul.bf16.vlgmr.msra.gmra.mxu0 %v15334_v16  ;;  %v9256_v40 = vld [vmem:[#allocation2 + $0xa0] sm:$0xf0]  ;;  %v9390_v26 = vld [vmem:[#allocation2 + $0x188] sm:$0xf] }
  0x81   :  { %1916 = vmatpush.bf16.msrb.mxu2 %v9931_v42  ;;  %1889 = vmatpush.bf16.msrb.mxu0 %v9387_v52  ;;  %v13752_v41 = vld [vmem:[#allocation2 + $0x284] sm:$0xf]  ;;  %v10059_v42 = vor.u32 %v13888_v34, %v10056_v35  ;;  %v9259_v48 = vor.u32 %v13688_v39, %v9256_v40  ;;  %v13725_v27 = vld [vmem:[#allocation2 + $0x1a4] sm:$0xf0] }
  0x82   :  { %1882 = vmatmul.bf16.vlgmr.msra.gmra.mxu3 %v15340_v20  ;;  %1854 = vmatmul.bf16.vlgmr.msra.gmra.mxu1 %v15349_v33  ;;  %v9515_v49 = vor.u32 %v13752_v41, %v9512_v43  ;;  %v13680_v51 = vld [vmem:[#allocation2 + $0x44] sm:$0xf]  ;;  %v9646_v28 = vld [vmem:[#allocation2 + $0x388] sm:$0xf] }
  0x83   :  { %1930 = vmatpush.bf16.msrb.mxu3 %v10187_v46  ;;  %1903 = vmatpush.bf16.msrb.mxu1 %v9643_v54  ;;  %v13880_v46 = vld [vmem:[#allocation2 + $0x684] sm:$0xf]  ;;  %v13789_v30 = vld [vmem:[#allocation2 + $0x3a4] sm:$0xf0] }
  0x84   :  { %v9224_v52 = vld [vmem:[#allocation2 + $0x60] sm:$0xf0]  ;;  %v10027_v54 = vor.u32 %v13880_v46, %v10024_v47  ;;  %v13853_v32 = vld [vmem:[#allocation2 + $0x5a4] sm:$0xf0] }
  0x85   :  { %1917 = vmatpush.bf16.msrb.mxu2 %v9899_v55  ;;  %1890 = vmatpush.bf16.msrb.mxu0 %v9355_v2  ;;  %v13744_v53 = vld [vmem:[#allocation2 + $0x244] sm:$0xf]  ;;  %v9227_v60 = vor.u32 %v13680_v51, %v9224_v52  ;;  %v10158_v34 = vld [vmem:[#allocation2 + $0x788] sm:$0xf] }
  0x86   :  { %v9480_v55 = vld [vmem:[#allocation2 + $0x260] sm:$0xf0]  ;;  %v13917_v35 = vld [vmem:[#allocation2 + $0x7a4] sm:$0xf0] }
  0x87   :  { %1931 = vmatpush.bf16.msrb.mxu3 %v10155_v59  ;;  %1904 = vmatpush.bf16.msrb.mxu1 %v9611_v7  ;;  %v13808_v56 = vld [vmem:[#allocation2 + $0x444] sm:$0xf]  ;;  %v9483_v63 = vor.u32 %v13744_v53, %v9480_v55  ;;  %v9358_v39 = vld [vmem:[#allocation2 + $0x148] sm:$0xf] }
  0x88   :  { %v9736_v57 = vld [vmem:[#allocation2 + $0x460] sm:$0xf0]  ;;  %v13717_v40 = vld [vmem:[#allocation2 + $0x164] sm:$0xf0] }
  0x89   :  { %1918 = vmatpush.bf16.msrb.mxu2 %v9867_v8  ;;  %1891 = vmatpush.bf16.msrb.mxu0 %v9323_v21  ;;  %v13872_v58 = vld [vmem:[#allocation2 + $0x644] sm:$0xf]  ;;  %v9739_v0 = vor.u32 %v13808_v56, %v9736_v57  ;;  %v9422_v8 = vld [vmem:[#allocation2 + $0x1c8] sm:$0xf] }
  0x8a   :  { %v9992_v59 = vld [vmem:[#allocation2 + $0x660] sm:$0xf0]  ;;  %v13925_v21 = vld [vmem:[#allocation2 + $0x7e4] sm:$0xf0]  ;;  %v9423_v23 = vor.u32 %v13733_v10, %v9422_v8 }
  0x8b   :  { %1932 = vmatpush.bf16.msrb.mxu3 %v10123_v13  ;;  %1905 = vmatpush.bf16.msrb.mxu1 %v9579_v24  ;;  %v13672_v61 = vld [vmem:[#allocation2 + $0x4] sm:$0xf]  ;;  %v9995_v4 = vor.u32 %v13872_v58, %v9992_v59  ;;  %v13797_v13 = vld [vmem:[#allocation2 + $0x3e4] sm:$0xf0] }
  0x8c   :  { %v9192_v62 = vld [vmem:[#allocation2 + $0x20] sm:$0xf0]  ;;  %v9679_v24 = vor.u32 %v13797_v13, %v9678_v11  ;;  %v9614_v41 = vld [vmem:[#allocation2 + $0x348] sm:$0xf] }
  0x8d   :  { %1919 = vmatpush.bf16.msrb.mxu2 %v9835_v25  ;;  %1892 = vmatpush.bf16.msrb.mxu0 %v9291_v36  ;;  %v13736_v1 = vld [vmem:[#allocation2 + $0x204] sm:$0xf]  ;;  %v9195_v12 = vor.u32 %v13672_v61, %v9192_v62  ;;  %v9935_v25 = vor.u32 %v13861_v15, %v9934_v14  ;;  %v9391_v36 = vor.u32 %v13725_v27, %v9390_v26  ;;  %v13781_v43 = vld [vmem:[#allocation2 + $0x364] sm:$0xf0] }
  0x8e   :  { %v9448_v2 = vld [vmem:[#allocation2 + $0x220] sm:$0xf0]  ;;  %v10126_v46 = vld [vmem:[#allocation2 + $0x748] sm:$0xf] }
  0x8f   :  { %1933 = vmatpush.bf16.msrb.mxu3 %v10091_v29  ;;  %1906 = vmatpush.bf16.msrb.mxu1 %v9547_v37  ;;  %v13800_v3 = vld [vmem:[#allocation2 + $0x404] sm:$0xf]  ;;  %v9451_v17 = vor.u32 %v13736_v1, %v9448_v2  ;;  %v10191_v29 = vor.u32 %v13925_v21, %v10190_v19  ;;  %v9647_v37 = vor.u32 %v13789_v30, %v9646_v28  ;;  %v13909_v47 = vld [vmem:[#allocation2 + $0x764] sm:$0xf0] }
  0x90   :  { %v9704_v5 = vld [vmem:[#allocation2 + $0x420] sm:$0xf0]  ;;  %v9326_v51 = vld [vmem:[#allocation2 + $0x108] sm:$0xf] }
  0x91   :  { %1920 = vmatpush.bf16.msrb.mxu2 %v9803_v38  ;;  %1893 = vmatpush.bf16.msrb.mxu0 %v9259_v48  ;;  %v13864_v6 = vld [vmem:[#allocation2 + $0x604] sm:$0xf]  ;;  %v9707_v18 = vor.u32 %v13800_v3, %v9704_v5  ;;  %v9903_v38 = vor.u32 %v13853_v32, %v9902_v31  ;;  %v9359_v48 = vor.u32 %v13717_v40, %v9358_v39  ;;  %v13709_v52 = vld [vmem:[#allocation2 + $0x124] sm:$0xf0] }
  0x92   :  { %v9960_v7 = vld [vmem:[#allocation2 + $0x620] sm:$0xf0]  ;;  %v9582_v53 = vld [vmem:[#allocation2 + $0x308] sm:$0xf] }
  0x93   :  { %1934 = vmatpush.bf16.msrb.mxu3 %v10059_v42  ;;  %1907 = vmatpush.bf16.msrb.mxu1 %v9515_v49  ;;  %v9963_v22 = vor.u32 %v13864_v6, %v9960_v7  ;;  %v10159_v42 = vor.u32 %v13917_v35, %v10158_v34  ;;  %v9615_v49 = vor.u32 %v13781_v43, %v9614_v41  ;;  %v13773_v55 = vld [vmem:[#allocation2 + $0x324] sm:$0xf0] }
  0x94   :  { %v9838_v56 = vld [vmem:[#allocation2 + $0x508] sm:$0xf]  ;;  %v9583_v61 = vor.u32 %v13773_v55, %v9582_v53  ;;  %v13857_v53 = vld [vmem:[#allocation2 + $0x5cc] sm:$0xf] }
  0x95   :  { %1921 = vmatpush.bf16.msrb.mxu2 %v9771_v50  ;;  %1894 = vmatpush.bf16.msrb.mxu0 %v9227_v60  ;;  %v9871_v50 = vor.u32 %v13845_v45, %v9870_v44  ;;  %v13837_v57 = vld [vmem:[#allocation2 + $0x524] sm:$0xf0]  ;;  %v9327_v60 = vor.u32 %v13709_v52, %v9326_v51  ;;  %v9680_v52 = vld [vmem:[#allocation2 + $0x3e8] sm:$0xf0] }
  0x96   :  { %v10094_v58 = vld [vmem:[#allocation2 + $0x708] sm:$0xf]  ;;  %v9839_v62 = vor.u32 %v13837_v57, %v9838_v56  ;;  %v13921_v57 = vld [vmem:[#allocation2 + $0x7cc] sm:$0xf] }
  0x97   :  { %1935 = vmatpush.bf16.msrb.mxu3 %v10027_v54  ;;  %1908 = vmatpush.bf16.msrb.mxu1 %v9483_v63  ;;  %v10127_v54 = vor.u32 %v13909_v47, %v10126_v46  ;;  %v13901_v59 = vld [vmem:[#allocation2 + $0x724] sm:$0xf0] }
  0x98   :  { %v9294_v63 = vld [vmem:[#allocation2 + $0xc8] sm:$0xf]  ;;  %v10095_v2 = vor.u32 %v13901_v59, %v10094_v58  ;;  %v10192_v58 = vld [vmem:[#allocation2 + $0x7e8] sm:$0xf0] }
  0x99   :  { %1922 = vmatpush.bf16.msrb.mxu2 %v9739_v0  ;;  %1895 = vmatpush.bf16.msrb.mxu0 %v9195_v12  ;;  %v13701_v0 = vld [vmem:[#allocation2 + $0xe4] sm:$0xf0] }
  0x9a   :  { %v9550_v1 = vld [vmem:[#allocation2 + $0x2c8] sm:$0xf]  ;;  %v9295_v8 = vor.u32 %v13701_v0, %v9294_v63  ;;  %v13721_v63 = vld [vmem:[#allocation2 + $0x18c] sm:$0xf] }
  0x9b   :  { %1936 = vmatpush.bf16.msrb.mxu3 %v9995_v4  ;;  %1909 = vmatpush.bf16.msrb.mxu1 %v9451_v17  ;;  %v13765_v3 = vld [vmem:[#allocation2 + $0x2e4] sm:$0xf0]  ;;  %v9392_v0 = vld [vmem:[#allocation2 + $0x1a8] sm:$0xf0] }
  0x9c   :  { %1896 = vmatmul.bf16.vlgmr.msrb.gmra.mxu0 %v15334_v16  ;;  %v9806_v4 = vld [vmem:[#allocation2 + $0x4c8] sm:$0xf]  ;;  %v9551_v10 = vor.u32 %v13765_v3, %v9550_v1  ;;  %v13785_v1 = vld [vmem:[#allocation2 + $0x38c] sm:$0xf] }
  0x9d   :  { %1923 = vmatpush.bf16.msrb.mxu2 %v9707_v18  ;;  %1944 = vmatpush.bf16.msra.mxu0 %v9423_v23  ;;  %v13829_v5 = vld [vmem:[#allocation2 + $0x4e4] sm:$0xf0]  ;;  %v9648_v3 = vld [vmem:[#allocation2 + $0x3a8] sm:$0xf0] }
  0x9e   :  { %1910 = vmatmul.bf16.vlgmr.msrb.gmra.mxu1 %v15349_v33  ;;  %v10062_v6 = vld [vmem:[#allocation2 + $0x6c8] sm:$0xf]  ;;  %v9807_v11 = vor.u32 %v13829_v5, %v9806_v4  ;;  %v13849_v4 = vld [vmem:[#allocation2 + $0x58c] sm:$0xf] }
  0x9f   :  { %1937 = vmatpush.bf16.msrb.mxu3 %v9963_v22  ;;  %1958 = vmatpush.bf16.msra.mxu1 %v9679_v24  ;;  %v13893_v7 = vld [vmem:[#allocation2 + $0x6e4] sm:$0xf0]  ;;  %v9904_v5 = vld [vmem:[#allocation2 + $0x5a8] sm:$0xf0] }
  0xa0   :  { %1924 = vmatmul.bf16.vlgmr.msrb.gmra.mxu2 %v15323_v9  ;;  %v9262_v12 = vld [vmem:[#allocation2 + $0x88] sm:$0xf]  ;;  %v10063_v15 = vor.u32 %v13893_v7, %v10062_v6  ;;  %v13913_v6 = vld [vmem:[#allocation2 + $0x78c] sm:$0xf] }
  0xa1   :  { %1972 = vmatpush.bf16.msra.mxu2 %v9935_v25  ;;  %1945 = vmatpush.bf16.msra.mxu0 %v9391_v36  ;;  %v13693_v13 = vld [vmem:[#allocation2 + $0xa4] sm:$0xf0]  ;;  %v10160_v7 = vld [vmem:[#allocation2 + $0x7a8] sm:$0xf0] }
  0xa2   :  { %1938 = vmatmul.bf16.vlgmr.msrb.gmra.mxu3 %v15340_v20  ;;  %v9518_v14 = vld [vmem:[#allocation2 + $0x288] sm:$0xf]  ;;  %v9263_v23 = vor.u32 %v13693_v13, %v9262_v12  ;;  %v13713_v12 = vld [vmem:[#allocation2 + $0x14c] sm:$0xf] }
  0xa3   :  { %1986 = vmatpush.bf16.msra.mxu3 %v10191_v29  ;;  %1959 = vmatpush.bf16.msra.mxu1 %v9647_v37  ;;  %v13757_v17 = vld [vmem:[#allocation2 + $0x2a4] sm:$0xf0]  ;;  %v9360_v13 = vld [vmem:[#allocation2 + $0x168] sm:$0xf0] }
  0xa4   :  { %v9774_v18 = vld [vmem:[#allocation2 + $0x488] sm:$0xf]  ;;  %v9519_v25 = vor.u32 %v13757_v17, %v9518_v14  ;;  %v13777_v14 = vld [vmem:[#allocation2 + $0x34c] sm:$0xf] }
  0xa5   :  { %1973 = vmatpush.bf16.msra.mxu2 %v9903_v38  ;;  %1946 = vmatpush.bf16.msra.mxu0 %v9359_v48  ;;  %v13821_v19 = vld [vmem:[#allocation2 + $0x4a4] sm:$0xf0]  ;;  %v13729_v48 = vld [vmem:[#allocation2 + $0x1cc] sm:$0xf] }
  0xa6   :  { %v10030_v21 = vld [vmem:[#allocation2 + $0x688] sm:$0xf]  ;;  %v9775_v26 = vor.u32 %v13821_v19, %v9774_v18  ;;  %v9616_v17 = vld [vmem:[#allocation2 + $0x368] sm:$0xf0] }
  0xa7   :  { %1987 = vmatpush.bf16.msra.mxu3 %v10159_v42  ;;  %1960 = vmatpush.bf16.msra.mxu1 %v9615_v49  ;;  %v13885_v22 = vld [vmem:[#allocation2 + $0x6a4] sm:$0xf0]  ;;  %v9424_v49 = vld [vmem:[#allocation2 + $0x1e8] sm:$0xf0] }
  0xa8   :  { %v9230_v24 = vld [vmem:[#allocation2 + $0x48] sm:$0xf]  ;;  %v10031_v30 = vor.u32 %v13885_v22, %v10030_v21  ;;  %v13841_v18 = vld [vmem:[#allocation2 + $0x54c] sm:$0xf] }
  0xa9   :  { %1974 = vmatpush.bf16.msra.mxu2 %v9871_v50  ;;  %1947 = vmatpush.bf16.msra.mxu0 %v9327_v60  ;;  %v13685_v27 = vld [vmem:[#allocation2 + $0x64] sm:$0xf0]  ;;  %v13793_v50 = vld [vmem:[#allocation2 + $0x3cc] sm:$0xf]  ;;  %v9427_v60 = vor.u32 %v13729_v48, %v9424_v49 }
  0xaa   :  { %v9486_v28 = vld [vmem:[#allocation2 + $0x248] sm:$0xf]  ;;  %v9231_v37 = vor.u32 %v13685_v27, %v9230_v24  ;;  %v9872_v19 = vld [vmem:[#allocation2 + $0x568] sm:$0xf0]  ;;  %v9619_v24 = vor.u32 %v13777_v14, %v9616_v17 }
  0xab   :  { %1988 = vmatpush.bf16.msra.mxu3 %v10127_v54  ;;  %1961 = vmatpush.bf16.msra.mxu1 %v9583_v61  ;;  %v13749_v29 = vld [vmem:[#allocation2 + $0x264] sm:$0xf0]  ;;  %v9936_v54 = vld [vmem:[#allocation2 + $0x5e8] sm:$0xf0]  ;;  %v9683_v61 = vor.u32 %v13793_v50, %v9680_v52 }
  0xac   :  { %v9742_v31 = vld [vmem:[#allocation2 + $0x448] sm:$0xf]  ;;  %v9487_v40 = vor.u32 %v13749_v29, %v9486_v28  ;;  %v13905_v21 = vld [vmem:[#allocation2 + $0x74c] sm:$0xf] }
  0xad   :  { %1975 = vmatpush.bf16.msra.mxu2 %v9839_v62  ;;  %1948 = vmatpush.bf16.msra.mxu0 %v9295_v8  ;;  %v13813_v32 = vld [vmem:[#allocation2 + $0x464] sm:$0xf0]  ;;  %v9939_v62 = vor.u32 %v13857_v53, %v9936_v54  ;;  %v9395_v8 = vor.u32 %v13721_v63, %v9392_v0  ;;  %v10128_v22 = vld [vmem:[#allocation2 + $0x768] sm:$0xf0] }
  0xae   :  { %v9998_v34 = vld [vmem:[#allocation2 + $0x648] sm:$0xf]  ;;  %v9743_v41 = vor.u32 %v13813_v32, %v9742_v31  ;;  %v9328_v27 = vld [vmem:[#allocation2 + $0x128] sm:$0xf0]  ;;  %v10131_v29 = vor.u32 %v13905_v21, %v10128_v22 }
  0xaf   :  { %1989 = vmatpush.bf16.msra.mxu3 %v10095_v2  ;;  %1962 = vmatpush.bf16.msra.mxu1 %v9551_v10  ;;  %v13877_v35 = vld [vmem:[#allocation2 + $0x664] sm:$0xf0]  ;;  %v10195_v2 = vor.u32 %v13921_v57, %v10192_v58  ;;  %v9651_v10 = vor.u32 %v13785_v1, %v9648_v3  ;;  %v13769_v28 = vld [vmem:[#allocation2 + $0x30c] sm:$0xf] }
  0xb0   :  { %v9198_v36 = vld [vmem:[#allocation2 + $0x8] sm:$0xf]  ;;  %v9999_v45 = vor.u32 %v13877_v35, %v9998_v34  ;;  %v13833_v31 = vld [vmem:[#allocation2 + $0x50c] sm:$0xf] }
  0xb1   :  { %1976 = vmatpush.bf16.msra.mxu2 %v9807_v11  ;;  %1949 = vmatpush.bf16.msra.mxu0 %v9263_v23  ;;  %v13677_v38 = vld [vmem:[#allocation2 + $0x24] sm:$0xf0]  ;;  %v9907_v11 = vor.u32 %v13849_v4, %v9904_v5  ;;  %v9363_v23 = vor.u32 %v13713_v12, %v9360_v13  ;;  %v9840_v32 = vld [vmem:[#allocation2 + $0x528] sm:$0xf0] }
  0xb2   :  { %v9454_v39 = vld [vmem:[#allocation2 + $0x208] sm:$0xf]  ;;  %v9199_v51 = vor.u32 %v13677_v38, %v9198_v36  ;;  %v13897_v34 = vld [vmem:[#allocation2 + $0x70c] sm:$0xf]  ;;  %v9843_v38 = vor.u32 %v13833_v31, %v9840_v32  ;;  %v10198_v32 = vld [vmem:[#allocation2 + $0x7d0] sm:$0xf] }
  0xb3   :  { %1990 = vmatpush.bf16.msra.mxu3 %v10063_v15  ;;  %1963 = vmatpush.bf16.msra.mxu1 %v9519_v25  ;;  %v13741_v42 = vld [vmem:[#allocation2 + $0x224] sm:$0xf0]  ;;  %v10163_v15 = vor.u32 %v13913_v6, %v10160_v7  ;;  %v9875_v25 = vor.u32 %v13841_v18, %v9872_v19  ;;  %v10096_v35 = vld [vmem:[#allocation2 + $0x728] sm:$0xf0] }
  0xb4   :  { %v9710_v43 = vld [vmem:[#allocation2 + $0x408] sm:$0xf]  ;;  %v9455_v55 = vor.u32 %v13741_v42, %v9454_v39  ;;  %v13697_v39 = vld [vmem:[#allocation2 + $0xcc] sm:$0xf]  ;;  %v10099_v42 = vor.u32 %v13897_v34, %v10096_v35  ;;  %v13926_v34 = vld [vmem:[#allocation2 + $0x7ec] sm:$0xf0] }
  0xb5   :  { %1977 = vmatpush.bf16.msra.mxu2 %v9775_v26  ;;  %v13805_v44 = vld [vmem:[#allocation2 + $0x424] sm:$0xf0]  ;;  %1950 = vmatpush.bf16.msra.mxu0 %v9231_v37  ;;  %v13705_v26 = vld [vmem:[#allocation2 + $0x10c] sm:$0xf] }
  0xb6   :  { %v9966_v46 = vld [vmem:[#allocation2 + $0x608] sm:$0xf]  ;;  %v9711_v56 = vor.u32 %v13805_v44, %v9710_v43  ;;  %v9331_v36 = vor.u32 %v13705_v26, %v9328_v27  ;;  %v9552_v43 = vld [vmem:[#allocation2 + $0x2e8] sm:$0xf0]  ;;  %v13798_v27 = vld [vmem:[#allocation2 + $0x3ec] sm:$0xf0] }
  0xb7   :  { %1991 = vmatpush.bf16.msra.mxu3 %v10031_v30  ;;  %v13869_v47 = vld [vmem:[#allocation2 + $0x624] sm:$0xf0]  ;;  %1964 = vmatpush.bf16.msra.mxu1 %v9487_v40  ;;  %v9584_v30 = vld [vmem:[#allocation2 + $0x328] sm:$0xf0] }
  0xb8   :  { %v9967_v59 = vor.u32 %v13869_v47, %v9966_v46  ;;  %v9587_v37 = vor.u32 %v13769_v28, %v9584_v30  ;;  %v9296_v40 = vld [vmem:[#allocation2 + $0xe8] sm:$0xf0]  ;;  %v9942_v28 = vld [vmem:[#allocation2 + $0x5d0] sm:$0xf] }
  0xb9   :  { %1978 = vmatpush.bf16.msra.mxu2 %v9743_v41  ;;  %1951 = vmatpush.bf16.msra.mxu0 %v9199_v51  ;;  %v13761_v41 = vld [vmem:[#allocation2 + $0x2cc] sm:$0xf]  ;;  %v9299_v48 = vor.u32 %v13697_v39, %v9296_v40  ;;  %v9398_v39 = vld [vmem:[#allocation2 + $0x190] sm:$0xf] }
  0xba   :  { %v13825_v44 = vld [vmem:[#allocation2 + $0x4cc] sm:$0xf]  ;;  %v9555_v49 = vor.u32 %v13761_v41, %v9552_v43  ;;  %v13726_v40 = vld [vmem:[#allocation2 + $0x1ac] sm:$0xf0] }
  0xbb   :  { %1992 = vmatpush.bf16.msra.mxu3 %v9999_v45  ;;  %1965 = vmatpush.bf16.msra.mxu1 %v9455_v55  ;;  %v9808_v45 = vld [vmem:[#allocation2 + $0x4e8] sm:$0xf0]  ;;  %v9654_v41 = vld [vmem:[#allocation2 + $0x390] sm:$0xf] }
  0xbc   :  { %1952 = vmatmul.bf16.vlgmr.msra.gmra.mxu0 %v15334_v16  ;;  %v13889_v46 = vld [vmem:[#allocation2 + $0x6cc] sm:$0xf]  ;;  %v9811_v50 = vor.u32 %v13825_v44, %v9808_v45  ;;  %v13790_v43 = vld [vmem:[#allocation2 + $0x3ac] sm:$0xf0] }
  0xbd   :  { %1979 = vmatpush.bf16.msra.mxu2 %v9711_v56  ;;  %2000 = vmatpush.bf16.msrb.mxu0 %v9427_v60  ;;  %v10064_v47 = vld [vmem:[#allocation2 + $0x6e8] sm:$0xf0]  ;;  %v9910_v44 = vld [vmem:[#allocation2 + $0x590] sm:$0xf] }
  0xbe   :  { %1966 = vmatmul.bf16.vlgmr.msra.gmra.mxu1 %v15349_v33  ;;  %v13689_v51 = vld [vmem:[#allocation2 + $0x8c] sm:$0xf]  ;;  %v10067_v54 = vor.u32 %v13889_v46, %v10064_v47  ;;  %v13854_v45 = vld [vmem:[#allocation2 + $0x5ac] sm:$0xf0] }
  0xbf   :  { %1993 = vmatpush.bf16.msra.mxu3 %v9967_v59  ;;  %2014 = vmatpush.bf16.msrb.mxu1 %v9683_v61  ;;  %v9264_v52 = vld [vmem:[#allocation2 + $0xa8] sm:$0xf0]  ;;  %v10166_v46 = vld [vmem:[#allocation2 + $0x790] sm:$0xf] }
  0xc0   :  { %1980 = vmatmul.bf16.vlgmr.msra.gmra.mxu2 %v15323_v9  ;;  %v13753_v53 = vld [vmem:[#allocation2 + $0x28c] sm:$0xf]  ;;  %v9267_v60 = vor.u32 %v13689_v51, %v9264_v52  ;;  %v13918_v47 = vld [vmem:[#allocation2 + $0x7ac] sm:$0xf0] }
  0xc1   :  { %2028 = vmatpush.bf16.msrb.mxu2 %v9939_v62  ;;  %2001 = vmatpush.bf16.msrb.mxu0 %v9395_v8  ;;  %v9520_v55 = vld [vmem:[#allocation2 + $0x2a8] sm:$0xf0]  ;;  %v9366_v51 = vld [vmem:[#allocation2 + $0x150] sm:$0xf] }
  0xc2   :  { %1994 = vmatmul.bf16.vlgmr.msra.gmra.mxu3 %v15340_v20  ;;  %v13817_v56 = vld [vmem:[#allocation2 + $0x48c] sm:$0xf]  ;;  %v9523_v61 = vor.u32 %v13753_v53, %v9520_v55  ;;  %v13718_v52 = vld [vmem:[#allocation2 + $0x16c] sm:$0xf0] }
  0xc3   :  { %2042 = vmatpush.bf16.msrb.mxu3 %v10195_v2  ;;  %2015 = vmatpush.bf16.msrb.mxu1 %v9651_v10  ;;  %v9776_v57 = vld [vmem:[#allocation2 + $0x4a8] sm:$0xf0]  ;;  %v9622_v53 = vld [vmem:[#allocation2 + $0x350] sm:$0xf] }
  0xc4   :  { %v13881_v58 = vld [vmem:[#allocation2 + $0x68c] sm:$0xf]  ;;  %v9779_v62 = vor.u32 %v13817_v56, %v9776_v57  ;;  %v13782_v55 = vld [vmem:[#allocation2 + $0x36c] sm:$0xf0] }
  0xc5   :  { %2029 = vmatpush.bf16.msrb.mxu2 %v9907_v11  ;;  %2002 = vmatpush.bf16.msrb.mxu0 %v9363_v23  ;;  %v10032_v59 = vld [vmem:[#allocation2 + $0x6a8] sm:$0xf0]  ;;  %v9430_v23 = vld [vmem:[#allocation2 + $0x1d0] sm:$0xf] }
  0xc6   :  { %v13681_v63 = vld [vmem:[#allocation2 + $0x4c] sm:$0xf]  ;;  %v10035_v2 = vor.u32 %v13881_v58, %v10032_v59  ;;  %v9878_v56 = vld [vmem:[#allocation2 + $0x550] sm:$0xf] }
  0xc7   :  { %2043 = vmatpush.bf16.msrb.mxu3 %v10163_v15  ;;  %2016 = vmatpush.bf16.msrb.mxu1 %v9619_v24  ;;  %v9232_v0 = vld [vmem:[#allocation2 + $0x68] sm:$0xf0]  ;;  %v13734_v24 = vld [vmem:[#allocation2 + $0x1ec] sm:$0xf0] }
  0xc8   :  { %v13745_v1 = vld [vmem:[#allocation2 + $0x24c] sm:$0xf]  ;;  %v9235_v8 = vor.u32 %v13681_v63, %v9232_v0  ;;  %v13846_v57 = vld [vmem:[#allocation2 + $0x56c] sm:$0xf0] }
  0xc9   :  { %2030 = vmatpush.bf16.msrb.mxu2 %v9875_v25  ;;  %2003 = vmatpush.bf16.msrb.mxu0 %v9331_v36  ;;  %v9488_v3 = vld [vmem:[#allocation2 + $0x268] sm:$0xf0]  ;;  %v9686_v25 = vld [vmem:[#allocation2 + $0x3d0] sm:$0xf]  ;;  %v9431_v36 = vor.u32 %v13734_v24, %v9430_v23 }
  0xca   :  { %v13809_v4 = vld [vmem:[#allocation2 + $0x44c] sm:$0xf]  ;;  %v9491_v12 = vor.u32 %v13745_v1, %v9488_v3  ;;  %v10134_v58 = vld [vmem:[#allocation2 + $0x750] sm:$0xf] }
  0xcb   :  { %2044 = vmatpush.bf16.msrb.mxu3 %v10131_v29  ;;  %2017 = vmatpush.bf16.msrb.mxu1 %v9587_v37  ;;  %v9744_v5 = vld [vmem:[#allocation2 + $0x468] sm:$0xf0]  ;;  %v13862_v29 = vld [vmem:[#allocation2 + $0x5ec] sm:$0xf0]  ;;  %v9687_v37 = vor.u32 %v13798_v27, %v9686_v25 }
  0xcc   :  { %v13873_v6 = vld [vmem:[#allocation2 + $0x64c] sm:$0xf]  ;;  %v9747_v13 = vor.u32 %v13809_v4, %v9744_v5  ;;  %v13910_v59 = vld [vmem:[#allocation2 + $0x76c] sm:$0xf0] }
  0xcd   :  { %2031 = vmatpush.bf16.msrb.mxu2 %v9843_v38  ;;  %2004 = vmatpush.bf16.msrb.mxu0 %v9299_v48  ;;  %v10000_v7 = vld [vmem:[#allocation2 + $0x668] sm:$0xf0]  ;;  %v9943_v38 = vor.u32 %v13862_v29, %v9942_v28  ;;  %v9399_v48 = vor.u32 %v13726_v40, %v9398_v39  ;;  %v9334_v63 = vld [vmem:[#allocation2 + $0x110] sm:$0xf] }
  0xce   :  { %v13673_v10 = vld [vmem:[#allocation2 + $0xc] sm:$0xf]  ;;  %v10003_v18 = vor.u32 %v13873_v6, %v10000_v7  ;;  %v13710_v0 = vld [vmem:[#allocation2 + $0x12c] sm:$0xf0] }
  0xcf   :  { %2045 = vmatpush.bf16.msrb.mxu3 %v10099_v42  ;;  %2018 = vmatpush.bf16.msrb.mxu1 %v9555_v49  ;;  %v9200_v11 = vld [vmem:[#allocation2 + $0x28] sm:$0xf0]  ;;  %v10199_v42 = vor.u32 %v13926_v34, %v10198_v32  ;;  %v9655_v49 = vor.u32 %v13790_v43, %v9654_v41  ;;  %v9590_v1 = vld [vmem:[#allocation2 + $0x310] sm:$0xf] }
  0xd0   :  { %v13737_v14 = vld [vmem:[#allocation2 + $0x20c] sm:$0xf]  ;;  %v9203_v26 = vor.u32 %v13673_v10, %v9200_v11  ;;  %v13774_v3 = vld [vmem:[#allocation2 + $0x32c] sm:$0xf0] }
  0xd1   :  { %2032 = vmatpush.bf16.msrb.mxu2 %v9811_v50  ;;  %2005 = vmatpush.bf16.msrb.mxu0 %v9267_v60  ;;  %v9456_v15 = vld [vmem:[#allocation2 + $0x228] sm:$0xf0]  ;;  %v9911_v50 = vor.u32 %v13854_v45, %v9910_v44  ;;  %v9367_v60 = vor.u32 %v13718_v52, %v9366_v51  ;;  %v9846_v4 = vld [vmem:[#allocation2 + $0x510] sm:$0xf]  ;;  %v9591_v10 = vor.u32 %v13774_v3, %v9590_v1  ;;  %v13858_v1 = vld [vmem:[#allocation2 + $0x5d4] sm:$0xf] }
  0xd2   :  { %v13801_v17 = vld [vmem:[#allocation2 + $0x40c] sm:$0xf]  ;;  %v9459_v30 = vor.u32 %v13737_v14, %v9456_v15  ;;  %v13838_v5 = vld [vmem:[#allocation2 + $0x52c] sm:$0xf0] }
  0xd3   :  { %2046 = vmatpush.bf16.msrb.mxu3 %v10067_v54  ;;  %2019 = vmatpush.bf16.msrb.mxu1 %v9523_v61  ;;  %v9712_v19 = vld [vmem:[#allocation2 + $0x428] sm:$0xf0]  ;;  %v10167_v54 = vor.u32 %v13918_v47, %v10166_v46  ;;  %v9623_v61 = vor.u32 %v13782_v55, %v9622_v53  ;;  %v10102_v6 = vld [vmem:[#allocation2 + $0x710] sm:$0xf]  ;;  %v9847_v11 = vor.u32 %v13838_v5, %v9846_v4  ;;  %v13922_v5 = vld [vmem:[#allocation2 + $0x7d4] sm:$0xf] }
  0xd4   :  { %v13865_v21 = vld [vmem:[#allocation2 + $0x60c] sm:$0xf]  ;;  %v9715_v31 = vor.u32 %v13801_v17, %v9712_v19  ;;  %v13902_v7 = vld [vmem:[#allocation2 + $0x72c] sm:$0xf0] }
  0xd5   :  { %2033 = vmatpush.bf16.msrb.mxu2 %v9779_v62  ;;  %v9968_v22 = vld [vmem:[#allocation2 + $0x628] sm:$0xf0]  ;;  %2006 = vmatpush.bf16.msrb.mxu0 %v9235_v8  ;;  %v9879_v62 = vor.u32 %v13846_v57, %v9878_v56  ;;  %v9335_v8 = vor.u32 %v13710_v0, %v9334_v63  ;;  %v9558_v14 = vld [vmem:[#allocation2 + $0x2d0] sm:$0xf]  ;;  %v10103_v15 = vor.u32 %v13902_v7, %v10102_v6  ;;  %v9688_v0 = vld [vmem:[#allocation2 + $0x3f0] sm:$0xf0] }
  0xd6   :  { %v9971_v35 = vor.u32 %v13865_v21, %v9968_v22  ;;  %v13766_v17 = vld [vmem:[#allocation2 + $0x2ec] sm:$0xf0]  ;;  %v10200_v6 = vld [vmem:[#allocation2 + $0x7f0] sm:$0xf0] }
  0xd7   :  { %2047 = vmatpush.bf16.msrb.mxu3 %v10035_v2  ;;  %2020 = vmatpush.bf16.msrb.mxu1 %v9491_v12  ;;  %v10135_v2 = vor.u32 %v13910_v59, %v10134_v58  ;;  %v9302_v12 = vld [vmem:[#allocation2 + $0xd0] sm:$0xf]  ;;  %v9559_v24 = vor.u32 %v13766_v17, %v9558_v14  ;;  %v13786_v14 = vld [vmem:[#allocation2 + $0x394] sm:$0xf] }
  0xd8   :  { %v13830_v19 = vld [vmem:[#allocation2 + $0x4ec] sm:$0xf0]  ;;  %v9656_v17 = vld [vmem:[#allocation2 + $0x3b0] sm:$0xf0] }
  0xd9   :  { %2034 = vmatpush.bf16.msrb.mxu2 %v9747_v13  ;;  %2007 = vmatpush.bf16.msrb.mxu0 %v9203_v26  ;;  %v13702_v13 = vld [vmem:[#allocation2 + $0xec] sm:$0xf0] }
  0xda   :  { %v10070_v21 = vld [vmem:[#allocation2 + $0x6d0] sm:$0xf]  ;;  %v9303_v23 = vor.u32 %v13702_v13, %v9302_v12  ;;  %v13722_v12 = vld [vmem:[#allocation2 + $0x194] sm:$0xf] }
  0xdb   :  { %2048 = vmatpush.bf16.msrb.mxu3 %v10003_v18  ;;  %2021 = vmatpush.bf16.msrb.mxu1 %v9459_v30  ;;  %v9814_v18 = vld [vmem:[#allocation2 + $0x4d0] sm:$0xf]  ;;  %v9400_v13 = vld [vmem:[#allocation2 + $0x1b0] sm:$0xf0] }
  0xdc   :  { %2008 = vmatmul.bf16.vlgmr.msrb.gmra.mxu0 %v15334_v16  ;;  %v13894_v22 = vld [vmem:[#allocation2 + $0x6ec] sm:$0xf0]  ;;  %v9815_v25 = vor.u32 %v13830_v19, %v9814_v18  ;;  %v13850_v18 = vld [vmem:[#allocation2 + $0x594] sm:$0xf] }
  0xdd   :  { %2035 = vmatpush.bf16.msrb.mxu2 %v9715_v31  ;;  %2056 = vmatpush.bf16.msra.mxu0 %v9431_v36  ;;  %v9270_v26 = vld [vmem:[#allocation2 + $0x90] sm:$0xf]  ;;  %v10071_v29 = vor.u32 %v13894_v22, %v10070_v21  ;;  %v9912_v19 = vld [vmem:[#allocation2 + $0x5b0] sm:$0xf0] }
  0xde   :  { %2022 = vmatmul.bf16.vlgmr.msrb.gmra.mxu1 %v15349_v33  ;;  %v13694_v27 = vld [vmem:[#allocation2 + $0xac] sm:$0xf0]  ;;  %v13914_v21 = vld [vmem:[#allocation2 + $0x794] sm:$0xf] }
  0xdf   :  { %2049 = vmatpush.bf16.msrb.mxu3 %v9971_v35  ;;  %2070 = vmatpush.bf16.msra.mxu1 %v9687_v37  ;;  %v9526_v28 = vld [vmem:[#allocation2 + $0x290] sm:$0xf]  ;;  %v9271_v36 = vor.u32 %v13694_v27, %v9270_v26  ;;  %v10168_v22 = vld [vmem:[#allocation2 + $0x7b0] sm:$0xf0] }
  0xe0   :  { %2036 = vmatmul.bf16.vlgmr.msrb.gmra.mxu2 %v15323_v9  ;;  %v13758_v30 = vld [vmem:[#allocation2 + $0x2ac] sm:$0xf0]  ;;  %v13714_v26 = vld [vmem:[#allocation2 + $0x154] sm:$0xf] }
  0xe1   :  { %2084 = vmatpush.bf16.msra.mxu2 %v9943_v38  ;;  %2057 = vmatpush.bf16.msra.mxu0 %v9399_v48  ;;  %v9782_v31 = vld [vmem:[#allocation2 + $0x490] sm:$0xf]  ;;  %v9527_v37 = vor.u32 %v13758_v30, %v9526_v28  ;;  %v9368_v27 = vld [vmem:[#allocation2 + $0x170] sm:$0xf0] }
  0xe2   :  { %2050 = vmatmul.bf16.vlgmr.msrb.gmra.mxu3 %v15340_v20  ;;  %v13822_v32 = vld [vmem:[#allocation2 + $0x4ac] sm:$0xf0]  ;;  %v13778_v28 = vld [vmem:[#allocation2 + $0x354] sm:$0xf] }
  0xe3   :  { %2098 = vmatpush.bf16.msra.mxu3 %v10199_v42  ;;  %2071 = vmatpush.bf16.msra.mxu1 %v9655_v49  ;;  %v10038_v34 = vld [vmem:[#allocation2 + $0x690] sm:$0xf]  ;;  %v9783_v38 = vor.u32 %v13822_v32, %v9782_v31  ;;  %v9624_v30 = vld [vmem:[#allocation2 + $0x370] sm:$0xf0] }
  0xe4   :  { %v13886_v35 = vld [vmem:[#allocation2 + $0x6ac] sm:$0xf0]  ;;  %v13842_v31 = vld [vmem:[#allocation2 + $0x554] sm:$0xf] }
  0xe5   :  { %2085 = vmatpush.bf16.msra.mxu2 %v9911_v50  ;;  %2058 = vmatpush.bf16.msra.mxu0 %v9367_v60  ;;  %v9238_v39 = vld [vmem:[#allocation2 + $0x50] sm:$0xf]  ;;  %v10039_v42 = vor.u32 %v13886_v35, %v10038_v34  ;;  %v13730_v60 = vld [vmem:[#allocation2 + $0x1d4] sm:$0xf] }
  0xe6   :  { %v13686_v40 = vld [vmem:[#allocation2 + $0x6c] sm:$0xf0]  ;;  %v9880_v32 = vld [vmem:[#allocation2 + $0x570] sm:$0xf0] }
  0xe7   :  { %2099 = vmatpush.bf16.msra.mxu3 %v10167_v54  ;;  %2072 = vmatpush.bf16.msra.mxu1 %v9623_v61  ;;  %v9494_v41 = vld [vmem:[#allocation2 + $0x250] sm:$0xf]  ;;  %v9239_v48 = vor.u32 %v13686_v40, %v9238_v39  ;;  %v9432_v61 = vld [vmem:[#allocation2 + $0x1f0] sm:$0xf0] }
  0xe8   :  { %v13750_v43 = vld [vmem:[#allocation2 + $0x26c] sm:$0xf0]  ;;  %v13906_v34 = vld [vmem:[#allocation2 + $0x754] sm:$0xf] }
  0xe9   :  { %2086 = vmatpush.bf16.msra.mxu2 %v9879_v62  ;;  %2059 = vmatpush.bf16.msra.mxu0 %v9335_v8  ;;  %v9750_v44 = vld [vmem:[#allocation2 + $0x450] sm:$0xf]  ;;  %v9495_v51 = vor.u32 %v13750_v43, %v9494_v41  ;;  %v13794_v62 = vld [vmem:[#allocation2 + $0x3d4] sm:$0xf]  ;;  %v9435_v8 = vor.u32 %v13730_v60, %v9432_v61 }
  0xea   :  { %v13814_v45 = vld [vmem:[#allocation2 + $0x46c] sm:$0xf0]  ;;  %v10136_v35 = vld [vmem:[#allocation2 + $0x770] sm:$0xf0] }
  0xeb   :  { %2100 = vmatpush.bf16.msra.mxu3 %v10135_v2  ;;  %2073 = vmatpush.bf16.msra.mxu1 %v9591_v10  ;;  %v10006_v46 = vld [vmem:[#allocation2 + $0x650] sm:$0xf]  ;;  %v9751_v52 = vor.u32 %v13814_v45, %v9750_v44  ;;  %v9944_v2 = vld [vmem:[#allocation2 + $0x5f0] sm:$0xf0]  ;;  %v9691_v10 = vor.u32 %v13794_v62, %v9688_v0 }
  0xec   :  { %v13878_v47 = vld [vmem:[#allocation2 + $0x66c] sm:$0xf0]  ;;  %v13706_v39 = vld [vmem:[#allocation2 + $0x114] sm:$0xf] }
  0xed   :  { %2087 = vmatpush.bf16.msra.mxu2 %v9847_v11  ;;  %2060 = vmatpush.bf16.msra.mxu0 %v9303_v23  ;;  %v9206_v49 = vld [vmem:[#allocation2 + $0x10] sm:$0xf]  ;;  %v10007_v56 = vor.u32 %v13878_v47, %v10006_v46  ;;  %v9947_v11 = vor.u32 %v13858_v1, %v9944_v2  ;;  %v9403_v23 = vor.u32 %v13722_v12, %v9400_v13  ;;  %v9336_v40 = vld [vmem:[#allocation2 + $0x130] sm:$0xf0] }
  0xee   :  { %v13678_v50 = vld [vmem:[#allocation2 + $0x2c] sm:$0xf0]  ;;  %v13770_v41 = vld [vmem:[#allocation2 + $0x314] sm:$0xf] }
  0xef   :  { %2101 = vmatpush.bf16.msra.mxu3 %v10103_v15  ;;  %2074 = vmatpush.bf16.msra.mxu1 %v9559_v24  ;;  %v9462_v53 = vld [vmem:[#allocation2 + $0x210] sm:$0xf]  ;;  %v9207_v63 = vor.u32 %v13678_v50, %v9206_v49  ;;  %v10203_v15 = vor.u32 %v13922_v5, %v10200_v6  ;;  %v9659_v24 = vor.u32 %v13786_v14, %v9656_v17  ;;  %v9592_v43 = vld [vmem:[#allocation2 + $0x330] sm:$0xf0] }
  0xf0   :  { %v13742_v54 = vld [vmem:[#allocation2 + $0x22c] sm:$0xf0]  ;;  %v13834_v44 = vld [vmem:[#allocation2 + $0x514] sm:$0xf]  ;;  %v9595_v49 = vor.u32 %v13770_v41, %v9592_v43  ;;  %v9950_v41 = vld [vmem:[#allocation2 + $0x5d8] sm:$0xf] }
  0xf1   :  { %2088 = vmatpush.bf16.msra.mxu2 %v9815_v25  ;;  %2061 = vmatpush.bf16.msra.mxu0 %v9271_v36  ;;  %v9718_v55 = vld [vmem:[#allocation2 + $0x410] sm:$0xf]  ;;  %v9463_v3 = vor.u32 %v13742_v54, %v9462_v53  ;;  %v9915_v25 = vor.u32 %v13850_v18, %v9912_v19  ;;  %v9371_v36 = vor.u32 %v13714_v26, %v9368_v27  ;;  %v9848_v45 = vld [vmem:[#allocation2 + $0x530] sm:$0xf0] }
  0xf2   :  { %v13806_v57 = vld [vmem:[#allocation2 + $0x42c] sm:$0xf0]  ;;  %v13898_v46 = vld [vmem:[#allocation2 + $0x714] sm:$0xf]  ;;  %v9851_v50 = vor.u32 %v13834_v44, %v9848_v45  ;;  %v10206_v45 = vld [vmem:[#allocation2 + $0x7d8] sm:$0xf] }
  0xf3   :  { %2102 = vmatpush.bf16.msra.mxu3 %v10071_v29  ;;  %2075 = vmatpush.bf16.msra.mxu1 %v9527_v37  ;;  %v9974_v58 = vld [vmem:[#allocation2 + $0x610] sm:$0xf]  ;;  %v9719_v4 = vor.u32 %v13806_v57, %v9718_v55  ;;  %v10171_v29 = vor.u32 %v13914_v21, %v10168_v22  ;;  %v9627_v37 = vor.u32 %v13778_v28, %v9624_v30  ;;  %v10104_v47 = vld [vmem:[#allocation2 + $0x730] sm:$0xf0] }
  0xf4   :  { %v13870_v59 = vld [vmem:[#allocation2 + $0x62c] sm:$0xf0]  ;;  %v13762_v53 = vld [vmem:[#allocation2 + $0x2d4] sm:$0xf]  ;;  %v10107_v54 = vor.u32 %v13898_v46, %v10104_v47  ;;  %v13927_v46 = vld [vmem:[#allocation2 + $0x7f4] sm:$0xf0] }
  0xf5   :  { %2089 = vmatpush.bf16.msra.mxu2 %v9783_v38  ;;  %2062 = vmatpush.bf16.msra.mxu0 %v9239_v48  ;;  %v9975_v7 = vor.u32 %v13870_v59, %v9974_v58  ;;  %v9883_v38 = vor.u32 %v13842_v31, %v9880_v32  ;;  %v9339_v48 = vor.u32 %v13706_v39, %v9336_v40  ;;  %v9560_v55 = vld [vmem:[#allocation2 + $0x2f0] sm:$0xf0]  ;;  %v13799_v40 = vld [vmem:[#allocation2 + $0x3f4] sm:$0xf0] }
  0xf6   :  { %v9816_v57 = vld [vmem:[#allocation2 + $0x4f0] sm:$0xf0]  ;;  %v9563_v61 = vor.u32 %v13762_v53, %v9560_v55  ;;  %v9662_v53 = vld [vmem:[#allocation2 + $0x398] sm:$0xf] }
  0xf7   :  { %2103 = vmatpush.bf16.msra.mxu3 %v10039_v42  ;;  %2076 = vmatpush.bf16.msra.mxu1 %v9495_v51  ;;  %v10139_v42 = vor.u32 %v13906_v34, %v10136_v35  ;;  %v13698_v51 = vld [vmem:[#allocation2 + $0xd4] sm:$0xf]  ;;  %v13791_v55 = vld [vmem:[#allocation2 + $0x3b4] sm:$0xf0] }
  0xf8   :  { %v13890_v58 = vld [vmem:[#allocation2 + $0x6d4] sm:$0xf] }
  0xf9   :  { %2090 = vmatpush.bf16.msra.mxu2 %v9751_v52  ;;  %2063 = vmatpush.bf16.msra.mxu0 %v9207_v63  ;;  %v9304_v52 = vld [vmem:[#allocation2 + $0xf0] sm:$0xf0] }
  0xfa   :  { %v10072_v59 = vld [vmem:[#allocation2 + $0x6f0] sm:$0xf0]  ;;  %v9307_v60 = vor.u32 %v13698_v51, %v9304_v52  ;;  %v9406_v51 = vld [vmem:[#allocation2 + $0x198] sm:$0xf] }
  0xfb   :  { %2104 = vmatpush.bf16.msra.mxu3 %v10007_v56  ;;  %2077 = vmatpush.bf16.msra.mxu1 %v9463_v3  ;;  %v13826_v56 = vld [vmem:[#allocation2 + $0x4d4] sm:$0xf]  ;;  %v10075_v2 = vor.u32 %v13890_v58, %v10072_v59  ;;  %v13727_v52 = vld [vmem:[#allocation2 + $0x1b4] sm:$0xf0] }
  0xfc   :  { %2064 = vmatmul.bf16.vlgmr.msra.gmra.mxu0 %v15334_v16  ;;  %v9819_v62 = vor.u32 %v13826_v56, %v9816_v57  ;;  %v13690_v63 = vld [vmem:[#allocation2 + $0x94] sm:$0xf]  ;;  %v9918_v56 = vld [vmem:[#allocation2 + $0x598] sm:$0xf] }
  0xfd   :  { %2091 = vmatpush.bf16.msra.mxu2 %v9719_v4  ;;  %2112 = vmatpush.bf16.msrb.mxu0 %v9435_v8  ;;  %v9272_v0 = vld [vmem:[#allocation2 + $0xb0] sm:$0xf0]  ;;  %v13855_v57 = vld [vmem:[#allocation2 + $0x5b4] sm:$0xf0] }
  0xfe   :  { %2078 = vmatmul.bf16.vlgmr.msra.gmra.mxu1 %v15349_v33  ;;  %v13754_v1 = vld [vmem:[#allocation2 + $0x294] sm:$0xf]  ;;  %v9275_v8 = vor.u32 %v13690_v63, %v9272_v0  ;;  %v10174_v58 = vld [vmem:[#allocation2 + $0x798] sm:$0xf] }
  0xff   :  { %2105 = vmatpush.bf16.msra.mxu3 %v9975_v7  ;;  %2126 = vmatpush.bf16.msrb.mxu1 %v9691_v10  ;;  %v9528_v3 = vld [vmem:[#allocation2 + $0x2b0] sm:$0xf0]  ;;  %v13919_v59 = vld [vmem:[#allocation2 + $0x7b4] sm:$0xf0] }
 0x100   :  { %2092 = vmatmul.bf16.vlgmr.msra.gmra.mxu2 %v15323_v9  ;;  %v13818_v4 = vld [vmem:[#allocation2 + $0x494] sm:$0xf]  ;;  %v9531_v10 = vor.u32 %v13754_v1, %v9528_v3  ;;  %v9374_v63 = vld [vmem:[#allocation2 + $0x158] sm:$0xf] }
 0x101   :  { %2140 = vmatpush.bf16.msrb.mxu2 %v9947_v11  ;;  %2113 = vmatpush.bf16.msrb.mxu0 %v9403_v23  ;;  %v9784_v5 = vld [vmem:[#allocation2 + $0x4b0] sm:$0xf0]  ;;  %v13719_v0 = vld [vmem:[#allocation2 + $0x174] sm:$0xf0] }
 0x102   :  { %2106 = vmatmul.bf16.vlgmr.msra.gmra.mxu3 %v15340_v20  ;;  %v13882_v6 = vld [vmem:[#allocation2 + $0x694] sm:$0xf]  ;;  %v9787_v11 = vor.u32 %v13818_v4, %v9784_v5  ;;  %v9630_v1 = vld [vmem:[#allocation2 + $0x358] sm:$0xf] }
 0x103   :  { %2154 = vmatpush.bf16.msrb.mxu3 %v10203_v15  ;;  %2127 = vmatpush.bf16.msrb.mxu1 %v9659_v24  ;;  %v10040_v7 = vld [vmem:[#allocation2 + $0x6b0] sm:$0xf0]  ;;  %v13783_v3 = vld [vmem:[#allocation2 + $0x374] sm:$0xf0] }
 0x104   :  { %v13682_v12 = vld [vmem:[#allocation2 + $0x54] sm:$0xf]  ;;  %v10043_v15 = vor.u32 %v13882_v6, %v10040_v7  ;;  %v9886_v4 = vld [vmem:[#allocation2 + $0x558] sm:$0xf] }
 0x105   :  { %2141 = vmatpush.bf16.msrb.mxu2 %v9915_v25  ;;  %2114 = vmatpush.bf16.msrb.mxu0 %v9371_v36  ;;  %v9240_v13 = vld [vmem:[#allocation2 + $0x70] sm:$0xf0]  ;;  %v9438_v36 = vld [vmem:[#allocation2 + $0x1d8] sm:$0xf] }
 0x106   :  { %v13746_v14 = vld [vmem:[#allocation2 + $0x254] sm:$0xf]  ;;  %v9243_v23 = vor.u32 %v13682_v12, %v9240_v13  ;;  %v13847_v5 = vld [vmem:[#allocation2 + $0x574] sm:$0xf0] }
 0x107   :  { %2155 = vmatpush.bf16.msrb.mxu3 %v10171_v29  ;;  %2128 = vmatpush.bf16.msrb.mxu1 %v9627_v37  ;;  %v9496_v17 = vld [vmem:[#allocation2 + $0x270] sm:$0xf0]  ;;  %v13735_v37 = vld [vmem:[#allocation2 + $0x1f4] sm:$0xf0] }
 0x108   :  { %v13810_v18 = vld [vmem:[#allocation2 + $0x454] sm:$0xf]  ;;  %v9499_v26 = vor.u32 %v13746_v14, %v9496_v17  ;;  %v10142_v6 = vld [vmem:[#allocation2 + $0x758] sm:$0xf] }
 0x109   :  { %2142 = vmatpush.bf16.msrb.mxu2 %v9883_v38  ;;  %2115 = vmatpush.bf16.msrb.mxu0 %v9339_v48  ;;  %v9752_v19 = vld [vmem:[#allocation2 + $0x470] sm:$0xf0]  ;;  %v9694_v38 = vld [vmem:[#allocation2 + $0x3d8] sm:$0xf]  ;;  %v9439_v48 = vor.u32 %v13735_v37, %v9438_v36  ;;  %v15373_v36 = vpop.f32.mrf.mxu0 }
 0x10a   :  { %v13874_v21 = vld [vmem:[#allocation2 + $0x654] sm:$0xf]  ;;  %v9755_v27 = vor.u32 %v13810_v18, %v9752_v19  ;;  %v13911_v7 = vld [vmem:[#allocation2 + $0x774] sm:$0xf0] }
 0x10b   :  { %2156 = vmatpush.bf16.msrb.mxu3 %v10139_v42  ;;  %2129 = vmatpush.bf16.msrb.mxu1 %v9595_v49  ;;  %v10008_v22 = vld [vmem:[#allocation2 + $0x670] sm:$0xf0]  ;;  %v13863_v42 = vld [vmem:[#allocation2 + $0x5f4] sm:$0xf0]  ;;  %v9695_v49 = vor.u32 %v13799_v40, %v9694_v38  ;;  %v15375_v38 = vpop.f32.mrf.mxu1 }
 0x10c   :  { %v13674_v24 = vld [vmem:[#allocation2 + $0x14] sm:$0xf]  ;;  %v10011_v31 = vor.u32 %v13874_v21, %v10008_v22  ;;  %v9342_v12 = vld [vmem:[#allocation2 + $0x118] sm:$0xf] }
 0x10d   :  { %2143 = vmatpush.bf16.msrb.mxu2 %v9851_v50  ;;  %2116 = vmatpush.bf16.msrb.mxu0 %v9307_v60  ;;  %v9208_v25 = vld [vmem:[#allocation2 + $0x30] sm:$0xf0]  ;;  %v9951_v50 = vor.u32 %v13863_v42, %v9950_v41  ;;  %v9407_v60 = vor.u32 %v13727_v52, %v9406_v51  ;;  %v13711_v13 = vld [vmem:[#allocation2 + $0x134] sm:$0xf0]  ;;  %v15377_v51 = vpop.f32.mrf.mxu2 }
 0x10e   :  { %v13738_v28 = vld [vmem:[#allocation2 + $0x214] sm:$0xf]  ;;  %v9211_v39 = vor.u32 %v13674_v24, %v9208_v25  ;;  %v9598_v14 = vld [vmem:[#allocation2 + $0x318] sm:$0xf] }
 0x10f   :  { %2157 = vmatpush.bf16.msrb.mxu3 %v10107_v54  ;;  %2130 = vmatpush.bf16.msrb.mxu1 %v9563_v61  ;;  %v9464_v29 = vld [vmem:[#allocation2 + $0x230] sm:$0xf0]  ;;  %v10207_v54 = vor.u32 %v13927_v46, %v10206_v45  ;;  %v9663_v61 = vor.u32 %v13791_v55, %v9662_v53  ;;  %v13775_v17 = vld [vmem:[#allocation2 + $0x334] sm:$0xf0] }
 0x110   :  { %v13802_v30 = vld [vmem:[#allocation2 + $0x414] sm:$0xf]  ;;  %v9467_v43 = vor.u32 %v13738_v28, %v9464_v29  ;;  %v9854_v18 = vld [vmem:[#allocation2 + $0x518] sm:$0xf]  ;;  %v9599_v24 = vor.u32 %v13775_v17, %v9598_v14  ;;  %v9440_v17 = vld [vmem:[#allocation2 + $0x1f8] sm:$0xf0] }
 0x111   :  { %2144 = vmatpush.bf16.msrb.mxu2 %v9819_v62  ;;  %2117 = vmatpush.bf16.msrb.mxu0 %v9275_v8  ;;  %v9720_v32 = vld [vmem:[#allocation2 + $0x430] sm:$0xf0]  ;;  %v9919_v62 = vor.u32 %v13855_v57, %v9918_v56  ;;  %v9375_v8 = vor.u32 %v13719_v0, %v9374_v63  ;;  %v13839_v19 = vld [vmem:[#allocation2 + $0x534] sm:$0xf0]  ;;  %v15379_v57 = vpop.f32.mrf.mxu3 }
 0x112   :  { %v13866_v34 = vld [vmem:[#allocation2 + $0x614] sm:$0xf]  ;;  %v9723_v44 = vor.u32 %v13802_v30, %v9720_v32  ;;  %v10110_v21 = vld [vmem:[#allocation2 + $0x718] sm:$0xf]  ;;  %v9855_v25 = vor.u32 %v13839_v19, %v9854_v18  ;;  %v13795_v18 = vld [vmem:[#allocation2 + $0x3dc] sm:$0xf] }
 0x113   :  { %2158 = vmatpush.bf16.msrb.mxu3 %v10075_v2  ;;  %2131 = vmatpush.bf16.msrb.mxu1 %v9531_v10  ;;  %v9976_v35 = vld [vmem:[#allocation2 + $0x630] sm:$0xf0]  ;;  %v10175_v2 = vor.u32 %v13919_v59, %v10174_v58  ;;  %v9631_v10 = vor.u32 %v13783_v3, %v9630_v1  ;;  %v13903_v22 = vld [vmem:[#allocation2 + $0x734] sm:$0xf0]  ;;  %v15383_v14 = vpop.f32.mrf.mxu1 }
 0x114   :  { %v9979_v47 = vor.u32 %v13866_v34, %v9976_v35  ;;  %v9566_v28 = vld [vmem:[#allocation2 + $0x2d8] sm:$0xf]  ;;  %v10111_v29 = vor.u32 %v13903_v22, %v10110_v21  ;;  %v9696_v21 = vld [vmem:[#allocation2 + $0x3f8] sm:$0xf0] }
 0x115   :  { %2145 = vmatpush.bf16.msrb.mxu2 %v9787_v11  ;;  %2118 = vmatpush.bf16.msrb.mxu0 %v9243_v23  ;;  %v9887_v11 = vor.u32 %v13847_v5, %v9886_v4  ;;  %v9343_v23 = vor.u32 %v13711_v13, %v9342_v12  ;;  %v13767_v30 = vld [vmem:[#allocation2 + $0x2f4] sm:$0xf0]  ;;  %v13859_v22 = vld [vmem:[#allocation2 + $0x5dc] sm:$0xf] }
 0x116   :  { %v13831_v32 = vld [vmem:[#allocation2 + $0x4f4] sm:$0xf0] }
 0x117   :  { %2159 = vmatpush.bf16.msrb.mxu3 %v10043_v15  ;;  %2132 = vmatpush.bf16.msrb.mxu1 %v9499_v26  ;;  %v10143_v15 = vor.u32 %v13911_v7, %v10142_v6  ;;  %v9310_v26 = vld [vmem:[#allocation2 + $0xd8] sm:$0xf] }
 0x118   :  { %v10078_v34 = vld [vmem:[#allocation2 + $0x6d8] sm:$0xf] }
 0x119   :  { %2146 = vmatpush.bf16.msrb.mxu2 %v9755_v27  ;;  %2119 = vmatpush.bf16.msrb.mxu0 %v9211_v39  ;;  %v13703_v27 = vld [vmem:[#allocation2 + $0xf4] sm:$0xf0]  ;;  %v9567_v39 = vor.u32 %v13767_v30, %v9566_v28  ;;  %v15385_v30 = vpop.f32.mrf.mxu2 }
 0x11a   :  { %v13895_v35 = vld [vmem:[#allocation2 + $0x6f4] sm:$0xf0]  ;;  %v9311_v37 = vor.u32 %v13703_v27, %v9310_v26  ;;  %v13923_v26 = vld [vmem:[#allocation2 + $0x7dc] sm:$0xf] }
 0x11b   :  { %2160 = vmatpush.bf16.msrb.mxu3 %v10011_v31  ;;  %2133 = vmatpush.bf16.msrb.mxu1 %v9467_v43  ;;  %v9822_v31 = vld [vmem:[#allocation2 + $0x4d8] sm:$0xf]  ;;  %v10208_v27 = vld [vmem:[#allocation2 + $0x7f8] sm:$0xf0] }
 0x11c   :  { %2120 = vmatmul.bf16.vlgmr.msrb.gmra.mxu0 %v15334_v16  ;;  %v9823_v40 = vor.u32 %v13831_v32, %v9822_v31  ;;  %v9278_v41 = vld [vmem:[#allocation2 + $0x98] sm:$0xf]  ;;  %v9699_v31 = vor.u32 %v13795_v18, %v9696_v21  ;;  %v9312_v21 = vld [vmem:[#allocation2 + $0xf8] sm:$0xf0] }
 0x11d   :  { %2147 = vmatpush.bf16.msrb.mxu2 %v9723_v44  ;;  %2168 = vmatpush.bf16.msra.mxu0 %v9439_v48  ;;  %v13695_v42 = vld [vmem:[#allocation2 + $0xb4] sm:$0xf0]  ;;  %v10079_v44 = vor.u32 %v13895_v35, %v10078_v34  ;;  %v13723_v34 = vld [vmem:[#allocation2 + $0x19c] sm:$0xf] }
 0x11e   :  { %2134 = vmatmul.bf16.vlgmr.msrb.gmra.mxu1 %v15349_v33  ;;  %v9534_v43 = vld [vmem:[#allocation2 + $0x298] sm:$0xf]  ;;  %v9408_v35 = vld [vmem:[#allocation2 + $0x1b8] sm:$0xf0] }
 0x11f   :  { %2161 = vmatpush.bf16.msrb.mxu3 %v9979_v47  ;;  %2182 = vmatpush.bf16.msra.mxu1 %v9695_v49  ;;  %v13759_v45 = vld [vmem:[#allocation2 + $0x2b4] sm:$0xf0] }
 0x120   :  { %2148 = vmatmul.bf16.vlgmr.msrb.gmra.mxu2 %v15323_v9  ;;  %v9790_v46 = vld [vmem:[#allocation2 + $0x498] sm:$0xf]  ;;  %v9535_v52 = vor.u32 %v13759_v45, %v9534_v43  ;;  %v9920_v43 = vld [vmem:[#allocation2 + $0x5b8] sm:$0xf0] }
 0x121   :  { %2196 = vmatpush.bf16.msra.mxu2 %v9951_v50  ;;  %2169 = vmatpush.bf16.msra.mxu0 %v9407_v60  ;;  %v13823_v47 = vld [vmem:[#allocation2 + $0x4b4] sm:$0xf0]  ;;  %v9279_v50 = vor.u32 %v13695_v42, %v9278_v41  ;;  %v9664_v41 = vld [vmem:[#allocation2 + $0x3b8] sm:$0xf0] }
 0x122   :  { %2162 = vmatmul.bf16.vlgmr.msrb.gmra.mxu3 %v15340_v20  ;;  %v10046_v48 = vld [vmem:[#allocation2 + $0x698] sm:$0xf]  ;;  %v9791_v53 = vor.u32 %v13823_v47, %v9790_v46  ;;  %v13851_v42 = vld [vmem:[#allocation2 + $0x59c] sm:$0xf]  ;;  %v9411_v47 = vor.u32 %v13723_v34, %v9408_v35 }
 0x123   :  { %2210 = vmatpush.bf16.msra.mxu3 %v10207_v54  ;;  %2183 = vmatpush.bf16.msra.mxu1 %v9663_v61  ;;  %v13887_v49 = vld [vmem:[#allocation2 + $0x6b4] sm:$0xf0]  ;;  %v10176_v45 = vld [vmem:[#allocation2 + $0x7b8] sm:$0xf0] }
 0x124   :  { %v9246_v54 = vld [vmem:[#allocation2 + $0x58] sm:$0xf]  ;;  %v10047_v58 = vor.u32 %v13887_v49, %v10046_v48  ;;  %v9923_v49 = vor.u32 %v13851_v42, %v9920_v43  ;;  %v9536_v43 = vld [vmem:[#allocation2 + $0x2b8] sm:$0xf0] }
 0x125   :  { %2197 = vmatpush.bf16.msra.mxu2 %v9919_v62  ;;  %2170 = vmatpush.bf16.msra.mxu0 %v9375_v8  ;;  %v13687_v55 = vld [vmem:[#allocation2 + $0x74] sm:$0xf0]  ;;  %v15381_v8 = vpop.f32.mrf.mxu0 }
 0x126   :  { %v9502_v56 = vld [vmem:[#allocation2 + $0x258] sm:$0xf]  ;;  %v9247_v0 = vor.u32 %v13687_v55, %v9246_v54  ;;  %v13779_v54 = vld [vmem:[#allocation2 + $0x35c] sm:$0xf] }
 0x127   :  { %2211 = vmatpush.bf16.msra.mxu3 %v10175_v2  ;;  %2184 = vmatpush.bf16.msra.mxu1 %v9631_v10  ;;  %v13751_v59 = vld [vmem:[#allocation2 + $0x274] sm:$0xf0] }
 0x128   :  { %v9758_v60 = vld [vmem:[#allocation2 + $0x458] sm:$0xf]  ;;  %v9503_v3 = vor.u32 %v13751_v59, %v9502_v56  ;;  %v9632_v56 = vld [vmem:[#allocation2 + $0x378] sm:$0xf0] }
 0x129   :  { %2198 = vmatpush.bf16.msra.mxu2 %v9887_v11  ;;  %2171 = vmatpush.bf16.msra.mxu0 %v9343_v23  ;;  %v13815_v61 = vld [vmem:[#allocation2 + $0x474] sm:$0xf0]  ;;  %v9952_v23 = vld [vmem:[#allocation2 + $0x5f8] sm:$0xf0] }
 0x12a   :  { %v10014_v62 = vld [vmem:[#allocation2 + $0x658] sm:$0xf]  ;;  %v9759_v4 = vor.u32 %v13815_v61, %v9758_v60  ;;  %v9955_v32 = vor.u32 %v13859_v22, %v9952_v23  ;;  %v9888_v59 = vld [vmem:[#allocation2 + $0x578] sm:$0xf0] }
 0x12b   :  { %2212 = vmatpush.bf16.msra.mxu3 %v10143_v15  ;;  %2185 = vmatpush.bf16.msra.mxu1 %v9599_v24  ;;  %v13879_v63 = vld [vmem:[#allocation2 + $0x674] sm:$0xf0]  ;;  %v13731_v15 = vld [vmem:[#allocation2 + $0x1dc] sm:$0xf] }
 0x12c   :  { %v9214_v1 = vld [vmem:[#allocation2 + $0x18] sm:$0xf]  ;;  %v10015_v10 = vor.u32 %v13879_v63, %v10014_v62  ;;  %v13907_v60 = vld [vmem:[#allocation2 + $0x75c] sm:$0xf]  ;;  %v15397_v63 = vpop.f32.mrf.mxu2 }
 0x12d   :  { %2199 = vmatpush.bf16.msra.mxu2 %v9855_v25  ;;  %2172 = vmatpush.bf16.msra.mxu0 %v9311_v37  ;;  %v13679_v2 = vld [vmem:[#allocation2 + $0x34] sm:$0xf0]  ;;  %v13787_v37 = vld [vmem:[#allocation2 + $0x39c] sm:$0xf]  ;;  %v15389_v46 = vpop.f32.mrf.mxu0 }
 0x12e   :  { %v9470_v5 = vld [vmem:[#allocation2 + $0x218] sm:$0xf]  ;;  %v9215_v19 = vor.u32 %v13679_v2, %v9214_v1  ;;  %v9667_v48 = vor.u32 %v13787_v37, %v9664_v41  ;;  %v10144_v61 = vld [vmem:[#allocation2 + $0x778] sm:$0xf0] }
 0x12f   :  { %2213 = vmatpush.bf16.msra.mxu3 %v10111_v29  ;;  %2186 = vmatpush.bf16.msra.mxu1 %v9567_v39  ;;  %v13743_v6 = vld [vmem:[#allocation2 + $0x234] sm:$0xf0]  ;;  %v9443_v29 = vor.u32 %v13731_v15, %v9440_v17  ;;  %v15387_v39 = vpop.f32.mrf.mxu3  ;;  %v13707_v2 = vld [vmem:[#allocation2 + $0x11c] sm:$0xf] }
 0x130   :  { %v9726_v7 = vld [vmem:[#allocation2 + $0x418] sm:$0xf]  ;;  %v9471_v24 = vor.u32 %v13743_v6, %v9470_v5  ;;  %v10147_v5 = vor.u32 %v13907_v60, %v10144_v61  ;;  %v13763_v22 = vld [vmem:[#allocation2 + $0x2dc] sm:$0xf] }
 0x131   :  { %2200 = vmatpush.bf16.msra.mxu2 %v9823_v40  ;;  %2173 = vmatpush.bf16.msra.mxu0 %v9279_v50  ;;  %v13807_v11 = vld [vmem:[#allocation2 + $0x434] sm:$0xf0]  ;;  %v10211_v40 = vor.u32 %v13923_v26, %v10208_v27  ;;  %v15391_v50 = vpop.f32.mrf.mxu1  ;;  %v13827_v26 = vld [vmem:[#allocation2 + $0x4dc] sm:$0xf] }
 0x132   :  { %v9982_v12 = vld [vmem:[#allocation2 + $0x618] sm:$0xf]  ;;  %v9727_v25 = vor.u32 %v13807_v11, %v9726_v7  ;;  %v9600_v7 = vld [vmem:[#allocation2 + $0x338] sm:$0xf0] }
 0x133   :  { %2214 = vmatpush.bf16.msra.mxu3 %v10079_v44  ;;  %2187 = vmatpush.bf16.msra.mxu1 %v9535_v52  ;;  %v13871_v13 = vld [vmem:[#allocation2 + $0x634] sm:$0xf0]  ;;  %v13915_v44 = vld [vmem:[#allocation2 + $0x79c] sm:$0xf] }
 0x134   :  { %v9983_v28 = vor.u32 %v13871_v13, %v9982_v12  ;;  %v13715_v52 = vld [vmem:[#allocation2 + $0x15c] sm:$0xf]  ;;  %v10179_v55 = vor.u32 %v13915_v44, %v10176_v45 }
 0x135   :  { %2201 = vmatpush.bf16.msra.mxu2 %v9791_v53  ;;  %2174 = vmatpush.bf16.msra.mxu0 %v9247_v0  ;;  %v9376_v53 = vld [vmem:[#allocation2 + $0x178] sm:$0xf0]  ;;  %v9635_v0 = vor.u32 %v13779_v54, %v9632_v56  ;;  %v15401_v23 = vpop.f32.mrf.mxu0 }
 0x136   :  { %v9379_v62 = vor.u32 %v13715_v52, %v9376_v53  ;;  %v9856_v11 = vld [vmem:[#allocation2 + $0x538] sm:$0xf0]  ;;  %v15407_v52 = vld [vmem:[#allocation4] sm:$0xff] }
 0x137   :  { %2215 = vmatpush.bf16.msra.mxu3 %v10047_v58  ;;  %2188 = vmatpush.bf16.msra.mxu1 %v9503_v3  ;;  %v13843_v58 = vld [vmem:[#allocation2 + $0x55c] sm:$0xf]  ;;  %v15399_v6 = vpop.f32.mrf.mxu3 }
 0x138   :  { %v9891_v1 = vor.u32 %v13843_v58, %v9888_v59  ;;  %v9344_v3 = vld [vmem:[#allocation2 + $0x138] sm:$0xf0] }
 0x139   :  { %2202 = vmatpush.bf16.msra.mxu2 %v9759_v4  ;;  %2175 = vmatpush.bf16.msra.mxu0 %v9215_v19  ;;  %v13771_v4 = vld [vmem:[#allocation2 + $0x31c] sm:$0xf]  ;;  %v9347_v15 = vor.u32 %v13707_v2, %v9344_v3 }
 0x13a   :  { %v13899_v12 = vld [vmem:[#allocation2 + $0x71c] sm:$0xf]  ;;  %v9603_v17 = vor.u32 %v13771_v4, %v9600_v7  ;;  %v516_v7 = vperm.slane %v15407_v52, 0 }
 0x13b   :  { %2216 = vmatpush.bf16.msra.mxu3 %v10015_v10  ;;  %2189 = vmatpush.bf16.msra.mxu1 %v9471_v24  ;;  %v13835_v10 = vld [vmem:[#allocation2 + $0x51c] sm:$0xf] }
 0x13c   :  { %2176 = vmatmul.bf16.vlgmr.msra.gmra.mxu0 %v15334_v16  ;;  %v10112_v13 = vld [vmem:[#allocation2 + $0x738] sm:$0xf0]  ;;  %v9859_v18 = vor.u32 %v13835_v10, %v9856_v11 }
 0x13d   :  { %2203 = vmatpush.bf16.msra.mxu2 %v9727_v25  ;;  %2224 = vmatpush.bf16.msrb.mxu0 %v9443_v29  ;;  %v13699_v19 = vld [vmem:[#allocation2 + $0xdc] sm:$0xf]  ;;  %v10115_v24 = vor.u32 %v13899_v12, %v10112_v13  ;;  %v15411_v2 = vpop.f32.mrf.mxu0 }
 0x13e   :  { %2190 = vmatmul.bf16.vlgmr.msra.gmra.mxu1 %v15349_v33  ;;  %v9568_v25 = vld [vmem:[#allocation2 + $0x2f8] sm:$0xf0] }
 0x13f   :  { %2217 = vmatpush.bf16.msra.mxu3 %v9983_v28  ;;  %2238 = vmatpush.bf16.msrb.mxu1 %v9699_v31  ;;  %v9824_v27 = vld [vmem:[#allocation2 + $0x4f8] sm:$0xf0]  ;;  %v15403_v28 = vpop.f32.mrf.mxu1  ;;  %v9571_v34 = vor.u32 %v13763_v22, %v9568_v25  ;;  %v15409_v53 = vpop.f32.mrf.mxu3 }
 0x140   :  { %2204 = vmatmul.bf16.vlgmr.msra.gmra.mxu2 %v15323_v9  ;;  %v13891_v29 = vld [vmem:[#allocation2 + $0x6dc] sm:$0xf]  ;;  %v9827_v35 = vor.u32 %v13827_v26, %v9824_v27  ;;  %v10438_v26 = vld [vmem:[#allocation6 + $0x1c0] sm:$0xf] }
 0x141   :  { %2252 = vmatpush.bf16.msrb.mxu2 %v9955_v32  ;;  %2225 = vmatpush.bf16.msrb.mxu0 %v9411_v47  ;;  %v10080_v31 = vld [vmem:[#allocation2 + $0x6f8] sm:$0xf0]  ;;  %v9315_v32 = vor.u32 %v13699_v19, %v9312_v21  ;;  %v15405_v47 = vpop.f32.mrf.mxu2  ;;  %v13988_v27 = vld [vmem:[#allocation6 + $0x1dc] sm:$0xf0] }
 0x142   :  { %2218 = vmatmul.bf16.vlgmr.msra.gmra.mxu3 %v15340_v20  ;;  %v13691_v37 = vld [vmem:[#allocation2 + $0x9c] sm:$0xf]  ;;  %v10083_v42 = vor.u32 %v13891_v29, %v10080_v31  ;;  %v10694_v29 = vld [vmem:[#allocation6 + $0x3c0] sm:$0xf] }
 0x143   :  { %2266 = vmatpush.bf16.msrb.mxu3 %v10211_v40  ;;  %2239 = vmatpush.bf16.msrb.mxu1 %v9667_v48  ;;  %v9280_v40 = vld [vmem:[#allocation2 + $0xb8] sm:$0xf0] }
 0x144   :  { %v13755_v41 = vld [vmem:[#allocation2 + $0x29c] sm:$0xf]  ;;  %v9283_v54 = vor.u32 %v13691_v37, %v9280_v40  ;;  %v14116_v37 = vld [vmem:[#allocation6 + $0x5dc] sm:$0xf0] }
 0x145   :  { %2253 = vmatpush.bf16.msrb.mxu2 %v9923_v49  ;;  %2226 = vmatpush.bf16.msrb.mxu0 %v9379_v62  ;;  %v13819_v44 = vld [vmem:[#allocation2 + $0x49c] sm:$0xf] }
 0x146   :  { %v9792_v45 = vld [vmem:[#allocation2 + $0x4b8] sm:$0xf0] }
 0x147   :  { %2267 = vmatpush.bf16.msrb.mxu3 %v10179_v55  ;;  %2240 = vmatpush.bf16.msrb.mxu1 %v9635_v0  ;;  %v13883_v48 = vld [vmem:[#allocation2 + $0x69c] sm:$0xf]  ;;  %v9539_v55 = vor.u32 %v13755_v41, %v9536_v43  ;;  %v9795_v56 = vor.u32 %v13819_v44, %v9792_v45  ;;  %v15418_v40 = vpop.f32.mrf.mxu3  ;;  %v10439_v44 = vor.u32 %v13988_v27, %v10438_v26  ;;  %v11206_v45 = vld [vmem:[#allocation6 + $0x7c0] sm:$0xf]  ;;  %v518_v26 = vperm.slane %v15407_v52, 2 }
 0x148   :  { %v10048_v49 = vld [vmem:[#allocation2 + $0x6b8] sm:$0xf0] }
 0x149   :  { %2254 = vmatpush.bf16.msrb.mxu2 %v9891_v1  ;;  %2227 = vmatpush.bf16.msrb.mxu0 %v9347_v15  ;;  %v13683_v58 = vld [vmem:[#allocation2 + $0x5c] sm:$0xf]  ;;  %v10051_v61 = vor.u32 %v13883_v48, %v10048_v49  ;;  %v15416_v31 = vpop.f32.mrf.mxu2  ;;  %v14180_v48 = vld [vmem:[#allocation6 + $0x7dc] sm:$0xf0] }
 0x14a   :  { %v9248_v59 = vld [vmem:[#allocation2 + $0x78] sm:$0xf0] }
 0x14b   :  { %2268 = vmatpush.bf16.msrb.mxu3 %v10147_v5  ;;  %2241 = vmatpush.bf16.msrb.mxu1 %v9603_v17  ;;  %v13747_v60 = vld [vmem:[#allocation2 + $0x25c] sm:$0xf]  ;;  %v15413_v5 = vpop.f32.mrf.mxu1  ;;  %v9251_v10 = vor.u32 %v13683_v58, %v9248_v59  ;;  %v10662_v58 = vld [vmem:[#allocation6 + $0x380] sm:$0xf]  ;;  %v1842_v59 = vadd.f32 %v15373_v36, %v516_v7 }
 0x14c   :  { %v9504_v62 = vld [vmem:[#allocation2 + $0x278] sm:$0xf0] }
 0x14d   :  { %2255 = vmatpush.bf16.msrb.mxu2 %v9859_v18  ;;  %2228 = vmatpush.bf16.msrb.mxu0 %v9315_v32  ;;  %v13811_v0 = vld [vmem:[#allocation2 + $0x45c] sm:$0xf]  ;;  %v9507_v13 = vor.u32 %v13747_v60, %v9504_v62  ;;  %v14044_v60 = vld [vmem:[#allocation6 + $0x39c] sm:$0xf0] }
 0x14e   :  { %v9760_v1 = vld [vmem:[#allocation2 + $0x478] sm:$0xf0]  ;;  %v14108_v62 = vld [vmem:[#allocation6 + $0x59c] sm:$0xf0]  ;;  %v10663_v36 = vor.u32 %v14044_v60, %v10662_v58 }
 0x14f   :  { %2269 = vmatpush.bf16.msrb.mxu3 %v10115_v24  ;;  %2242 = vmatpush.bf16.msrb.mxu1 %v9571_v34  ;;  %v13875_v3 = vld [vmem:[#allocation2 + $0x65c] sm:$0xf]  ;;  %v9763_v15 = vor.u32 %v13811_v0, %v9760_v1  ;;  %v14052_v34 = vld [vmem:[#allocation6 + $0x3dc] sm:$0xf0]  ;;  %v1955_v0 = vpop.f32.mrf.mxu0  ;;  %v1844_v1 = vadd.f32 %v15381_v8, %v516_v7  ;;  %v1856_v8 = vadd.f32 %v15375_v38, %v1842_v59 }
 0x150   :  { %v10016_v4 = vld [vmem:[#allocation2 + $0x678] sm:$0xf0]  ;;  %v10695_v49 = vor.u32 %v14052_v34, %v10694_v29  ;;  %v14036_v7 = vld [vmem:[#allocation6 + $0x35c] sm:$0xf0]  ;;  %v1956_v59 = vadd.f32 %v1955_v0, %v518_v26 }
 0x151   :  { %2256 = vmatpush.bf16.msrb.mxu2 %v9827_v35  ;;  %2229 = vmatpush.bf16.msrb.mxu0 %v9283_v54  ;;  %v13675_v11 = vld [vmem:[#allocation2 + $0x1c] sm:$0xf]  ;;  %v10019_v21 = vor.u32 %v13875_v3, %v10016_v4  ;;  %v10950_v35 = vld [vmem:[#allocation6 + $0x5c0] sm:$0xf]  ;;  %v517_v3 = vperm.slane %v15407_v52, 1  ;;  %v15433_v27 = vpop.f32.mrf.mxu2 }
 0x152   :  { %v9216_v12 = vld [vmem:[#allocation2 + $0x38] sm:$0xf0]  ;;  %v10951_v54 = vor.u32 %v14116_v37, %v10950_v35  ;;  %v11142_v29 = vld [vmem:[#allocation6 + $0x740] sm:$0xf] }
 0x153   :  { %2270 = vmatpush.bf16.msrb.mxu3 %v10083_v42  ;;  %2243 = vmatpush.bf16.msrb.mxu1 %v9539_v55  ;;  %v13739_v17 = vld [vmem:[#allocation2 + $0x21c] sm:$0xf]  ;;  %v9219_v32 = vor.u32 %v13675_v11, %v9216_v12  ;;  %v10406_v55 = vld [vmem:[#allocation6 + $0x180] sm:$0xf]  ;;  %v15423_v4 = vpop.f32.mrf.mxu1 }
 0x154   :  { %v9472_v18 = vld [vmem:[#allocation2 + $0x238] sm:$0xf0]  ;;  %v11174_v12 = vld [vmem:[#allocation6 + $0x780] sm:$0xf] }
 0x155   :  { %2257 = vmatpush.bf16.msrb.mxu2 %v9795_v56  ;;  %v13803_v19 = vld [vmem:[#allocation2 + $0x41c] sm:$0xf]  ;;  %2230 = vmatpush.bf16.msrb.mxu0 %v9251_v10  ;;  %v9475_v41 = vor.u32 %v13739_v17, %v9472_v18  ;;  %v13980_v56 = vld [vmem:[#allocation6 + $0x19c] sm:$0xf0]  ;;  %v11207_v10 = vor.u32 %v14180_v48, %v11206_v45  ;;  %v1900_v45 = vadd.f32 %v15401_v23, %v517_v3 }
 0x156   :  { %v9728_v22 = vld [vmem:[#allocation2 + $0x438] sm:$0xf0]  ;;  %v10407_v11 = vor.u32 %v13980_v56, %v10406_v55  ;;  %v10374_v17 = vld [vmem:[#allocation6 + $0x140] sm:$0xf]  ;;  %v1954_v48 = vadd.f32 %v15411_v2, %v518_v26  ;;  %v519_v55 = vperm.slane %v15407_v52, 3 }
 0x157   :  { %2271 = vmatpush.bf16.msrb.mxu3 %v10051_v61  ;;  %v13867_v24 = vld [vmem:[#allocation2 + $0x61c] sm:$0xf]  ;;  %2244 = vmatpush.bf16.msrb.mxu1 %v9507_v13  ;;  %v9731_v42 = vor.u32 %v13803_v19, %v9728_v22  ;;  %v10918_v61 = vld [vmem:[#allocation6 + $0x580] sm:$0xf]  ;;  %v1914_v0 = vadd.f32 %v15403_v28, %v1900_v45 }
 0x158   :  { %v9984_v25 = vld [vmem:[#allocation2 + $0x638] sm:$0xf0]  ;;  %v14172_v13 = vld [vmem:[#allocation6 + $0x79c] sm:$0xf0] }
 0x159   :  { %2258 = vmatpush.bf16.msrb.mxu2 %v9763_v15  ;;  %v9987_v43 = vor.u32 %v13867_v24, %v9984_v25  ;;  %2231 = vmatpush.bf16.msrb.mxu0 %v9219_v32  ;;  %v10919_v15 = vor.u32 %v14108_v62, %v10918_v61  ;;  %v13972_v18 = vld [vmem:[#allocation6 + $0x15c] sm:$0xf0]  ;;  %v1858_v24 = vadd.f32 %v15383_v14, %v1844_v1  ;;  %v2009_v56 = vpop.f32.mrf.mxu0 }
 0x15a   :  { %v10630_v19 = vld [vmem:[#allocation6 + $0x340] sm:$0xf]  ;;  %v1898_v25 = vadd.f32 %v15389_v46, %v517_v3  ;;  %v10375_v38 = vor.u32 %v13972_v18, %v10374_v17 }
 0x15b   :  { %2272 = vmatpush.bf16.msrb.mxu3 %v10019_v21  ;;  %2245 = vmatpush.bf16.msrb.mxu1 %v9475_v41  ;;  %v10886_v21 = vld [vmem:[#allocation6 + $0x540] sm:$0xf]  ;;  %v10631_v14 = vor.u32 %v14036_v7, %v10630_v19  ;;  %v2023_v61 = vpop.f32.mrf.mxu1 }
 0x15c   :  { %2232 = vmatmul.bf16.vlgmr.msrb.gmra.mxu0 %v15334_v16  ;;  %v14100_v22 = vld [vmem:[#allocation6 + $0x55c] sm:$0xf0]  ;;  %v11175_v16 = vor.u32 %v14172_v13, %v11174_v12  ;;  %v1968_v13 = vadd.f32 %v15413_v5, %v1954_v48 }
 0x15d   :  { %2259 = vmatpush.bf16.msrb.mxu2 %v9731_v42  ;;  %5394 = vmatpush.bf16.msra.mxu0 %v10439_v44  ;;  %v14164_v32 = vld [vmem:[#allocation6 + $0x75c] sm:$0xf0]  ;;  %v10887_v46 = vor.u32 %v14100_v22, %v10886_v21  ;;  %v1912_v44 = vadd.f32 %v15391_v50, %v1898_v25 }
 0x15e   :  { %2246 = vmatmul.bf16.vlgmr.msrb.gmra.mxu1 %v15349_v33  ;;  %v15435_v33 = vpop.f32.mrf.mxu3  ;;  %v10342_v34 = vld [vmem:[#allocation6 + $0x100] sm:$0xf] }
 0x15f   :  { %2273 = vmatpush.bf16.msrb.mxu3 %v9987_v43  ;;  %5408 = vmatpush.bf16.msra.mxu1 %v10695_v49  ;;  %v13964_v35 = vld [vmem:[#allocation6 + $0x11c] sm:$0xf0]  ;;  %v1872_v43 = vadd.f32 %v15385_v30, %v1858_v24  ;;  %v11143_v49 = vor.u32 %v14164_v32, %v11142_v29  ;;  %v1926_v12 = vadd.f32 %v15397_v63, %v1912_v44 }
 0x160   :  { %2260 = vmatmul.bf16.vlgmr.msrb.gmra.mxu2 %v15323_v9  ;;  %v10598_v37 = vld [vmem:[#allocation6 + $0x300] sm:$0xf]  ;;  %v1870_v9 = vadd.f32 %v15377_v51, %v1856_v8  ;;  %v1970_v8 = vadd.f32 %v15423_v4, %v1956_v59  ;;  %v1982_v4 = vadd.f32 %v15416_v31, %v1968_v13 }
 0x161   :  { %5422 = vmatpush.bf16.msra.mxu2 %v10951_v54  ;;  %5395 = vmatpush.bf16.msra.mxu0 %v10407_v11  ;;  %v10854_v41 = vld [vmem:[#allocation6 + $0x500] sm:$0xf]  ;;  %v10343_v54 = vor.u32 %v13964_v35, %v10342_v34  ;;  %v15447_v11 = vadd.f32 %v15387_v39, %v1872_v43  ;;  %v2011_v35 = vpop.f32.mrf.mxu0 }
 0x162   :  { %2274 = vmatmul.bf16.vlgmr.msrb.gmra.mxu3 %v15340_v20  ;;  %v14028_v20 = vld [vmem:[#allocation6 + $0x31c] sm:$0xf0]  ;;  %v15444_v2 = vadd.f32 %v15379_v57, %v1870_v9 }
 0x163   :  { %5436 = vmatpush.bf16.msra.mxu3 %v11207_v10  ;;  %5409 = vmatpush.bf16.msra.mxu1 %v10663_v36  ;;  %v14092_v42 = vld [vmem:[#allocation6 + $0x51c] sm:$0xf0]  ;;  %v10599_v60 = vor.u32 %v14028_v20, %v10598_v37  ;;  %v2010_v36 = vadd.f32 %v2009_v56, %v519_v55  ;;  %v2037_v21 = vpop.f32.mrf.mxu2  ;;  %v2288_v32 = vmax.f32 %v15447_v11, 0.0  ;;  %v1984_v20 = vadd.f32 %v15433_v27, %v1970_v8 }
 0x164   :  { %v11110_v58 = vld [vmem:[#allocation6 + $0x700] sm:$0xf]  ;;  %v10855_v30 = vor.u32 %v14092_v42, %v10854_v41  ;;  %v2280_v5 = vmax.f32 %v15444_v2, 0.0  ;;  %v2012_v41 = vadd.f32 %v2011_v35, %v519_v55  ;;  %v1996_v56 = vadd.f32 %v15418_v40, %v1982_v4 }
 0x165   :  { %5423 = vmatpush.bf16.msra.mxu2 %v10919_v15  ;;  %5396 = vmatpush.bf16.msra.mxu0 %v10375_v38  ;;  %v14156_v51 = vld [vmem:[#allocation6 + $0x71c] sm:$0xf0]  ;;  %v1928_v38 = vadd.f32 %v15405_v47, %v1914_v0  ;;  %v2025_v47 = vpop.f32.mrf.mxu1 }
 0x166   :  { %v10310_v50 = vld [vmem:[#allocation6 + $0xc0] sm:$0xf]  ;;  %v11111_v15 = vor.u32 %v14156_v51, %v11110_v58  ;;  %v2051_v24 = vpop.f32.mrf.mxu3  ;;  %v2026_v58 = vadd.f32 %v2025_v47, %v2012_v41 }
 0x167   :  { %5437 = vmatpush.bf16.msra.mxu3 %v11175_v16  ;;  %5410 = vmatpush.bf16.msra.mxu1 %v10631_v14  ;;  %v13956_v62 = vld [vmem:[#allocation6 + $0xdc] sm:$0xf0]  ;;  %v15455_v16 = vadd.f32 %v15399_v6, %v1926_v12  ;;  %v2024_v14 = vadd.f32 %v2023_v61, %v2010_v36  ;;  %v1998_v61 = vadd.f32 %v15435_v33, %v1984_v20 }
 0x168   :  { %v10566_v23 = vld [vmem:[#allocation6 + $0x2c0] sm:$0xf]  ;;  %v10311_v17 = vor.u32 %v13956_v62, %v10310_v50 }
 0x169   :  { %5424 = vmatpush.bf16.msra.mxu2 %v10887_v46  ;;  %v14020_v1 = vld [vmem:[#allocation6 + $0x2dc] sm:$0xf0]  ;;  %5397 = vmatpush.bf16.msra.mxu0 %v10343_v54  ;;  %v1942_v54 = vadd.f32 %v15409_v53, %v1928_v38  ;;  %v2038_v51 = vadd.f32 %v2037_v21, %v2024_v14 }
 0x16a   :  { %v10822_v3 = vld [vmem:[#allocation6 + $0x4c0] sm:$0xf]  ;;  %v10567_v39 = vor.u32 %v14020_v1, %v10566_v23 }
 0x16b   :  { %v14084_v10 = vld [vmem:[#allocation6 + $0x4dc] sm:$0xf0]  ;;  %5438 = vmatpush.bf16.msra.mxu3 %v11143_v49  ;;  %5411 = vmatpush.bf16.msra.mxu1 %v10599_v60  ;;  %v2281_v49 = vmax.f32 %v15455_v16, 0.0  ;;  %v2039_v23 = vpop.f32.mrf.mxu2 }
 0x16c   :  { %v11078_v18 = vld [vmem:[#allocation6 + $0x6c0] sm:$0xf]  ;;  %v10823_v7 = vor.u32 %v14084_v10, %v10822_v3  ;;  %v2040_v40 = vadd.f32 %v2039_v23, %v2026_v58 }
 0x16d   :  { %v14148_v57 = vld [vmem:[#allocation6 + $0x6dc] sm:$0xf0]  ;;  %5425 = vmatpush.bf16.msra.mxu2 %v10855_v30  ;;  %5398 = vmatpush.bf16.msra.mxu0 %v10311_v17 }
 0x16e   :  { %v10278_v19 = vld [vmem:[#allocation6 + $0x80] sm:$0xf]  ;;  %v11079_v29 = vor.u32 %v14148_v57, %v11078_v18  ;;  %v2053_v10 = vpop.f32.mrf.mxu3  ;;  %v2289_v57 = vmax.f32 %v1942_v54, 0.0  ;;  %v520_v54 = vperm.slane %v15407_v52, 4 }
 0x16f   :  { %v13948_v63 = vld [vmem:[#allocation6 + $0x9c] sm:$0xf0]  ;;  %5439 = vmatpush.bf16.msra.mxu3 %v11111_v15  ;;  %5412 = vmatpush.bf16.msra.mxu1 %v10567_v39  ;;  %v2054_v33 = vadd.f32 %v2053_v10, %v2040_v40  ;;  %v2282_v39 = vmax.f32 %v1996_v56, 0.0 }
 0x170   :  { %v10534_v22 = vld [vmem:[#allocation6 + $0x280] sm:$0xf]  ;;  %v10279_v46 = vor.u32 %v13948_v63, %v10278_v19  ;;  %v2052_v19 = vadd.f32 %v2051_v24, %v2038_v51 }
 0x171   :  { %v14012_v28 = vld [vmem:[#allocation6 + $0x29c] sm:$0xf0]  ;;  %5426 = vmatpush.bf16.msra.mxu2 %v10823_v7  ;;  %v2290_v7 = vmax.f32 %v1998_v61, 0.0  ;;  %v2291_v24 = vmax.f32 %v2054_v33, 0.0 }
 0x172   :  { %v10790_v25 = vld [vmem:[#allocation6 + $0x480] sm:$0xf]  ;;  %v10535_v34 = vor.u32 %v14012_v28, %v10534_v22  ;;  %5399 = vmatpush.bf16.msra.mxu0 %v10279_v46  ;;  %v2283_v14 = vmax.f32 %v2052_v19, 0.0  ;;  %v15469_v46 = vpack.c.bf16 %v2288_v32, %v2280_v5 }
 0x173   :  { %v14076_v26 = vld [vmem:[#allocation6 + $0x49c] sm:$0xf0]  ;;  %5440 = vmatpush.bf16.msra.mxu3 %v11079_v29 }
 0x174   :  { %v11046_v37 = vld [vmem:[#allocation6 + $0x680] sm:$0xf]  ;;  %v10791_v6 = vor.u32 %v14076_v26, %v10790_v25  ;;  %5413 = vmatpush.bf16.msra.mxu1 %v10535_v34  ;;  %v15471_v34 = vpack.c.bf16 %v2289_v57, %v2281_v49 }
 0x175   :  { %v14140_v9 = vld [vmem:[#allocation6 + $0x69c] sm:$0xf0] }
 0x176   :  { %v10246_v42 = vld [vmem:[#allocation6 + $0x40] sm:$0xf]  ;;  %v11047_v27 = vor.u32 %v14140_v9, %v11046_v37  ;;  %5427 = vmatpush.bf16.msra.mxu2 %v10791_v6  ;;  %v15473_v37 = vpack.c.bf16 %v2290_v7, %v2282_v39 }
 0x177   :  { %v13940_v31 = vld [vmem:[#allocation6 + $0x5c] sm:$0xf0] }
 0x178   :  { %v10502_v43 = vld [vmem:[#allocation6 + $0x240] sm:$0xf]  ;;  %v10247_v59 = vor.u32 %v13940_v31, %v10246_v42  ;;  %5441 = vmatpush.bf16.msra.mxu3 %v11047_v27  ;;  %v15476_v42 = vpack.c.bf16 %v2291_v24, %v2283_v14 }
 0x179   :  { %v14004_v44 = vld [vmem:[#allocation6 + $0x25c] sm:$0xf0] }
 0x17a   :  { %v10758_v45 = vld [vmem:[#allocation6 + $0x440] sm:$0xf]  ;;  %v10503_v50 = vor.u32 %v14004_v44, %v10502_v43  ;;  %5400 = vmatpush.bf16.msra.mxu0 %v10247_v59  ;;  %v2065_v59 = vpop.f32.mrf.mxu0 }
 0x17b   :  { %v14068_v48 = vld [vmem:[#allocation6 + $0x45c] sm:$0xf0] }
 0x17c   :  { %v11014_v55 = vld [vmem:[#allocation6 + $0x640] sm:$0xf]  ;;  %v10759_v62 = vor.u32 %v14068_v48, %v10758_v45  ;;  %5414 = vmatpush.bf16.msra.mxu1 %v10503_v50  ;;  %v2066_v50 = vadd.f32 %v2065_v59, %v520_v54 }
 0x17d   :  { %v14132_v60 = vld [vmem:[#allocation6 + $0x65c] sm:$0xf0] }
 0x17e   :  { %v10214_v30 = vld [vmem:[#allocation6] sm:$0xf]  ;;  %v11015_v36 = vor.u32 %v14132_v60, %v11014_v55  ;;  %5428 = vmatpush.bf16.msra.mxu2 %v10759_v62  ;;  %v2079_v62 = vpop.f32.mrf.mxu1 }
 0x17f   :  { %v13932_v1 = vld [vmem:[#allocation6 + $0x1c] sm:$0xf0]  ;;  %v2080_v40 = vadd.f32 %v2079_v62, %v2066_v50 }
 0x180   :  { %v10470_v53 = vld [vmem:[#allocation6 + $0x200] sm:$0xf]  ;;  %v10215_v8 = vor.u32 %v13932_v1, %v10214_v30  ;;  %5442 = vmatpush.bf16.msra.mxu3 %v11015_v36 }
 0x181   :  { %v13996_v3 = vld [vmem:[#allocation6 + $0x21c] sm:$0xf0] }
 0x182   :  { %v10726_v12 = vld [vmem:[#allocation6 + $0x400] sm:$0xf]  ;;  %v10471_v21 = vor.u32 %v13996_v3, %v10470_v53  ;;  %5401 = vmatpush.bf16.msra.mxu0 %v10215_v8  ;;  %v2067_v7 = vpop.f32.mrf.mxu0 }
 0x183   :  { %v14060_v0 = vld [vmem:[#allocation6 + $0x41c] sm:$0xf0] }
 0x184   :  { %v11462_v13 = vld [vmem:[#allocation6 + $0x9c0] sm:$0xf]  ;;  %v10727_v63 = vor.u32 %v14060_v0, %v10726_v12  ;;  %5415 = vmatpush.bf16.msra.mxu1 %v10471_v21 }
 0x185   :  { %v14244_v15 = vld [vmem:[#allocation6 + $0x9dc] sm:$0xf0]  ;;  %5402 = vmatmul.bf16.vlgmr.msra.gmra.mxu0 %v15469_v46  ;;  %v2107_v33 = vpop.f32.mrf.mxu3 }
 0x186   :  { %v11718_v17 = vld [vmem:[#allocation6 + $0xbc0] sm:$0xf]  ;;  %v11463_v22 = vor.u32 %v14244_v15, %v11462_v13  ;;  %5429 = vmatpush.bf16.msra.mxu2 %v10727_v63  ;;  %v2093_v15 = vpop.f32.mrf.mxu2 }
 0x187   :  { %v14308_v18 = vld [vmem:[#allocation6 + $0xbdc] sm:$0xf0]  ;;  %5416 = vmatmul.bf16.vlgmr.msra.gmra.mxu1 %v15471_v34  ;;  %v2094_v8 = vadd.f32 %v2093_v15, %v2080_v40  ;;  %v10632_v15 = vld [vmem:[#allocation6 + $0x360] sm:$0xf0] }
 0x188   :  { %v10982_v28 = vld [vmem:[#allocation6 + $0x600] sm:$0xf]  ;;  %v11719_v16 = vor.u32 %v14308_v18, %v11718_v17  ;;  %5450 = vmatpush.bf16.msrb.mxu0 %v11463_v22 }
 0x189   :  { %v14124_v25 = vld [vmem:[#allocation6 + $0x61c] sm:$0xf0]  ;;  %5430 = vmatmul.bf16.vlgmr.msra.gmra.mxu2 %v15473_v37 }
 0x18a   :  { %v11430_v26 = vld [vmem:[#allocation6 + $0x980] sm:$0xf]  ;;  %v10983_v35 = vor.u32 %v14124_v25, %v10982_v28  ;;  %5464 = vmatpush.bf16.msrb.mxu1 %v11719_v16  ;;  %v2068_v25 = vadd.f32 %v2067_v7, %v520_v54  ;;  %v10344_v7 = vld [vmem:[#allocation6 + $0x120] sm:$0xf0] }
 0x18b   :  { %v14236_v38 = vld [vmem:[#allocation6 + $0x99c] sm:$0xf0] }
 0x18c   :  { %v11686_v4 = vld [vmem:[#allocation6 + $0xb80] sm:$0xf]  ;;  %v11431_v9 = vor.u32 %v14236_v38, %v11430_v26  ;;  %5443 = vmatpush.bf16.msra.mxu3 %v10983_v35  ;;  %v2081_v26 = vpop.f32.mrf.mxu1  ;;  %v2108_v35 = vadd.f32 %v2107_v33, %v2094_v8  ;;  %v10952_v8 = vld [vmem:[#allocation6 + $0x5e0] sm:$0xf0] }
 0x18d   :  { %v14300_v29 = vld [vmem:[#allocation6 + $0xb9c] sm:$0xf0]  ;;  %v2082_v14 = vadd.f32 %v2081_v26, %v2068_v25  ;;  %v14104_v26 = vld [vmem:[#allocation6 + $0x584] sm:$0xf] }
 0x18e   :  { %v11398_v20 = vld [vmem:[#allocation6 + $0x940] sm:$0xf]  ;;  %v11687_v6 = vor.u32 %v14300_v29, %v11686_v4  ;;  %5451 = vmatpush.bf16.msrb.mxu0 %v11431_v9  ;;  %v2284_v54 = vmax.f32 %v2108_v35, 0.0  ;;  %v13952_v35 = vld [vmem:[#allocation6 + $0xc4] sm:$0xf] }
 0x18f   :  { %v11974_v41 = vld [vmem:[#allocation6 + $0xdc0] sm:$0xf]  ;;  %5444 = vmatmul.bf16.vlgmr.msra.gmra.mxu3 %v15476_v42 }
 0x190   :  { %v14372_v47 = vld [vmem:[#allocation6 + $0xddc] sm:$0xf0]  ;;  %5465 = vmatpush.bf16.msrb.mxu1 %v11687_v6 }
 0x191   :  { %v14228_v2 = vld [vmem:[#allocation6 + $0x95c] sm:$0xf0]  ;;  %v11975_v32 = vor.u32 %v14372_v47, %v11974_v41 }
 0x192   :  { %v11654_v11 = vld [vmem:[#allocation6 + $0xb40] sm:$0xf]  ;;  %v11399_v43 = vor.u32 %v14228_v2, %v11398_v20  ;;  %v2095_v2 = vpop.f32.mrf.mxu2 }
 0x193   :  { %v14292_v5 = vld [vmem:[#allocation6 + $0xb5c] sm:$0xf0]  ;;  %5478 = vmatpush.bf16.msrb.mxu2 %v11975_v32 }
 0x194   :  { %v11366_v31 = vld [vmem:[#allocation6 + $0x900] sm:$0xf]  ;;  %v11655_v45 = vor.u32 %v14292_v5, %v11654_v11  ;;  %5452 = vmatpush.bf16.msrb.mxu0 %v11399_v43  ;;  %v13984_v11 = vld [vmem:[#allocation6 + $0x1c4] sm:$0xf]  ;;  %v2096_v43 = vadd.f32 %v2095_v2, %v2082_v14  ;;  %v521_v14 = vperm.slane %v15407_v52, 5 }
 0x195   :  { %v14220_v44 = vld [vmem:[#allocation6 + $0x91c] sm:$0xf0]  ;;  %v14096_v2 = vld [vmem:[#allocation6 + $0x544] sm:$0xf] }
 0x196   :  { %v11942_v48 = vld [vmem:[#allocation6 + $0xd80] sm:$0xf]  ;;  %v11367_v27 = vor.u32 %v14220_v44, %v11366_v31  ;;  %5466 = vmatpush.bf16.msrb.mxu1 %v11655_v45  ;;  %v2109_v44 = vpop.f32.mrf.mxu3  ;;  %v10440_v45 = vld [vmem:[#allocation6 + $0x1e0] sm:$0xf0] }
 0x197   :  { %v14364_v49 = vld [vmem:[#allocation6 + $0xd9c] sm:$0xf0] }
 0x198   :  { %v11622_v56 = vld [vmem:[#allocation6 + $0xb00] sm:$0xf]  ;;  %v11943_v51 = vor.u32 %v14364_v49, %v11942_v48  ;;  %5453 = vmatpush.bf16.msrb.mxu0 %v11367_v27  ;;  %v14048_v48 = vld [vmem:[#allocation6 + $0x3c4] sm:$0xf] }
 0x199   :  { %v14284_v58 = vld [vmem:[#allocation6 + $0xb1c] sm:$0xf0]  ;;  %v10696_v49 = vld [vmem:[#allocation6 + $0x3e0] sm:$0xf0] }
 0x19a   :  { %5479 = vmatpush.bf16.msrb.mxu2 %v11943_v51  ;;  %v11334_v55 = vld [vmem:[#allocation6 + $0x8c0] sm:$0xf]  ;;  %v11623_v60 = vor.u32 %v14284_v58, %v11622_v56  ;;  %v2110_v56 = vadd.f32 %v2109_v44, %v2096_v43  ;;  %v10888_v43 = vld [vmem:[#allocation6 + $0x560] sm:$0xf0] }
 0x19b   :  { %v11910_v30 = vld [vmem:[#allocation6 + $0xd40] sm:$0xf]  ;;  %v10891_v52 = vor.u32 %v14096_v2, %v10888_v43  ;;  %v14304_v2 = vld [vmem:[#allocation6 + $0xbc4] sm:$0xf] }
 0x19c   :  { %v14356_v61 = vld [vmem:[#allocation6 + $0xd5c] sm:$0xf0]  ;;  %5467 = vmatpush.bf16.msrb.mxu1 %v11623_v60  ;;  %v13976_v60 = vld [vmem:[#allocation6 + $0x184] sm:$0xf]  ;;  %v2292_v62 = vmax.f32 %v2110_v56, 0.0 }
 0x19d   :  { %v14212_v23 = vld [vmem:[#allocation6 + $0x8dc] sm:$0xf0]  ;;  %v11911_v3 = vor.u32 %v14356_v61, %v11910_v30  ;;  %v10408_v30 = vld [vmem:[#allocation6 + $0x1a0] sm:$0xf0]  ;;  %v10699_v61 = vor.u32 %v14048_v48, %v10696_v49 }
 0x19e   :  { %v11590_v1 = vld [vmem:[#allocation6 + $0xac0] sm:$0xf]  ;;  %v11335_v10 = vor.u32 %v14212_v23, %v11334_v55  ;;  %v10443_v55 = vor.u32 %v13984_v11, %v10440_v45  ;;  %v14040_v23 = vld [vmem:[#allocation6 + $0x384] sm:$0xf]  ;;  %v2121_v11 = vpop.f32.mrf.mxu0  ;;  %v2135_v45 = vpop.f32.mrf.mxu1 }
 0x19f   :  { %v14276_v53 = vld [vmem:[#allocation6 + $0xadc] sm:$0xf0]  ;;  %5480 = vmatpush.bf16.msrb.mxu2 %v11911_v3  ;;  %v13968_v3 = vld [vmem:[#allocation6 + $0x144] sm:$0xf]  ;;  %v2122_v44 = vadd.f32 %v2121_v11, %v521_v14 }
 0x1a0   :  { %v11302_v12 = vld [vmem:[#allocation6 + $0x880] sm:$0xf]  ;;  %v11591_v0 = vor.u32 %v14276_v53, %v11590_v1  ;;  %5454 = vmatpush.bf16.msrb.mxu0 %v11335_v10  ;;  %v10664_v1 = vld [vmem:[#allocation6 + $0x3a0] sm:$0xf0]  ;;  %v15482_v53 = vpack.c.bf16 %v2292_v62, %v2284_v54 }
 0x1a1   :  { %v11878_v13 = vld [vmem:[#allocation6 + $0xd00] sm:$0xf]  ;;  %v13944_v48 = vld [vmem:[#allocation6 + $0x84] sm:$0xf] }
 0x1a2   :  { %v14348_v36 = vld [vmem:[#allocation6 + $0xd1c] sm:$0xf0]  ;;  %5468 = vmatpush.bf16.msrb.mxu1 %v11591_v0  ;;  %v10376_v0 = vld [vmem:[#allocation6 + $0x160] sm:$0xf0] }
 0x1a3   :  { %v14204_v17 = vld [vmem:[#allocation6 + $0x89c] sm:$0xf0]  ;;  %v11879_v19 = vor.u32 %v14348_v36, %v11878_v13  ;;  %v10667_v13 = vor.u32 %v14040_v23, %v10664_v1  ;;  %v14032_v36 = vld [vmem:[#allocation6 + $0x344] sm:$0xf] }
 0x1a4   :  { %v11558_v18 = vld [vmem:[#allocation6 + $0xa80] sm:$0xf]  ;;  %v11303_v39 = vor.u32 %v14204_v17, %v11302_v12  ;;  %v10411_v12 = vor.u32 %v13976_v60, %v10408_v30  ;;  %v10280_v49 = vld [vmem:[#allocation6 + $0xa0] sm:$0xf0] }
 0x1a5   :  { %v14268_v57 = vld [vmem:[#allocation6 + $0xa9c] sm:$0xf0]  ;;  %5481 = vmatpush.bf16.msrb.mxu2 %v11879_v19  ;;  %v14112_v19 = vld [vmem:[#allocation6 + $0x5c4] sm:$0xf]  ;;  %v2163_v23 = vpop.f32.mrf.mxu3 }
 0x1a6   :  { %v11270_v21 = vld [vmem:[#allocation6 + $0x840] sm:$0xf]  ;;  %v11559_v63 = vor.u32 %v14268_v57, %v11558_v18  ;;  %5455 = vmatpush.bf16.msrb.mxu0 %v11303_v39  ;;  %v13960_v39 = vld [vmem:[#allocation6 + $0x104] sm:$0xf] }
 0x1a7   :  { %v11846_v22 = vld [vmem:[#allocation6 + $0xcc0] sm:$0xf]  ;;  %v10536_v60 = vld [vmem:[#allocation6 + $0x2a0] sm:$0xf0] }
 0x1a8   :  { %v14340_v28 = vld [vmem:[#allocation6 + $0xcdc] sm:$0xf0]  ;;  %5469 = vmatpush.bf16.msrb.mxu1 %v11559_v63  ;;  %v10379_v63 = vor.u32 %v13968_v3, %v10376_v0  ;;  %v13936_v1 = vld [vmem:[#allocation6 + $0x44] sm:$0xf] }
 0x1a9   :  { %v14196_v16 = vld [vmem:[#allocation6 + $0x85c] sm:$0xf0]  ;;  %v11847_v29 = vor.u32 %v14340_v28, %v11846_v22  ;;  %v10635_v22 = vor.u32 %v14032_v36, %v10632_v15  ;;  %v10248_v3 = vld [vmem:[#allocation6 + $0x60] sm:$0xf0]  ;;  %v2123_v15 = vpop.f32.mrf.mxu0 }
 0x1aa   :  { %v11526_v38 = vld [vmem:[#allocation6 + $0xa40] sm:$0xf]  ;;  %v11271_v9 = vor.u32 %v14196_v16, %v11270_v21  ;;  %v10955_v21 = vor.u32 %v14112_v19, %v10952_v8  ;;  %v14024_v16 = vld [vmem:[#allocation6 + $0x304] sm:$0xf]  ;;  %v2137_v8 = vpop.f32.mrf.mxu1 }
 0x1ab   :  { %v14260_v4 = vld [vmem:[#allocation6 + $0xa5c] sm:$0xf0]  ;;  %5482 = vmatpush.bf16.msrb.mxu2 %v11847_v29  ;;  %v10920_v29 = vld [vmem:[#allocation6 + $0x5a0] sm:$0xf0] }
 0x1ac   :  { %v11238_v24 = vld [vmem:[#allocation6 + $0x800] sm:$0xf]  ;;  %v11527_v6 = vor.u32 %v14260_v4, %v11526_v38  ;;  %5456 = vmatpush.bf16.msrb.mxu0 %v11271_v9  ;;  %v10600_v38 = vld [vmem:[#allocation6 + $0x320] sm:$0xf0] }
 0x1ad   :  { %v14188_v20 = vld [vmem:[#allocation6 + $0x81c] sm:$0xf0]  ;;  %v10312_v9 = vld [vmem:[#allocation6 + $0xe0] sm:$0xf0] }
 0x1ae   :  { %v11814_v41 = vld [vmem:[#allocation6 + $0xc80] sm:$0xf]  ;;  %v11239_v58 = vor.u32 %v14188_v20, %v11238_v24  ;;  %5470 = vmatpush.bf16.msrb.mxu1 %v11527_v6  ;;  %v10923_v24 = vor.u32 %v14104_v26, %v10920_v29  ;;  %v10347_v20 = vor.u32 %v13960_v39, %v10344_v7  ;;  %v10603_v6 = vor.u32 %v14024_v16, %v10600_v38  ;;  %v10824_v19 = vld [vmem:[#allocation6 + $0x4e0] sm:$0xf0] }
 0x1af   :  { %v14332_v47 = vld [vmem:[#allocation6 + $0xc9c] sm:$0xf0]  ;;  %v10315_v54 = vor.u32 %v13952_v35, %v10312_v9  ;;  %v13928_v7 = vld [vmem:[#allocation6 + $0x4] sm:$0xf] }
 0x1b0   :  { %v11494_v5 = vld [vmem:[#allocation6 + $0xa00] sm:$0xf]  ;;  %v11815_v31 = vor.u32 %v14332_v47, %v11814_v41  ;;  %5457 = vmatpush.bf16.msrb.mxu0 %v11239_v58  ;;  %v14072_v16 = vld [vmem:[#allocation6 + $0x484] sm:$0xf] }
 0x1b1   :  { %v14252_v32 = vld [vmem:[#allocation6 + $0xa1c] sm:$0xf0]  ;;  %v10472_v29 = vld [vmem:[#allocation6 + $0x220] sm:$0xf0] }
 0x1b2   :  { %5483 = vmatpush.bf16.msrb.mxu2 %v11815_v31  ;;  %v11495_v51 = vor.u32 %v14252_v32, %v11494_v5  ;;  %v11782_v27 = vld [vmem:[#allocation6 + $0xc40] sm:$0xf]  ;;  %v14016_v5 = vld [vmem:[#allocation6 + $0x2c4] sm:$0xf] }
 0x1b3   :  { %v14324_v59 = vld [vmem:[#allocation6 + $0xc5c] sm:$0xf0]  ;;  %5458 = vmatmul.bf16.vlgmr.msrb.gmra.mxu0 %v15482_v53  ;;  %v10568_v32 = vld [vmem:[#allocation6 + $0x2e0] sm:$0xf0] }
 0x1b4   :  { %v11783_v50 = vor.u32 %v14324_v59, %v11782_v27  ;;  %5471 = vmatpush.bf16.msrb.mxu1 %v11495_v51  ;;  %v11750_v40 = vld [vmem:[#allocation6 + $0xc00] sm:$0xf]  ;;  %5506 = vmatpush.bf16.msra.mxu0 %v10443_v55  ;;  %v10571_v56 = vor.u32 %v14016_v5, %v10568_v32  ;;  %v14088_v27 = vld [vmem:[#allocation6 + $0x504] sm:$0xf]  ;;  %v2136_v59 = vadd.f32 %v2135_v45, %v2122_v44 }
 0x1b5   :  { %v14316_v10 = vld [vmem:[#allocation6 + $0xc1c] sm:$0xf0]  ;;  %v14008_v55 = vld [vmem:[#allocation6 + $0x284] sm:$0xf] }
 0x1b6   :  { %5484 = vmatpush.bf16.msrb.mxu2 %v11783_v50  ;;  %v11751_v17 = vor.u32 %v14316_v10, %v11750_v40  ;;  %v12230_v18 = vld [vmem:[#allocation6 + $0xfc0] sm:$0xf]  ;;  %v2149_v50 = vpop.f32.mrf.mxu2  ;;  %v10283_v40 = vor.u32 %v13944_v48, %v10280_v49  ;;  %v10539_v10 = vor.u32 %v14008_v55, %v10536_v60  ;;  %v10792_v35 = vld [vmem:[#allocation6 + $0x4a0] sm:$0xf0] }
 0x1b7   :  { %v14436_v57 = vld [vmem:[#allocation6 + $0xfdc] sm:$0xf0]  ;;  %v2150_v36 = vadd.f32 %v2149_v50, %v2136_v59  ;;  %v14240_v9 = vld [vmem:[#allocation6 + $0x9c4] sm:$0xf] }
 0x1b8   :  { %5520 = vmatpush.bf16.msra.mxu1 %v10699_v61  ;;  %v12231_v33 = vor.u32 %v14436_v57, %v12230_v18  ;;  %5507 = vmatpush.bf16.msra.mxu0 %v10411_v12  ;;  %v12198_v28 = vld [vmem:[#allocation6 + $0xf80] sm:$0xf]  ;;  %v10856_v61 = vld [vmem:[#allocation6 + $0x520] sm:$0xf0] }
 0x1b9   :  { %v14428_v25 = vld [vmem:[#allocation6 + $0xf9c] sm:$0xf0]  ;;  %v10859_v62 = vor.u32 %v14088_v27, %v10856_v61  ;;  %v10504_v18 = vld [vmem:[#allocation6 + $0x260] sm:$0xf0]  ;;  %v2164_v38 = vadd.f32 %v2163_v23, %v2150_v36 }
 0x1ba   :  { %5485 = vmatpush.bf16.msrb.mxu2 %v11751_v17  ;;  %5492 = vmatpush.bf16.msrb.mxu3 %v12231_v33  ;;  %v12199_v4 = vor.u32 %v14428_v25, %v12198_v28  ;;  %v12166_v41 = vld [vmem:[#allocation6 + $0xf40] sm:$0xf]  ;;  %v14000_v17 = vld [vmem:[#allocation6 + $0x244] sm:$0xf]  ;;  %v2124_v33 = vadd.f32 %v2123_v15, %v521_v14 }
 0x1bb   :  { %v14420_v47 = vld [vmem:[#allocation6 + $0xf5c] sm:$0xf0]  ;;  %v10507_v28 = vor.u32 %v14000_v17, %v10504_v18  ;;  %v14064_v43 = vld [vmem:[#allocation6 + $0x444] sm:$0xf]  ;;  %v2285_v44 = vmax.f32 %v2164_v38, 0.0 }
 0x1bc   :  { %5521 = vmatpush.bf16.msra.mxu1 %v10667_v13  ;;  %5508 = vmatpush.bf16.msra.mxu0 %v10379_v63  ;;  %v12167_v31 = vor.u32 %v14420_v47, %v12166_v41  ;;  %v12134_v58 = vld [vmem:[#allocation6 + $0xf00] sm:$0xf]  ;;  %v14080_v13 = vld [vmem:[#allocation6 + $0x4c4] sm:$0xf]  ;;  %v2138_v63 = vadd.f32 %v2137_v8, %v2124_v33  ;;  %v2165_v47 = vpop.f32.mrf.mxu3 }
 0x1bd   :  { %v14412_v51 = vld [vmem:[#allocation6 + $0xf1c] sm:$0xf0]  ;;  %v10827_v39 = vor.u32 %v14080_v13, %v10824_v19  ;;  %v11720_v48 = vld [vmem:[#allocation6 + $0xbe0] sm:$0xf0] }
 0x1be   :  { %5534 = vmatpush.bf16.msra.mxu2 %v10955_v21  ;;  %5493 = vmatpush.bf16.msrb.mxu3 %v12199_v4  ;;  %v12135_v30 = vor.u32 %v14412_v51, %v12134_v58  ;;  %v12102_v12 = vld [vmem:[#allocation6 + $0xec0] sm:$0xf]  ;;  %v10216_v21 = vld [vmem:[#allocation6 + $0x20] sm:$0xf0]  ;;  %v2151_v14 = vpop.f32.mrf.mxu2  ;;  %v11723_v59 = vor.u32 %v14304_v2, %v11720_v48 }
 0x1bf   :  { %v14404_v0 = vld [vmem:[#allocation6 + $0xedc] sm:$0xf0]  ;;  %v13992_v4 = vld [vmem:[#allocation6 + $0x204] sm:$0xf]  ;;  %v2152_v41 = vadd.f32 %v2151_v14, %v2138_v63  ;;  %v10219_v11 = vor.u32 %v13928_v7, %v10216_v21  ;;  %v15490_v21 = vld [vmem:[#allocation4] sm:$0xff] }
 0x1c0   :  { %5522 = vmatpush.bf16.msra.mxu1 %v10635_v22  ;;  %5509 = vmatpush.bf16.msra.mxu0 %v10347_v20  ;;  %v12103_v57 = vor.u32 %v14404_v0, %v12102_v12  ;;  %v10251_v22 = vor.u32 %v13936_v1, %v10248_v3  ;;  %v12070_v25 = vld [vmem:[#allocation6 + $0xe80] sm:$0xf]  ;;  %v11464_v20 = vld [vmem:[#allocation6 + $0x9e0] sm:$0xf0]  ;;  %v10475_v5 = vor.u32 %v13992_v4, %v10472_v29  ;;  %v522_v63 = vperm.slane %v15490_v21, 6 }
 0x1c1   :  { %v14396_v26 = vld [vmem:[#allocation6 + $0xe9c] sm:$0xf0]  ;;  %v2166_v45 = vadd.f32 %v2165_v47, %v2152_v41  ;;  %v11432_v58 = vld [vmem:[#allocation6 + $0x9a0] sm:$0xf0] }
 0x1c2   :  { %5535 = vmatpush.bf16.msra.mxu2 %v10923_v24  ;;  %5494 = vmatpush.bf16.msrb.mxu3 %v12167_v31  ;;  %v12071_v24 = vor.u32 %v14396_v26, %v12070_v25  ;;  %v12038_v32 = vld [vmem:[#allocation6 + $0xe40] sm:$0xf]  ;;  %v11688_v23 = vld [vmem:[#allocation6 + $0xba0] sm:$0xf0] }
 0x1c3   :  { %v14388_v31 = vld [vmem:[#allocation6 + $0xe5c] sm:$0xf0]  ;;  %v2293_v27 = vmax.f32 %v2166_v45, 0.0  ;;  %v10728_v3 = vld [vmem:[#allocation6 + $0x420] sm:$0xf0] }
 0x1c4   :  { %5523 = vmatpush.bf16.msra.mxu1 %v10603_v6  ;;  %5510 = vmatpush.bf16.msra.mxu0 %v10315_v54  ;;  %v10795_v6 = vor.u32 %v14072_v16, %v10792_v35  ;;  %v12039_v49 = vor.u32 %v14388_v31, %v12038_v32  ;;  %v10760_v54 = vld [vmem:[#allocation6 + $0x460] sm:$0xf0]  ;;  %v12006_v55 = vld [vmem:[#allocation6 + $0xe00] sm:$0xf]  ;;  %v2177_v35 = vpop.f32.mrf.mxu0 }
 0x1c5   :  { %v10763_v51 = vor.u32 %v14064_v43, %v10760_v54  ;;  %v14380_v60 = vld [vmem:[#allocation6 + $0xe1c] sm:$0xf0]  ;;  %v15486_v61 = vpack.c.bf16 %v2293_v27, %v2285_v44  ;;  %v14176_v0 = vld [vmem:[#allocation6 + $0x7c4] sm:$0xf]  ;;  %v2178_v14 = vadd.f32 %v2177_v35, %v522_v63  ;;  %v2219_v48 = vpop.f32.mrf.mxu3 }
 0x1c6   :  { %5536 = vmatpush.bf16.msra.mxu2 %v10891_v52  ;;  %5495 = vmatpush.bf16.msrb.mxu3 %v12135_v30  ;;  %v11467_v52 = vor.u32 %v14240_v9, %v11464_v20  ;;  %v14056_v30 = vld [vmem:[#allocation6 + $0x404] sm:$0xf]  ;;  %v12007_v1 = vor.u32 %v14380_v60, %v12006_v55  ;;  %v2191_v9 = vpop.f32.mrf.mxu1  ;;  %v2205_v44 = vpop.f32.mrf.mxu2 }
 0x1c7   :  { %v10731_v12 = vor.u32 %v14056_v30, %v10728_v3  ;;  %5472 = vmatmul.bf16.vlgmr.msrb.gmra.mxu1 %v15486_v61  ;;  %v11208_v13 = vld [vmem:[#allocation6 + $0x7e0] sm:$0xf0]  ;;  %v2192_v43 = vadd.f32 %v2191_v9, %v2178_v14 }
 0x1c8   :  { %5524 = vmatpush.bf16.msra.mxu1 %v10571_v56  ;;  %5511 = vmatpush.bf16.msra.mxu0 %v10283_v40  ;;  %v14232_v56 = vld [vmem:[#allocation6 + $0x984] sm:$0xf]  ;;  %v11211_v17 = vor.u32 %v14176_v0, %v11208_v13 }
 0x1c9   :  { %v11435_v50 = vor.u32 %v14232_v56, %v11432_v58  ;;  %v14224_v40 = vld [vmem:[#allocation6 + $0x944] sm:$0xf]  ;;  %v2206_v55 = vadd.f32 %v2205_v44, %v2192_v43  ;;  %v14045_v43 = vld [vmem:[#allocation6 + $0x3a4] sm:$0xf0] }
 0x1ca   :  { %5537 = vmatpush.bf16.msra.mxu2 %v10859_v62  ;;  %5496 = vmatpush.bf16.msrb.mxu3 %v12103_v57  ;;  %v14296_v62 = vld [vmem:[#allocation6 + $0xb84] sm:$0xf] }
 0x1cb   :  { %v11691_v36 = vor.u32 %v14296_v62, %v11688_v23  ;;  %v14288_v15 = vld [vmem:[#allocation6 + $0xb44] sm:$0xf] }
 0x1cc   :  { %5525 = vmatpush.bf16.msra.mxu1 %v10539_v10  ;;  %5512 = vmatpush.bf16.msra.mxu0 %v10251_v22  ;;  %v11400_v10 = vld [vmem:[#allocation6 + $0x960] sm:$0xf0]  ;;  %v2179_v60 = vpop.f32.mrf.mxu0 }
 0x1cd   :  { %v11403_v18 = vor.u32 %v14224_v40, %v11400_v10  ;;  %v11656_v57 = vld [vmem:[#allocation6 + $0xb60] sm:$0xf0]  ;;  %v2180_v30 = vadd.f32 %v2179_v60, %v522_v63 }
 0x1ce   :  { %5538 = vmatpush.bf16.msra.mxu2 %v10827_v39  ;;  %5497 = vmatpush.bf16.msrb.mxu3 %v12071_v24  ;;  %v14168_v19 = vld [vmem:[#allocation6 + $0x784] sm:$0xf]  ;;  %v11659_v22 = vor.u32 %v14288_v15, %v11656_v57  ;;  %v2220_v15 = vadd.f32 %v2219_v48, %v2206_v55  ;;  %v2207_v57 = vpop.f32.mrf.mxu2  ;;  %v13965_v55 = vld [vmem:[#allocation6 + $0x124] sm:$0xf0] }
 0x1cf   :  { %v11176_v33 = vld [vmem:[#allocation6 + $0x7a0] sm:$0xf0] }
 0x1d0   :  { %5526 = vmatpush.bf16.msra.mxu1 %v10507_v28  ;;  %5513 = vmatpush.bf16.msra.mxu0 %v10219_v11  ;;  %v14216_v8 = vld [vmem:[#allocation6 + $0x904] sm:$0xf]  ;;  %v11179_v7 = vor.u32 %v14168_v19, %v11176_v33 }
 0x1d1   :  { %v11368_v39 = vld [vmem:[#allocation6 + $0x920] sm:$0xf0] }
 0x1d2   :  { %5539 = vmatpush.bf16.msra.mxu2 %v10795_v6  ;;  %5498 = vmatpush.bf16.msrb.mxu3 %v12039_v49  ;;  %v14280_v28 = vld [vmem:[#allocation6 + $0xb04] sm:$0xf]  ;;  %v11371_v25 = vor.u32 %v14216_v8, %v11368_v39 }
 0x1d3   :  { %5514 = vmatmul.bf16.vlgmr.msra.gmra.mxu0 %v15469_v46  ;;  %v11624_v26 = vld [vmem:[#allocation6 + $0xb20] sm:$0xf0] }
 0x1d4   :  { %5527 = vmatpush.bf16.msra.mxu1 %v10475_v5  ;;  %5562 = vmatpush.bf16.msrb.mxu0 %v11467_v52  ;;  %v14160_v16 = vld [vmem:[#allocation6 + $0x744] sm:$0xf]  ;;  %v11627_v20 = vor.u32 %v14280_v28, %v11624_v26 }
 0x1d5   :  { %v11144_v38 = vld [vmem:[#allocation6 + $0x760] sm:$0xf0] }
 0x1d6   :  { %5540 = vmatpush.bf16.msra.mxu2 %v10763_v51  ;;  %5499 = vmatpush.bf16.msrb.mxu3 %v12007_v1  ;;  %v14208_v4 = vld [vmem:[#allocation6 + $0x8c4] sm:$0xf]  ;;  %v11147_v24 = vor.u32 %v14160_v16, %v11144_v38  ;;  %v13981_v16 = vld [vmem:[#allocation6 + $0x1a4] sm:$0xf0] }
 0x1d7   :  { %v11336_v29 = vld [vmem:[#allocation6 + $0x8e0] sm:$0xf0]  ;;  %5528 = vmatmul.bf16.vlgmr.msra.gmra.mxu1 %v15471_v34  ;;  %v10702_v38 = vld [vmem:[#allocation6 + $0x3c8] sm:$0xf] }
 0x1d8   :  { %5576 = vmatpush.bf16.msrb.mxu1 %v11723_v59  ;;  %5563 = vmatpush.bf16.msrb.mxu0 %v11435_v50  ;;  %v14272_v6 = vld [vmem:[#allocation6 + $0xac4] sm:$0xf]  ;;  %v11339_v41 = vor.u32 %v14208_v4, %v11336_v29  ;;  %v2193_v50 = vpop.f32.mrf.mxu1  ;;  %v14053_v4 = vld [vmem:[#allocation6 + $0x3e4] sm:$0xf0] }
 0x1d9   :  { %v11592_v47 = vld [vmem:[#allocation6 + $0xae0] sm:$0xf0] }
 0x1da   :  { %5541 = vmatpush.bf16.msra.mxu2 %v10731_v12  ;;  %5548 = vmatpush.bf16.msra.mxu3 %v11211_v17  ;;  %v14152_v2 = vld [vmem:[#allocation6 + $0x704] sm:$0xf]  ;;  %v11595_v45 = vor.u32 %v14272_v6, %v11592_v47  ;;  %v2194_v12 = vadd.f32 %v2193_v50, %v2180_v30  ;;  %v10446_v17 = vld [vmem:[#allocation6 + $0x1c8] sm:$0xf] }
 0x1db   :  { %v11112_v11 = vld [vmem:[#allocation6 + $0x720] sm:$0xf0] }
 0x1dc   :  { %5577 = vmatpush.bf16.msrb.mxu1 %v11691_v36  ;;  %5564 = vmatpush.bf16.msrb.mxu0 %v11403_v18  ;;  %v14200_v5 = vld [vmem:[#allocation6 + $0x884] sm:$0xf]  ;;  %v11115_v31 = vor.u32 %v14152_v2, %v11112_v11  ;;  %v13989_v18 = vld [vmem:[#allocation6 + $0x1e4] sm:$0xf0]  ;;  %v2208_v39 = vadd.f32 %v2207_v57, %v2194_v12 }
 0x1dd   :  { %v11304_v32 = vld [vmem:[#allocation6 + $0x8a0] sm:$0xf0]  ;;  %v10447_v26 = vor.u32 %v13989_v18, %v10446_v17  ;;  %v10286_v57 = vld [vmem:[#allocation6 + $0x88] sm:$0xf] }
 0x1de   :  { %5549 = vmatpush.bf16.msra.mxu3 %v11179_v7  ;;  %v14264_v52 = vld [vmem:[#allocation6 + $0xa84] sm:$0xf]  ;;  %v11307_v49 = vor.u32 %v14200_v5, %v11304_v32  ;;  %v2221_v7 = vpop.f32.mrf.mxu3  ;;  %v10382_v32 = vld [vmem:[#allocation6 + $0x148] sm:$0xf] }
 0x1df   :  { %v11560_v54 = vld [vmem:[#allocation6 + $0xaa0] sm:$0xf0]  ;;  %v2222_v35 = vadd.f32 %v2221_v7, %v2208_v39  ;;  %v13949_v39 = vld [vmem:[#allocation6 + $0xa4] sm:$0xf0] }
 0x1e0   :  { %5578 = vmatpush.bf16.msrb.mxu1 %v11659_v22  ;;  %5565 = vmatpush.bf16.msrb.mxu0 %v11371_v25  ;;  %v14144_v56 = vld [vmem:[#allocation6 + $0x6c4] sm:$0xf]  ;;  %v11563_v62 = vor.u32 %v14264_v52, %v11560_v54  ;;  %v10414_v22 = vld [vmem:[#allocation6 + $0x188] sm:$0xf] }
 0x1e1   :  { %v11080_v58 = vld [vmem:[#allocation6 + $0x6e0] sm:$0xf0]  ;;  %v2294_v6 = vmax.f32 %v2222_v35, 0.0  ;;  %v10415_v11 = vor.u32 %v13981_v16, %v10414_v22  ;;  %v10542_v16 = vld [vmem:[#allocation6 + $0x288] sm:$0xf] }
 0x1e2   :  { %5550 = vmatpush.bf16.msra.mxu3 %v11147_v24  ;;  %v14192_v51 = vld [vmem:[#allocation6 + $0x844] sm:$0xf]  ;;  %v11083_v59 = vor.u32 %v14144_v56, %v11080_v58  ;;  %v2286_v24 = vmax.f32 %v2220_v15, 0.0 }
 0x1e3   :  { %v11272_v27 = vld [vmem:[#allocation6 + $0x860] sm:$0xf0] }
 0x1e4   :  { %5579 = vmatpush.bf16.msrb.mxu1 %v11627_v20  ;;  %5566 = vmatpush.bf16.msrb.mxu0 %v11339_v41  ;;  %v14256_v23 = vld [vmem:[#allocation6 + $0xa44] sm:$0xf]  ;;  %v11275_v1 = vor.u32 %v14192_v51, %v11272_v27  ;;  %v10703_v41 = vor.u32 %v14053_v4, %v10702_v38  ;;  %v15494_v44 = vpack.c.bf16 %v2294_v6, %v2286_v24  ;;  %v10350_v51 = vld [vmem:[#allocation6 + $0x108] sm:$0xf]  ;;  %v2261_v4 = vpop.f32.mrf.mxu2 }
 0x1e5   :  { %v11528_v3 = vld [vmem:[#allocation6 + $0xa60] sm:$0xf0]  ;;  %v10638_v27 = vld [vmem:[#allocation6 + $0x348] sm:$0xf] }
 0x1e6   :  { %5551 = vmatpush.bf16.msra.mxu3 %v11115_v31  ;;  %v14136_v40 = vld [vmem:[#allocation6 + $0x684] sm:$0xf]  ;;  %v11531_v19 = vor.u32 %v14256_v23, %v11528_v3  ;;  %v10670_v31 = vld [vmem:[#allocation6 + $0x388] sm:$0xf]  ;;  %5486 = vmatmul.bf16.vlgmr.msrb.gmra.mxu2 %v15494_v44 }
 0x1e7   :  { %v11048_v10 = vld [vmem:[#allocation6 + $0x6a0] sm:$0xf0]  ;;  %v10671_v54 = vor.u32 %v14045_v43, %v10670_v31  ;;  %v10606_v3 = vld [vmem:[#allocation6 + $0x308] sm:$0xf] }
 0x1e8   :  { %5580 = vmatpush.bf16.msrb.mxu1 %v11595_v45  ;;  %5567 = vmatpush.bf16.msrb.mxu0 %v11307_v49  ;;  %v14184_v0 = vld [vmem:[#allocation6 + $0x804] sm:$0xf]  ;;  %v11051_v36 = vor.u32 %v14136_v40, %v11048_v10  ;;  %v13973_v45 = vld [vmem:[#allocation6 + $0x164] sm:$0xf0] }
 0x1e9   :  { %v11240_v13 = vld [vmem:[#allocation6 + $0x820] sm:$0xf0]  ;;  %v10383_v56 = vor.u32 %v13973_v45, %v10382_v32  ;;  %v14029_v40 = vld [vmem:[#allocation6 + $0x324] sm:$0xf0] }
 0x1ea   :  { %5552 = vmatpush.bf16.msra.mxu3 %v11083_v59  ;;  %v14248_v33 = vld [vmem:[#allocation6 + $0xa04] sm:$0xf]  ;;  %v11243_v63 = vor.u32 %v14184_v0, %v11240_v13  ;;  %v14037_v59 = vld [vmem:[#allocation6 + $0x364] sm:$0xf0]  ;;  %v523_v13 = vperm.slane %v15490_v21, 7  ;;  %v10607_v15 = vor.u32 %v14029_v40, %v10606_v3  ;;  %v10287_v21 = vor.u32 %v13949_v39, %v10286_v57 }
 0x1eb   :  { %v11496_v8 = vld [vmem:[#allocation6 + $0xa20] sm:$0xf0]  ;;  %v10639_v50 = vor.u32 %v14037_v59, %v10638_v27  ;;  %v13957_v10 = vld [vmem:[#allocation6 + $0xe4] sm:$0xf0] }
 0x1ec   :  { %5581 = vmatpush.bf16.msrb.mxu1 %v11563_v62  ;;  %5568 = vmatpush.bf16.msrb.mxu0 %v11275_v1  ;;  %v14128_v28 = vld [vmem:[#allocation6 + $0x644] sm:$0xf]  ;;  %v11499_v20 = vor.u32 %v14248_v33, %v11496_v8  ;;  %v10351_v62 = vor.u32 %v13965_v55, %v10350_v51  ;;  %v10318_v1 = vld [vmem:[#allocation6 + $0xc8] sm:$0xf]  ;;  %v2247_v8 = vpop.f32.mrf.mxu1 }
 0x1ed   :  { %v11016_v25 = vld [vmem:[#allocation6 + $0x660] sm:$0xf0]  ;;  %v10319_v17 = vor.u32 %v13957_v10, %v10318_v1  ;;  %v14021_v33 = vld [vmem:[#allocation6 + $0x2e4] sm:$0xf0] }
 0x1ee   :  { %5553 = vmatpush.bf16.msra.mxu3 %v11051_v36  ;;  %v11019_v29 = vor.u32 %v14128_v28, %v11016_v25  ;;  %v14368_v14 = vld [vmem:[#allocation6 + $0xdc4] sm:$0xf]  ;;  %v2233_v36 = vpop.f32.mrf.mxu0  ;;  %v14013_v38 = vld [vmem:[#allocation6 + $0x2a4] sm:$0xf0] }
 0x1ef   :  { %v11976_v9 = vld [vmem:[#allocation6 + $0xde0] sm:$0xf0]  ;;  %v2234_v22 = vadd.f32 %v2233_v36, %v523_v13  ;;  %v13941_v24 = vld [vmem:[#allocation6 + $0x64] sm:$0xf0]  ;;  %v10543_v6 = vor.u32 %v14013_v38, %v10542_v16 }
 0x1f0   :  { %5582 = vmatpush.bf16.msrb.mxu1 %v11531_v19  ;;  %5569 = vmatpush.bf16.msrb.mxu0 %v11243_v63  ;;  %v14120_v47 = vld [vmem:[#allocation6 + $0x604] sm:$0xf]  ;;  %v11979_v5 = vor.u32 %v14368_v14, %v11976_v9  ;;  %v10574_v19 = vld [vmem:[#allocation6 + $0x2c8] sm:$0xf] }
 0x1f1   :  { %v10984_v2 = vld [vmem:[#allocation6 + $0x620] sm:$0xf0]  ;;  %v10575_v28 = vor.u32 %v14021_v33, %v10574_v19  ;;  %v2248_v9 = vadd.f32 %v2247_v8, %v2234_v22  ;;  %v14005_v32 = vld [vmem:[#allocation6 + $0x264] sm:$0xf0] }
 0x1f2   :  { %5554 = vmatpush.bf16.msra.mxu3 %v11019_v29  ;;  %v14360_v52 = vld [vmem:[#allocation6 + $0xd84] sm:$0xf]  ;;  %v10987_v49 = vor.u32 %v14120_v47, %v10984_v2  ;;  %5590 = vmatpush.bf16.msrb.mxu2 %v11979_v5  ;;  %v2275_v29 = vpop.f32.mrf.mxu3  ;;  %v10510_v5 = vld [vmem:[#allocation6 + $0x248] sm:$0xf] }
 0x1f3   :  { %v11944_v48 = vld [vmem:[#allocation6 + $0xda0] sm:$0xf0]  ;;  %5570 = vmatmul.bf16.vlgmr.msrb.gmra.mxu0 %v15482_v53  ;;  %v13933_v31 = vld [vmem:[#allocation6 + $0x24] sm:$0xf0] }
 0x1f4   :  { %5618 = vmatpush.bf16.msra.mxu0 %v10447_v26  ;;  %5583 = vmatpush.bf16.msrb.mxu1 %v11499_v20  ;;  %v11947_v58 = vor.u32 %v14360_v52, %v11944_v48  ;;  %v14352_v60 = vld [vmem:[#allocation6 + $0xd44] sm:$0xf]  ;;  %v10254_v26 = vld [vmem:[#allocation6 + $0x48] sm:$0xf]  ;;  %v2262_v52 = vadd.f32 %v2261_v4, %v2248_v9 }
 0x1f5   :  { %v11912_v30 = vld [vmem:[#allocation6 + $0xd60] sm:$0xf0]  ;;  %v10255_v47 = vor.u32 %v13941_v24, %v10254_v26  ;;  %v11470_v48 = vld [vmem:[#allocation6 + $0x9c8] sm:$0xf] }
 0x1f6   :  { %5555 = vmatpush.bf16.msra.mxu3 %v10987_v49  ;;  %5591 = vmatpush.bf16.msrb.mxu2 %v11947_v58  ;;  %v11915_v23 = vor.u32 %v14352_v60, %v11912_v30  ;;  %v14344_v12 = vld [vmem:[#allocation6 + $0xd04] sm:$0xf]  ;;  %v2235_v20 = vpop.f32.mrf.mxu0  ;;  %v14245_v49 = vld [vmem:[#allocation6 + $0x9e4] sm:$0xf0]  ;;  %v2276_v40 = vadd.f32 %v2275_v29, %v2262_v52 }
 0x1f7   :  { %5584 = vmatmul.bf16.vlgmr.msrb.gmra.mxu1 %v15486_v61  ;;  %v11880_v0 = vld [vmem:[#allocation6 + $0xd20] sm:$0xf0]  ;;  %5542 = vmatmul.bf16.vlgmr.msra.gmra.mxu2 %v15473_v37  ;;  %v10478_v60 = vld [vmem:[#allocation6 + $0x208] sm:$0xf] }
 0x1f8   :  { %5632 = vmatpush.bf16.msra.mxu1 %v10703_v41  ;;  %5619 = vmatpush.bf16.msra.mxu0 %v10415_v11  ;;  %v11883_v18 = vor.u32 %v14344_v12, %v11880_v0  ;;  %v14336_v7 = vld [vmem:[#allocation6 + $0xcc4] sm:$0xf]  ;;  %v2236_v41 = vadd.f32 %v2235_v20, %v523_v13  ;;  %v10222_v11 = vld [vmem:[#allocation6 + $0x8] sm:$0xf] }
 0x1f9   :  { %v11848_v63 = vld [vmem:[#allocation6 + $0xce0] sm:$0xf0]  ;;  %v10223_v27 = vor.u32 %v13933_v31, %v10222_v11  ;;  %v13997_v30 = vld [vmem:[#allocation6 + $0x224] sm:$0xf0] }
 0x1fa   :  { %5592 = vmatpush.bf16.msrb.mxu2 %v11915_v23  ;;  %v11851_v25 = vor.u32 %v14336_v7, %v11848_v63  ;;  %v14328_v35 = vld [vmem:[#allocation6 + $0xc84] sm:$0xf]  ;;  %v11438_v23 = vld [vmem:[#allocation6 + $0x988] sm:$0xf]  ;;  %v2277_v36 = vpop.f32.mrf.mxu3 }
 0x1fb   :  { %v11816_v14 = vld [vmem:[#allocation6 + $0xca0] sm:$0xf0]  ;;  %v11726_v1 = vld [vmem:[#allocation6 + $0xbc8] sm:$0xf] }
 0x1fc   :  { %5633 = vmatpush.bf16.msra.mxu1 %v10671_v54  ;;  %5620 = vmatpush.bf16.msra.mxu0 %v10383_v56  ;;  %v11819_v2 = vor.u32 %v14328_v35, %v11816_v14  ;;  %v14320_v43 = vld [vmem:[#allocation6 + $0xc44] sm:$0xf]  ;;  %v2249_v54 = vpop.f32.mrf.mxu1  ;;  %v10511_v56 = vor.u32 %v14005_v32, %v10510_v5  ;;  %v14309_v3 = vld [vmem:[#allocation6 + $0xbe4] sm:$0xf0] }
 0x1fd   :  { %v11784_v45 = vld [vmem:[#allocation6 + $0xc60] sm:$0xf0]  ;;  %v2250_v51 = vadd.f32 %v2249_v54, %v2236_v41  ;;  %v14237_v12 = vld [vmem:[#allocation6 + $0x9a4] sm:$0xf0]  ;;  %v11727_v33 = vor.u32 %v14309_v3, %v11726_v1 }
 0x1fe   :  { %5593 = vmatpush.bf16.msrb.mxu2 %v11883_v18  ;;  %v14312_v58 = vld [vmem:[#allocation6 + $0xc04] sm:$0xf]  ;;  %v11787_v59 = vor.u32 %v14320_v43, %v11784_v45  ;;  %v10958_v0 = vld [vmem:[#allocation6 + $0x5c8] sm:$0xf]  ;;  %v11439_v39 = vor.u32 %v14237_v12, %v11438_v23 }
 0x1ff   :  { %v11752_v55 = vld [vmem:[#allocation6 + $0xc20] sm:$0xf0]  ;;  %v14117_v13 = vld [vmem:[#allocation6 + $0x5e4] sm:$0xf0] }
 0x200   :  { %5634 = vmatpush.bf16.msra.mxu1 %v10639_v50  ;;  %5621 = vmatpush.bf16.msra.mxu0 %v10351_v62  ;;  %v2263_v50 = vpop.f32.mrf.mxu2  ;;  %v11471_v62 = vor.u32 %v14245_v49, %v11470_v48  ;;  %v11755_v18 = vor.u32 %v14312_v58, %v11752_v55  ;;  %v14432_v57 = vld [vmem:[#allocation6 + $0xfc4] sm:$0xf]  ;;  %v11406_v8 = vld [vmem:[#allocation6 + $0x948] sm:$0xf]  ;;  %v10959_v7 = vor.u32 %v14117_v13, %v10958_v0 }
 0x201   :  { %v2264_v10 = vadd.f32 %v2263_v50, %v2250_v51  ;;  %v12232_v19 = vld [vmem:[#allocation6 + $0xfe0] sm:$0xf0]  ;;  %v14229_v63 = vld [vmem:[#allocation6 + $0x964] sm:$0xf0] }
 0x202   :  { %5594 = vmatpush.bf16.msrb.mxu2 %v11851_v25  ;;  %v11694_v22 = vld [vmem:[#allocation6 + $0xb88] sm:$0xf]  ;;  %v12235_v38 = vor.u32 %v14432_v57, %v12232_v19  ;;  %v14424_v29 = vld [vmem:[#allocation6 + $0xf84] sm:$0xf]  ;;  %v11407_v9 = vor.u32 %v14229_v63, %v11406_v8  ;;  %v5403_v55 = vpop.f32.mrf.mxu0 }
 0x203   :  { %v10926_v26 = vld [vmem:[#allocation6 + $0x588] sm:$0xf]  ;;  %v12200_v24 = vld [vmem:[#allocation6 + $0xfa0] sm:$0xf0] }
 0x204   :  { %5635 = vmatpush.bf16.msra.mxu1 %v10607_v15  ;;  %5622 = vmatpush.bf16.msra.mxu0 %v10319_v17  ;;  %v10479_v15 = vor.u32 %v13997_v30, %v10478_v60  ;;  %v2278_v17 = vadd.f32 %v2277_v36, %v2264_v10  ;;  %v14109_v16 = vld [vmem:[#allocation6 + $0x5a4] sm:$0xf0]  ;;  %v15504_v14 = vld [vmem:[#allocation7] sm:$0xff]  ;;  %v12203_v32 = vor.u32 %v14424_v29, %v12200_v24  ;;  %v5417_v1 = vpop.f32.mrf.mxu1 }
 0x205   :  { %v10927_v20 = vor.u32 %v14109_v16, %v10926_v26  ;;  %v11662_v41 = vld [vmem:[#allocation6 + $0xb48] sm:$0xf]  ;;  %v2818_v31 = vperm.slane %v15504_v14, 0  ;;  %v14416_v43 = vld [vmem:[#allocation6 + $0xf44] sm:$0xf] }
 0x206   :  { %5595 = vmatpush.bf16.msrb.mxu2 %v11819_v2  ;;  %v2295_v25 = vmax.f32 %v2278_v17, 0.0  ;;  %v14221_v2 = vld [vmem:[#allocation6 + $0x924] sm:$0xf0]  ;;  %v12168_v45 = vld [vmem:[#allocation6 + $0xf60] sm:$0xf0] }
 0x207   :  { %v10894_v11 = vld [vmem:[#allocation6 + $0x548] sm:$0xf]  ;;  %v12171_v60 = vor.u32 %v14416_v43, %v12168_v45  ;;  %v5404_v30 = vadd.f32 %v5403_v55, %v2818_v31  ;;  %v14408_v50 = vld [vmem:[#allocation6 + $0xf04] sm:$0xf] }
 0x208   :  { %5636 = vmatpush.bf16.msra.mxu1 %v10575_v28  ;;  %5623 = vmatpush.bf16.msra.mxu0 %v10287_v21  ;;  %v14301_v28 = vld [vmem:[#allocation6 + $0xba4] sm:$0xf0]  ;;  %v2287_v21 = vmax.f32 %v2276_v40, 0.0  ;;  %v14400_v57 = vld [vmem:[#allocation6 + $0xec4] sm:$0xf] }
 0x209   :  { %v11695_v35 = vor.u32 %v14301_v28, %v11694_v22  ;;  %v14101_v5 = vld [vmem:[#allocation6 + $0x564] sm:$0xf0]  ;;  %v5418_v13 = vadd.f32 %v5417_v1, %v5404_v30  ;;  %v12104_v19 = vld [vmem:[#allocation6 + $0xee0] sm:$0xf0] }
 0x20a   :  { %5596 = vmatpush.bf16.msrb.mxu2 %v11787_v59  ;;  %v15502_v4 = vpack.c.bf16 %v2295_v25, %v2287_v21  ;;  %v10895_v49 = vor.u32 %v14101_v5, %v10894_v11  ;;  %v11342_v54 = vld [vmem:[#allocation6 + $0x8c8] sm:$0xf]  ;;  %v14392_v29 = vld [vmem:[#allocation6 + $0xe84] sm:$0xf] }
 0x20b   :  { %v14285_v58 = vld [vmem:[#allocation6 + $0xb24] sm:$0xf0]  ;;  %v12072_v24 = vld [vmem:[#allocation6 + $0xea0] sm:$0xf0] }
 0x20c   :  { %5637 = vmatpush.bf16.msra.mxu1 %v10543_v6  ;;  %5624 = vmatpush.bf16.msra.mxu0 %v10255_v47  ;;  %v11374_v6 = vld [vmem:[#allocation6 + $0x908] sm:$0xf]  ;;  %v5431_v28 = vpop.f32.mrf.mxu2  ;;  %v12075_v45 = vor.u32 %v14392_v29, %v12072_v24  ;;  %v14033_v24 = vld [vmem:[#allocation6 + $0x34c] sm:$0xf] }
 0x20d   :  { %v14293_v47 = vld [vmem:[#allocation6 + $0xb64] sm:$0xf0]  ;;  %5500 = vmatmul.bf16.vlgmr.msrb.gmra.mxu3 %v15502_v4  ;;  %v11375_v48 = vor.u32 %v14221_v2, %v11374_v6  ;;  %v5432_v16 = vadd.f32 %v5431_v28, %v5418_v13 }
 0x20e   :  { %5597 = vmatpush.bf16.msrb.mxu2 %v11755_v18  ;;  %5604 = vmatpush.bf16.msrb.mxu3 %v12235_v38  ;;  %v11663_v52 = vor.u32 %v14293_v47, %v11662_v41  ;;  %v14213_v51 = vld [vmem:[#allocation6 + $0x8e4] sm:$0xf0]  ;;  %v12107_v38 = vor.u32 %v14400_v57, %v12104_v19 }
 0x20f   :  { %v14093_v59 = vld [vmem:[#allocation6 + $0x524] sm:$0xf0]  ;;  %v11343_v3 = vor.u32 %v14213_v51, %v11342_v54  ;;  %v12040_v54 = vld [vmem:[#allocation6 + $0xe60] sm:$0xf0] }
 0x210   :  { %5638 = vmatpush.bf16.msra.mxu1 %v10511_v56  ;;  %5625 = vmatpush.bf16.msra.mxu0 %v10223_v27  ;;  %v11630_v56 = vld [vmem:[#allocation6 + $0xb08] sm:$0xf] }
 0x211   :  { %5598 = vmatmul.bf16.vlgmr.msrb.gmra.mxu2 %v15494_v44  ;;  %v10862_v27 = vld [vmem:[#allocation6 + $0x508] sm:$0xf]  ;;  %v11631_v23 = vor.u32 %v14285_v58, %v11630_v56 }
 0x212   :  { %5646 = vmatpush.bf16.msra.mxu2 %v10959_v7  ;;  %5605 = vmatpush.bf16.msrb.mxu3 %v12203_v32  ;;  %v10863_v40 = vor.u32 %v14093_v59, %v10862_v27  ;;  %v11310_v10 = vld [vmem:[#allocation6 + $0x888] sm:$0xf]  ;;  %v5445_v2 = vpop.f32.mrf.mxu3 }
 0x213   :  { %5626 = vmatmul.bf16.vlgmr.msra.gmra.mxu0 %v15469_v46  ;;  %v11598_v12 = vld [vmem:[#allocation6 + $0xac8] sm:$0xf]  ;;  %v15513_v43 = vadd.f32 %v5445_v2, %v5432_v16 }
 0x214   :  { %5674 = vmatpush.bf16.msrb.mxu0 %v11471_v62  ;;  %5639 = vmatpush.bf16.msra.mxu1 %v10479_v15  ;;  %v12136_v62 = vld [vmem:[#allocation6 + $0xf20] sm:$0xf0]  ;;  %v14277_v0 = vld [vmem:[#allocation6 + $0xae4] sm:$0xf0] }
 0x215   :  { %v14205_v36 = vld [vmem:[#allocation6 + $0x8a4] sm:$0xf0]  ;;  %v12139_v18 = vor.u32 %v14408_v50, %v12136_v62  ;;  %v13977_v50 = vld [vmem:[#allocation6 + $0x18c] sm:$0xf] }
 0x216   :  { %5647 = vmatpush.bf16.msra.mxu2 %v10927_v20  ;;  %v10830_v15 = vld [vmem:[#allocation6 + $0x4c8] sm:$0xf]  ;;  %5606 = vmatpush.bf16.msrb.mxu3 %v12171_v60  ;;  %v11311_v8 = vor.u32 %v14205_v36, %v11310_v10  ;;  %v14049_v62 = vld [vmem:[#allocation6 + $0x3cc] sm:$0xf] }
 0x217   :  { %5640 = vmatmul.bf16.vlgmr.msra.gmra.mxu1 %v15471_v34  ;;  %v14085_v17 = vld [vmem:[#allocation6 + $0x4e4] sm:$0xf0] }
 0x218   :  { %5688 = vmatpush.bf16.msrb.mxu1 %v11727_v33  ;;  %5675 = vmatpush.bf16.msrb.mxu0 %v11439_v39  ;;  %v11599_v33 = vor.u32 %v14277_v0, %v11598_v12  ;;  %v10831_v39 = vor.u32 %v14085_v17, %v10830_v15  ;;  %v11278_v7 = vld [vmem:[#allocation6 + $0x848] sm:$0xf]  ;;  %v14376_v12 = vld [vmem:[#allocation6 + $0xe04] sm:$0xf] }
 0x219   :  { %v11566_v63 = vld [vmem:[#allocation6 + $0xa88] sm:$0xf]  ;;  %v12008_v0 = vld [vmem:[#allocation6 + $0xe20] sm:$0xf0] }
 0x21a   :  { %5648 = vmatpush.bf16.msra.mxu2 %v10895_v49  ;;  %v14269_v22 = vld [vmem:[#allocation6 + $0xaa4] sm:$0xf0]  ;;  %5607 = vmatpush.bf16.msrb.mxu3 %v12139_v18  ;;  %v14384_v49 = vld [vmem:[#allocation6 + $0xe44] sm:$0xf] }
 0x21b   :  { %v14197_v21 = vld [vmem:[#allocation6 + $0x864] sm:$0xf0]  ;;  %v12043_v1 = vor.u32 %v14384_v49, %v12040_v54  ;;  %v13953_v54 = vld [vmem:[#allocation6 + $0xcc] sm:$0xf] }
 0x21c   :  { %5689 = vmatpush.bf16.msrb.mxu1 %v11695_v35  ;;  %5676 = vmatpush.bf16.msrb.mxu0 %v11407_v9  ;;  %v10798_v25 = vld [vmem:[#allocation6 + $0x488] sm:$0xf]  ;;  %v11567_v35 = vor.u32 %v14269_v22, %v11566_v63  ;;  %v11279_v9 = vor.u32 %v14197_v21, %v11278_v7  ;;  %v13969_v7 = vld [vmem:[#allocation6 + $0x14c] sm:$0xf] }
 0x21d   :  { %v14077_v26 = vld [vmem:[#allocation6 + $0x4a4] sm:$0xf0]  ;;  %5556 = vmatmul.bf16.vlgmr.msra.gmra.mxu3 %v15476_v42  ;;  %v10384_v63 = vld [vmem:[#allocation6 + $0x168] sm:$0xf0] }
 0x21e   :  { %5649 = vmatpush.bf16.msra.mxu2 %v10863_v40  ;;  %v10799_v20 = vor.u32 %v14077_v26, %v10798_v25  ;;  %v11246_v6 = vld [vmem:[#allocation6 + $0x808] sm:$0xf]  ;;  %5608 = vmatpush.bf16.msrb.mxu3 %v12107_v38  ;;  %v15516_v25 = vpop.f32.mrf.mxu0  ;;  %v10387_v29 = vor.u32 %v13969_v7, %v10384_v63 }
 0x21f   :  { %v11534_v41 = vld [vmem:[#allocation6 + $0xa48] sm:$0xf] }
 0x220   :  { %5690 = vmatpush.bf16.msrb.mxu1 %v11663_v52  ;;  %5677 = vmatpush.bf16.msrb.mxu0 %v11375_v48  ;;  %v14261_v47 = vld [vmem:[#allocation6 + $0xa64] sm:$0xf0]  ;;  %v13985_v52 = vld [vmem:[#allocation6 + $0x1cc] sm:$0xf] }
 0x221   :  { %v14189_v11 = vld [vmem:[#allocation6 + $0x824] sm:$0xf0]  ;;  %v10448_v48 = vld [vmem:[#allocation6 + $0x1e8] sm:$0xf0]  ;;  %v11535_v56 = vor.u32 %v14261_v47, %v11534_v41 }
 0x222   :  { %5650 = vmatpush.bf16.msra.mxu2 %v10831_v39  ;;  %v10766_v5 = vld [vmem:[#allocation6 + $0x448] sm:$0xf]  ;;  %v11247_v51 = vor.u32 %v14189_v11, %v11246_v6  ;;  %v10451_v30 = vor.u32 %v13985_v52, %v10448_v48  ;;  %5609 = vmatpush.bf16.msrb.mxu3 %v12075_v45  ;;  %v12011_v39 = vor.u32 %v14376_v12, %v12008_v0  ;;  %v10352_v6 = vld [vmem:[#allocation6 + $0x128] sm:$0xf0] }
 0x223   :  { %v14069_v32 = vld [vmem:[#allocation6 + $0x464] sm:$0xf0]  ;;  %v14025_v52 = vld [vmem:[#allocation6 + $0x30c] sm:$0xf] }
 0x224   :  { %5691 = vmatpush.bf16.msrb.mxu1 %v11631_v23  ;;  %5678 = vmatpush.bf16.msrb.mxu0 %v11343_v3  ;;  %v10734_v58 = vld [vmem:[#allocation6 + $0x408] sm:$0xf]  ;;  %v10767_v27 = vor.u32 %v14069_v32, %v10766_v5  ;;  %v10704_v23 = vld [vmem:[#allocation6 + $0x3e8] sm:$0xf0] }
 0x225   :  { %v14061_v59 = vld [vmem:[#allocation6 + $0x424] sm:$0xf0]  ;;  %v10416_v3 = vld [vmem:[#allocation6 + $0x1a8] sm:$0xf0]  ;;  %v10707_v18 = vor.u32 %v14049_v62, %v10704_v23 }
 0x226   :  { %5651 = vmatpush.bf16.msra.mxu2 %v10799_v20  ;;  %v11502_v55 = vld [vmem:[#allocation6 + $0xa08] sm:$0xf]  ;;  %v10735_v36 = vor.u32 %v14061_v59, %v10734_v58  ;;  %v10419_v57 = vor.u32 %v13977_v50, %v10416_v3  ;;  %5610 = vmatpush.bf16.msrb.mxu3 %v12043_v1  ;;  %v13961_v20 = vld [vmem:[#allocation6 + $0x10c] sm:$0xf] }
 0x227   :  { %v14253_v60 = vld [vmem:[#allocation6 + $0xa24] sm:$0xf0]  ;;  %v10355_v45 = vor.u32 %v13961_v20, %v10352_v6  ;;  %v10608_v48 = vld [vmem:[#allocation6 + $0x328] sm:$0xf0] }
 0x228   :  { %5692 = vmatpush.bf16.msrb.mxu1 %v11599_v33  ;;  %5679 = vmatpush.bf16.msrb.mxu0 %v11311_v8  ;;  %v11982_v40 = vld [vmem:[#allocation6 + $0xdc8] sm:$0xf]  ;;  %v11503_v13 = vor.u32 %v14253_v60, %v11502_v55  ;;  %v14041_v33 = vld [vmem:[#allocation6 + $0x38c] sm:$0xf] }
 0x229   :  { %v14373_v10 = vld [vmem:[#allocation6 + $0xde4] sm:$0xf0]  ;;  %v10672_v8 = vld [vmem:[#allocation6 + $0x3a8] sm:$0xf0] }
 0x22a   :  { %5652 = vmatpush.bf16.msra.mxu2 %v10767_v27  ;;  %v11214_v15 = vld [vmem:[#allocation6 + $0x7c8] sm:$0xf]  ;;  %v11983_v19 = vor.u32 %v14373_v10, %v11982_v40  ;;  %v10675_v38 = vor.u32 %v14041_v33, %v10672_v8  ;;  %5611 = vmatpush.bf16.msrb.mxu3 %v12011_v39  ;;  %v14017_v23 = vld [vmem:[#allocation6 + $0x2cc] sm:$0xf] }
 0x22b   :  { %v14181_v17 = vld [vmem:[#allocation6 + $0x7e4] sm:$0xf0]  ;;  %v10576_v1 = vld [vmem:[#allocation6 + $0x2e8] sm:$0xf0] }
 0x22c   :  { %5693 = vmatpush.bf16.msrb.mxu1 %v11567_v35  ;;  %5680 = vmatpush.bf16.msrb.mxu0 %v11279_v9  ;;  %v11215_v22 = vor.u32 %v14181_v17, %v11214_v15  ;;  %v11950_v28 = vld [vmem:[#allocation6 + $0xd88] sm:$0xf]  ;;  %v10640_v35 = vld [vmem:[#allocation6 + $0x368] sm:$0xf0]  ;;  %v10579_v17 = vor.u32 %v14017_v23, %v10576_v1 }
 0x22d   :  { %v14365_v21 = vld [vmem:[#allocation6 + $0xda4] sm:$0xf0]  ;;  %v10643_v32 = vor.u32 %v14033_v24, %v10640_v35  ;;  %5612 = vmatmul.bf16.vlgmr.msrb.gmra.mxu3 %v15502_v4  ;;  %v13945_v40 = vld [vmem:[#allocation6 + $0x8c] sm:$0xf] }
 0x22e   :  { %5653 = vmatpush.bf16.msra.mxu2 %v10735_v36  ;;  %v11182_v26 = vld [vmem:[#allocation6 + $0x788] sm:$0xf]  ;;  %v11951_v9 = vor.u32 %v14365_v21, %v11950_v28  ;;  %5660 = vmatpush.bf16.msra.mxu3 %v11215_v22  ;;  %v10288_v10 = vld [vmem:[#allocation6 + $0xa8] sm:$0xf0] }
 0x22f   :  { %v14173_v16 = vld [vmem:[#allocation6 + $0x7a4] sm:$0xf0]  ;;  %v13937_v33 = vld [vmem:[#allocation6 + $0x4c] sm:$0xf] }
 0x230   :  { %5694 = vmatpush.bf16.msrb.mxu1 %v11535_v56  ;;  %5681 = vmatpush.bf16.msrb.mxu0 %v11247_v51  ;;  %v11183_v41 = vor.u32 %v14173_v16, %v11182_v26  ;;  %v11918_v47 = vld [vmem:[#allocation6 + $0xd48] sm:$0xf]  ;;  %v10320_v56 = vld [vmem:[#allocation6 + $0xe8] sm:$0xf0]  ;;  %v5459_v59 = vpop.f32.mrf.mxu0 }
 0x231   :  { %5654 = vmatmul.bf16.vlgmr.msra.gmra.mxu2 %v15473_v37  ;;  %v14357_v2 = vld [vmem:[#allocation6 + $0xd64] sm:$0xf0]  ;;  %v15522_v50 = vadd.f32 %v5459_v59, %v15513_v43  ;;  %v10323_v62 = vor.u32 %v13953_v54, %v10320_v56  ;;  %v10544_v43 = vld [vmem:[#allocation6 + $0x2a8] sm:$0xf0] }
 0x232   :  { %5702 = vmatpush.bf16.msrb.mxu2 %v11983_v19  ;;  %v11150_v11 = vld [vmem:[#allocation6 + $0x748] sm:$0xf]  ;;  %v11919_v49 = vor.u32 %v14357_v2, %v11918_v47  ;;  %5661 = vmatpush.bf16.msra.mxu3 %v11183_v41  ;;  %v10256_v8 = vld [vmem:[#allocation6 + $0x68] sm:$0xf0] }
 0x233   :  { %5682 = vmatmul.bf16.vlgmr.msrb.gmra.mxu0 %v15482_v53  ;;  %v14165_v5 = vld [vmem:[#allocation6 + $0x764] sm:$0xf0]  ;;  %v10259_v26 = vor.u32 %v13937_v33, %v10256_v8  ;;  %v14001_v16 = vld [vmem:[#allocation6 + $0x24c] sm:$0xf]  ;;  %v15525_v8 = vpop.f32.mrf.mxu1 }
 0x234   :  { %5730 = vmatpush.bf16.msra.mxu0 %v10451_v30  ;;  %5695 = vmatpush.bf16.msrb.mxu1 %v11503_v13  ;;  %v11151_v58 = vor.u32 %v14165_v5, %v11150_v11  ;;  %v11886_v51 = vld [vmem:[#allocation6 + $0xd08] sm:$0xf]  ;;  %v10611_v30 = vor.u32 %v14025_v52, %v10608_v48  ;;  %v13929_v24 = vld [vmem:[#allocation6 + $0xc] sm:$0xf] }
 0x235   :  { %v14349_v27 = vld [vmem:[#allocation6 + $0xd24] sm:$0xf0]  ;;  %v10224_v35 = vld [vmem:[#allocation6 + $0x28] sm:$0xf0] }
 0x236   :  { %5703 = vmatpush.bf16.msrb.mxu2 %v11951_v9  ;;  %v11118_v55 = vld [vmem:[#allocation6 + $0x708] sm:$0xf]  ;;  %v11887_v3 = vor.u32 %v14349_v27, %v11886_v51  ;;  %5662 = vmatpush.bf16.msra.mxu3 %v11151_v58  ;;  %v14241_v41 = vld [vmem:[#allocation6 + $0x9cc] sm:$0xf] }
 0x237   :  { %5696 = vmatmul.bf16.vlgmr.msrb.gmra.mxu1 %v15486_v61  ;;  %v14157_v60 = vld [vmem:[#allocation6 + $0x724] sm:$0xf0]  ;;  %v11472_v47 = vld [vmem:[#allocation6 + $0x9e8] sm:$0xf0] }
 0x238   :  { %5744 = vmatpush.bf16.msra.mxu1 %v10707_v18  ;;  %5731 = vmatpush.bf16.msra.mxu0 %v10419_v57  ;;  %v11119_v12 = vor.u32 %v14157_v60, %v11118_v55  ;;  %v11854_v0 = vld [vmem:[#allocation6 + $0xcc8] sm:$0xf]  ;;  %v10291_v18 = vor.u32 %v13945_v40, %v10288_v10  ;;  %v14009_v57 = vld [vmem:[#allocation6 + $0x28c] sm:$0xf] }
 0x239   :  { %v14341_v13 = vld [vmem:[#allocation6 + $0xce4] sm:$0xf0]  ;;  %v10547_v21 = vor.u32 %v14009_v57, %v10544_v43  ;;  %v10480_v52 = vld [vmem:[#allocation6 + $0x228] sm:$0xf0] }
 0x23a   :  { %5704 = vmatpush.bf16.msrb.mxu2 %v11919_v49  ;;  %v11086_v36 = vld [vmem:[#allocation6 + $0x6c8] sm:$0xf]  ;;  %v11855_v19 = vor.u32 %v14341_v13, %v11854_v0  ;;  %5663 = vmatpush.bf16.msra.mxu3 %v11119_v12  ;;  %v11475_v49 = vor.u32 %v14241_v41, %v11472_v47  ;;  %v14305_v58 = vld [vmem:[#allocation6 + $0xbcc] sm:$0xf] }
 0x23b   :  { %v14149_v15 = vld [vmem:[#allocation6 + $0x6e4] sm:$0xf0]  ;;  %v11728_v51 = vld [vmem:[#allocation6 + $0xbe8] sm:$0xf0] }
 0x23c   :  { %5745 = vmatpush.bf16.msra.mxu1 %v10675_v38  ;;  %5732 = vmatpush.bf16.msra.mxu0 %v10387_v29  ;;  %v11087_v39 = vor.u32 %v14149_v15, %v11086_v36  ;;  %v11822_v7 = vld [vmem:[#allocation6 + $0xc88] sm:$0xf]  ;;  %v10512_v38 = vld [vmem:[#allocation6 + $0x268] sm:$0xf0]  ;;  %v11731_v10 = vor.u32 %v14305_v58, %v11728_v51 }
 0x23d   :  { %v14333_v63 = vld [vmem:[#allocation6 + $0xca4] sm:$0xf0]  ;;  %v10515_v5 = vor.u32 %v14001_v16, %v10512_v38  ;;  %v14233_v55 = vld [vmem:[#allocation6 + $0x98c] sm:$0xf] }
 0x23e   :  { %5705 = vmatpush.bf16.msrb.mxu2 %v11887_v3  ;;  %v11054_v22 = vld [vmem:[#allocation6 + $0x688] sm:$0xf]  ;;  %v11823_v29 = vor.u32 %v14333_v63, %v11822_v7  ;;  %5664 = vmatpush.bf16.msra.mxu3 %v11087_v39  ;;  %v11440_v60 = vld [vmem:[#allocation6 + $0x9a8] sm:$0xf0] }
 0x23f   :  { %v14141_v28 = vld [vmem:[#allocation6 + $0x6a4] sm:$0xf0]  ;;  %v14113_v23 = vld [vmem:[#allocation6 + $0x5cc] sm:$0xf]  ;;  %v11443_v0 = vor.u32 %v14233_v55, %v11440_v60 }
 0x240   :  { %5746 = vmatpush.bf16.msra.mxu1 %v10643_v32  ;;  %5733 = vmatpush.bf16.msra.mxu0 %v10355_v45  ;;  %v11790_v9 = vld [vmem:[#allocation6 + $0xc48] sm:$0xf]  ;;  %v11055_v20 = vor.u32 %v14141_v28, %v11054_v22  ;;  %v10227_v32 = vor.u32 %v13929_v24, %v10224_v35  ;;  %v13993_v45 = vld [vmem:[#allocation6 + $0x20c] sm:$0xf] }
 0x241   :  { %v14325_v6 = vld [vmem:[#allocation6 + $0xc64] sm:$0xf0]  ;;  %v10960_v1 = vld [vmem:[#allocation6 + $0x5e8] sm:$0xf0] }
 0x242   :  { %5706 = vmatpush.bf16.msrb.mxu2 %v11855_v19  ;;  %v11022_v2 = vld [vmem:[#allocation6 + $0x648] sm:$0xf]  ;;  %v11791_v48 = vor.u32 %v14325_v6, %v11790_v9  ;;  %5665 = vmatpush.bf16.msra.mxu3 %v11055_v20  ;;  %v14297_v13 = vld [vmem:[#allocation6 + $0xb8c] sm:$0xf] }
 0x243   :  { %v14133_v11 = vld [vmem:[#allocation6 + $0x664] sm:$0xf0]  ;;  %v11696_v36 = vld [vmem:[#allocation6 + $0xba8] sm:$0xf0] }
 0x244   :  { %5747 = vmatpush.bf16.msra.mxu1 %v10611_v30  ;;  %5734 = vmatpush.bf16.msra.mxu0 %v10323_v62  ;;  %v10990_v54 = vld [vmem:[#allocation6 + $0x608] sm:$0xf]  ;;  %v11023_v27 = vor.u32 %v14133_v11, %v11022_v2  ;;  %v10483_v62 = vor.u32 %v13993_v45, %v10480_v52  ;;  %v11408_v57 = vld [vmem:[#allocation6 + $0x968] sm:$0xf0]  ;;  %v11699_v63 = vor.u32 %v14297_v13, %v11696_v36 }
 0x245   :  { %v11758_v56 = vld [vmem:[#allocation6 + $0xc08] sm:$0xf]  ;;  %v14105_v19 = vld [vmem:[#allocation6 + $0x58c] sm:$0xf] }
 0x246   :  { %5707 = vmatpush.bf16.msrb.mxu2 %v11823_v29  ;;  %v14317_v59 = vld [vmem:[#allocation6 + $0xc24] sm:$0xf0]  ;;  %5666 = vmatpush.bf16.msra.mxu3 %v11023_v27  ;;  %v10928_v33 = vld [vmem:[#allocation6 + $0x5a8] sm:$0xf0] }
 0x247   :  { %v14125_v30 = vld [vmem:[#allocation6 + $0x624] sm:$0xf0]  ;;  %v11759_v12 = vor.u32 %v14317_v59, %v11758_v56  ;;  %v14289_v28 = vld [vmem:[#allocation6 + $0xb4c] sm:$0xf] }
 0x248   :  { %5748 = vmatpush.bf16.msra.mxu1 %v10579_v17  ;;  %5735 = vmatpush.bf16.msra.mxu0 %v10291_v18  ;;  %v12238_v3 = vld [vmem:[#allocation6 + $0xfc8] sm:$0xf]  ;;  %v10991_v15 = vor.u32 %v14125_v30, %v10990_v54  ;;  %v10963_v17 = vor.u32 %v14113_v23, %v10960_v1  ;;  %v14225_v18 = vld [vmem:[#allocation6 + $0x94c] sm:$0xf] }
 0x249   :  { %v14437_v40 = vld [vmem:[#allocation6 + $0xfe4] sm:$0xf0]  ;;  %v11411_v22 = vor.u32 %v14225_v18, %v11408_v57  ;;  %v14217_v16 = vld [vmem:[#allocation6 + $0x90c] sm:$0xf] }
 0x24a   :  { %5708 = vmatpush.bf16.msrb.mxu2 %v11791_v48  ;;  %v12239_v43 = vor.u32 %v14437_v40, %v12238_v3  ;;  %v12206_v39 = vld [vmem:[#allocation6 + $0xf88] sm:$0xf]  ;;  %5667 = vmatpush.bf16.msra.mxu3 %v10991_v15  ;;  %v11376_v38 = vld [vmem:[#allocation6 + $0x928] sm:$0xf0]  ;;  %v15533_v40 = vpop.f32.mrf.mxu0 }
 0x24b   :  { %v14429_v7 = vld [vmem:[#allocation6 + $0xfa4] sm:$0xf0]  ;;  %v14097_v24 = vld [vmem:[#allocation6 + $0x54c] sm:$0xf]  ;;  %v11379_v41 = vor.u32 %v14217_v16, %v11376_v38 }
 0x24c   :  { %5749 = vmatpush.bf16.msra.mxu1 %v10547_v21  ;;  %5736 = vmatpush.bf16.msra.mxu0 %v10259_v26  ;;  %v11664_v21 = vld [vmem:[#allocation6 + $0xb68] sm:$0xf0]  ;;  %v10931_v26 = vor.u32 %v14105_v19, %v10928_v33  ;;  %v12207_v29 = vor.u32 %v14429_v7, %v12206_v39  ;;  %v12174_v9 = vld [vmem:[#allocation6 + $0xf48] sm:$0xf] }
 0x24d   :  { %v10896_v35 = vld [vmem:[#allocation6 + $0x568] sm:$0xf0]  ;;  %v14421_v20 = vld [vmem:[#allocation6 + $0xf64] sm:$0xf0]  ;;  %v11667_v6 = vor.u32 %v14289_v28, %v11664_v21  ;;  %5668 = vmatmul.bf16.vlgmr.msra.gmra.mxu3 %v15476_v42 }
 0x24e   :  { %5709 = vmatpush.bf16.msrb.mxu2 %v11759_v12  ;;  %5716 = vmatpush.bf16.msrb.mxu3 %v12239_v43  ;;  %v14281_v47 = vld [vmem:[#allocation6 + $0xb0c] sm:$0xf]  ;;  %v10899_v11 = vor.u32 %v14097_v24, %v10896_v35  ;;  %v12175_v45 = vor.u32 %v14421_v20, %v12174_v9  ;;  %v12142_v54 = vld [vmem:[#allocation6 + $0xf08] sm:$0xf]  ;;  %v10454_v20 = vld [vmem:[#allocation6 + $0x1d0] sm:$0xf] }
 0x24f   :  { %v11632_v2 = vld [vmem:[#allocation6 + $0xb28] sm:$0xf0]  ;;  %v14413_v56 = vld [vmem:[#allocation6 + $0xf24] sm:$0xf0] }
 0x250   :  { %5750 = vmatpush.bf16.msra.mxu1 %v10515_v5  ;;  %5737 = vmatpush.bf16.msra.mxu0 %v10227_v32  ;;  %v14209_v5 = vld [vmem:[#allocation6 + $0x8cc] sm:$0xf]  ;;  %v11635_v58 = vor.u32 %v14281_v47, %v11632_v2  ;;  %v12143_v23 = vor.u32 %v14413_v56, %v12142_v54  ;;  %v14405_v12 = vld [vmem:[#allocation6 + $0xee4] sm:$0xf0]  ;;  %v10710_v56 = vld [vmem:[#allocation6 + $0x3d0] sm:$0xf] }
 0x251   :  { %5710 = vmatmul.bf16.vlgmr.msrb.gmra.mxu2 %v15494_v44  ;;  %v11344_v32 = vld [vmem:[#allocation6 + $0x8e8] sm:$0xf0]  ;;  %v12078_v39 = vld [vmem:[#allocation6 + $0xe88] sm:$0xf] }
 0x252   :  { %5758 = vmatpush.bf16.msra.mxu2 %v10963_v17  ;;  %5717 = vmatpush.bf16.msrb.mxu3 %v12207_v29  ;;  %v14089_v52 = vld [vmem:[#allocation6 + $0x50c] sm:$0xf]  ;;  %v11347_v27 = vor.u32 %v14209_v5, %v11344_v32  ;;  %v14397_v7 = vld [vmem:[#allocation6 + $0xea4] sm:$0xf0] }
 0x253   :  { %5738 = vmatmul.bf16.vlgmr.msra.gmra.mxu0 %v15469_v46  ;;  %v10864_v48 = vld [vmem:[#allocation6 + $0x528] sm:$0xf0]  ;;  %v12079_v35 = vor.u32 %v14397_v7, %v12078_v39  ;;  %v12046_v47 = vld [vmem:[#allocation6 + $0xe48] sm:$0xf]  ;;  %v13974_v39 = vld [vmem:[#allocation6 + $0x16c] sm:$0xf0] }
 0x254   :  { %5786 = vmatpush.bf16.msrb.mxu0 %v11475_v49  ;;  %5751 = vmatpush.bf16.msra.mxu1 %v10483_v62  ;;  %v5473_v49 = vpop.f32.mrf.mxu1  ;;  %v14273_v59 = vld [vmem:[#allocation6 + $0xacc] sm:$0xf]  ;;  %v10867_v60 = vor.u32 %v14089_v52, %v10864_v48  ;;  %v14389_v2 = vld [vmem:[#allocation6 + $0xe64] sm:$0xf0] }
 0x255   :  { %v15531_v51 = vadd.f32 %v5473_v49, %v15522_v50  ;;  %v11600_v55 = vld [vmem:[#allocation6 + $0xae8] sm:$0xf0]  ;;  %v12014_v49 = vld [vmem:[#allocation6 + $0xe08] sm:$0xf] }
 0x256   :  { %5759 = vmatpush.bf16.msra.mxu2 %v10931_v26  ;;  %v14201_v30 = vld [vmem:[#allocation6 + $0x88c] sm:$0xf]  ;;  %5718 = vmatpush.bf16.msrb.mxu3 %v12175_v45 }
 0x257   :  { %5752 = vmatmul.bf16.vlgmr.msra.gmra.mxu1 %v15471_v34  ;;  %v11312_v62 = vld [vmem:[#allocation6 + $0x8a8] sm:$0xf0] }
 0x258   :  { %5800 = vmatpush.bf16.msrb.mxu1 %v11731_v10  ;;  %5787 = vmatpush.bf16.msrb.mxu0 %v11443_v0  ;;  %v14081_v1 = vld [vmem:[#allocation6 + $0x4cc] sm:$0xf]  ;;  %v12110_v10 = vld [vmem:[#allocation6 + $0xec8] sm:$0xf]  ;;  %v11603_v0 = vor.u32 %v14273_v59, %v11600_v55  ;;  %v11315_v50 = vor.u32 %v14201_v30, %v11312_v62  ;;  %v12047_v59 = vor.u32 %v14389_v2, %v12046_v47  ;;  %v13982_v30 = vld [vmem:[#allocation6 + $0x1ac] sm:$0xf0] }
 0x259   :  { %v10832_v3 = vld [vmem:[#allocation6 + $0x4e8] sm:$0xf0]  ;;  %v12111_v57 = vor.u32 %v14405_v12, %v12110_v10 }
 0x25a   :  { %5760 = vmatpush.bf16.msra.mxu2 %v10899_v11  ;;  %v14265_v13 = vld [vmem:[#allocation6 + $0xa8c] sm:$0xf]  ;;  %v10835_v15 = vor.u32 %v14081_v1, %v10832_v3  ;;  %5719 = vmatpush.bf16.msrb.mxu3 %v12143_v23  ;;  %v14381_v23 = vld [vmem:[#allocation6 + $0xe24] sm:$0xf0] }
 0x25b   :  { %v11568_v36 = vld [vmem:[#allocation6 + $0xaa8] sm:$0xf0] }
 0x25c   :  { %5801 = vmatpush.bf16.msrb.mxu1 %v11699_v63  ;;  %5788 = vmatpush.bf16.msrb.mxu0 %v11411_v22  ;;  %v14193_v17 = vld [vmem:[#allocation6 + $0x84c] sm:$0xf]  ;;  %v15535_v33 = vpop.f32.mrf.mxu1  ;;  %v11571_v63 = vor.u32 %v14265_v13, %v11568_v36  ;;  %v2819_v22 = vperm.slane %v15504_v14, 1 }
 0x25d   :  { %v11280_v18 = vld [vmem:[#allocation6 + $0x868] sm:$0xf0] }
 0x25e   :  { %5761 = vmatpush.bf16.msra.mxu2 %v10867_v60  ;;  %v14073_v43 = vld [vmem:[#allocation6 + $0x48c] sm:$0xf]  ;;  %v11283_v28 = vor.u32 %v14193_v17, %v11280_v18  ;;  %5720 = vmatpush.bf16.msrb.mxu3 %v12111_v57  ;;  %v10422_v60 = vld [vmem:[#allocation6 + $0x190] sm:$0xf]  ;;  %v12015_v57 = vor.u32 %v14381_v23, %v12014_v49 }
 0x25f   :  { %v10800_v19 = vld [vmem:[#allocation6 + $0x4a8] sm:$0xf0]  ;;  %v10678_v17 = vld [vmem:[#allocation6 + $0x390] sm:$0xf] }
 0x260   :  { %5802 = vmatpush.bf16.msrb.mxu1 %v11667_v6  ;;  %5789 = vmatpush.bf16.msrb.mxu0 %v11379_v41  ;;  %v14257_v21 = vld [vmem:[#allocation6 + $0xa4c] sm:$0xf]  ;;  %v10803_v16 = vor.u32 %v14073_v43, %v10800_v19  ;;  %v13990_v6 = vld [vmem:[#allocation6 + $0x1ec] sm:$0xf0]  ;;  %v5515_v41 = vpop.f32.mrf.mxu0 }
 0x261   :  { %v11536_v26 = vld [vmem:[#allocation6 + $0xa68] sm:$0xf0]  ;;  %v10455_v48 = vor.u32 %v13990_v6, %v10454_v20  ;;  %v14046_v18 = vld [vmem:[#allocation6 + $0x3ac] sm:$0xf0] }
 0x262   :  { %5762 = vmatpush.bf16.msra.mxu2 %v10835_v15  ;;  %v14185_v38 = vld [vmem:[#allocation6 + $0x80c] sm:$0xf]  ;;  %v11539_v11 = vor.u32 %v14257_v21, %v11536_v26  ;;  %5721 = vmatpush.bf16.msrb.mxu3 %v12079_v35  ;;  %v10423_v15 = vor.u32 %v13982_v30, %v10422_v60  ;;  %v10390_v19 = vld [vmem:[#allocation6 + $0x150] sm:$0xf] }
 0x263   :  { %v11248_v29 = vld [vmem:[#allocation6 + $0x828] sm:$0xf0]  ;;  %v13966_v20 = vld [vmem:[#allocation6 + $0x12c] sm:$0xf0] }
 0x264   :  { %5803 = vmatpush.bf16.msrb.mxu1 %v11635_v58  ;;  %5790 = vmatpush.bf16.msrb.mxu0 %v11347_v27  ;;  %v14065_v24 = vld [vmem:[#allocation6 + $0x44c] sm:$0xf]  ;;  %v11251_v5 = vor.u32 %v14185_v38, %v11248_v29  ;;  %v14054_v58 = vld [vmem:[#allocation6 + $0x3ec] sm:$0xf0]  ;;  %v5516_v27 = vadd.f32 %v5515_v41, %v2819_v22  ;;  %v5529_v62 = vpop.f32.mrf.mxu1  ;;  %v10391_v38 = vor.u32 %v13974_v39, %v10390_v19 }
 0x265   :  { %v10768_v9 = vld [vmem:[#allocation6 + $0x468] sm:$0xf0]  ;;  %v10711_v13 = vor.u32 %v14054_v58, %v10710_v56  ;;  %v10646_v29 = vld [vmem:[#allocation6 + $0x350] sm:$0xf]  ;;  %v15546_v56 = vpop.f32.mrf.mxu2 }
 0x266   :  { %v14249_v32 = vld [vmem:[#allocation6 + $0xa0c] sm:$0xf]  ;;  %5763 = vmatpush.bf16.msra.mxu2 %v10803_v16  ;;  %v10771_v52 = vor.u32 %v14065_v24, %v10768_v9  ;;  %v15540_v12 = vadd.f32 %v5529_v62, %v5516_v27  ;;  %5722 = vmatpush.bf16.msrb.mxu3 %v12047_v59  ;;  %v10679_v16 = vor.u32 %v14046_v18, %v10678_v17  ;;  %v14038_v24 = vld [vmem:[#allocation6 + $0x36c] sm:$0xf0] }
 0x267   :  { %v11504_v45 = vld [vmem:[#allocation6 + $0xa28] sm:$0xf0]  ;;  %v10358_v9 = vld [vmem:[#allocation6 + $0x110] sm:$0xf] }
 0x268   :  { %5804 = vmatpush.bf16.msrb.mxu1 %v11603_v0  ;;  %5791 = vmatpush.bf16.msrb.mxu0 %v11315_v50  ;;  %v14057_v54 = vld [vmem:[#allocation6 + $0x40c] sm:$0xf]  ;;  %v11507_v1 = vor.u32 %v14249_v32, %v11504_v45  ;;  %v10359_v32 = vor.u32 %v13966_v20, %v10358_v9  ;;  %v10614_v45 = vld [vmem:[#allocation6 + $0x310] sm:$0xf] }
 0x269   :  { %v10736_v55 = vld [vmem:[#allocation6 + $0x428] sm:$0xf0]  ;;  %v10326_v49 = vld [vmem:[#allocation6 + $0xd0] sm:$0xf] }
 0x26a   :  { %v14369_v3 = vld [vmem:[#allocation6 + $0xdcc] sm:$0xf]  ;;  %5764 = vmatpush.bf16.msra.mxu2 %v10771_v52  ;;  %v10739_v36 = vor.u32 %v14057_v54, %v10736_v55  ;;  %5723 = vmatpush.bf16.msrb.mxu3 %v12015_v57  ;;  %v14030_v52 = vld [vmem:[#allocation6 + $0x32c] sm:$0xf0] }
 0x26b   :  { %v11984_v10 = vld [vmem:[#allocation6 + $0xde8] sm:$0xf0]  ;;  %v13958_v54 = vld [vmem:[#allocation6 + $0xec] sm:$0xf0]  ;;  %v10615_v30 = vor.u32 %v14030_v52, %v10614_v45 }
 0x26c   :  { %5805 = vmatpush.bf16.msrb.mxu1 %v11571_v63  ;;  %5792 = vmatpush.bf16.msrb.mxu0 %v11283_v28  ;;  %v14177_v0 = vld [vmem:[#allocation6 + $0x7cc] sm:$0xf]  ;;  %v11987_v43 = vor.u32 %v14369_v3, %v11984_v10  ;;  %v10327_v62 = vor.u32 %v13958_v54, %v10326_v49  ;;  %v10582_v23 = vld [vmem:[#allocation6 + $0x2d0] sm:$0xf]  ;;  %v15550_v17 = vpop.f32.mrf.mxu1 }
 0x26d   :  { %v11216_v50 = vld [vmem:[#allocation6 + $0x7e8] sm:$0xf0]  ;;  %5724 = vmatmul.bf16.vlgmr.msrb.gmra.mxu3 %v15502_v4  ;;  %v10294_v10 = vld [vmem:[#allocation6 + $0x90] sm:$0xf] }
 0x26e   :  { %v11219_v7 = vor.u32 %v14177_v0, %v11216_v50  ;;  %v14361_v63 = vld [vmem:[#allocation6 + $0xd8c] sm:$0xf]  ;;  %5765 = vmatpush.bf16.msra.mxu2 %v10739_v36  ;;  %v13950_v0 = vld [vmem:[#allocation6 + $0xac] sm:$0xf0]  ;;  %v15548_v50 = vpop.f32.mrf.mxu0 }
 0x26f   :  { %v11952_v28 = vld [vmem:[#allocation6 + $0xda8] sm:$0xf0]  ;;  %v10295_v19 = vor.u32 %v13950_v0, %v10294_v10  ;;  %v10550_v39 = vld [vmem:[#allocation6 + $0x290] sm:$0xf] }
 0x270   :  { %5806 = vmatpush.bf16.msrb.mxu1 %v11539_v11  ;;  %5793 = vmatpush.bf16.msrb.mxu0 %v11251_v5  ;;  %v14169_v21 = vld [vmem:[#allocation6 + $0x78c] sm:$0xf]  ;;  %v11955_v35 = vor.u32 %v14361_v63, %v11952_v28  ;;  %v10647_v5 = vor.u32 %v14038_v24, %v10646_v29  ;;  %v10262_v28 = vld [vmem:[#allocation6 + $0x50] sm:$0xf] }
 0x271   :  { %v11184_v26 = vld [vmem:[#allocation6 + $0x7a8] sm:$0xf0]  ;;  %5772 = vmatpush.bf16.msra.mxu3 %v11219_v7  ;;  %5766 = vmatmul.bf16.vlgmr.msra.gmra.mxu2 %v15473_v37  ;;  %v14014_v7 = vld [vmem:[#allocation6 + $0x2ac] sm:$0xf0] }
 0x272   :  { %5814 = vmatpush.bf16.msrb.mxu2 %v11987_v43  ;;  %v11187_v6 = vor.u32 %v14169_v21, %v11184_v26  ;;  %v14353_v41 = vld [vmem:[#allocation6 + $0xd4c] sm:$0xf]  ;;  %v13942_v21 = vld [vmem:[#allocation6 + $0x6c] sm:$0xf0]  ;;  %v5487_v26 = vpop.f32.mrf.mxu2  ;;  %v10551_v20 = vor.u32 %v14014_v7, %v10550_v39 }
 0x273   :  { %5794 = vmatmul.bf16.vlgmr.msrb.gmra.mxu0 %v15482_v53  ;;  %v11920_v47 = vld [vmem:[#allocation6 + $0xd68] sm:$0xf0]  ;;  %v15553_v24 = vadd.f32 %v5487_v26, %v15531_v51  ;;  %v11478_v51 = vld [vmem:[#allocation6 + $0x9d0] sm:$0xf] }
 0x274   :  { %5842 = vmatpush.bf16.msra.mxu0 %v10455_v48  ;;  %5807 = vmatpush.bf16.msrb.mxu1 %v11507_v1  ;;  %v14161_v2 = vld [vmem:[#allocation6 + $0x74c] sm:$0xf]  ;;  %v11923_v48 = vor.u32 %v14353_v41, %v11920_v47  ;;  %v14022_v1 = vld [vmem:[#allocation6 + $0x2ec] sm:$0xf0] }
 0x275   :  { %v11152_v11 = vld [vmem:[#allocation6 + $0x768] sm:$0xf0]  ;;  %5773 = vmatpush.bf16.msra.mxu3 %v11187_v6  ;;  %v10583_v43 = vor.u32 %v14022_v1, %v10582_v23  ;;  %v10263_v6 = vor.u32 %v13942_v21, %v10262_v28  ;;  %v10518_v41 = vld [vmem:[#allocation6 + $0x250] sm:$0xf] }
 0x276   :  { %5815 = vmatpush.bf16.msrb.mxu2 %v11955_v35  ;;  %v11155_v58 = vor.u32 %v14161_v2, %v11152_v11  ;;  %v14345_v27 = vld [vmem:[#allocation6 + $0xd0c] sm:$0xf]  ;;  %v14006_v47 = vld [vmem:[#allocation6 + $0x26c] sm:$0xf0]  ;;  %v15555_v45 = vpop.f32.mrf.mxu0 }
 0x277   :  { %5808 = vmatmul.bf16.vlgmr.msrb.gmra.mxu1 %v15486_v61  ;;  %v11888_v59 = vld [vmem:[#allocation6 + $0xd28] sm:$0xf0]  ;;  %v10230_v11 = vld [vmem:[#allocation6 + $0x10] sm:$0xf] }
 0x278   :  { %5856 = vmatpush.bf16.msra.mxu1 %v10711_v13  ;;  %5843 = vmatpush.bf16.msra.mxu0 %v10423_v15  ;;  %v14153_v55 = vld [vmem:[#allocation6 + $0x70c] sm:$0xf]  ;;  %v11891_v3 = vor.u32 %v14345_v27, %v11888_v59  ;;  %v14246_v49 = vld [vmem:[#allocation6 + $0x9ec] sm:$0xf0]  ;;  %v10519_v27 = vor.u32 %v14006_v47, %v10518_v41 }
 0x279   :  { %v11120_v60 = vld [vmem:[#allocation6 + $0x728] sm:$0xf0]  ;;  %5774 = vmatpush.bf16.msra.mxu3 %v11155_v58  ;;  %v11479_v23 = vor.u32 %v14246_v49, %v11478_v51  ;;  %v11734_v10 = vld [vmem:[#allocation6 + $0xbd0] sm:$0xf] }
 0x27a   :  { %5816 = vmatpush.bf16.msrb.mxu2 %v11923_v48  ;;  %v11123_v13 = vor.u32 %v14153_v55, %v11120_v60  ;;  %v14337_v36 = vld [vmem:[#allocation6 + $0xccc] sm:$0xf]  ;;  %v10486_v55 = vld [vmem:[#allocation6 + $0x210] sm:$0xf] }
 0x27b   :  { %v11856_v15 = vld [vmem:[#allocation6 + $0xce8] sm:$0xf0]  ;;  %v13998_v60 = vld [vmem:[#allocation6 + $0x22c] sm:$0xf0] }
 0x27c   :  { %5857 = vmatpush.bf16.msra.mxu1 %v10679_v16  ;;  %5844 = vmatpush.bf16.msra.mxu0 %v10391_v38  ;;  %v14145_v18 = vld [vmem:[#allocation6 + $0x6cc] sm:$0xf]  ;;  %v11859_v63 = vor.u32 %v14337_v36, %v11856_v15  ;;  %v14310_v0 = vld [vmem:[#allocation6 + $0xbec] sm:$0xf0] }
 0x27d   :  { %v11088_v57 = vld [vmem:[#allocation6 + $0x6e8] sm:$0xf0]  ;;  %5775 = vmatpush.bf16.msra.mxu3 %v11123_v13  ;;  %v15559_v13 = vpop.f32.mrf.mxu2  ;;  %v10966_v39 = vld [vmem:[#allocation6 + $0x5d0] sm:$0xf]  ;;  %v11735_v21 = vor.u32 %v14310_v0, %v11734_v10 }
 0x27e   :  { %5817 = vmatpush.bf16.msrb.mxu2 %v11891_v3  ;;  %v11091_v16 = vor.u32 %v14145_v18, %v11088_v57  ;;  %v14329_v38 = vld [vmem:[#allocation6 + $0xc8c] sm:$0xf]  ;;  %v11446_v18 = vld [vmem:[#allocation6 + $0x990] sm:$0xf] }
 0x27f   :  { %v11824_v29 = vld [vmem:[#allocation6 + $0xca8] sm:$0xf0]  ;;  %v14238_v57 = vld [vmem:[#allocation6 + $0x9ac] sm:$0xf0] }
 0x280   :  { %5858 = vmatpush.bf16.msra.mxu1 %v10647_v5  ;;  %5845 = vmatpush.bf16.msra.mxu0 %v10359_v32  ;;  %v14137_v35 = vld [vmem:[#allocation6 + $0x68c] sm:$0xf]  ;;  %v11827_v2 = vor.u32 %v14329_v38, %v11824_v29  ;;  %v13934_v5 = vld [vmem:[#allocation6 + $0x2c] sm:$0xf0] }
 0x281   :  { %v11056_v9 = vld [vmem:[#allocation6 + $0x6a8] sm:$0xf0]  ;;  %5776 = vmatpush.bf16.msra.mxu3 %v11091_v16  ;;  %v10231_v59 = vor.u32 %v13934_v5, %v10230_v11  ;;  %v14118_v7 = vld [vmem:[#allocation6 + $0x5ec] sm:$0xf0]  ;;  %v11447_v16 = vor.u32 %v14238_v57, %v11446_v18  ;;  %v15562_v11 = vpop.f32.mrf.mxu0 }
 0x282   :  { %5818 = vmatpush.bf16.msrb.mxu2 %v11859_v63  ;;  %v14321_v32 = vld [vmem:[#allocation6 + $0xc4c] sm:$0xf]  ;;  %v11059_v52 = vor.u32 %v14137_v35, %v11056_v9  ;;  %v11702_v38 = vld [vmem:[#allocation6 + $0xb90] sm:$0xf]  ;;  %v10967_v9 = vor.u32 %v14118_v7, %v10966_v39 }
 0x283   :  { %v11792_v48 = vld [vmem:[#allocation6 + $0xc68] sm:$0xf0]  ;;  %v14302_v29 = vld [vmem:[#allocation6 + $0xbac] sm:$0xf0] }
 0x284   :  { %5859 = vmatpush.bf16.msra.mxu1 %v10615_v30  ;;  %5846 = vmatpush.bf16.msra.mxu0 %v10327_v62  ;;  %v14129_v54 = vld [vmem:[#allocation6 + $0x64c] sm:$0xf]  ;;  %v15557_v30 = vpop.f32.mrf.mxu1  ;;  %v11795_v62 = vor.u32 %v14321_v32, %v11792_v48  ;;  %v10934_v47 = vld [vmem:[#allocation6 + $0x590] sm:$0xf] }
 0x285   :  { %v11024_v58 = vld [vmem:[#allocation6 + $0x668] sm:$0xf0]  ;;  %5777 = vmatpush.bf16.msra.mxu3 %v11059_v52  ;;  %v11703_v52 = vor.u32 %v14302_v29, %v11702_v38  ;;  %v11670_v51 = vld [vmem:[#allocation6 + $0xb50] sm:$0xf]  ;;  %v15575_v29 = vpop.f32.mrf.mxu3 }
 0x286   :  { %5819 = vmatpush.bf16.msrb.mxu2 %v11827_v2  ;;  %v14121_v1 = vld [vmem:[#allocation6 + $0x60c] sm:$0xf]  ;;  %v11027_v36 = vor.u32 %v14129_v54, %v11024_v58  ;;  %v14110_v2 = vld [vmem:[#allocation6 + $0x5ac] sm:$0xf0]  ;;  %v5543_v54 = vpop.f32.mrf.mxu2 }
 0x287   :  { %v14313_v3 = vld [vmem:[#allocation6 + $0xc0c] sm:$0xf]  ;;  %v14294_v49 = vld [vmem:[#allocation6 + $0xb6c] sm:$0xf0]  ;;  %v10935_v58 = vor.u32 %v14110_v2, %v10934_v47 }
 0x288   :  { %5860 = vmatpush.bf16.msra.mxu1 %v10583_v43  ;;  %5847 = vmatpush.bf16.msra.mxu0 %v10295_v19  ;;  %v11760_v15 = vld [vmem:[#allocation6 + $0xc28] sm:$0xf0]  ;;  %v10487_v19 = vor.u32 %v13998_v60, %v10486_v55  ;;  %v15567_v60 = vadd.f32 %v5543_v54, %v15540_v12  ;;  %v11671_v0 = vor.u32 %v14294_v49, %v11670_v51  ;;  %v14286_v18 = vld [vmem:[#allocation6 + $0xb2c] sm:$0xf0]  ;;  %v15572_v12 = vld [vmem:[#allocation7] sm:$0xff] }
 0x289   :  { %v10992_v43 = vld [vmem:[#allocation6 + $0x628] sm:$0xf0]  ;;  %v11763_v26 = vor.u32 %v14313_v3, %v11760_v15  ;;  %5778 = vmatpush.bf16.msra.mxu3 %v11027_v36  ;;  %v11638_v15 = vld [vmem:[#allocation6 + $0xb10] sm:$0xf]  ;;  %v15874_v57 = vperm.slane %v15572_v12, 2 }
 0x28a   :  { %v14433_v63 = vld [vmem:[#allocation6 + $0xfcc] sm:$0xf]  ;;  %5820 = vmatpush.bf16.msrb.mxu2 %v11795_v62  ;;  %v10995_v35 = vor.u32 %v14121_v1, %v10992_v43  ;;  %v14102_v1 = vld [vmem:[#allocation6 + $0x56c] sm:$0xf0]  ;;  %v11639_v38 = vor.u32 %v14286_v18, %v11638_v15 }
 0x28b   :  { %v12240_v28 = vld [vmem:[#allocation6 + $0xfe8] sm:$0xf0]  ;;  %v14214_v39 = vld [vmem:[#allocation6 + $0x8ec] sm:$0xf0] }
 0x28c   :  { %5861 = vmatpush.bf16.msra.mxu1 %v10551_v20  ;;  %5848 = vmatpush.bf16.msra.mxu0 %v10263_v6  ;;  %v11414_v20 = vld [vmem:[#allocation6 + $0x950] sm:$0xf]  ;;  %v12243_v41 = vor.u32 %v14433_v63, %v12240_v28  ;;  %v14425_v5 = vld [vmem:[#allocation6 + $0xf8c] sm:$0xf]  ;;  %v15564_v55 = vpop.f32.mrf.mxu1 }
 0x28d   :  { %v14230_v6 = vld [vmem:[#allocation6 + $0x96c] sm:$0xf0]  ;;  %v12208_v32 = vld [vmem:[#allocation6 + $0xfa8] sm:$0xf0]  ;;  %5779 = vmatpush.bf16.msra.mxu3 %v10995_v35 }
 0x28e   :  { %5821 = vmatpush.bf16.msrb.mxu2 %v11763_v26  ;;  %v11415_v48 = vor.u32 %v14230_v6, %v11414_v20  ;;  %v12211_v62 = vor.u32 %v14425_v5, %v12208_v32  ;;  %v14417_v3 = vld [vmem:[#allocation6 + $0xf4c] sm:$0xf]  ;;  %v10870_v63 = vld [vmem:[#allocation6 + $0x510] sm:$0xf] }
 0x28f   :  { %v12176_v10 = vld [vmem:[#allocation6 + $0xf68] sm:$0xf0]  ;;  %v14094_v28 = vld [vmem:[#allocation6 + $0x52c] sm:$0xf0] }
 0x290   :  { %5862 = vmatpush.bf16.msra.mxu1 %v10519_v27  ;;  %5849 = vmatpush.bf16.msra.mxu0 %v10231_v59  ;;  %v11382_v27 = vld [vmem:[#allocation6 + $0x910] sm:$0xf]  ;;  %v12179_v7 = vor.u32 %v14417_v3, %v12176_v10  ;;  %v14409_v26 = vld [vmem:[#allocation6 + $0xf0c] sm:$0xf] }
 0x291   :  { %v14222_v59 = vld [vmem:[#allocation6 + $0x92c] sm:$0xf0]  ;;  %5828 = vmatpush.bf16.msrb.mxu3 %v12243_v41  ;;  %5822 = vmatmul.bf16.vlgmr.msrb.gmra.mxu2 %v15494_v44  ;;  %v10871_v41 = vor.u32 %v14094_v28, %v10870_v63  ;;  %v14401_v49 = vld [vmem:[#allocation6 + $0xecc] sm:$0xf] }
 0x292   :  { %5870 = vmatpush.bf16.msra.mxu2 %v10967_v9  ;;  %5780 = vmatmul.bf16.vlgmr.msra.gmra.mxu3 %v15476_v42  ;;  %v11383_v36 = vor.u32 %v14222_v59, %v11382_v27  ;;  %v11606_v9 = vld [vmem:[#allocation6 + $0xad0] sm:$0xf]  ;;  %v12112_v54 = vld [vmem:[#allocation6 + $0xee8] sm:$0xf0] }
 0x293   :  { %5850 = vmatmul.bf16.vlgmr.msra.gmra.mxu0 %v15469_v46  ;;  %v14278_v20 = vld [vmem:[#allocation6 + $0xaec] sm:$0xf0]  ;;  %v12115_v10 = vor.u32 %v14401_v49, %v12112_v54  ;;  %v14393_v15 = vld [vmem:[#allocation6 + $0xe8c] sm:$0xf] }
 0x294   :  { %5898 = vmatpush.bf16.msrb.mxu0 %v11479_v23  ;;  %5863 = vmatpush.bf16.msra.mxu1 %v10487_v19  ;;  %v10902_v23 = vld [vmem:[#allocation6 + $0x550] sm:$0xf]  ;;  %v5641_v5 = vpop.f32.mrf.mxu1  ;;  %v12080_v18 = vld [vmem:[#allocation6 + $0xea8] sm:$0xf0] }
 0x295   :  { %v10903_v43 = vor.u32 %v14102_v1, %v10902_v23  ;;  %v11350_v19 = vld [vmem:[#allocation6 + $0x8d0] sm:$0xf]  ;;  %5829 = vmatpush.bf16.msrb.mxu3 %v12211_v62  ;;  %v14377_v54 = vld [vmem:[#allocation6 + $0xe0c] sm:$0xf] }
 0x296   :  { %5871 = vmatpush.bf16.msra.mxu2 %v10935_v58  ;;  %v11351_v35 = vor.u32 %v14214_v39, %v11350_v19  ;;  %v11318_v47 = vld [vmem:[#allocation6 + $0x890] sm:$0xf]  ;;  %v11607_v58 = vor.u32 %v14278_v20, %v11606_v9  ;;  %v5501_v19 = vpop.f32.mrf.mxu3  ;;  %v12083_v9 = vor.u32 %v14393_v15, %v12080_v18 }
 0x297   :  { %5864 = vmatmul.bf16.vlgmr.msra.gmra.mxu1 %v15471_v34  ;;  %v14206_v2 = vld [vmem:[#allocation6 + $0x8ac] sm:$0xf0]  ;;  %v15582_v28 = vadd.f32 %v5501_v19, %v15553_v24 }
 0x298   :  { %5912 = vmatpush.bf16.msrb.mxu1 %v11735_v21  ;;  %5899 = vmatpush.bf16.msrb.mxu0 %v11447_v16  ;;  %v5627_v21 = vpop.f32.mrf.mxu0  ;;  %v12144_v16 = vld [vmem:[#allocation6 + $0xf28] sm:$0xf0]  ;;  %v11319_v27 = vor.u32 %v14206_v2, %v11318_v47  ;;  %v11574_v59 = vld [vmem:[#allocation6 + $0xa90] sm:$0xf] }
 0x299   :  { %v5628_v6 = vadd.f32 %v5627_v21, %v15874_v57  ;;  %5830 = vmatpush.bf16.msrb.mxu3 %v12179_v7  ;;  %v12147_v32 = vor.u32 %v14409_v26, %v12144_v16  ;;  %v14270_v62 = vld [vmem:[#allocation6 + $0xaac] sm:$0xf0]  ;;  %v14385_v47 = vld [vmem:[#allocation6 + $0xe4c] sm:$0xf]  ;;  %v13979_v57 = vld [vmem:[#allocation6 + $0x19c] sm:$0xf] }
 0x29a   :  { %5872 = vmatpush.bf16.msra.mxu2 %v10903_v43  ;;  %v11286_v1 = vld [vmem:[#allocation6 + $0x850] sm:$0xf]  ;;  %v11575_v43 = vor.u32 %v14270_v62, %v11574_v59  ;;  %v12048_v2 = vld [vmem:[#allocation6 + $0xe68] sm:$0xf0]  ;;  %v10712_v59 = vld [vmem:[#allocation6 + $0x3f0] sm:$0xf0] }
 0x29b   :  { %v15579_v51 = vadd.f32 %v5641_v5, %v5628_v6  ;;  %v14198_v3 = vld [vmem:[#allocation6 + $0x86c] sm:$0xf0]  ;;  %v13986_v6 = vld [vmem:[#allocation6 + $0x1d4] sm:$0xf]  ;;  %v12051_v62 = vor.u32 %v14385_v47, %v12048_v2 }
 0x29c   :  { %5913 = vmatpush.bf16.msrb.mxu1 %v11703_v52  ;;  %5900 = vmatpush.bf16.msrb.mxu0 %v11415_v48  ;;  %v10838_v52 = vld [vmem:[#allocation6 + $0x4d0] sm:$0xf]  ;;  %v11287_v39 = vor.u32 %v14198_v3, %v11286_v1  ;;  %v13978_v1 = vld [vmem:[#allocation6 + $0x194] sm:$0xf] }
 0x29d   :  { %v14086_v48 = vld [vmem:[#allocation6 + $0x4ec] sm:$0xf0]  ;;  %5831 = vmatpush.bf16.msrb.mxu3 %v12147_v32  ;;  %v10424_v3 = vld [vmem:[#allocation6 + $0x1b0] sm:$0xf0] }
 0x29e   :  { %5873 = vmatpush.bf16.msra.mxu2 %v10871_v41  ;;  %v10839_v23 = vor.u32 %v14086_v48, %v10838_v52  ;;  %v11542_v7 = vld [vmem:[#allocation6 + $0xa50] sm:$0xf]  ;;  %v10456_v41 = vld [vmem:[#allocation6 + $0x1f0] sm:$0xf0]  ;;  %v15586_v18 = vpop.f32.mrf.mxu3 }
 0x29f   :  { %v14262_v63 = vld [vmem:[#allocation6 + $0xa6c] sm:$0xf0]  ;;  %v10459_v49 = vor.u32 %v13986_v6, %v10456_v41 }
 0x2a0   :  { %5914 = vmatpush.bf16.msrb.mxu1 %v11671_v0  ;;  %5901 = vmatpush.bf16.msrb.mxu0 %v11383_v36  ;;  %v10806_v0 = vld [vmem:[#allocation6 + $0x490] sm:$0xf]  ;;  %v11543_v5 = vor.u32 %v14262_v63, %v11542_v7  ;;  %v10427_v63 = vor.u32 %v13978_v1, %v10424_v3 }
 0x2a1   :  { %v14078_v36 = vld [vmem:[#allocation6 + $0x4ac] sm:$0xf0]  ;;  %5832 = vmatpush.bf16.msrb.mxu3 %v12115_v10  ;;  %v12016_v10 = vld [vmem:[#allocation6 + $0xe28] sm:$0xf0] }
 0x2a2   :  { %5874 = vmatpush.bf16.msra.mxu2 %v10839_v23  ;;  %v10807_v21 = vor.u32 %v14078_v36, %v10806_v0  ;;  %v11254_v26 = vld [vmem:[#allocation6 + $0x810] sm:$0xf] }
 0x2a3   :  { %v14190_v16 = vld [vmem:[#allocation6 + $0x82c] sm:$0xf0] }
 0x2a4   :  { %5915 = vmatpush.bf16.msrb.mxu1 %v11639_v38  ;;  %5902 = vmatpush.bf16.msrb.mxu0 %v11351_v35  ;;  %v10774_v38 = vld [vmem:[#allocation6 + $0x450] sm:$0xf]  ;;  %v15584_v35 = vpop.f32.mrf.mxu2  ;;  %v11255_v32 = vor.u32 %v14190_v16, %v11254_v26  ;;  %v10680_v26 = vld [vmem:[#allocation6 + $0x3b0] sm:$0xf0]  ;;  %v12019_v16 = vor.u32 %v14377_v54, %v12016_v10 }
 0x2a5   :  { %v14070_v20 = vld [vmem:[#allocation6 + $0x46c] sm:$0xf0]  ;;  %5833 = vmatpush.bf16.msrb.mxu3 %v12083_v9  ;;  %v13970_v9 = vld [vmem:[#allocation6 + $0x154] sm:$0xf] }
 0x2a6   :  { %v11510_v24 = vld [vmem:[#allocation6 + $0xa10] sm:$0xf]  ;;  %5875 = vmatpush.bf16.msra.mxu2 %v10807_v21  ;;  %v10775_v48 = vor.u32 %v14070_v20, %v10774_v38  ;;  %v14042_v21 = vld [vmem:[#allocation6 + $0x394] sm:$0xf]  ;;  %v5557_v1 = vpop.f32.mrf.mxu3 }
 0x2a7   :  { %v14254_v52 = vld [vmem:[#allocation6 + $0xa2c] sm:$0xf0]  ;;  %v10392_v20 = vld [vmem:[#allocation6 + $0x170] sm:$0xf0] }
 0x2a8   :  { %5916 = vmatpush.bf16.msrb.mxu1 %v11607_v58  ;;  %5903 = vmatpush.bf16.msrb.mxu0 %v11319_v27  ;;  %v10742_v58 = vld [vmem:[#allocation6 + $0x410] sm:$0xf]  ;;  %v14050_v27 = vld [vmem:[#allocation6 + $0x3d4] sm:$0xf]  ;;  %v11511_v0 = vor.u32 %v14254_v52, %v11510_v24  ;;  %v10683_v24 = vor.u32 %v14042_v21, %v10680_v26  ;;  %v10395_v52 = vor.u32 %v13970_v9, %v10392_v20 }
 0x2a9   :  { %v14062_v23 = vld [vmem:[#allocation6 + $0x42c] sm:$0xf0]  ;;  %5834 = vmatpush.bf16.msrb.mxu3 %v12051_v62  ;;  %v5518_v21 = vadd.f32 %v15548_v50, %v2819_v22  ;;  %v13946_v50 = vld [vmem:[#allocation6 + $0x94] sm:$0xf] }
 0x2aa   :  { %v11990_v36 = vld [vmem:[#allocation6 + $0xdd0] sm:$0xf]  ;;  %5876 = vmatpush.bf16.msra.mxu2 %v10775_v48  ;;  %v10743_v7 = vor.u32 %v14062_v23, %v10742_v58  ;;  %v14034_v48 = vld [vmem:[#allocation6 + $0x354] sm:$0xf] }
 0x2ab   :  { %v14374_v15 = vld [vmem:[#allocation6 + $0xdec] sm:$0xf0]  ;;  %v13962_v58 = vld [vmem:[#allocation6 + $0x114] sm:$0xf] }
 0x2ac   :  { %5917 = vmatpush.bf16.msrb.mxu1 %v11575_v43  ;;  %5904 = vmatpush.bf16.msrb.mxu0 %v11287_v39  ;;  %v11222_v43 = vld [vmem:[#allocation6 + $0x7d0] sm:$0xf]  ;;  %v10715_v39 = vor.u32 %v14050_v27, %v10712_v59  ;;  %v11991_v38 = vor.u32 %v14374_v15, %v11990_v36  ;;  %v15589_v2 = vpop.f32.mrf.mxu2  ;;  %v10360_v27 = vld [vmem:[#allocation6 + $0x130] sm:$0xf0]  ;;  %v5558_v36 = vadd.f32 %v5557_v1, %v15567_v60 }
 0x2ad   :  { %v14182_v19 = vld [vmem:[#allocation6 + $0x7ec] sm:$0xf0]  ;;  %5835 = vmatpush.bf16.msrb.mxu3 %v12019_v16  ;;  %v10363_v15 = vor.u32 %v13962_v58, %v10360_v27 }
 0x2ae   :  { %v11223_v6 = vor.u32 %v14182_v19, %v11222_v43  ;;  %v11958_v41 = vld [vmem:[#allocation6 + $0xd90] sm:$0xf]  ;;  %5877 = vmatpush.bf16.msra.mxu2 %v10743_v7  ;;  %v14026_v43 = vld [vmem:[#allocation6 + $0x314] sm:$0xf]  ;;  %v5572_v26 = vadd.f32 %v15555_v45, %v5558_v36 }
 0x2af   :  { %v14366_v47 = vld [vmem:[#allocation6 + $0xdac] sm:$0xf0]  ;;  %v10616_v19 = vld [vmem:[#allocation6 + $0x330] sm:$0xf0] }
 0x2b0   :  { %5918 = vmatpush.bf16.msrb.mxu1 %v11543_v5  ;;  %5905 = vmatpush.bf16.msrb.mxu0 %v11255_v32  ;;  %v11190_v5 = vld [vmem:[#allocation6 + $0x790] sm:$0xf]  ;;  %v11959_v54 = vor.u32 %v14366_v47, %v11958_v41  ;;  %v13954_v7 = vld [vmem:[#allocation6 + $0xd4] sm:$0xf]  ;;  %v5532_v41 = vadd.f32 %v15550_v17, %v5518_v21 }
 0x2b1   :  { %v14174_v32 = vld [vmem:[#allocation6 + $0x7ac] sm:$0xf0]  ;;  %5884 = vmatpush.bf16.msra.mxu3 %v11223_v6  ;;  %5878 = vmatmul.bf16.vlgmr.msra.gmra.mxu2 %v15473_v37  ;;  %v10619_v6 = vor.u32 %v14026_v43, %v10616_v19  ;;  %v10296_v45 = vld [vmem:[#allocation6 + $0xb0] sm:$0xf0]  ;;  %v15607_v43 = vpop.f32.mrf.mxu1 }
 0x2b2   :  { %5926 = vmatpush.bf16.msrb.mxu2 %v11991_v38  ;;  %v11191_v59 = vor.u32 %v14174_v32, %v11190_v5  ;;  %v11926_v62 = vld [vmem:[#allocation6 + $0xd50] sm:$0xf]  ;;  %5836 = vmatmul.bf16.vlgmr.msrb.gmra.mxu3 %v15502_v4  ;;  %v14018_v5 = vld [vmem:[#allocation6 + $0x2d4] sm:$0xf] }
 0x2b3   :  { %5906 = vmatmul.bf16.vlgmr.msrb.gmra.mxu0 %v15482_v53  ;;  %v14358_v23 = vld [vmem:[#allocation6 + $0xd6c] sm:$0xf0]  ;;  %v10584_v32 = vld [vmem:[#allocation6 + $0x2f0] sm:$0xf0] }
 0x2b4   :  { %5954 = vmatpush.bf16.msra.mxu0 %v10459_v49  ;;  %5919 = vmatpush.bf16.msrb.mxu1 %v11511_v0  ;;  %v10648_v49 = vld [vmem:[#allocation6 + $0x370] sm:$0xf0]  ;;  %v11158_v3 = vld [vmem:[#allocation6 + $0x750] sm:$0xf] }
 0x2b5   :  { %v14166_v10 = vld [vmem:[#allocation6 + $0x76c] sm:$0xf0]  ;;  %v10651_v0 = vor.u32 %v14034_v48, %v10648_v49  ;;  %5885 = vmatpush.bf16.msra.mxu3 %v11191_v59  ;;  %v5546_v48 = vadd.f32 %v15584_v35, %v5532_v41  ;;  %v15604_v49 = vpop.f32.mrf.mxu0  ;;  %v5559_v59 = vpop.f32.mrf.mxu3  ;;  %v13938_v36 = vld [vmem:[#allocation6 + $0x54] sm:$0xf] }
 0x2b6   :  { %5927 = vmatpush.bf16.msrb.mxu2 %v11959_v54  ;;  %v11159_v16 = vor.u32 %v14166_v10, %v11158_v3  ;;  %v11894_v38 = vld [vmem:[#allocation6 + $0xd10] sm:$0xf]  ;;  %v10299_v3 = vor.u32 %v13946_v50, %v10296_v45  ;;  %v14010_v10 = vld [vmem:[#allocation6 + $0x294] sm:$0xf] }
 0x2b7   :  { %5920 = vmatmul.bf16.vlgmr.msrb.gmra.mxu1 %v15486_v61  ;;  %v14350_v60 = vld [vmem:[#allocation6 + $0xd2c] sm:$0xf0]  ;;  %v5560_v1 = vadd.f32 %v5559_v59, %v5546_v48  ;;  %v13930_v41 = vld [vmem:[#allocation6 + $0x14] sm:$0xf] }
 0x2b8   :  { %5968 = vmatpush.bf16.msra.mxu1 %v10715_v39  ;;  %5955 = vmatpush.bf16.msra.mxu0 %v10427_v63  ;;  %v11927_v39 = vor.u32 %v14358_v23, %v11926_v62  ;;  %v10328_v63 = vld [vmem:[#allocation6 + $0xf0] sm:$0xf0]  ;;  %v11126_v9 = vld [vmem:[#allocation6 + $0x710] sm:$0xf]  ;;  %v11895_v22 = vor.u32 %v14350_v60, %v11894_v38  ;;  %v10587_v23 = vor.u32 %v14018_v5, %v10584_v32 }
 0x2b9   :  { %v14158_v20 = vld [vmem:[#allocation6 + $0x72c] sm:$0xf0]  ;;  %v10331_v47 = vor.u32 %v13954_v7, %v10328_v63  ;;  %5886 = vmatpush.bf16.msra.mxu3 %v11159_v16  ;;  %v5574_v19 = vadd.f32 %v15562_v11, %v5560_v1  ;;  %v14002_v38 = vld [vmem:[#allocation6 + $0x254] sm:$0xf] }
 0x2ba   :  { %5928 = vmatpush.bf16.msrb.mxu2 %v11927_v39  ;;  %v11127_v54 = vor.u32 %v14158_v20, %v11126_v9  ;;  %v11862_v58 = vld [vmem:[#allocation6 + $0xcd0] sm:$0xf]  ;;  %v10520_v60 = vld [vmem:[#allocation6 + $0x270] sm:$0xf0] }
 0x2bb   :  { %v14342_v17 = vld [vmem:[#allocation6 + $0xcec] sm:$0xf0]  ;;  %v5588_v9 = vadd.f32 %v15564_v55, %v5574_v19  ;;  %v14242_v50 = vld [vmem:[#allocation6 + $0x9d4] sm:$0xf] }
 0x2bc   :  { %5969 = vmatpush.bf16.msra.mxu1 %v10683_v24  ;;  %5956 = vmatpush.bf16.msra.mxu0 %v10395_v52  ;;  %v5586_v24 = vadd.f32 %v15557_v30, %v5572_v26  ;;  %v15601_v52 = vpop.f32.mrf.mxu2  ;;  %v11094_v62 = vld [vmem:[#allocation6 + $0x6d0] sm:$0xf]  ;;  %v11863_v35 = vor.u32 %v14342_v17, %v11862_v58  ;;  %v11480_v45 = vld [vmem:[#allocation6 + $0x9f0] sm:$0xf0]  ;;  %v10523_v58 = vor.u32 %v14002_v38, %v10520_v60 }
 0x2bd   :  { %v14150_v30 = vld [vmem:[#allocation6 + $0x6ec] sm:$0xf0]  ;;  %5887 = vmatpush.bf16.msra.mxu3 %v11127_v54  ;;  %v15611_v5 = vpop.f32.mrf.mxu0  ;;  %v5613_v48 = vpop.f32.mrf.mxu3  ;;  %v11483_v1 = vor.u32 %v14242_v50, %v11480_v45  ;;  %v14234_v19 = vld [vmem:[#allocation6 + $0x994] sm:$0xf] }
 0x2be   :  { %v5600_v27 = vadd.f32 %v15589_v2, %v5586_v24  ;;  %5929 = vmatpush.bf16.msrb.mxu2 %v11895_v22  ;;  %v11095_v2 = vor.u32 %v14150_v30, %v11094_v62  ;;  %v11830_v39 = vld [vmem:[#allocation6 + $0xc90] sm:$0xf]  ;;  %v13994_v62 = vld [vmem:[#allocation6 + $0x214] sm:$0xf] }
 0x2bf   :  { %v14334_v7 = vld [vmem:[#allocation6 + $0xcac] sm:$0xf0]  ;;  %v10488_v30 = vld [vmem:[#allocation6 + $0x230] sm:$0xf0] }
 0x2c0   :  { %5970 = vmatpush.bf16.msra.mxu1 %v10651_v0  ;;  %5957 = vmatpush.bf16.msra.mxu0 %v10363_v15  ;;  %v10552_v0 = vld [vmem:[#allocation6 + $0x2b0] sm:$0xf0]  ;;  %v11062_v63 = vld [vmem:[#allocation6 + $0x690] sm:$0xf]  ;;  %v15616_v17 = vadd.f32 %v5613_v48, %v5600_v27 }
 0x2c1   :  { %v10264_v15 = vld [vmem:[#allocation6 + $0x70] sm:$0xf0]  ;;  %v14142_v21 = vld [vmem:[#allocation6 + $0x6ac] sm:$0xf0]  ;;  %v10555_v26 = vor.u32 %v14010_v10, %v10552_v0  ;;  %5888 = vmatpush.bf16.msra.mxu3 %v11095_v2 }
 0x2c2   :  { %v10267_v16 = vor.u32 %v13938_v36, %v10264_v15  ;;  %5930 = vmatpush.bf16.msrb.mxu2 %v11863_v35  ;;  %v11798_v11 = vld [vmem:[#allocation6 + $0xc50] sm:$0xf]  ;;  %v11063_v24 = vor.u32 %v14142_v21, %v11062_v63  ;;  %v14306_v10 = vld [vmem:[#allocation6 + $0xbd4] sm:$0xf]  ;;  %v15618_v35 = vpop.f32.mrf.mxu1 }
 0x2c3   :  { %v14326_v22 = vld [vmem:[#allocation6 + $0xc6c] sm:$0xf0]  ;;  %v11736_v0 = vld [vmem:[#allocation6 + $0xbf0] sm:$0xf0] }
 0x2c4   :  { %5971 = vmatpush.bf16.msra.mxu1 %v10619_v6  ;;  %5958 = vmatpush.bf16.msra.mxu0 %v10331_v47  ;;  %v5655_v20 = vpop.f32.mrf.mxu2  ;;  %v11831_v6 = vor.u32 %v14334_v7, %v11830_v39  ;;  %v10232_v47 = vld [vmem:[#allocation6 + $0x30] sm:$0xf0]  ;;  %v11030_v54 = vld [vmem:[#allocation6 + $0x650] sm:$0xf]  ;;  %v10491_v39 = vor.u32 %v13994_v62, %v10488_v30 }
 0x2c5   :  { %v15614_v32 = vadd.f32 %v5655_v20, %v15579_v51  ;;  %v14134_v55 = vld [vmem:[#allocation6 + $0x66c] sm:$0xf0]  ;;  %v10235_v59 = vor.u32 %v13930_v41, %v10232_v47  ;;  %5889 = vmatpush.bf16.msra.mxu3 %v11063_v24  ;;  %v11448_v2 = vld [vmem:[#allocation6 + $0x9b0] sm:$0xf0]  ;;  %v5602_v41 = vadd.f32 %v15601_v52, %v5588_v9  ;;  %v5615_v50 = vpop.f32.mrf.mxu3 }
 0x2c6   :  { %5931 = vmatpush.bf16.msrb.mxu2 %v11831_v6  ;;  %v10998_v51 = vld [vmem:[#allocation6 + $0x610] sm:$0xf]  ;;  %v11031_v36 = vor.u32 %v14134_v55, %v11030_v54  ;;  %v14114_v7 = vld [vmem:[#allocation6 + $0x5d4] sm:$0xf]  ;;  %v11451_v60 = vor.u32 %v14234_v19, %v11448_v2  ;;  %v15622_v55 = vpop.f32.mrf.mxu0 }
 0x2c7   :  { %v14318_v15 = vld [vmem:[#allocation6 + $0xc2c] sm:$0xf0]  ;;  %v10968_v63 = vld [vmem:[#allocation6 + $0x5f0] sm:$0xf0] }
 0x2c8   :  { %5972 = vmatpush.bf16.msra.mxu1 %v10587_v23  ;;  %5959 = vmatpush.bf16.msra.mxu0 %v10299_v3  ;;  %v11799_v23 = vor.u32 %v14326_v22, %v11798_v11  ;;  %v11766_v3 = vld [vmem:[#allocation6 + $0xc10] sm:$0xf]  ;;  %v14298_v20 = vld [vmem:[#allocation6 + $0xb94] sm:$0xf]  ;;  %v10971_v11 = vor.u32 %v14114_v7, %v10968_v63 }
 0x2c9   :  { %v14126_v27 = vld [vmem:[#allocation6 + $0x62c] sm:$0xf0]  ;;  %v11767_v38 = vor.u32 %v14318_v15, %v11766_v3  ;;  %v11704_v6 = vld [vmem:[#allocation6 + $0xbb0] sm:$0xf0]  ;;  %5890 = vmatpush.bf16.msra.mxu3 %v11031_v36 }
 0x2ca   :  { %v12246_v21 = vld [vmem:[#allocation6 + $0xfd0] sm:$0xf]  ;;  %5932 = vmatpush.bf16.msrb.mxu2 %v11799_v23  ;;  %v10999_v47 = vor.u32 %v14126_v27, %v10998_v51  ;;  %v14226_v24 = vld [vmem:[#allocation6 + $0x954] sm:$0xf]  ;;  %v11707_v30 = vor.u32 %v14298_v20, %v11704_v6  ;;  %v15626_v2 = vpop.f32.mrf.mxu1  ;;  %v15873_v20 = vperm.slane %v15572_v12, 3 }
 0x2cb   :  { %v11416_v22 = vld [vmem:[#allocation6 + $0x970] sm:$0xf0]  ;;  %v14430_v62 = vld [vmem:[#allocation6 + $0xfac] sm:$0xf0] }
 0x2cc   :  { %5973 = vmatpush.bf16.msra.mxu1 %v10555_v26  ;;  %5960 = vmatpush.bf16.msra.mxu0 %v10267_v16  ;;  %v14438_v26 = vld [vmem:[#allocation6 + $0xfec] sm:$0xf0]  ;;  %v11739_v16 = vor.u32 %v14306_v10, %v11736_v0  ;;  %v14106_v48 = vld [vmem:[#allocation6 + $0x594] sm:$0xf]  ;;  %v11419_v52 = vor.u32 %v14226_v24, %v11416_v22 }
 0x2cd   :  { %v12247_v45 = vor.u32 %v14438_v26, %v12246_v21  ;;  %v10936_v54 = vld [vmem:[#allocation6 + $0x5b0] sm:$0xf0]  ;;  %5891 = vmatpush.bf16.msra.mxu3 %v10999_v47  ;;  %v12150_v24 = vld [vmem:[#allocation6 + $0xf10] sm:$0xf] }
 0x2ce   :  { %5933 = vmatpush.bf16.msrb.mxu2 %v11767_v38  ;;  %v14290_v9 = vld [vmem:[#allocation6 + $0xb54] sm:$0xf]  ;;  %v10939_v3 = vor.u32 %v14106_v48, %v10936_v54  ;;  %v14414_v22 = vld [vmem:[#allocation6 + $0xf2c] sm:$0xf0] }
 0x2cf   :  { %v11672_v23 = vld [vmem:[#allocation6 + $0xb70] sm:$0xf0] }
 0x2d0   :  { %5974 = vmatpush.bf16.msra.mxu1 %v10523_v58  ;;  %5961 = vmatpush.bf16.msra.mxu0 %v10235_v59  ;;  %v5616_v58 = vadd.f32 %v5615_v50, %v5602_v41  ;;  %v12214_v59 = vld [vmem:[#allocation6 + $0xf90] sm:$0xf]  ;;  %v14218_v10 = vld [vmem:[#allocation6 + $0x914] sm:$0xf]  ;;  %v11675_v7 = vor.u32 %v14290_v9, %v11672_v23 }
 0x2d1   :  { %v11384_v0 = vld [vmem:[#allocation6 + $0x930] sm:$0xf0]  ;;  %5940 = vmatpush.bf16.msrb.mxu3 %v12247_v45  ;;  %v12215_v36 = vor.u32 %v14430_v62, %v12214_v59  ;;  %5934 = vmatmul.bf16.vlgmr.msrb.gmra.mxu2 %v15494_v44 }
 0x2d2   :  { %v6299_v51 = vmax.f32 %v5616_v58, 0.0  ;;  %5982 = vmatpush.bf16.msra.mxu2 %v10971_v11  ;;  %v14098_v15 = vld [vmem:[#allocation6 + $0x554] sm:$0xf]  ;;  %5892 = vmatmul.bf16.vlgmr.msra.gmra.mxu3 %v15476_v42  ;;  %v11387_v63 = vor.u32 %v14218_v10, %v11384_v0  ;;  %v5739_v11 = vpop.f32.mrf.mxu0 }
 0x2d3   :  { %5962 = vmatmul.bf16.vlgmr.msra.gmra.mxu0 %v15469_v46  ;;  %v10904_v19 = vld [vmem:[#allocation6 + $0x570] sm:$0xf0] }
 0x2d4   :  { %6010 = vmatpush.bf16.msrb.mxu0 %v11483_v1  ;;  %5975 = vmatpush.bf16.msra.mxu1 %v10491_v39  ;;  %v6291_v1 = vmax.f32 %v15616_v17, 0.0  ;;  %v12182_v17 = vld [vmem:[#allocation6 + $0xf50] sm:$0xf]  ;;  %v14282_v21 = vld [vmem:[#allocation6 + $0xb14] sm:$0xf] }
 0x2d5   :  { %v14422_v39 = vld [vmem:[#allocation6 + $0xf6c] sm:$0xf0]  ;;  %v11640_v26 = vld [vmem:[#allocation6 + $0xb30] sm:$0xf0]  ;;  %5941 = vmatpush.bf16.msrb.mxu3 %v12215_v36 }
 0x2d6   :  { %v15628_v27 = vpack.c.bf16 %v6299_v51, %v6291_v1  ;;  %5983 = vmatpush.bf16.msra.mxu2 %v10939_v3  ;;  %v14210_v38 = vld [vmem:[#allocation6 + $0x8d4] sm:$0xf]  ;;  %v12183_v6 = vor.u32 %v14422_v39, %v12182_v17  ;;  %v11643_v50 = vor.u32 %v14282_v21, %v11640_v26  ;;  %v5753_v1 = vpop.f32.mrf.mxu1  ;;  %v12118_v51 = vld [vmem:[#allocation6 + $0xed0] sm:$0xf] }
 0x2d7   :  { %5976 = vmatmul.bf16.vlgmr.msra.gmra.mxu1 %v15471_v34  ;;  %v14090_v41 = vld [vmem:[#allocation6 + $0x514] sm:$0xf]  ;;  %v14406_v3 = vld [vmem:[#allocation6 + $0xeec] sm:$0xf0] }
 0x2d8   :  { %6024 = vmatpush.bf16.msrb.mxu1 %v11739_v16  ;;  %6011 = vmatpush.bf16.msrb.mxu0 %v11451_v60  ;;  %v10907_v16 = vor.u32 %v14098_v15, %v10904_v19  ;;  %v11352_v60 = vld [vmem:[#allocation6 + $0x8f0] sm:$0xf0] }
 0x2d9   :  { %v10872_v47 = vld [vmem:[#allocation6 + $0x530] sm:$0xf0]  ;;  %v11355_v45 = vor.u32 %v14210_v38, %v11352_v60  ;;  %5942 = vmatpush.bf16.msrb.mxu3 %v12183_v6  ;;  %v14398_v38 = vld [vmem:[#allocation6 + $0xeac] sm:$0xf0] }
 0x2da   :  { %v14274_v48 = vld [vmem:[#allocation6 + $0xad4] sm:$0xf]  ;;  %5984 = vmatpush.bf16.msra.mxu2 %v10907_v16  ;;  %v10875_v58 = vor.u32 %v14090_v41, %v10872_v47  ;;  %v12086_v16 = vld [vmem:[#allocation6 + $0xe90] sm:$0xf] }
 0x2db   :  { %v11608_v54 = vld [vmem:[#allocation6 + $0xaf0] sm:$0xf0] }
 0x2dc   :  { %6025 = vmatpush.bf16.msrb.mxu1 %v11707_v30  ;;  %6012 = vmatpush.bf16.msrb.mxu0 %v11419_v52  ;;  %v14202_v59 = vld [vmem:[#allocation6 + $0x894] sm:$0xf]  ;;  %v5740_v30 = vadd.f32 %v5739_v11, %v15873_v20  ;;  %v12151_v52 = vor.u32 %v14414_v22, %v12150_v24  ;;  %v11611_v10 = vor.u32 %v14274_v48, %v11608_v54  ;;  %v15637_v11 = vpop.f32.mrf.mxu2  ;;  %v14063_v20 = vld [vmem:[#allocation6 + $0x434] sm:$0xf0] }
 0x2dd   :  { %v11320_v62 = vld [vmem:[#allocation6 + $0x8b0] sm:$0xf0]  ;;  %v12087_v48 = vor.u32 %v14398_v38, %v12086_v16  ;;  %v13983_v16 = vld [vmem:[#allocation6 + $0x1b4] sm:$0xf0] }
 0x2de   :  { %v14082_v9 = vld [vmem:[#allocation6 + $0x4d4] sm:$0xf]  ;;  %v15635_v0 = vadd.f32 %v5753_v1, %v5740_v30  ;;  %v11323_v36 = vor.u32 %v14202_v59, %v11320_v62  ;;  %5985 = vmatpush.bf16.msra.mxu2 %v10875_v58  ;;  %5943 = vmatpush.bf16.msrb.mxu3 %v12151_v52  ;;  %v10462_v58 = vld [vmem:[#allocation6 + $0x1d8] sm:$0xf]  ;;  %v5669_v62 = vpop.f32.mrf.mxu3  ;;  %v12054_v30 = vld [vmem:[#allocation6 + $0xe50] sm:$0xf] }
 0x2df   :  { %v10840_v23 = vld [vmem:[#allocation6 + $0x4f0] sm:$0xf0]  ;;  %v13991_v59 = vld [vmem:[#allocation6 + $0x1f4] sm:$0xf0]  ;;  %v14390_v52 = vld [vmem:[#allocation6 + $0xe6c] sm:$0xf0] }
 0x2e0   :  { %6026 = vmatpush.bf16.msrb.mxu1 %v11675_v7  ;;  %6013 = vmatpush.bf16.msrb.mxu0 %v11387_v63  ;;  %v14266_v15 = vld [vmem:[#allocation6 + $0xa94] sm:$0xf]  ;;  %v10843_v17 = vor.u32 %v14082_v9, %v10840_v23  ;;  %v12119_v63 = vor.u32 %v14406_v3, %v12118_v51  ;;  %v5670_v23 = vadd.f32 %v5669_v62, %v15614_v32  ;;  %v14382_v32 = vld [vmem:[#allocation6 + $0xe2c] sm:$0xf0] }
 0x2e1   :  { %v11576_v19 = vld [vmem:[#allocation6 + $0xab0] sm:$0xf0] }
 0x2e2   :  { %v14194_v39 = vld [vmem:[#allocation6 + $0x854] sm:$0xf]  ;;  %v11579_v60 = vor.u32 %v14266_v15, %v11576_v19  ;;  %5986 = vmatpush.bf16.msra.mxu2 %v10843_v17  ;;  %5944 = vmatpush.bf16.msrb.mxu3 %v12119_v63  ;;  %v12022_v15 = vld [vmem:[#allocation6 + $0xe10] sm:$0xf]  ;;  %v10718_v17 = vld [vmem:[#allocation6 + $0x3d8] sm:$0xf]  ;;  %v12055_v63 = vor.u32 %v14390_v52, %v12054_v30 }
 0x2e3   :  { %v11288_v7 = vld [vmem:[#allocation6 + $0x870] sm:$0xf0]  ;;  %v10398_v30 = vld [vmem:[#allocation6 + $0x158] sm:$0xf] }
 0x2e4   :  { %6027 = vmatpush.bf16.msrb.mxu1 %v11643_v50  ;;  %6014 = vmatpush.bf16.msrb.mxu0 %v11355_v45  ;;  %v14074_v21 = vld [vmem:[#allocation6 + $0x494] sm:$0xf]  ;;  %v11291_v6 = vor.u32 %v14194_v39, %v11288_v7  ;;  %v14055_v39 = vld [vmem:[#allocation6 + $0x3f4] sm:$0xf0]  ;;  %v5684_v7 = vadd.f32 %v15611_v5, %v5670_v23 }
 0x2e5   :  { %v10808_v26 = vld [vmem:[#allocation6 + $0x4b0] sm:$0xf0]  ;;  %v13975_v52 = vld [vmem:[#allocation6 + $0x174] sm:$0xf0] }
 0x2e6   :  { %v14258_v41 = vld [vmem:[#allocation6 + $0xa54] sm:$0xf]  ;;  %v10811_v24 = vor.u32 %v14074_v21, %v10808_v26  ;;  %5945 = vmatpush.bf16.msrb.mxu3 %v12087_v48  ;;  %v10430_v26 = vld [vmem:[#allocation6 + $0x198] sm:$0xf] }
 0x2e7   :  { %v11544_v47 = vld [vmem:[#allocation6 + $0xa70] sm:$0xf0]  ;;  %v10686_v48 = vld [vmem:[#allocation6 + $0x398] sm:$0xf] }
 0x2e8   :  { %6028 = vmatpush.bf16.msrb.mxu1 %v11611_v10  ;;  %6015 = vmatpush.bf16.msrb.mxu0 %v11323_v36  ;;  %v14186_v22 = vld [vmem:[#allocation6 + $0x814] sm:$0xf]  ;;  %v11547_v9 = vor.u32 %v14258_v41, %v11544_v47  ;;  %v10463_v36 = vor.u32 %v13991_v59, %v10462_v58  ;;  %v5698_v41 = vadd.f32 %v15618_v35, %v5684_v7 }
 0x2e9   :  { %v11256_v50 = vld [vmem:[#allocation6 + $0x830] sm:$0xf0]  ;;  %5987 = vmatpush.bf16.msra.mxu2 %v10811_v24  ;;  %v12023_v59 = vor.u32 %v14382_v32, %v12022_v15 }
 0x2ea   :  { %v14066_v45 = vld [vmem:[#allocation6 + $0x454] sm:$0xf]  ;;  %v11259_v1 = vor.u32 %v14186_v22, %v11256_v50  ;;  %v10719_v22 = vor.u32 %v14055_v39, %v10718_v17  ;;  %v5711_v50 = vpop.f32.mrf.mxu2  ;;  %5946 = vmatpush.bf16.msrb.mxu3 %v12055_v63  ;;  %v10366_v17 = vld [vmem:[#allocation6 + $0x118] sm:$0xf] }
 0x2eb   :  { %v10776_v54 = vld [vmem:[#allocation6 + $0x470] sm:$0xf0]  ;;  %v15642_v58 = vadd.f32 %v5711_v50, %v5698_v41  ;;  %v13967_v39 = vld [vmem:[#allocation6 + $0x134] sm:$0xf0] }
 0x2ec   :  { %6029 = vmatpush.bf16.msrb.mxu1 %v11579_v60  ;;  %6016 = vmatpush.bf16.msrb.mxu0 %v11291_v6  ;;  %v14250_v51 = vld [vmem:[#allocation6 + $0xa14] sm:$0xf]  ;;  %v10779_v10 = vor.u32 %v14066_v45, %v10776_v54  ;;  %v10431_v45 = vor.u32 %v13983_v16, %v10430_v26  ;;  %v14047_v54 = vld [vmem:[#allocation6 + $0x3b4] sm:$0xf0] }
 0x2ed   :  { %v11512_v3 = vld [vmem:[#allocation6 + $0xa30] sm:$0xf0] }
 0x2ee   :  { %v14058_v19 = vld [vmem:[#allocation6 + $0x414] sm:$0xf]  ;;  %v11515_v38 = vor.u32 %v14250_v51, %v11512_v3  ;;  %5988 = vmatpush.bf16.msra.mxu2 %v10779_v10  ;;  %v10687_v3 = vor.u32 %v14047_v54, %v10686_v48  ;;  %v10399_v10 = vor.u32 %v13975_v52, %v10398_v30  ;;  %5947 = vmatpush.bf16.msrb.mxu3 %v12023_v59  ;;  %v14023_v30 = vld [vmem:[#allocation6 + $0x2f4] sm:$0xf0] }
 0x2ef   :  { %v10744_v21 = vld [vmem:[#allocation6 + $0x430] sm:$0xf0] }
 0x2f0   :  { %6030 = vmatpush.bf16.msrb.mxu1 %v11547_v9  ;;  %v14370_v60 = vld [vmem:[#allocation6 + $0xdd4] sm:$0xf]  ;;  %6017 = vmatpush.bf16.msrb.mxu0 %v11259_v1  ;;  %v10747_v5 = vor.u32 %v14058_v19, %v10744_v21  ;;  %v14039_v19 = vld [vmem:[#allocation6 + $0x374] sm:$0xf0] }
 0x2f1   :  { %v11992_v6 = vld [vmem:[#allocation6 + $0xdf0] sm:$0xf0]  ;;  %5948 = vmatmul.bf16.vlgmr.msrb.gmra.mxu3 %v15502_v4 }
 0x2f2   :  { %v14178_v47 = vld [vmem:[#allocation6 + $0x7d4] sm:$0xf]  ;;  %v11995_v62 = vor.u32 %v14370_v60, %v11992_v6  ;;  %5989 = vmatpush.bf16.msra.mxu2 %v10747_v5  ;;  %v10622_v60 = vld [vmem:[#allocation6 + $0x318] sm:$0xf] }
 0x2f3   :  { %v11224_v24 = vld [vmem:[#allocation6 + $0x7f0] sm:$0xf0]  ;;  %6018 = vmatmul.bf16.vlgmr.msrb.gmra.mxu0 %v15482_v53  ;;  %v14031_v6 = vld [vmem:[#allocation6 + $0x334] sm:$0xf0] }
 0x2f4   :  { %6066 = vmatpush.bf16.msra.mxu0 %v10463_v36  ;;  %6031 = vmatpush.bf16.msrb.mxu1 %v11515_v38  ;;  %v11227_v35 = vor.u32 %v14178_v47, %v11224_v24  ;;  %v14362_v9 = vld [vmem:[#allocation6 + $0xd94] sm:$0xf]  ;;  %v10654_v36 = vld [vmem:[#allocation6 + $0x358] sm:$0xf]  ;;  %v10367_v38 = vor.u32 %v13967_v39, %v10366_v17  ;;  %v10623_v54 = vor.u32 %v14031_v6, %v10622_v60 }
 0x2f5   :  { %v11960_v23 = vld [vmem:[#allocation6 + $0xdb0] sm:$0xf0]  ;;  %5990 = vmatmul.bf16.vlgmr.msra.gmra.mxu2 %v15473_v37  ;;  %v10655_v32 = vor.u32 %v14039_v19, %v10654_v36  ;;  %v10334_v47 = vld [vmem:[#allocation6 + $0xd8] sm:$0xf] }
 0x2f6   :  { %v14170_v1 = vld [vmem:[#allocation6 + $0x794] sm:$0xf]  ;;  %6038 = vmatpush.bf16.msrb.mxu2 %v11995_v62  ;;  %v11963_v15 = vor.u32 %v14362_v9, %v11960_v23  ;;  %5996 = vmatpush.bf16.msra.mxu3 %v11227_v35  ;;  %v13959_v24 = vld [vmem:[#allocation6 + $0xf4] sm:$0xf0]  ;;  %v15648_v23 = vpop.f32.mrf.mxu2 }
 0x2f7   :  { %v11192_v51 = vld [vmem:[#allocation6 + $0x7b0] sm:$0xf0]  ;;  %6032 = vmatmul.bf16.vlgmr.msrb.gmra.mxu1 %v15486_v61  ;;  %v10335_v59 = vor.u32 %v13959_v24, %v10334_v47  ;;  %v10590_v62 = vld [vmem:[#allocation6 + $0x2d8] sm:$0xf] }
 0x2f8   :  { %6080 = vmatpush.bf16.msra.mxu1 %v10719_v22  ;;  %6067 = vmatpush.bf16.msra.mxu0 %v10431_v45  ;;  %v11195_v7 = vor.u32 %v14170_v1, %v11192_v51  ;;  %v14354_v63 = vld [vmem:[#allocation6 + $0xd54] sm:$0xf]  ;;  %v10302_v35 = vld [vmem:[#allocation6 + $0x98] sm:$0xf] }
 0x2f9   :  { %v11928_v21 = vld [vmem:[#allocation6 + $0xd70] sm:$0xf0]  ;;  %v13951_v9 = vld [vmem:[#allocation6 + $0xb4] sm:$0xf0] }
 0x2fa   :  { %v14162_v26 = vld [vmem:[#allocation6 + $0x754] sm:$0xf]  ;;  %6039 = vmatpush.bf16.msrb.mxu2 %v11963_v15  ;;  %v11931_v41 = vor.u32 %v14354_v63, %v11928_v21  ;;  %5997 = vmatpush.bf16.msra.mxu3 %v11195_v7  ;;  %v10591_v15 = vor.u32 %v14023_v30, %v10590_v62  ;;  %v10303_v17 = vor.u32 %v13951_v9, %v10302_v35  ;;  %v10558_v39 = vld [vmem:[#allocation6 + $0x298] sm:$0xf] }
 0x2fb   :  { %v11160_v16 = vld [vmem:[#allocation6 + $0x770] sm:$0xf0]  ;;  %v14015_v7 = vld [vmem:[#allocation6 + $0x2b4] sm:$0xf0] }
 0x2fc   :  { %6081 = vmatpush.bf16.msra.mxu1 %v10687_v3  ;;  %6068 = vmatpush.bf16.msra.mxu0 %v10399_v10  ;;  %v11163_v22 = vor.u32 %v14162_v26, %v11160_v16  ;;  %v14346_v50 = vld [vmem:[#allocation6 + $0xd14] sm:$0xf]  ;;  %v15650_v10 = vpop.f32.mrf.mxu3  ;;  %v10270_v21 = vld [vmem:[#allocation6 + $0x58] sm:$0xf] }
 0x2fd   :  { %v11896_v5 = vld [vmem:[#allocation6 + $0xd30] sm:$0xf0]  ;;  %v13943_v26 = vld [vmem:[#allocation6 + $0x74] sm:$0xf0] }
 0x2fe   :  { %v14154_v45 = vld [vmem:[#allocation6 + $0x714] sm:$0xf]  ;;  %6040 = vmatpush.bf16.msrb.mxu2 %v11931_v41  ;;  %v11899_v52 = vor.u32 %v14346_v50, %v11896_v5  ;;  %5998 = vmatpush.bf16.msra.mxu3 %v11163_v22  ;;  %v10559_v41 = vor.u32 %v14015_v7, %v10558_v39  ;;  %v10271_v47 = vor.u32 %v13943_v26, %v10270_v21  ;;  %v10526_v24 = vld [vmem:[#allocation6 + $0x258] sm:$0xf] }
 0x2ff   :  { %v11128_v48 = vld [vmem:[#allocation6 + $0x730] sm:$0xf0]  ;;  %v14007_v22 = vld [vmem:[#allocation6 + $0x274] sm:$0xf0] }
 0x300   :  { %6082 = vmatpush.bf16.msra.mxu1 %v10655_v32  ;;  %6069 = vmatpush.bf16.msra.mxu0 %v10367_v38  ;;  %v11131_v1 = vor.u32 %v14154_v45, %v11128_v48  ;;  %v14338_v51 = vld [vmem:[#allocation6 + $0xcd4] sm:$0xf]  ;;  %v10238_v5 = vld [vmem:[#allocation6 + $0x18] sm:$0xf] }
 0x301   :  { %v11864_v3 = vld [vmem:[#allocation6 + $0xcf0] sm:$0xf0]  ;;  %v13935_v45 = vld [vmem:[#allocation6 + $0x34] sm:$0xf0] }
 0x302   :  { %v14146_v36 = vld [vmem:[#allocation6 + $0x6d4] sm:$0xf]  ;;  %6041 = vmatpush.bf16.msrb.mxu2 %v11899_v52  ;;  %v11867_v63 = vor.u32 %v14338_v51, %v11864_v3  ;;  %5999 = vmatpush.bf16.msra.mxu3 %v11131_v1  ;;  %v11486_v30 = vld [vmem:[#allocation6 + $0x9d8] sm:$0xf]  ;;  %v10527_v3 = vor.u32 %v14007_v22, %v10526_v24 }
 0x303   :  { %v11096_v19 = vld [vmem:[#allocation6 + $0x6f0] sm:$0xf0]  ;;  %v14247_v52 = vld [vmem:[#allocation6 + $0x9f4] sm:$0xf0] }
 0x304   :  { %6083 = vmatpush.bf16.msra.mxu1 %v10623_v54  ;;  %6070 = vmatpush.bf16.msra.mxu0 %v10335_v59  ;;  %v11099_v16 = vor.u32 %v14146_v36, %v11096_v19  ;;  %v14330_v32 = vld [vmem:[#allocation6 + $0xc94] sm:$0xf]  ;;  %v5767_v54 = vpop.f32.mrf.mxu2  ;;  %v5725_v35 = vpop.f32.mrf.mxu3  ;;  %v10239_v19 = vor.u32 %v13935_v45, %v10238_v5  ;;  %v11487_v7 = vor.u32 %v14247_v52, %v11486_v30  ;;  %v11742_v26 = vld [vmem:[#allocation6 + $0xbd8] sm:$0xf] }
 0x305   :  { %v11832_v38 = vld [vmem:[#allocation6 + $0xcb0] sm:$0xf0]  ;;  %v15653_v9 = vadd.f32 %v5767_v54, %v15635_v0  ;;  %v15656_v36 = vadd.f32 %v5725_v35, %v15642_v58  ;;  %v14303_v54 = vld [vmem:[#allocation6 + $0xbb4] sm:$0xf0] }
 0x306   :  { %v14138_v60 = vld [vmem:[#allocation6 + $0x694] sm:$0xf]  ;;  %6042 = vmatpush.bf16.msrb.mxu2 %v11867_v63  ;;  %v11835_v50 = vor.u32 %v14330_v32, %v11832_v38  ;;  %6000 = vmatpush.bf16.msra.mxu3 %v11099_v16  ;;  %v14311_v16 = vld [vmem:[#allocation6 + $0xbf4] sm:$0xf0] }
 0x307   :  { %v11064_v6 = vld [vmem:[#allocation6 + $0x6b0] sm:$0xf0]  ;;  %v11454_v38 = vld [vmem:[#allocation6 + $0x998] sm:$0xf] }
 0x308   :  { %6084 = vmatpush.bf16.msra.mxu1 %v10591_v15  ;;  %6071 = vmatpush.bf16.msra.mxu0 %v10303_v17  ;;  %v14322_v48 = vld [vmem:[#allocation6 + $0xc54] sm:$0xf]  ;;  %v11067_v59 = vor.u32 %v14138_v60, %v11064_v6  ;;  %v10494_v15 = vld [vmem:[#allocation6 + $0x218] sm:$0xf] }
 0x309   :  { %v11800_v62 = vld [vmem:[#allocation6 + $0xc70] sm:$0xf0]  ;;  %v13999_v17 = vld [vmem:[#allocation6 + $0x234] sm:$0xf0] }
 0x30a   :  { %v14130_v1 = vld [vmem:[#allocation6 + $0x654] sm:$0xf]  ;;  %6043 = vmatpush.bf16.msrb.mxu2 %v11835_v50  ;;  %v11803_v39 = vor.u32 %v14322_v48, %v11800_v62  ;;  %6001 = vmatpush.bf16.msra.mxu3 %v11067_v59  ;;  %v14239_v60 = vld [vmem:[#allocation6 + $0x9b4] sm:$0xf0]  ;;  %v10495_v58 = vor.u32 %v13999_v17, %v10494_v15  ;;  %v11743_v50 = vor.u32 %v14311_v16, %v11742_v26 }
 0x30b   :  { %v11032_v51 = vld [vmem:[#allocation6 + $0x670] sm:$0xf0]  ;;  %v11455_v45 = vor.u32 %v14239_v60, %v11454_v38  ;;  %v11710_v48 = vld [vmem:[#allocation6 + $0xb98] sm:$0xf] }
 0x30c   :  { %6085 = vmatpush.bf16.msra.mxu1 %v10559_v41  ;;  %6072 = vmatpush.bf16.msra.mxu0 %v10271_v47  ;;  %v14122_v63 = vld [vmem:[#allocation6 + $0x614] sm:$0xf]  ;;  %v11035_v0 = vor.u32 %v14130_v1, %v11032_v51  ;;  %v10974_v41 = vld [vmem:[#allocation6 + $0x5d8] sm:$0xf]  ;;  %v11711_v15 = vor.u32 %v14303_v54, %v11710_v48 }
 0x30d   :  { %v14314_v21 = vld [vmem:[#allocation6 + $0xc14] sm:$0xf]  ;;  %v14119_v47 = vld [vmem:[#allocation6 + $0x5f4] sm:$0xf0] }
 0x30e   :  { %v11768_v32 = vld [vmem:[#allocation6 + $0xc30] sm:$0xf0]  ;;  %6044 = vmatpush.bf16.msrb.mxu2 %v11803_v39  ;;  %6002 = vmatpush.bf16.msra.mxu3 %v11035_v0  ;;  %v10975_v62 = vor.u32 %v14119_v47, %v10974_v41  ;;  %v11422_v30 = vld [vmem:[#allocation6 + $0x958] sm:$0xf] }
 0x30f   :  { %v11000_v6 = vld [vmem:[#allocation6 + $0x630] sm:$0xf0]  ;;  %v11771_v5 = vor.u32 %v14314_v21, %v11768_v32  ;;  %v14231_v52 = vld [vmem:[#allocation6 + $0x974] sm:$0xf0] }
 0x310   :  { %6086 = vmatpush.bf16.msra.mxu1 %v10527_v3  ;;  %6073 = vmatpush.bf16.msra.mxu0 %v10239_v19  ;;  %v14434_v24 = vld [vmem:[#allocation6 + $0xfd4] sm:$0xf]  ;;  %v11003_v59 = vor.u32 %v14122_v63, %v11000_v6  ;;  %v10942_v1 = vld [vmem:[#allocation6 + $0x598] sm:$0xf]  ;;  %v11423_v17 = vor.u32 %v14231_v52, %v11422_v30 }
 0x311   :  { %v12248_v22 = vld [vmem:[#allocation6 + $0xff0] sm:$0xf0]  ;;  %v14111_v51 = vld [vmem:[#allocation6 + $0x5b4] sm:$0xf0] }
 0x312   :  { %v12251_v35 = vor.u32 %v14434_v24, %v12248_v22  ;;  %v14426_v3 = vld [vmem:[#allocation6 + $0xf94] sm:$0xf]  ;;  %6045 = vmatpush.bf16.msrb.mxu2 %v11771_v5  ;;  %v11678_v39 = vld [vmem:[#allocation6 + $0xb58] sm:$0xf]  ;;  %6003 = vmatpush.bf16.msra.mxu3 %v11003_v59  ;;  %v10943_v63 = vor.u32 %v14111_v51, %v10942_v1 }
 0x313   :  { %6074 = vmatmul.bf16.vlgmr.msra.gmra.mxu0 %v15469_v46  ;;  %v12216_v19 = vld [vmem:[#allocation6 + $0xfb0] sm:$0xf0]  ;;  %v11390_v21 = vld [vmem:[#allocation6 + $0x918] sm:$0xf] }
 0x314   :  { %6122 = vmatpush.bf16.msrb.mxu0 %v11487_v7  ;;  %6087 = vmatpush.bf16.msra.mxu1 %v10495_v58  ;;  %v14295_v7 = vld [vmem:[#allocation6 + $0xb74] sm:$0xf0]  ;;  %v12219_v16 = vor.u32 %v14426_v3, %v12216_v19  ;;  %v14418_v38 = vld [vmem:[#allocation6 + $0xf54] sm:$0xf] }
 0x315   :  { %v14223_v26 = vld [vmem:[#allocation6 + $0x934] sm:$0xf0]  ;;  %6046 = vmatmul.bf16.vlgmr.msrb.gmra.mxu2 %v15494_v44  ;;  %v12184_v60 = vld [vmem:[#allocation6 + $0xf70] sm:$0xf0]  ;;  %v11679_v6 = vor.u32 %v14295_v7, %v11678_v39  ;;  %6004 = vmatmul.bf16.vlgmr.msra.gmra.mxu3 %v15476_v42  ;;  %v15662_v39 = vpop.f32.mrf.mxu3 }
 0x316   :  { %6094 = vmatpush.bf16.msra.mxu2 %v10975_v62  ;;  %6052 = vmatpush.bf16.msrb.mxu3 %v12251_v35  ;;  %v10910_v0 = vld [vmem:[#allocation6 + $0x558] sm:$0xf]  ;;  %v11391_v58 = vor.u32 %v14223_v26, %v11390_v21  ;;  %v12187_v5 = vor.u32 %v14418_v38, %v12184_v60  ;;  %v14410_v54 = vld [vmem:[#allocation6 + $0xf14] sm:$0xf] }
 0x317   :  { %6088 = vmatmul.bf16.vlgmr.msra.gmra.mxu1 %v15471_v34  ;;  %v14103_v32 = vld [vmem:[#allocation6 + $0x574] sm:$0xf0]  ;;  %v12152_v59 = vld [vmem:[#allocation6 + $0xf30] sm:$0xf0] }
 0x318   :  { %6136 = vmatpush.bf16.msrb.mxu1 %v11743_v50  ;;  %6123 = vmatpush.bf16.msrb.mxu0 %v11455_v45  ;;  %v11646_v41 = vld [vmem:[#allocation6 + $0xb18] sm:$0xf]  ;;  %v10911_v24 = vor.u32 %v14103_v32, %v10910_v0  ;;  %v12155_v19 = vor.u32 %v14410_v54, %v12152_v59  ;;  %v14402_v7 = vld [vmem:[#allocation6 + $0xed4] sm:$0xf]  ;;  %v15664_v32 = vpop.f32.mrf.mxu0  ;;  %v15668_v59 = vpop.f32.mrf.mxu2 }
 0x319   :  { %v14287_v47 = vld [vmem:[#allocation6 + $0xb34] sm:$0xf0] }
 0x31a   :  { %6095 = vmatpush.bf16.msra.mxu2 %v10943_v63  ;;  %v11358_v22 = vld [vmem:[#allocation6 + $0x8d8] sm:$0xf]  ;;  %6053 = vmatpush.bf16.msrb.mxu3 %v12219_v16  ;;  %v11647_v62 = vor.u32 %v14287_v47, %v11646_v41  ;;  %v12120_v63 = vld [vmem:[#allocation6 + $0xef0] sm:$0xf0] }
 0x31b   :  { %v14215_v50 = vld [vmem:[#allocation6 + $0x8f4] sm:$0xf0] }
 0x31c   :  { %6137 = vmatpush.bf16.msrb.mxu1 %v11711_v15  ;;  %6124 = vmatpush.bf16.msrb.mxu0 %v11423_v17  ;;  %v10878_v45 = vld [vmem:[#allocation6 + $0x518] sm:$0xf]  ;;  %v11359_v30 = vor.u32 %v14215_v50, %v11358_v22  ;;  %v14394_v22 = vld [vmem:[#allocation6 + $0xe94] sm:$0xf] }
 0x31d   :  { %v14095_v48 = vld [vmem:[#allocation6 + $0x534] sm:$0xf0]  ;;  %v12088_v50 = vld [vmem:[#allocation6 + $0xeb0] sm:$0xf0] }
 0x31e   :  { %v11614_v52 = vld [vmem:[#allocation6 + $0xad8] sm:$0xf]  ;;  %6096 = vmatpush.bf16.msra.mxu2 %v10911_v24  ;;  %v10879_v1 = vor.u32 %v14095_v48, %v10878_v45  ;;  %6054 = vmatpush.bf16.msrb.mxu3 %v12187_v5  ;;  %v15666_v24 = vpop.f32.mrf.mxu1 }
 0x31f   :  { %v14279_v35 = vld [vmem:[#allocation6 + $0xaf4] sm:$0xf0] }
 0x320   :  { %6138 = vmatpush.bf16.msrb.mxu1 %v11679_v6  ;;  %6125 = vmatpush.bf16.msrb.mxu0 %v11391_v58  ;;  %v11326_v51 = vld [vmem:[#allocation6 + $0x898] sm:$0xf]  ;;  %v11615_v21 = vor.u32 %v14279_v35, %v11614_v52  ;;  %v12123_v58 = vor.u32 %v14402_v7, %v12120_v63  ;;  %v12056_v7 = vld [vmem:[#allocation6 + $0xe70] sm:$0xf0] }
 0x321   :  { %v14207_v3 = vld [vmem:[#allocation6 + $0x8b4] sm:$0xf0] }
 0x322   :  { %v10846_v15 = vld [vmem:[#allocation6 + $0x4d8] sm:$0xf]  ;;  %v11327_v26 = vor.u32 %v14207_v3, %v11326_v51  ;;  %6097 = vmatpush.bf16.msra.mxu2 %v10879_v1  ;;  %6055 = vmatpush.bf16.msrb.mxu3 %v12155_v19  ;;  %v12091_v1 = vor.u32 %v14394_v22, %v12088_v50  ;;  %v13987_v3 = vld [vmem:[#allocation6 + $0x1dc] sm:$0xf] }
 0x323   :  { %v14087_v17 = vld [vmem:[#allocation6 + $0x4f4] sm:$0xf0]  ;;  %v10464_v19 = vld [vmem:[#allocation6 + $0x1f8] sm:$0xf0] }
 0x324   :  { %6139 = vmatpush.bf16.msrb.mxu1 %v11647_v62  ;;  %6126 = vmatpush.bf16.msrb.mxu0 %v11359_v30  ;;  %v11582_v16 = vld [vmem:[#allocation6 + $0xa98] sm:$0xf]  ;;  %v10847_v38 = vor.u32 %v14087_v17, %v10846_v15  ;;  %v5781_v15 = vpop.f32.mrf.mxu3  ;;  %v14386_v17 = vld [vmem:[#allocation6 + $0xe54] sm:$0xf]  ;;  %v10720_v22 = vld [vmem:[#allocation6 + $0x3f8] sm:$0xf0] }
 0x325   :  { %v14271_v0 = vld [vmem:[#allocation6 + $0xab4] sm:$0xf0] }
 0x326   :  { %v11294_v60 = vld [vmem:[#allocation6 + $0x858] sm:$0xf]  ;;  %v11583_v5 = vor.u32 %v14271_v0, %v11582_v16  ;;  %6098 = vmatpush.bf16.msra.mxu2 %v10847_v38  ;;  %6056 = vmatpush.bf16.msrb.mxu3 %v12123_v58  ;;  %v5795_v38 = vpop.f32.mrf.mxu0  ;;  %v14378_v58 = vld [vmem:[#allocation6 + $0xe14] sm:$0xf] }
 0x327   :  { %v14199_v6 = vld [vmem:[#allocation6 + $0x874] sm:$0xf0] }
 0x328   :  { %v10814_v41 = vld [vmem:[#allocation6 + $0x498] sm:$0xf]  ;;  %6140 = vmatpush.bf16.msrb.mxu1 %v11615_v21  ;;  %6127 = vmatpush.bf16.msrb.mxu0 %v11327_v26  ;;  %v11295_v45 = vor.u32 %v14199_v6, %v11294_v60  ;;  %v5782_v21 = vadd.f32 %v5781_v15, %v15653_v9  ;;  %v10467_v6 = vor.u32 %v13987_v3, %v10464_v19  ;;  %v12024_v9 = vld [vmem:[#allocation6 + $0xe30] sm:$0xf0]  ;;  %v5823_v3 = vpop.f32.mrf.mxu2 }
 0x329   :  { %v14079_v47 = vld [vmem:[#allocation6 + $0x4b4] sm:$0xf0] }
 0x32a   :  { %v11550_v48 = vld [vmem:[#allocation6 + $0xa58] sm:$0xf]  ;;  %v10815_v62 = vor.u32 %v14079_v47, %v10814_v41  ;;  %v14051_v47 = vld [vmem:[#allocation6 + $0x3dc] sm:$0xf]  ;;  %v5796_v50 = vadd.f32 %v5795_v38, %v5782_v21  ;;  %6057 = vmatpush.bf16.msrb.mxu3 %v12091_v1 }
 0x32b   :  { %v14263_v54 = vld [vmem:[#allocation6 + $0xa74] sm:$0xf0] }
 0x32c   :  { %v11262_v30 = vld [vmem:[#allocation6 + $0x818] sm:$0xf]  ;;  %6141 = vmatpush.bf16.msrb.mxu1 %v11583_v5  ;;  %v11551_v63 = vor.u32 %v14263_v54, %v11550_v48  ;;  %6128 = vmatpush.bf16.msrb.mxu0 %v11295_v45  ;;  %v12059_v5 = vor.u32 %v14386_v17, %v12056_v7  ;;  %v10432_v48 = vld [vmem:[#allocation6 + $0x1b8] sm:$0xf0]  ;;  %v5809_v54 = vpop.f32.mrf.mxu1 }
 0x32d   :  { %v14191_v52 = vld [vmem:[#allocation6 + $0x834] sm:$0xf0]  ;;  %6099 = vmatpush.bf16.msra.mxu2 %v10815_v62  ;;  %v5810_v15 = vadd.f32 %v5809_v54, %v5796_v50  ;;  %v10435_v1 = vor.u32 %v13979_v57, %v10432_v48  ;;  %v14043_v17 = vld [vmem:[#allocation6 + $0x39c] sm:$0xf] }
 0x32e   :  { %v10782_v35 = vld [vmem:[#allocation6 + $0x458] sm:$0xf]  ;;  %v11263_v26 = vor.u32 %v14191_v52, %v11262_v30  ;;  %v10688_v7 = vld [vmem:[#allocation6 + $0x3b8] sm:$0xf0]  ;;  %6058 = vmatpush.bf16.msrb.mxu3 %v12059_v5 }
 0x32f   :  { %v14071_v51 = vld [vmem:[#allocation6 + $0x474] sm:$0xf0]  ;;  %v15671_v21 = vadd.f32 %v5823_v3, %v5810_v15  ;;  %v13963_v5 = vld [vmem:[#allocation6 + $0x11c] sm:$0xf] }
 0x330   :  { %v11518_v16 = vld [vmem:[#allocation6 + $0xa18] sm:$0xf]  ;;  %v10783_v60 = vor.u32 %v14071_v51, %v10782_v35  ;;  %6142 = vmatpush.bf16.msrb.mxu1 %v11551_v63  ;;  %6129 = vmatpush.bf16.msrb.mxu0 %v11263_v26  ;;  %v10723_v51 = vor.u32 %v14051_v47, %v10720_v22  ;;  %v12027_v63 = vor.u32 %v14378_v58, %v12024_v9  ;;  %v10656_v22 = vld [vmem:[#allocation6 + $0x378] sm:$0xf0] }
 0x331   :  { %v14255_v0 = vld [vmem:[#allocation6 + $0xa34] sm:$0xf0]  ;;  %v10368_v48 = vld [vmem:[#allocation6 + $0x138] sm:$0xf0] }
 0x332   :  { %v10750_v41 = vld [vmem:[#allocation6 + $0x418] sm:$0xf]  ;;  %v11519_v45 = vor.u32 %v14255_v0, %v11518_v16  ;;  %6100 = vmatpush.bf16.msra.mxu2 %v10783_v60  ;;  %v13971_v16 = vld [vmem:[#allocation6 + $0x15c] sm:$0xf]  ;;  %6059 = vmatpush.bf16.msrb.mxu3 %v12027_v63 }
 0x333   :  { %v11998_v30 = vld [vmem:[#allocation6 + $0xdd8] sm:$0xf]  ;;  %v10751_v19 = vor.u32 %v14063_v20, %v10750_v41  ;;  %v10400_v0 = vld [vmem:[#allocation6 + $0x178] sm:$0xf0]  ;;  %6130 = vmatmul.bf16.vlgmr.msrb.gmra.mxu0 %v15482_v53  ;;  %v10691_v20 = vor.u32 %v14043_v17, %v10688_v7 }
 0x334   :  { %v14375_v52 = vld [vmem:[#allocation6 + $0xdf4] sm:$0xf0]  ;;  %6178 = vmatpush.bf16.msra.mxu0 %v10467_v6  ;;  %6143 = vmatpush.bf16.msrb.mxu1 %v11519_v45  ;;  %v10403_v57 = vor.u32 %v13971_v16, %v10400_v0  ;;  %v14035_v41 = vld [vmem:[#allocation6 + $0x35c] sm:$0xf] }
 0x335   :  { %v11230_v62 = vld [vmem:[#allocation6 + $0x7d8] sm:$0xf]  ;;  %v11999_v38 = vor.u32 %v14375_v52, %v11998_v30  ;;  %v10659_v15 = vor.u32 %v14035_v41, %v10656_v22  ;;  %6060 = vmatmul.bf16.vlgmr.msrb.gmra.mxu3 %v15502_v4 }
 0x336   :  { %v14183_v35 = vld [vmem:[#allocation6 + $0x7f4] sm:$0xf0]  ;;  %6101 = vmatpush.bf16.msra.mxu2 %v10751_v19  ;;  %v13955_v19 = vld [vmem:[#allocation6 + $0xdc] sm:$0xf] }
 0x337   :  { %v11231_v26 = vor.u32 %v14183_v35, %v11230_v62  ;;  %v11966_v50 = vld [vmem:[#allocation6 + $0xd98] sm:$0xf]  ;;  %6144 = vmatmul.bf16.vlgmr.msrb.gmra.mxu1 %v15486_v61  ;;  %v10371_v62 = vor.u32 %v13963_v5, %v10368_v48  ;;  %v14027_v35 = vld [vmem:[#allocation6 + $0x31c] sm:$0xf] }
 0x338   :  { %v14367_v47 = vld [vmem:[#allocation6 + $0xdb4] sm:$0xf0]  ;;  %6192 = vmatpush.bf16.msra.mxu1 %v10723_v51  ;;  %6179 = vmatpush.bf16.msra.mxu0 %v10435_v1  ;;  %v10624_v51 = vld [vmem:[#allocation6 + $0x338] sm:$0xf0] }
 0x339   :  { %v11198_v60 = vld [vmem:[#allocation6 + $0x798] sm:$0xf]  ;;  %v11967_v58 = vor.u32 %v14367_v47, %v11966_v50  ;;  %6108 = vmatpush.bf16.msra.mxu3 %v11231_v26  ;;  %6102 = vmatmul.bf16.vlgmr.msra.gmra.mxu2 %v15473_v37  ;;  %v10336_v1 = vld [vmem:[#allocation6 + $0xf8] sm:$0xf0]  ;;  %v10627_v0 = vor.u32 %v14027_v35, %v10624_v51 }
 0x33a   :  { %v14175_v6 = vld [vmem:[#allocation6 + $0x7b4] sm:$0xf0]  ;;  %6150 = vmatpush.bf16.msrb.mxu2 %v11999_v38  ;;  %v10339_v26 = vor.u32 %v13955_v19, %v10336_v1  ;;  %v14019_v50 = vld [vmem:[#allocation6 + $0x2dc] sm:$0xf] }
 0x33b   :  { %v11199_v54 = vor.u32 %v14175_v6, %v11198_v60  ;;  %v11934_v9 = vld [vmem:[#allocation6 + $0xd58] sm:$0xf]  ;;  %v10592_v47 = vld [vmem:[#allocation6 + $0x2f8] sm:$0xf0] }
 0x33c   :  { %v14359_v45 = vld [vmem:[#allocation6 + $0xd74] sm:$0xf0]  ;;  %6193 = vmatpush.bf16.msra.mxu1 %v10691_v20  ;;  %6180 = vmatpush.bf16.msra.mxu0 %v10403_v57  ;;  %v13947_v6 = vld [vmem:[#allocation6 + $0x9c] sm:$0xf] }
 0x33d   :  { %v11166_v30 = vld [vmem:[#allocation6 + $0x758] sm:$0xf]  ;;  %v11935_v3 = vor.u32 %v14359_v45, %v11934_v9  ;;  %6109 = vmatpush.bf16.msra.mxu3 %v11199_v54  ;;  %v10304_v20 = vld [vmem:[#allocation6 + $0xb8] sm:$0xf0]  ;;  %v10595_v54 = vor.u32 %v14019_v50, %v10592_v47 }
 0x33e   :  { %v14167_v52 = vld [vmem:[#allocation6 + $0x774] sm:$0xf0]  ;;  %6151 = vmatpush.bf16.msrb.mxu2 %v11967_v58  ;;  %v15677_v58 = vpop.f32.mrf.mxu3  ;;  %v10307_v9 = vor.u32 %v13947_v6, %v10304_v20  ;;  %v14011_v45 = vld [vmem:[#allocation6 + $0x29c] sm:$0xf] }
 0x33f   :  { %v11167_v17 = vor.u32 %v14167_v52, %v11166_v30  ;;  %v11902_v7 = vld [vmem:[#allocation6 + $0xd18] sm:$0xf]  ;;  %v10560_v30 = vld [vmem:[#allocation6 + $0x2b8] sm:$0xf0] }
 0x340   :  { %v14351_v63 = vld [vmem:[#allocation6 + $0xd34] sm:$0xf0]  ;;  %6194 = vmatpush.bf16.msra.mxu1 %v10659_v15  ;;  %6181 = vmatpush.bf16.msra.mxu0 %v10371_v62  ;;  %v13939_v15 = vld [vmem:[#allocation6 + $0x5c] sm:$0xf] }
 0x341   :  { %v11134_v38 = vld [vmem:[#allocation6 + $0x718] sm:$0xf]  ;;  %v11903_v60 = vor.u32 %v14351_v63, %v11902_v7  ;;  %6110 = vmatpush.bf16.msra.mxu3 %v11167_v17  ;;  %v10272_v62 = vld [vmem:[#allocation6 + $0x78] sm:$0xf0]  ;;  %v10563_v17 = vor.u32 %v14011_v45, %v10560_v30 }
 0x342   :  { %v14159_v16 = vld [vmem:[#allocation6 + $0x734] sm:$0xf0]  ;;  %6152 = vmatpush.bf16.msrb.mxu2 %v11935_v3  ;;  %v10275_v7 = vor.u32 %v13939_v15, %v10272_v62  ;;  %v14003_v63 = vld [vmem:[#allocation6 + $0x25c] sm:$0xf] }
 0x343   :  { %v11135_v57 = vor.u32 %v14159_v16, %v11134_v38  ;;  %v11870_v41 = vld [vmem:[#allocation6 + $0xcd8] sm:$0xf]  ;;  %v10528_v38 = vld [vmem:[#allocation6 + $0x278] sm:$0xf0] }
 0x344   :  { %v14343_v22 = vld [vmem:[#allocation6 + $0xcf4] sm:$0xf0]  ;;  %6195 = vmatpush.bf16.msra.mxu1 %v10627_v0  ;;  %6182 = vmatpush.bf16.msra.mxu0 %v10339_v26  ;;  %v13931_v0 = vld [vmem:[#allocation6 + $0x1c] sm:$0xf] }
 0x345   :  { %v11102_v5 = vld [vmem:[#allocation6 + $0x6d8] sm:$0xf]  ;;  %v11871_v52 = vor.u32 %v14343_v22, %v11870_v41  ;;  %6111 = vmatpush.bf16.msra.mxu3 %v11135_v57  ;;  %v10240_v26 = vld [vmem:[#allocation6 + $0x38] sm:$0xf0] }
 0x346   :  { %v14151_v48 = vld [vmem:[#allocation6 + $0x6f4] sm:$0xf0]  ;;  %6153 = vmatpush.bf16.msrb.mxu2 %v11903_v60  ;;  %v14243_v6 = vld [vmem:[#allocation6 + $0x9dc] sm:$0xf]  ;;  %v5837_v57 = vpop.f32.mrf.mxu3 }
 0x347   :  { %v11103_v35 = vor.u32 %v14151_v48, %v11102_v5  ;;  %v11838_v51 = vld [vmem:[#allocation6 + $0xc98] sm:$0xf]  ;;  %v11488_v20 = vld [vmem:[#allocation6 + $0x9f8] sm:$0xf0]  ;;  %v10531_v5 = vor.u32 %v14003_v63, %v10528_v38  ;;  %v15680_v48 = vadd.f32 %v5837_v57, %v15671_v21 }
 0x348   :  { %v14335_v3 = vld [vmem:[#allocation6 + $0xcb4] sm:$0xf0]  ;;  %6196 = vmatpush.bf16.msra.mxu1 %v10595_v54  ;;  %6183 = vmatpush.bf16.msra.mxu0 %v10307_v9  ;;  %v10243_v54 = vor.u32 %v13931_v0, %v10240_v26  ;;  %v13995_v9 = vld [vmem:[#allocation6 + $0x21c] sm:$0xf] }
 0x349   :  { %v11070_v19 = vld [vmem:[#allocation6 + $0x698] sm:$0xf]  ;;  %v11839_v16 = vor.u32 %v14335_v3, %v11838_v51  ;;  %6112 = vmatpush.bf16.msra.mxu3 %v11103_v35  ;;  %v10496_v45 = vld [vmem:[#allocation6 + $0x238] sm:$0xf0] }
 0x34a   :  { %v14143_v1 = vld [vmem:[#allocation6 + $0x6b4] sm:$0xf0]  ;;  %6154 = vmatpush.bf16.msrb.mxu2 %v11871_v52  ;;  %v11491_v52 = vor.u32 %v14243_v6, %v11488_v20  ;;  %v14307_v35 = vld [vmem:[#allocation6 + $0xbdc] sm:$0xf]  ;;  %v10499_v21 = vor.u32 %v13995_v9, %v10496_v45 }
 0x34b   :  { %v11806_v50 = vld [vmem:[#allocation6 + $0xc58] sm:$0xf]  ;;  %v11071_v47 = vor.u32 %v14143_v1, %v11070_v19  ;;  %v11744_v51 = vld [vmem:[#allocation6 + $0xbf8] sm:$0xf0] }
 0x34c   :  { %v14327_v60 = vld [vmem:[#allocation6 + $0xc74] sm:$0xf0]  ;;  %6197 = vmatpush.bf16.msra.mxu1 %v10563_v17  ;;  %6184 = vmatpush.bf16.msra.mxu0 %v10275_v7  ;;  %v14235_v1 = vld [vmem:[#allocation6 + $0x99c] sm:$0xf] }
 0x34d   :  { %v11038_v41 = vld [vmem:[#allocation6 + $0x658] sm:$0xf]  ;;  %v11807_v30 = vor.u32 %v14327_v60, %v11806_v50  ;;  %6113 = vmatpush.bf16.msra.mxu3 %v11071_v47  ;;  %v11456_v17 = vld [vmem:[#allocation6 + $0x9b8] sm:$0xf0] }
 0x34e   :  { %v14135_v22 = vld [vmem:[#allocation6 + $0x674] sm:$0xf0]  ;;  %6155 = vmatpush.bf16.msrb.mxu2 %v11839_v16  ;;  %v14115_v38 = vld [vmem:[#allocation6 + $0x5dc] sm:$0xf]  ;;  %v11747_v16 = vor.u32 %v14307_v35, %v11744_v51  ;;  %v11459_v60 = vor.u32 %v14235_v1, %v11456_v17 }
 0x34f   :  { %v11006_v15 = vld [vmem:[#allocation6 + $0x618] sm:$0xf]  ;;  %v11039_v3 = vor.u32 %v14135_v22, %v11038_v41  ;;  %v10976_v7 = vld [vmem:[#allocation6 + $0x5f8] sm:$0xf0] }
 0x350   :  { %v11774_v62 = vld [vmem:[#allocation6 + $0xc18] sm:$0xf]  ;;  %6198 = vmatpush.bf16.msra.mxu1 %v10531_v5  ;;  %6185 = vmatpush.bf16.msra.mxu0 %v10243_v54  ;;  %v14299_v6 = vld [vmem:[#allocation6 + $0xb9c] sm:$0xf]  ;;  %v10979_v57 = vor.u32 %v14115_v38, %v10976_v7 }
 0x351   :  { %v14319_v19 = vld [vmem:[#allocation6 + $0xc34] sm:$0xf0]  ;;  %v11712_v20 = vld [vmem:[#allocation6 + $0xbb8] sm:$0xf0]  ;;  %6114 = vmatpush.bf16.msra.mxu3 %v11039_v3 }
 0x352   :  { %v14127_v63 = vld [vmem:[#allocation6 + $0x634] sm:$0xf0]  ;;  %6156 = vmatpush.bf16.msrb.mxu2 %v11807_v30  ;;  %v11775_v50 = vor.u32 %v14319_v19, %v11774_v62  ;;  %v14227_v41 = vld [vmem:[#allocation6 + $0x95c] sm:$0xf]  ;;  %v11715_v30 = vor.u32 %v14299_v6, %v11712_v20 }
 0x353   :  { %v12254_v0 = vld [vmem:[#allocation6 + $0xfd8] sm:$0xf]  ;;  %v11007_v47 = vor.u32 %v14127_v63, %v11006_v15  ;;  %v11424_v22 = vld [vmem:[#allocation6 + $0x978] sm:$0xf0]  ;;  %6186 = vmatmul.bf16.vlgmr.msra.gmra.mxu0 %v15469_v46 }
 0x354   :  { %v14439_v26 = vld [vmem:[#allocation6 + $0xff4] sm:$0xf0]  ;;  %6234 = vmatpush.bf16.msrb.mxu0 %v11491_v52  ;;  %6199 = vmatpush.bf16.msra.mxu1 %v10499_v21  ;;  %v14107_v9 = vld [vmem:[#allocation6 + $0x59c] sm:$0xf]  ;;  %v11427_v52 = vor.u32 %v14227_v41, %v11424_v22 }
 0x355   :  { %v12255_v5 = vor.u32 %v14439_v26, %v12254_v0  ;;  %v10944_v54 = vld [vmem:[#allocation6 + $0x5b8] sm:$0xf0]  ;;  %v12222_v45 = vld [vmem:[#allocation6 + $0xf98] sm:$0xf]  ;;  %6115 = vmatpush.bf16.msra.mxu3 %v11007_v47 }
 0x356   :  { %v14431_v35 = vld [vmem:[#allocation6 + $0xfb4] sm:$0xf0]  ;;  %6157 = vmatpush.bf16.msrb.mxu2 %v11775_v50  ;;  %v14291_v62 = vld [vmem:[#allocation6 + $0xb5c] sm:$0xf]  ;;  %v10947_v15 = vor.u32 %v14107_v9, %v10944_v54 }
 0x357   :  { %v11680_v51 = vld [vmem:[#allocation6 + $0xb78] sm:$0xf0]  ;;  %6200 = vmatmul.bf16.vlgmr.msra.gmra.mxu1 %v15471_v34  ;;  %v12223_v46 = vor.u32 %v14431_v35, %v12222_v45  ;;  %v12190_v63 = vld [vmem:[#allocation6 + $0xf58] sm:$0xf] }
 0x358   :  { %6248 = vmatpush.bf16.msrb.mxu1 %v11747_v16  ;;  %6235 = vmatpush.bf16.msrb.mxu0 %v11459_v60  ;;  %v14219_v3 = vld [vmem:[#allocation6 + $0x91c] sm:$0xf]  ;;  %v14423_v21 = vld [vmem:[#allocation6 + $0xf74] sm:$0xf0]  ;;  %v11683_v38 = vor.u32 %v14291_v62, %v11680_v51 }
 0x359   :  { %v11392_v19 = vld [vmem:[#allocation6 + $0x938] sm:$0xf0]  ;;  %6164 = vmatpush.bf16.msrb.mxu3 %v12255_v5  ;;  %6158 = vmatmul.bf16.vlgmr.msrb.gmra.mxu2 %v15494_v44  ;;  %v12191_v34 = vor.u32 %v14423_v21, %v12190_v63  ;;  %v12158_v47 = vld [vmem:[#allocation6 + $0xf18] sm:$0xf] }
 0x35a   :  { %6206 = vmatpush.bf16.msra.mxu2 %v10979_v57  ;;  %v14099_v1 = vld [vmem:[#allocation6 + $0x55c] sm:$0xf]  ;;  %6116 = vmatmul.bf16.vlgmr.msra.gmra.mxu3 %v15476_v42  ;;  %v11395_v7 = vor.u32 %v14219_v3, %v11392_v19  ;;  %v14415_v57 = vld [vmem:[#allocation6 + $0xf34] sm:$0xf0] }
 0x35b   :  { %v10912_v17 = vld [vmem:[#allocation6 + $0x578] sm:$0xf0]  ;;  %v12126_v51 = vld [vmem:[#allocation6 + $0xed8] sm:$0xf] }
 0x35c   :  { %6249 = vmatpush.bf16.msrb.mxu1 %v11715_v30  ;;  %6236 = vmatpush.bf16.msrb.mxu0 %v11427_v52  ;;  %v14283_v0 = vld [vmem:[#allocation6 + $0xb1c] sm:$0xf]  ;;  %v10915_v16 = vor.u32 %v14099_v1, %v10912_v17  ;;  %v12159_v30 = vor.u32 %v14415_v57, %v12158_v47 }
 0x35d   :  { %v11648_v26 = vld [vmem:[#allocation6 + $0xb38] sm:$0xf0]  ;;  %6165 = vmatpush.bf16.msrb.mxu3 %v12223_v46 }
 0x35e   :  { %6207 = vmatpush.bf16.msra.mxu2 %v10947_v15  ;;  %v14211_v50 = vld [vmem:[#allocation6 + $0x8dc] sm:$0xf]  ;;  %v11651_v41 = vor.u32 %v14283_v0, %v11648_v26  ;;  %v14407_v15 = vld [vmem:[#allocation6 + $0xef4] sm:$0xf0] }
 0x35f   :  { %v11360_v60 = vld [vmem:[#allocation6 + $0x8f8] sm:$0xf0]  ;;  %v12094_v26 = vld [vmem:[#allocation6 + $0xe98] sm:$0xf] }
 0x360   :  { %v14091_v6 = vld [vmem:[#allocation6 + $0x51c] sm:$0xf]  ;;  %6250 = vmatpush.bf16.msrb.mxu1 %v11683_v38  ;;  %6237 = vmatpush.bf16.msrb.mxu0 %v11395_v7  ;;  %v11363_v22 = vor.u32 %v14211_v50, %v11360_v60  ;;  %v12127_v38 = vor.u32 %v14407_v15, %v12126_v51 }
 0x361   :  { %v10880_v20 = vld [vmem:[#allocation6 + $0x538] sm:$0xf0]  ;;  %6166 = vmatpush.bf16.msrb.mxu3 %v12191_v34 }
 0x362   :  { %v14275_v5 = vld [vmem:[#allocation6 + $0xadc] sm:$0xf]  ;;  %6208 = vmatpush.bf16.msra.mxu2 %v10915_v16  ;;  %v10883_v54 = vor.u32 %v14091_v6, %v10880_v20  ;;  %v14399_v16 = vld [vmem:[#allocation6 + $0xeb4] sm:$0xf0] }
 0x363   :  { %v11616_v9 = vld [vmem:[#allocation6 + $0xaf8] sm:$0xf0] }
 0x364   :  { %v14203_v45 = vld [vmem:[#allocation6 + $0x89c] sm:$0xf]  ;;  %6251 = vmatpush.bf16.msrb.mxu1 %v11651_v41  ;;  %v11619_v3 = vor.u32 %v14275_v5, %v11616_v9  ;;  %6238 = vmatpush.bf16.msrb.mxu0 %v11363_v22  ;;  %v12095_v22 = vor.u32 %v14399_v16, %v12094_v26  ;;  %v12374_v9 = vld [vmem:[#allocation9 + $0xe0] sm:$0xf] }
 0x365   :  { %v11328_v35 = vld [vmem:[#allocation6 + $0x8b8] sm:$0xf0]  ;;  %6167 = vmatpush.bf16.msrb.mxu3 %v12159_v30 }
 0x366   :  { %v14083_v52 = vld [vmem:[#allocation6 + $0x4dc] sm:$0xf]  ;;  %v11331_v19 = vor.u32 %v14203_v45, %v11328_v35  ;;  %6209 = vmatpush.bf16.msra.mxu2 %v10883_v54  ;;  %v14470_v54 = vld [vmem:[#allocation9 + $0xec] sm:$0xf0] }
 0x367   :  { %v10848_v62 = vld [vmem:[#allocation6 + $0x4f8] sm:$0xf0]  ;;  %v12062_v45 = vld [vmem:[#allocation6 + $0xe58] sm:$0xf] }
 0x368   :  { %v14267_v46 = vld [vmem:[#allocation6 + $0xa9c] sm:$0xf]  ;;  %v10851_v17 = vor.u32 %v14083_v52, %v10848_v62  ;;  %6252 = vmatpush.bf16.msrb.mxu1 %v11619_v3  ;;  %6239 = vmatpush.bf16.msrb.mxu0 %v11331_v19  ;;  %v14391_v35 = vld [vmem:[#allocation6 + $0xe74] sm:$0xf0]  ;;  %v12375_v3 = vor.u32 %v14470_v54, %v12374_v9  ;;  %v12342_v9 = vld [vmem:[#allocation9 + $0xa0] sm:$0xf] }
 0x369   :  { %v11584_v1 = vld [vmem:[#allocation6 + $0xab8] sm:$0xf0]  ;;  %6168 = vmatpush.bf16.msrb.mxu3 %v12127_v38  ;;  %v12030_v19 = vld [vmem:[#allocation6 + $0xe18] sm:$0xf]  ;;  %v12358_v38 = vld [vmem:[#allocation9 + $0xc0] sm:$0xf] }
 0x36a   :  { %v14195_v63 = vld [vmem:[#allocation6 + $0x85c] sm:$0xf]  ;;  %v11587_v50 = vor.u32 %v14267_v46, %v11584_v1  ;;  %6210 = vmatpush.bf16.msra.mxu2 %v10851_v17  ;;  %v12502_v1 = vld [vmem:[#allocation9 + $0x1e0] sm:$0xf]  ;;  %v14502_v17 = vld [vmem:[#allocation9 + $0x1ec] sm:$0xf0] }
 0x36b   :  { %v11296_v21 = vld [vmem:[#allocation6 + $0x878] sm:$0xf0]  ;;  %v14462_v54 = vld [vmem:[#allocation9 + $0xac] sm:$0xf0] }
 0x36c   :  { %v14075_v7 = vld [vmem:[#allocation6 + $0x49c] sm:$0xf]  ;;  %v11299_v60 = vor.u32 %v14195_v63, %v11296_v21  ;;  %6253 = vmatpush.bf16.msrb.mxu1 %v11587_v50  ;;  %v12063_v63 = vor.u32 %v14391_v35, %v12062_v45  ;;  %v5406_v45 = vadd.f32 %v15516_v25, %v2818_v31  ;;  %v15689_v35 = vpop.f32.mrf.mxu0  ;;  %v12326_v31 = vld [vmem:[#allocation9 + $0x80] sm:$0xf]  ;;  %v14458_v25 = vld [vmem:[#allocation9 + $0x8c] sm:$0xf0] }
 0x36d   :  { %v10816_v0 = vld [vmem:[#allocation6 + $0x4b8] sm:$0xf0]  ;;  %6169 = vmatpush.bf16.msrb.mxu3 %v12095_v22 }
 0x36e   :  { %v14259_v34 = vld [vmem:[#allocation6 + $0xa5c] sm:$0xf]  ;;  %v10819_v20 = vor.u32 %v14075_v7, %v10816_v0  ;;  %6240 = vmatpush.bf16.msrb.mxu0 %v11299_v60  ;;  %v14466_v7 = vld [vmem:[#allocation9 + $0xcc] sm:$0xf0] }
 0x36f   :  { %v11552_v6 = vld [vmem:[#allocation6 + $0xa78] sm:$0xf0]  ;;  %v14383_v0 = vld [vmem:[#allocation6 + $0xe34] sm:$0xf0] }
 0x370   :  { %v14187_v47 = vld [vmem:[#allocation6 + $0x81c] sm:$0xf]  ;;  %v11555_v30 = vor.u32 %v14259_v34, %v11552_v6  ;;  %6211 = vmatpush.bf16.msra.mxu2 %v10819_v20  ;;  %v12503_v6 = vor.u32 %v14502_v17, %v12502_v1  ;;  %v12031_v22 = vor.u32 %v14383_v0, %v12030_v19  ;;  %v12343_v19 = vor.u32 %v14462_v54, %v12342_v9  ;;  %v14494_v1 = vld [vmem:[#allocation9 + $0x1ac] sm:$0xf0] }
 0x371   :  { %v11264_v57 = vld [vmem:[#allocation6 + $0x838] sm:$0xf0]  ;;  %6170 = vmatpush.bf16.msrb.mxu3 %v12063_v63 }
 0x372   :  { %v14067_v41 = vld [vmem:[#allocation6 + $0x45c] sm:$0xf]  ;;  %v11267_v52 = vor.u32 %v14187_v47, %v11264_v57  ;;  %6254 = vmatpush.bf16.msrb.mxu1 %v11555_v30  ;;  %v12359_v47 = vor.u32 %v14466_v7, %v12358_v38  ;;  %v12486_v57 = vld [vmem:[#allocation9 + $0x1c0] sm:$0xf]  ;;  %v15694_v38 = vpop.f32.mrf.mxu1 }
 0x373   :  { %v10784_v5 = vld [vmem:[#allocation6 + $0x478] sm:$0xf0] }
 0x374   :  { %v14251_v62 = vld [vmem:[#allocation6 + $0xa1c] sm:$0xf]  ;;  %v10787_v15 = vor.u32 %v14067_v41, %v10784_v5  ;;  %6241 = vmatpush.bf16.msrb.mxu0 %v11267_v52  ;;  %v14498_v41 = vld [vmem:[#allocation9 + $0x1cc] sm:$0xf0] }
 0x375   :  { %v11520_v51 = vld [vmem:[#allocation6 + $0xa38] sm:$0xf0]  ;;  %6171 = vmatpush.bf16.msrb.mxu3 %v12031_v22  ;;  %v15703_v22 = vpop.f32.mrf.mxu3 }
 0x376   :  { %v14059_v46 = vld [vmem:[#allocation6 + $0x41c] sm:$0xf]  ;;  %v11523_v26 = vor.u32 %v14251_v62, %v11520_v51  ;;  %6212 = vmatpush.bf16.msra.mxu2 %v10787_v15 }
 0x377   :  { %v10752_v21 = vld [vmem:[#allocation6 + $0x438] sm:$0xf0]  ;;  %6242 = vmatmul.bf16.vlgmr.msrb.gmra.mxu0 %v15482_v53  ;;  %v5420_v53 = vadd.f32 %v15525_v8, %v5406_v45  ;;  %v12327_v8 = vor.u32 %v14458_v25, %v12326_v31 }
 0x378   :  { %v14371_v16 = vld [vmem:[#allocation6 + $0xddc] sm:$0xf]  ;;  %7860 = vmatpush.bf16.msra.mxu0 %v12375_v3  ;;  %v10755_v20 = vor.u32 %v14059_v46, %v10752_v21  ;;  %6255 = vmatpush.bf16.msrb.mxu1 %v11523_v26  ;;  %v12487_v3 = vor.u32 %v14498_v41, %v12486_v57  ;;  %v12470_v46 = vld [vmem:[#allocation9 + $0x1a0] sm:$0xf]  ;;  %v15701_v41 = vpop.f32.mrf.mxu2 }
 0x379   :  { %v12000_v50 = vld [vmem:[#allocation6 + $0xdf8] sm:$0xf0]  ;;  %v12471_v26 = vor.u32 %v14494_v1, %v12470_v46  ;;  %6172 = vmatmul.bf16.vlgmr.msrb.gmra.mxu3 %v15502_v4 }
 0x37a   :  { %v14179_v60 = vld [vmem:[#allocation6 + $0x7dc] sm:$0xf]  ;;  %v12003_v5 = vor.u32 %v14371_v16, %v12000_v50  ;;  %6213 = vmatpush.bf16.msra.mxu2 %v10755_v20  ;;  %v5434_v16 = vadd.f32 %v15546_v56, %v5420_v53  ;;  %v12454_v50 = vld [vmem:[#allocation9 + $0x180] sm:$0xf]  ;;  %v15699_v20 = vpop.f32.mrf.mxu0 }
 0x37b   :  { %v11232_v34 = vld [vmem:[#allocation6 + $0x7f8] sm:$0xf0]  ;;  %6256 = vmatmul.bf16.vlgmr.msrb.gmra.mxu1 %v15486_v61 }
 0x37c   :  { %v11235_v30 = vor.u32 %v14179_v60, %v11232_v34  ;;  %v14363_v52 = vld [vmem:[#allocation6 + $0xd9c] sm:$0xf]  ;;  %7874 = vmatpush.bf16.msra.mxu1 %v12503_v6  ;;  %7861 = vmatpush.bf16.msra.mxu0 %v12359_v47  ;;  %v14490_v60 = vld [vmem:[#allocation9 + $0x18c] sm:$0xf0]  ;;  %v12310_v34 = vld [vmem:[#allocation9 + $0x60] sm:$0xf]  ;;  %v5448_v54 = vadd.f32 %v15575_v29, %v5434_v16 }
 0x37d   :  { %v11968_v62 = vld [vmem:[#allocation6 + $0xdb8] sm:$0xf0]  ;;  %6214 = vmatmul.bf16.vlgmr.msra.gmra.mxu2 %v15473_v37  ;;  %v14454_v6 = vld [vmem:[#allocation9 + $0x6c] sm:$0xf0]  ;;  %v12455_v9 = vor.u32 %v14490_v60, %v12454_v50 }
 0x37e   :  { %v14171_v51 = vld [vmem:[#allocation6 + $0x79c] sm:$0xf]  ;;  %6262 = vmatpush.bf16.msrb.mxu2 %v12003_v5  ;;  %v11971_v14 = vor.u32 %v14363_v52, %v11968_v62  ;;  %6220 = vmatpush.bf16.msra.mxu3 %v11235_v30  ;;  %v12311_v45 = vor.u32 %v14454_v6, %v12310_v34  ;;  %v12438_v30 = vld [vmem:[#allocation9 + $0x160] sm:$0xf]  ;;  %v14486_v52 = vld [vmem:[#allocation9 + $0x16c] sm:$0xf0] }
 0x37f   :  { %v11200_v15 = vld [vmem:[#allocation6 + $0x7b8] sm:$0xf0]  ;;  %v12439_v29 = vor.u32 %v14486_v52, %v12438_v30 }
 0x380   :  { %v11203_v17 = vor.u32 %v14171_v51, %v11200_v15  ;;  %v14355_v63 = vld [vmem:[#allocation6 + $0xd5c] sm:$0xf]  ;;  %7875 = vmatpush.bf16.msra.mxu1 %v12487_v3  ;;  %7862 = vmatpush.bf16.msra.mxu0 %v12343_v19  ;;  %v12294_v51 = vld [vmem:[#allocation9 + $0x40] sm:$0xf]  ;;  %v14450_v15 = vld [vmem:[#allocation9 + $0x4c] sm:$0xf0]  ;;  %v5462_v3 = vadd.f32 %v15533_v40, %v5448_v54  ;;  %v15711_v60 = vpop.f32.mrf.mxu2 }
 0x381   :  { %v11936_v21 = vld [vmem:[#allocation6 + $0xd78] sm:$0xf0]  ;;  %v14446_v40 = vld [vmem:[#allocation9 + $0x2c] sm:$0xf0] }
 0x382   :  { %v14163_v7 = vld [vmem:[#allocation6 + $0x75c] sm:$0xf]  ;;  %6263 = vmatpush.bf16.msrb.mxu2 %v11971_v14  ;;  %v11939_v61 = vor.u32 %v14355_v63, %v11936_v21  ;;  %6221 = vmatpush.bf16.msra.mxu3 %v11203_v17  ;;  %v15707_v14 = vpop.f32.mrf.mxu1  ;;  %v5476_v53 = vadd.f32 %v15535_v33, %v5462_v3  ;;  %v12295_v17 = vor.u32 %v14450_v15, %v12294_v51  ;;  %v12422_v63 = vld [vmem:[#allocation9 + $0x140] sm:$0xf]  ;;  %v14482_v21 = vld [vmem:[#allocation9 + $0x14c] sm:$0xf0] }
 0x383   :  { %v11168_v0 = vld [vmem:[#allocation6 + $0x778] sm:$0xf0]  ;;  %v12423_v6 = vor.u32 %v14482_v21, %v12422_v63  ;;  %v14442_v54 = vld [vmem:[#allocation9 + $0xc] sm:$0xf0] }
 0x384   :  { %v11171_v37 = vor.u32 %v14163_v7, %v11168_v0  ;;  %v14347_v47 = vld [vmem:[#allocation6 + $0xd1c] sm:$0xf]  ;;  %7876 = vmatpush.bf16.msra.mxu1 %v12471_v26  ;;  %7863 = vmatpush.bf16.msra.mxu0 %v12327_v8  ;;  %v12278_v0 = vld [vmem:[#allocation9 + $0x20] sm:$0xf]  ;;  %v5490_v26 = vadd.f32 %v15559_v13, %v5476_v53  ;;  %v14598_v51 = vld [vmem:[#allocation9 + $0x4ec] sm:$0xf0] }
 0x385   :  { %v11904_v57 = vld [vmem:[#allocation6 + $0xd38] sm:$0xf0] }
 0x386   :  { %v14155_v56 = vld [vmem:[#allocation6 + $0x71c] sm:$0xf]  ;;  %6264 = vmatpush.bf16.msrb.mxu2 %v11939_v61  ;;  %v11907_v62 = vor.u32 %v14347_v47, %v11904_v57  ;;  %6222 = vmatpush.bf16.msra.mxu3 %v11171_v37  ;;  %v15713_v61 = vpop.f32.mrf.mxu3  ;;  %v5504_v37 = vadd.f32 %v15586_v18, %v5490_v26  ;;  %v5853_v47 = vpop.f32.mrf.mxu0  ;;  %v12279_v57 = vor.u32 %v14446_v40, %v12278_v0  ;;  %v6290_v18 = vmax.f32 %v15582_v28, 0.0  ;;  %v14630_v0 = vld [vmem:[#allocation9 + $0x5ec] sm:$0xf0] }
 0x387   :  { %v11136_v5 = vld [vmem:[#allocation6 + $0x738] sm:$0xf0] }
 0x388   :  { %v11139_v19 = vor.u32 %v14155_v56, %v11136_v5  ;;  %v14339_v46 = vld [vmem:[#allocation6 + $0xcdc] sm:$0xf]  ;;  %7877 = vmatpush.bf16.msra.mxu1 %v12455_v9  ;;  %7864 = vmatpush.bf16.msra.mxu0 %v12311_v45  ;;  %v12406_v56 = vld [vmem:[#allocation9 + $0x120] sm:$0xf]  ;;  %v14478_v5 = vld [vmem:[#allocation9 + $0x12c] sm:$0xf0] }
 0x389   :  { %v11872_v1 = vld [vmem:[#allocation6 + $0xcf8] sm:$0xf0]  ;;  %v12262_v9 = vld [vmem:[#allocation9] sm:$0xf] }
 0x38a   :  { %v14147_v31 = vld [vmem:[#allocation6 + $0x6dc] sm:$0xf]  ;;  %6265 = vmatpush.bf16.msrb.mxu2 %v11907_v62  ;;  %v11875_v7 = vor.u32 %v14339_v46, %v11872_v1  ;;  %6223 = vmatpush.bf16.msra.mxu3 %v11139_v19  ;;  %v12886_v62 = vld [vmem:[#allocation9 + $0x4e0] sm:$0xf]  ;;  %v12407_v19 = vor.u32 %v14478_v5, %v12406_v56  ;;  %v6298_v46 = vmax.f32 %v5504_v37, 0.0  ;;  %v12263_v1 = vor.u32 %v14442_v54, %v12262_v9  ;;  %v5881_v54 = vpop.f32.mrf.mxu2 }
 0x38b   :  { %v11104_v25 = vld [vmem:[#allocation6 + $0x6f8] sm:$0xf0] }
 0x38c   :  { %v11107_v16 = vor.u32 %v14147_v31, %v11104_v25  ;;  %v14331_v8 = vld [vmem:[#allocation6 + $0xc9c] sm:$0xf]  ;;  %7878 = vmatpush.bf16.msra.mxu1 %v12439_v29  ;;  %7865 = vmatpush.bf16.msra.mxu0 %v12295_v17  ;;  %v12390_v31 = vld [vmem:[#allocation9 + $0x100] sm:$0xf]  ;;  %v14474_v25 = vld [vmem:[#allocation9 + $0x10c] sm:$0xf0]  ;;  %v5867_v29 = vpop.f32.mrf.mxu1  ;;  %v12887_v17 = vor.u32 %v14598_v51, %v12886_v62  ;;  %v15722_v9 = vpack.c.bf16 %v6298_v46, %v6290_v18 }
 0x38d   :  { %v11840_v50 = vld [vmem:[#allocation6 + $0xcb8] sm:$0xf0]  ;;  %v12998_v62 = vld [vmem:[#allocation9 + $0x5c0] sm:$0xf]  ;;  %v14626_v51 = vld [vmem:[#allocation9 + $0x5cc] sm:$0xf0] }
 0x38e   :  { %v14139_v33 = vld [vmem:[#allocation6 + $0x69c] sm:$0xf]  ;;  %6266 = vmatpush.bf16.msrb.mxu2 %v11875_v7  ;;  %v11843_v13 = vor.u32 %v14331_v8, %v11840_v50  ;;  %6224 = vmatpush.bf16.msra.mxu3 %v11107_v16  ;;  %v13014_v7 = vld [vmem:[#allocation9 + $0x5e0] sm:$0xf]  ;;  %v14594_v8 = vld [vmem:[#allocation9 + $0x4cc] sm:$0xf0]  ;;  %v12391_v50 = vor.u32 %v14474_v25, %v12390_v31 }
 0x38f   :  { %v11072_v34 = vld [vmem:[#allocation6 + $0x6b8] sm:$0xf0]  ;;  %v12870_v16 = vld [vmem:[#allocation9 + $0x4c0] sm:$0xf]  ;;  %v14590_v25 = vld [vmem:[#allocation9 + $0x4ac] sm:$0xf0] }
 0x390   :  { %v14323_v45 = vld [vmem:[#allocation6 + $0xc5c] sm:$0xf]  ;;  %v11075_v30 = vor.u32 %v14139_v33, %v11072_v34  ;;  %7879 = vmatpush.bf16.msra.mxu1 %v12423_v6  ;;  %7866 = vmatpush.bf16.msra.mxu0 %v12279_v57  ;;  %v12630_v33 = vld [vmem:[#allocation9 + $0x2e0] sm:$0xf]  ;;  %v14534_v34 = vld [vmem:[#allocation9 + $0x2ec] sm:$0xf0]  ;;  %v15720_v57 = vpop.f32.mrf.mxu0 }
 0x391   :  { %v11808_v52 = vld [vmem:[#allocation6 + $0xc78] sm:$0xf0]  ;;  %v15717_v6 = vld [vmem:[#allocation7] sm:$0xff]  ;;  %v12854_v31 = vld [vmem:[#allocation9 + $0x4a0] sm:$0xf] }
 0x392   :  { %v14131_v15 = vld [vmem:[#allocation6 + $0x65c] sm:$0xf]  ;;  %6267 = vmatpush.bf16.msrb.mxu2 %v11843_v13  ;;  %v11811_v53 = vor.u32 %v14323_v45, %v11808_v52  ;;  %6225 = vmatpush.bf16.msra.mxu3 %v11075_v30  ;;  %v2822_v37 = vperm.slane %v15717_v6, 4  ;;  %v13015_v13 = vor.u32 %v14630_v0, %v13014_v7  ;;  %v5895_v45 = vpop.f32.mrf.mxu3  ;;  %v12871_v52 = vor.u32 %v14594_v8, %v12870_v16  ;;  %v12614_v18 = vld [vmem:[#allocation9 + $0x2c0] sm:$0xf] }
 0x393   :  { %v11040_v3 = vld [vmem:[#allocation6 + $0x678] sm:$0xf0]  ;;  %v14530_v46 = vld [vmem:[#allocation9 + $0x2cc] sm:$0xf0]  ;;  %v12999_v0 = vor.u32 %v14626_v51, %v12998_v62  ;;  %v15736_v62 = vpop.f32.mrf.mxu2 }
 0x394   :  { %v14123_v63 = vld [vmem:[#allocation6 + $0x61c] sm:$0xf]  ;;  %v11043_v40 = vor.u32 %v14131_v15, %v11040_v3  ;;  %7880 = vmatpush.bf16.msra.mxu1 %v12407_v19  ;;  %7867 = vmatpush.bf16.msra.mxu0 %v12263_v1  ;;  %v5854_v15 = vadd.f32 %v5853_v47, %v2822_v37  ;;  %v12631_v19 = vor.u32 %v14534_v34, %v12630_v33 }
 0x395   :  { %v14315_v21 = vld [vmem:[#allocation6 + $0xc1c] sm:$0xf]  ;;  %v5852_v7 = vadd.f32 %v15699_v20, %v2822_v37  ;;  %v12855_v47 = vor.u32 %v14590_v25, %v12854_v31  ;;  %v14586_v20 = vld [vmem:[#allocation9 + $0x48c] sm:$0xf0]  ;;  %v12598_v37 = vld [vmem:[#allocation9 + $0x2a0] sm:$0xf] }
 0x396   :  { %v11776_v26 = vld [vmem:[#allocation6 + $0xc38] sm:$0xf0]  ;;  %6268 = vmatpush.bf16.msrb.mxu2 %v11811_v53  ;;  %6226 = vmatpush.bf16.msra.mxu3 %v11043_v40  ;;  %v5868_v53 = vadd.f32 %v5867_v29, %v5854_v15  ;;  %v14622_v40 = vld [vmem:[#allocation9 + $0x5ac] sm:$0xf0]  ;;  %v15875_v29 = vperm.slane %v15572_v12, 2 }
 0x397   :  { %v11008_v28 = vld [vmem:[#allocation6 + $0x638] sm:$0xf0]  ;;  %v11779_v30 = vor.u32 %v14315_v21, %v11776_v26  ;;  %7868 = vmatmul.bf16.vlgmr.msra.gmra.mxu0 %v15722_v9  ;;  %v15726_v26 = vpop.f32.mrf.mxu1  ;;  %v5866_v16 = vadd.f32 %v15707_v14, %v5852_v7  ;;  %v12966_v15 = vld [vmem:[#allocation9 + $0x580] sm:$0xf] }
 0x398   :  { %v14435_v56 = vld [vmem:[#allocation6 + $0xfdc] sm:$0xf]  ;;  %7916 = vmatpush.bf16.msrb.mxu0 %v12887_v17  ;;  %v11011_v3 = vor.u32 %v14123_v63, %v11008_v28  ;;  %7881 = vmatpush.bf16.msra.mxu1 %v12391_v50  ;;  %v12982_v63 = vld [vmem:[#allocation9 + $0x5a0] sm:$0xf]  ;;  %v5882_v8 = vadd.f32 %v5881_v54, %v5868_v53  ;;  %v12615_v28 = vor.u32 %v14530_v46, %v12614_v18  ;;  %v5909_v25 = vpop.f32.mrf.mxu0  ;;  %v14522_v18 = vld [vmem:[#allocation9 + $0x28c] sm:$0xf0] }
 0x399   :  { %v12256_v5 = vld [vmem:[#allocation6 + $0xff8] sm:$0xf0]  ;;  %v12838_v50 = vld [vmem:[#allocation9 + $0x480] sm:$0xf]  ;;  %v5630_v33 = vadd.f32 %v15604_v49, %v15875_v29 }
 0x39a   :  { %v12259_v1 = vor.u32 %v14435_v56, %v12256_v5  ;;  %v14427_v17 = vld [vmem:[#allocation6 + $0xf9c] sm:$0xf]  ;;  %6269 = vmatpush.bf16.msrb.mxu2 %v11779_v30  ;;  %6227 = vmatpush.bf16.msra.mxu3 %v11011_v3  ;;  %v14526_v56 = vld [vmem:[#allocation9 + $0x2ac] sm:$0xf0]  ;;  %v5880_v5 = vadd.f32 %v15711_v60, %v5866_v16  ;;  %v12983_v30 = vor.u32 %v14622_v40, %v12982_v63  ;;  %v15738_v49 = vpop.f32.mrf.mxu3  ;;  %v12806_v63 = vld [vmem:[#allocation9 + $0x440] sm:$0xf] }
 0x39b   :  { %v12224_v21 = vld [vmem:[#allocation6 + $0xfb8] sm:$0xf0]  ;;  %7882 = vmatmul.bf16.vlgmr.msra.gmra.mxu1 %v15628_v27  ;;  %v12839_v51 = vor.u32 %v14586_v20, %v12838_v50  ;;  %v14618_v3 = vld [vmem:[#allocation9 + $0x58c] sm:$0xf0] }
 0x39c   :  { %7930 = vmatpush.bf16.msrb.mxu1 %v13015_v13  ;;  %7917 = vmatpush.bf16.msrb.mxu0 %v12871_v52  ;;  %v12227_v34 = vor.u32 %v14427_v17, %v12224_v21  ;;  %v5896_v13 = vadd.f32 %v5895_v45, %v5882_v8  ;;  %v14419_v14 = vld [vmem:[#allocation6 + $0xf5c] sm:$0xf]  ;;  %v5644_v52 = vadd.f32 %v15607_v43, %v5630_v33  ;;  %v12822_v45 = vld [vmem:[#allocation9 + $0x460] sm:$0xf]  ;;  %v14578_v40 = vld [vmem:[#allocation9 + $0x44c] sm:$0xf0] }
 0x39d   :  { %6270 = vmatmul.bf16.vlgmr.msrb.gmra.mxu2 %v15494_v44  ;;  %v12192_v54 = vld [vmem:[#allocation6 + $0xf78] sm:$0xf0]  ;;  %6228 = vmatmul.bf16.vlgmr.msra.gmra.mxu3 %v15476_v42  ;;  %v5894_v60 = vadd.f32 %v15713_v61, %v5880_v5  ;;  %v12599_v44 = vor.u32 %v14526_v56, %v12598_v37  ;;  %v12967_v53 = vor.u32 %v14618_v3, %v12966_v15  ;;  %v12950_v21 = vld [vmem:[#allocation9 + $0x560] sm:$0xf]  ;;  %v14518_v50 = vld [vmem:[#allocation9 + $0x26c] sm:$0xf0] }
 0x39e   :  { %7888 = vmatpush.bf16.msra.mxu2 %v12631_v19  ;;  %6276 = vmatpush.bf16.msrb.mxu3 %v12259_v1  ;;  %v14582_v19 = vld [vmem:[#allocation9 + $0x46c] sm:$0xf0]  ;;  %v5658_v31 = vadd.f32 %v15637_v11, %v5644_v52  ;;  %v12195_v43 = vor.u32 %v14419_v14, %v12192_v54  ;;  %v12582_v1 = vld [vmem:[#allocation9 + $0x280] sm:$0xf]  ;;  %v5910_v46 = vadd.f32 %v5909_v25, %v5896_v13  ;;  %v14411_v42 = vld [vmem:[#allocation6 + $0xf1c] sm:$0xf] }
 0x39f   :  { %v12160_v7 = vld [vmem:[#allocation6 + $0xf38] sm:$0xf0]  ;;  %v12823_v61 = vor.u32 %v14582_v19, %v12822_v45  ;;  %v12583_v11 = vor.u32 %v14522_v18, %v12582_v1  ;;  %v5923_v16 = vpop.f32.mrf.mxu1  ;;  %v12807_v37 = vor.u32 %v14578_v40, %v12806_v63  ;;  %v12934_v56 = vld [vmem:[#allocation9 + $0x540] sm:$0xf]  ;;  %v14574_v54 = vld [vmem:[#allocation9 + $0x42c] sm:$0xf0] }
 0x3a0   :  { %7931 = vmatpush.bf16.msrb.mxu1 %v12999_v0  ;;  %7918 = vmatpush.bf16.msrb.mxu0 %v12855_v47  ;;  %v5672_v17 = vadd.f32 %v15650_v10, %v5658_v31  ;;  %v14614_v0 = vld [vmem:[#allocation9 + $0x56c] sm:$0xf0]  ;;  %v5908_v47 = vadd.f32 %v15720_v57, %v5894_v60  ;;  %v12163_v8 = vor.u32 %v14411_v42, %v12160_v7  ;;  %v14403_v29 = vld [vmem:[#allocation6 + $0xedc] sm:$0xf]  ;;  %v12790_v14 = vld [vmem:[#allocation9 + $0x420] sm:$0xf] }
 0x3a1   :  { %v5924_v20 = vadd.f32 %v5923_v16, %v5910_v46  ;;  %v12128_v33 = vld [vmem:[#allocation6 + $0xef8] sm:$0xf0]  ;;  %v12951_v10 = vor.u32 %v14614_v0, %v12950_v21  ;;  %v14610_v57 = vld [vmem:[#allocation9 + $0x54c] sm:$0xf0]  ;;  %v12550_v15 = vld [vmem:[#allocation9 + $0x240] sm:$0xf]  ;;  %v12791_v31 = vor.u32 %v14574_v54, %v12790_v14 }
 0x3a2   :  { %7889 = vmatpush.bf16.msra.mxu2 %v12615_v28  ;;  %6277 = vmatpush.bf16.msrb.mxu3 %v12227_v34  ;;  %v12566_v28 = vld [vmem:[#allocation9 + $0x260] sm:$0xf]  ;;  %v5686_v34 = vadd.f32 %v15622_v55, %v5672_v17  ;;  %v5922_v5 = vadd.f32 %v15726_v26, %v5908_v47  ;;  %v5951_v52 = vpop.f32.mrf.mxu3  ;;  %v14514_v3 = vld [vmem:[#allocation9 + $0x24c] sm:$0xf0]  ;;  %v12096_v55 = vld [vmem:[#allocation6 + $0xeb8] sm:$0xf0]  ;;  %v12935_v45 = vor.u32 %v14610_v57, %v12934_v56 }
 0x3a3   :  { %v12567_v13 = vor.u32 %v14518_v50, %v12566_v28  ;;  %v12918_v26 = vld [vmem:[#allocation9 + $0x520] sm:$0xf]  ;;  %v14606_v25 = vld [vmem:[#allocation9 + $0x52c] sm:$0xf0]  ;;  %v12551_v18 = vor.u32 %v14514_v3, %v12550_v15  ;;  %v14468_v21 = vld [vmem:[#allocation9 + $0xe4] sm:$0xf] }
 0x3a4   :  { %7932 = vmatpush.bf16.msrb.mxu1 %v12983_v30  ;;  %7919 = vmatpush.bf16.msrb.mxu0 %v12839_v51  ;;  %v5937_v30 = vpop.f32.mrf.mxu2  ;;  %v12131_v51 = vor.u32 %v14403_v29, %v12128_v33  ;;  %v5700_v19 = vadd.f32 %v15626_v2, %v5686_v34  ;;  %v12774_v46 = vld [vmem:[#allocation9 + $0x400] sm:$0xf]  ;;  %v14570_v42 = vld [vmem:[#allocation9 + $0x40c] sm:$0xf0]  ;;  %v12376_v0 = vld [vmem:[#allocation9 + $0xf0] sm:$0xf0]  ;;  %v12919_v63 = vor.u32 %v14606_v25, %v12918_v26 }
 0x3a5   :  { %v5938_v60 = vadd.f32 %v5937_v30, %v5924_v20  ;;  %v12534_v7 = vld [vmem:[#allocation9 + $0x220] sm:$0xf]  ;;  %v14387_v47 = vld [vmem:[#allocation6 + $0xe5c] sm:$0xf]  ;;  %v12775_v40 = vor.u32 %v14570_v42, %v12774_v46  ;;  %v14602_v28 = vld [vmem:[#allocation9 + $0x50c] sm:$0xf0]  ;;  %v12379_v29 = vor.u32 %v14468_v21, %v12376_v0 }
 0x3a6   :  { %7890 = vmatpush.bf16.msra.mxu2 %v12599_v44  ;;  %6278 = vmatpush.bf16.msrb.mxu3 %v12195_v43  ;;  %v14395_v44 = vld [vmem:[#allocation6 + $0xe9c] sm:$0xf]  ;;  %v5936_v43 = vadd.f32 %v15736_v62, %v5922_v5  ;;  %v5714_v62 = vadd.f32 %v15648_v23, %v5700_v19  ;;  %v12518_v16 = vld [vmem:[#allocation9 + $0x200] sm:$0xf]  ;;  %v14500_v33 = vld [vmem:[#allocation9 + $0x1e4] sm:$0xf] }
 0x3a7   :  { %v5952_v1 = vadd.f32 %v5951_v52, %v5938_v60  ;;  %v12099_v17 = vor.u32 %v14395_v44, %v12096_v55  ;;  %v14506_v56 = vld [vmem:[#allocation9 + $0x20c] sm:$0xf0]  ;;  %v14464_v57 = vld [vmem:[#allocation9 + $0xc4] sm:$0xf]  ;;  %v12360_v23 = vld [vmem:[#allocation9 + $0xd0] sm:$0xf0] }
 0x3a8   :  { %7933 = vmatpush.bf16.msrb.mxu1 %v12967_v53  ;;  %7920 = vmatpush.bf16.msrb.mxu0 %v12823_v61  ;;  %v15749_v53 = vpop.f32.mrf.mxu0  ;;  %v14510_v61 = vld [vmem:[#allocation9 + $0x22c] sm:$0xf0]  ;;  %v5950_v2 = vadd.f32 %v15738_v49, %v5936_v43  ;;  %v5728_v34 = vadd.f32 %v15662_v39, %v5714_v62  ;;  %v15754_v49 = vpop.f32.mrf.mxu1  ;;  %v12032_v14 = vld [vmem:[#allocation6 + $0xe38] sm:$0xf0]  ;;  %v12758_v30 = vld [vmem:[#allocation9 + $0x3e0] sm:$0xf]  ;;  %v12519_v39 = vor.u32 %v14506_v56, %v12518_v16 }
 0x3a9   :  { %v6302_v50 = vmax.f32 %v5952_v1, 0.0  ;;  %v12535_v20 = vor.u32 %v14510_v61, %v12534_v7  ;;  %v14566_v52 = vld [vmem:[#allocation9 + $0x3ec] sm:$0xf0]  ;;  %v12363_v3 = vor.u32 %v14464_v57, %v12360_v23  ;;  %v14496_v60 = vld [vmem:[#allocation9 + $0x1c4] sm:$0xf]  ;;  %v6292_v25 = vmax.f32 %v15656_v36, 0.0 }
 0x3aa   :  { %7891 = vmatpush.bf16.msra.mxu2 %v12583_v11  ;;  %6279 = vmatpush.bf16.msrb.mxu3 %v12163_v8  ;;  %v12064_v11 = vld [vmem:[#allocation6 + $0xe78] sm:$0xf0]  ;;  %v12902_v8 = vld [vmem:[#allocation9 + $0x500] sm:$0xf]  ;;  %v6294_v5 = vmax.f32 %v5950_v2, 0.0  ;;  %v6300_v55 = vmax.f32 %v5728_v34, 0.0  ;;  %v12759_v43 = vor.u32 %v14566_v52, %v12758_v30  ;;  %v6005_v36 = vpop.f32.mrf.mxu3 }
 0x3ab   :  { %v12903_v54 = vor.u32 %v14602_v28, %v12902_v8  ;;  %v12488_v44 = vld [vmem:[#allocation9 + $0x1d0] sm:$0xf0]  ;;  %v12742_v1 = vld [vmem:[#allocation9 + $0x3c0] sm:$0xf]  ;;  %v14562_v46 = vld [vmem:[#allocation9 + $0x3cc] sm:$0xf0] }
 0x3ac   :  { %7934 = vmatpush.bf16.msrb.mxu1 %v12951_v10  ;;  %7921 = vmatpush.bf16.msrb.mxu0 %v12807_v37  ;;  %v12504_v10 = vld [vmem:[#allocation9 + $0x1f0] sm:$0xf0]  ;;  %v12067_v37 = vor.u32 %v14387_v47, %v12064_v11  ;;  %v15756_v15 = vpack.c.bf16 %v6302_v50, %v6294_v5  ;;  %v12491_v42 = vor.u32 %v14496_v60, %v12488_v44  ;;  %v13142_v7 = vld [vmem:[#allocation9 + $0x6e0] sm:$0xf]  ;;  %v14492_v21 = vld [vmem:[#allocation9 + $0x1a4] sm:$0xf] }
 0x3ad   :  { %v12344_v26 = vld [vmem:[#allocation9 + $0xb0] sm:$0xf0]  ;;  %v15762_v47 = vpack.c.bf16 %v6300_v55, %v6292_v25  ;;  %v14456_v11 = vld [vmem:[#allocation9 + $0x84] sm:$0xf]  ;;  %v2823_v62 = vperm.slane %v15717_v6, 5  ;;  %v15876_v16 = vperm.slane %v15572_v12, 3 }
 0x3ae   :  { %7892 = vmatpush.bf16.msra.mxu2 %v12567_v13  ;;  %6280 = vmatpush.bf16.msrb.mxu3 %v12131_v51  ;;  %v14379_v13 = vld [vmem:[#allocation6 + $0xe1c] sm:$0xf]  ;;  %v12507_v51 = vor.u32 %v14500_v33, %v12504_v10  ;;  %v12726_v50 = vld [vmem:[#allocation9 + $0x3a0] sm:$0xf]  ;;  %v14488_v33 = vld [vmem:[#allocation9 + $0x184] sm:$0xf] }
 0x3af   :  { %v12035_v19 = vor.u32 %v14379_v13, %v12032_v14  ;;  %v12472_v0 = vld [vmem:[#allocation9 + $0x1b0] sm:$0xf0]  ;;  %v5742_v8 = vadd.f32 %v15664_v32, %v15876_v16  ;;  %v14658_v56 = vld [vmem:[#allocation9 + $0x6cc] sm:$0xf0]  ;;  %v14452_v12 = vld [vmem:[#allocation9 + $0x64] sm:$0xf]  ;;  %v5964_v5 = vadd.f32 %v15749_v53, %v2823_v62 }
 0x3b0   :  { %7935 = vmatpush.bf16.msrb.mxu1 %v12935_v45  ;;  %7922 = vmatpush.bf16.msrb.mxu0 %v12791_v31  ;;  %v15758_v45 = vpop.f32.mrf.mxu2  ;;  %v14460_v31 = vld [vmem:[#allocation9 + $0xa4] sm:$0xf]  ;;  %v5979_v28 = vpop.f32.mrf.mxu1  ;;  %v12456_v34 = vld [vmem:[#allocation9 + $0x190] sm:$0xf0]  ;;  %v14554_v52 = vld [vmem:[#allocation9 + $0x38c] sm:$0xf0] }
 0x3b1   :  { %v12347_v61 = vor.u32 %v14460_v31, %v12344_v26  ;;  %v5756_v57 = vadd.f32 %v15666_v24, %v5742_v8  ;;  %v12312_v23 = vld [vmem:[#allocation9 + $0x70] sm:$0xf0]  ;;  %v13110_v55 = vld [vmem:[#allocation9 + $0x6a0] sm:$0xf]  ;;  %v14654_v53 = vld [vmem:[#allocation9 + $0x6ac] sm:$0xf0] }
 0x3b2   :  { %7893 = vmatpush.bf16.msra.mxu2 %v12551_v18  ;;  %6281 = vmatpush.bf16.msrb.mxu3 %v12099_v17  ;;  %v5965_v18 = vpop.f32.mrf.mxu0  ;;  %v14662_v17 = vld [vmem:[#allocation9 + $0x6ec] sm:$0xf0]  ;;  %v12315_v60 = vor.u32 %v14452_v12, %v12312_v23  ;;  %v12440_v44 = vld [vmem:[#allocation9 + $0x170] sm:$0xf0]  ;;  %v14448_v31 = vld [vmem:[#allocation9 + $0x44] sm:$0xf]  ;;  %v13111_v26 = vor.u32 %v14654_v53, %v13110_v55 }
 0x3b3   :  { %v13143_v2 = vor.u32 %v14662_v17, %v13142_v7  ;;  %v5770_v14 = vadd.f32 %v15668_v59, %v5756_v57  ;;  %v5966_v24 = vadd.f32 %v5965_v18, %v2823_v62  ;;  %v12296_v59 = vld [vmem:[#allocation9 + $0x50] sm:$0xf0]  ;;  %v14550_v18 = vld [vmem:[#allocation9 + $0x36c] sm:$0xf0]  ;;  %v14480_v17 = vld [vmem:[#allocation9 + $0x144] sm:$0xf] }
 0x3b4   :  { %7936 = vmatpush.bf16.msrb.mxu1 %v12919_v63  ;;  %7923 = vmatpush.bf16.msrb.mxu0 %v12775_v40  ;;  %v12328_v63 = vld [vmem:[#allocation9 + $0x90] sm:$0xf0]  ;;  %v12743_v40 = vor.u32 %v14562_v46, %v12742_v1  ;;  %v14440_v12 = vld [vmem:[#allocation9 + $0x4] sm:$0xf] }
 0x3b5   :  { %v12331_v10 = vor.u32 %v14456_v11, %v12328_v63  ;;  %v5980_v25 = vadd.f32 %v5979_v28, %v5966_v24  ;;  %v14650_v11 = vld [vmem:[#allocation9 + $0x68c] sm:$0xf0]  ;;  %v12280_v62 = vld [vmem:[#allocation9 + $0x30] sm:$0xf0] }
 0x3b6   :  { %7894 = vmatpush.bf16.msra.mxu2 %v12535_v20  ;;  %6282 = vmatpush.bf16.msrb.mxu3 %v12067_v37  ;;  %v14558_v20 = vld [vmem:[#allocation9 + $0x3ac] sm:$0xf0]  ;;  %v13126_v37 = vld [vmem:[#allocation9 + $0x6c0] sm:$0xf]  ;;  %v12264_v23 = vld [vmem:[#allocation9 + $0x10] sm:$0xf0] }
 0x3b7   :  { %7924 = vmatmul.bf16.vlgmr.msrb.gmra.mxu0 %v15756_v15  ;;  %v13127_v32 = vor.u32 %v14658_v56, %v13126_v37  ;;  %v12727_v13 = vor.u32 %v14558_v20, %v12726_v50  ;;  %v12678_v50 = vld [vmem:[#allocation9 + $0x340] sm:$0xf]  ;;  %v14546_v20 = vld [vmem:[#allocation9 + $0x34c] sm:$0xf0]  ;;  %v12267_v24 = vor.u32 %v14440_v12, %v12264_v23 }
 0x3b8   :  { %7972 = vmatpush.bf16.msra.mxu0 %v12379_v29  ;;  %7937 = vmatpush.bf16.msrb.mxu1 %v12903_v54  ;;  %v12475_v29 = vor.u32 %v14492_v21, %v12472_v0  ;;  %v5993_v30 = vpop.f32.mrf.mxu2  ;;  %v6033_v46 = vpop.f32.mrf.mxu1  ;;  %v12424_v0 = vld [vmem:[#allocation9 + $0x150] sm:$0xf0]  ;;  %v13078_v37 = vld [vmem:[#allocation9 + $0x660] sm:$0xf]  ;;  %v14646_v56 = vld [vmem:[#allocation9 + $0x66c] sm:$0xf0] }
 0x3ba   :  { %7895 = vmatpush.bf16.msra.mxu2 %v12519_v39  ;;  %6283 = vmatpush.bf16.msrb.mxu3 %v12035_v19  ;;  %v6019_v54 = vpop.f32.mrf.mxu0  ;;  %v14484_v39 = vld [vmem:[#allocation9 + $0x164] sm:$0xf]  ;;  %v5784_v19 = vadd.f32 %v15677_v58, %v5770_v14  ;;  %v12299_v58 = vor.u32 %v14448_v31, %v12296_v59 }
 0x3bb   :  { %v12443_v7 = vor.u32 %v14484_v39, %v12440_v44  ;;  %v14596_v14 = vld [vmem:[#allocation9 + $0x4e4] sm:$0xf]  ;;  %v14642_v44 = vld [vmem:[#allocation9 + $0x64c] sm:$0xf0] }
 0x3bc   :  { %7986 = vmatpush.bf16.msra.mxu1 %v12507_v51  ;;  %7973 = vmatpush.bf16.msra.mxu0 %v12363_v3  ;;  %v12459_v51 = vor.u32 %v14488_v33, %v12456_v34  ;;  %v5978_v3 = vadd.f32 %v15754_v49, %v5964_v5  ;;  %v12694_v49 = vld [vmem:[#allocation9 + $0x360] sm:$0xf]  ;;  %v5798_v63 = vadd.f32 %v15689_v35, %v5784_v19  ;;  %v14476_v33 = vld [vmem:[#allocation9 + $0x124] sm:$0xf]  ;;  %v12408_v34 = vld [vmem:[#allocation9 + $0x130] sm:$0xf0] }
 0x3bd   :  { %7896 = vmatmul.bf16.vlgmr.msra.gmra.mxu2 %v15762_v47  ;;  %6284 = vmatmul.bf16.vlgmr.msrb.gmra.mxu3 %v15502_v4  ;;  %v12710_v4 = vld [vmem:[#allocation9 + $0x380] sm:$0xf]  ;;  %v12695_v8 = vor.u32 %v14550_v18, %v12694_v49  ;;  %v14472_v39 = vld [vmem:[#allocation9 + $0x104] sm:$0xf] }
 0x3be   :  { %7902 = vmatpush.bf16.msra.mxu3 %v12759_v43  ;;  %7944 = vmatpush.bf16.msrb.mxu2 %v13143_v2  ;;  %v5992_v43 = vadd.f32 %v15758_v45, %v5978_v3  ;;  %v12711_v1 = vor.u32 %v14554_v52, %v12710_v4  ;;  %v13094_v2 = vld [vmem:[#allocation9 + $0x680] sm:$0xf]  ;;  %v14444_v45 = vld [vmem:[#allocation9 + $0x24] sm:$0xf]  ;;  %v5812_v35 = vadd.f32 %v15694_v38, %v5798_v63  ;;  %v12392_v38 = vld [vmem:[#allocation9 + $0x110] sm:$0xf0] }
 0x3bf   :  { %v12662_v52 = vld [vmem:[#allocation9 + $0x320] sm:$0xf]  ;;  %v12395_v49 = vor.u32 %v14472_v39, %v12392_v38  ;;  %v12856_v63 = vld [vmem:[#allocation9 + $0x4b0] sm:$0xf0] }
 0x3c0   :  { %7987 = vmatpush.bf16.msra.mxu1 %v12491_v42  ;;  %7974 = vmatpush.bf16.msra.mxu0 %v12347_v61  ;;  %v6007_v42 = vpop.f32.mrf.mxu3  ;;  %v5994_v61 = vadd.f32 %v5993_v30, %v5980_v25  ;;  %v6006_v21 = vadd.f32 %v6005_v36, %v5992_v43  ;;  %v6047_v28 = vpop.f32.mrf.mxu2  ;;  %v12888_v30 = vld [vmem:[#allocation9 + $0x4f0] sm:$0xf0]  ;;  %v5826_v55 = vadd.f32 %v15701_v41, %v5812_v35  ;;  %v14592_v25 = vld [vmem:[#allocation9 + $0x4c4] sm:$0xf] }
 0x3c1   :  { %v6035_v53 = vpop.f32.mrf.mxu1  ;;  %v12891_v19 = vor.u32 %v14596_v14, %v12888_v30  ;;  %v12872_v43 = vld [vmem:[#allocation9 + $0x4d0] sm:$0xf0]  ;;  %v14580_v30 = vld [vmem:[#allocation9 + $0x464] sm:$0xf] }
 0x3c2   :  { %7903 = vmatpush.bf16.msra.mxu3 %v12743_v40  ;;  %7945 = vmatpush.bf16.msrb.mxu2 %v13127_v32  ;;  %v13095_v40 = vor.u32 %v14650_v11, %v13094_v2  ;;  %v6008_v16 = vadd.f32 %v6007_v42, %v5994_v61  ;;  %v6020_v36 = vadd.f32 %v6019_v54, %v6006_v21  ;;  %v6021_v57 = vpop.f32.mrf.mxu0  ;;  %v14542_v54 = vld [vmem:[#allocation9 + $0x32c] sm:$0xf0]  ;;  %v12646_v42 = vld [vmem:[#allocation9 + $0x300] sm:$0xf]  ;;  %v14588_v11 = vld [vmem:[#allocation9 + $0x4a4] sm:$0xf] }
 0x3c3   :  { %v13079_v32 = vor.u32 %v14646_v56, %v13078_v37  ;;  %v12875_v61 = vor.u32 %v14592_v25, %v12872_v43  ;;  %v14584_v37 = vld [vmem:[#allocation9 + $0x484] sm:$0xf]  ;;  %v12840_v56 = vld [vmem:[#allocation9 + $0x490] sm:$0xf0] }
 0x3c4   :  { %7988 = vmatpush.bf16.msra.mxu1 %v12475_v29  ;;  %7975 = vmatpush.bf16.msra.mxu0 %v12331_v10  ;;  %v12427_v29 = vor.u32 %v14480_v17, %v12424_v0  ;;  %v12283_v10 = vor.u32 %v14444_v45, %v12280_v62  ;;  %v6022_v5 = vadd.f32 %v6021_v57, %v6008_v16  ;;  %v14638_v17 = vld [vmem:[#allocation9 + $0x62c] sm:$0xf0]  ;;  %v14628_v62 = vld [vmem:[#allocation9 + $0x5e4] sm:$0xf]  ;;  %v13016_v16 = vld [vmem:[#allocation9 + $0x5f0] sm:$0xf0] }
 0x3c5   :  { %v6034_v3 = vadd.f32 %v6033_v46, %v6020_v36  ;;  %v14538_v46 = vld [vmem:[#allocation9 + $0x30c] sm:$0xf0]  ;;  %v12632_v36 = vld [vmem:[#allocation9 + $0x2f0] sm:$0xf0]  ;;  %v13019_v12 = vor.u32 %v14628_v62, %v13016_v16  ;;  %v14572_v43 = vld [vmem:[#allocation9 + $0x424] sm:$0xf] }
 0x3c6   :  { %7904 = vmatpush.bf16.msra.mxu3 %v12727_v13  ;;  %7946 = vmatpush.bf16.msrb.mxu2 %v13111_v26  ;;  %v12679_v13 = vor.u32 %v14546_v20, %v12678_v50  ;;  %v6036_v59 = vadd.f32 %v6035_v53, %v6022_v5  ;;  %v12663_v26 = vor.u32 %v14542_v54, %v12662_v52  ;;  %v6293_v50 = vmax.f32 %v15680_v48, 0.0  ;;  %v13000_v5 = vld [vmem:[#allocation9 + $0x5d0] sm:$0xf0]  ;;  %v14512_v62 = vld [vmem:[#allocation9 + $0x244] sm:$0xf] }
 0x3c7   :  { %v6048_v18 = vadd.f32 %v6047_v28, %v6034_v3  ;;  %v12647_v2 = vor.u32 %v14538_v46, %v12646_v42  ;;  %v14634_v28 = vld [vmem:[#allocation9 + $0x60c] sm:$0xf0]  ;;  %v12859_v20 = vor.u32 %v14588_v11, %v12856_v63  ;;  %v12843_v48 = vor.u32 %v14584_v37, %v12840_v56  ;;  %v12616_v14 = vld [vmem:[#allocation9 + $0x2d0] sm:$0xf0]  ;;  %v14608_v11 = vld [vmem:[#allocation9 + $0x544] sm:$0xf] }
 0x3c8   :  { %7989 = vmatpush.bf16.msra.mxu1 %v12459_v51  ;;  %7976 = vmatpush.bf16.msra.mxu0 %v12315_v60  ;;  %v6061_v4 = vpop.f32.mrf.mxu3  ;;  %v12411_v51 = vor.u32 %v14476_v33, %v12408_v34  ;;  %v13062_v60 = vld [vmem:[#allocation9 + $0x640] sm:$0xf]  ;;  %v6049_v41 = vpop.f32.mrf.mxu2  ;;  %v14532_v33 = vld [vmem:[#allocation9 + $0x2e4] sm:$0xf]  ;;  %v12984_v39 = vld [vmem:[#allocation9 + $0x5b0] sm:$0xf0] }
 0x3c9   :  { %v13063_v31 = vor.u32 %v14642_v44, %v13062_v60  ;;  %v6062_v0 = vadd.f32 %v6061_v4, %v6048_v18  ;;  %v12635_v35 = vor.u32 %v14532_v33, %v12632_v36  ;;  %v12824_v4 = vld [vmem:[#allocation9 + $0x470] sm:$0xf0]  ;;  %v14576_v60 = vld [vmem:[#allocation9 + $0x444] sm:$0xf]  ;;  %v12382_v63 = vld [vmem:[#allocation9 + $0xe8] sm:$0xf] }
 0x3ca   :  { %7905 = vmatpush.bf16.msra.mxu3 %v12711_v1  ;;  %7947 = vmatpush.bf16.msrb.mxu2 %v13095_v40  ;;  %v5840_v1 = vadd.f32 %v15703_v22, %v5826_v55  ;;  %v12827_v3 = vor.u32 %v14580_v30, %v12824_v4  ;;  %v12600_v38 = vld [vmem:[#allocation9 + $0x2b0] sm:$0xf0]  ;;  %v14467_v33 = vld [vmem:[#allocation9 + $0xd4] sm:$0xf0]  ;;  %v14604_v36 = vld [vmem:[#allocation9 + $0x524] sm:$0xf] }
 0x3cb   :  { %v12808_v44 = vld [vmem:[#allocation9 + $0x450] sm:$0xf0]  ;;  %v12510_v30 = vld [vmem:[#allocation9 + $0x1e8] sm:$0xf] }
 0x3cc   :  { %7990 = vmatpush.bf16.msra.mxu1 %v12443_v7  ;;  %7977 = vmatpush.bf16.msra.mxu0 %v12299_v58  ;;  %v13046_v7 = vld [vmem:[#allocation9 + $0x620] sm:$0xf]  ;;  %v6050_v58 = vadd.f32 %v6049_v41, %v6036_v59  ;;  %v6301_v22 = vmax.f32 %v5840_v1, 0.0  ;;  %v12811_v59 = vor.u32 %v14576_v60, %v12808_v44  ;;  %v12584_v25 = vld [vmem:[#allocation9 + $0x290] sm:$0xf0] }
 0x3cd   :  { %v13047_v21 = vor.u32 %v14638_v17, %v13046_v7  ;;  %v12792_v1 = vld [vmem:[#allocation9 + $0x430] sm:$0xf0]  ;;  %v14516_v17 = vld [vmem:[#allocation9 + $0x264] sm:$0xf] }
 0x3ce   :  { %7906 = vmatpush.bf16.msra.mxu3 %v12695_v8  ;;  %7948 = vmatpush.bf16.msrb.mxu2 %v13079_v32  ;;  %v13030_v8 = vld [vmem:[#allocation9 + $0x600] sm:$0xf]  ;;  %v15782_v57 = vpack.c.bf16 %v6301_v22, %v6293_v50  ;;  %v14624_v32 = vld [vmem:[#allocation9 + $0x5c4] sm:$0xf]  ;;  %v12952_v18 = vld [vmem:[#allocation9 + $0x570] sm:$0xf0]  ;;  %v12795_v7 = vor.u32 %v14572_v43, %v12792_v1  ;;  %v6089_v50 = vpop.f32.mrf.mxu1 }
 0x3cf   :  { %v13003_v54 = vor.u32 %v14624_v32, %v13000_v5  ;;  %v12568_v41 = vld [vmem:[#allocation9 + $0x270] sm:$0xf0]  ;;  %v14471_v22 = vld [vmem:[#allocation9 + $0xf4] sm:$0xf0]  ;;  %v12350_v5 = vld [vmem:[#allocation9 + $0xa8] sm:$0xf] }
 0x3d0   :  { %7991 = vmatpush.bf16.msra.mxu1 %v12427_v29  ;;  %7978 = vmatpush.bf16.msra.mxu0 %v12283_v10  ;;  %v6063_v45 = vpop.f32.mrf.mxu3  ;;  %v13031_v29 = vor.u32 %v14634_v28, %v13030_v8  ;;  %v6295_v10 = vmax.f32 %v6062_v0, 0.0  ;;  %v15788_v0 = vpop.f32.mrf.mxu0  ;;  %v12383_v8 = vor.u32 %v14471_v22, %v12382_v63  ;;  %v12536_v37 = vld [vmem:[#allocation9 + $0x230] sm:$0xf0]  ;;  %v14499_v43 = vld [vmem:[#allocation9 + $0x1d4] sm:$0xf0] }
 0x3d1   :  { %v6064_v40 = vadd.f32 %v6063_v45, %v6050_v58  ;;  %v12571_v58 = vor.u32 %v14516_v17, %v12568_v41  ;;  %v12936_v45 = vld [vmem:[#allocation9 + $0x550] sm:$0xf0]  ;;  %v13238_v22 = vld [vmem:[#allocation9 + $0x7a0] sm:$0xf] }
 0x3d2   :  { %7907 = vmatpush.bf16.msra.mxu3 %v12679_v13  ;;  %7949 = vmatpush.bf16.msrb.mxu2 %v13063_v31  ;;  %v14528_v13 = vld [vmem:[#allocation9 + $0x2c4] sm:$0xf]  ;;  %v12968_v31 = vld [vmem:[#allocation9 + $0x590] sm:$0xf0] }
 0x3d3   :  { %v6303_v34 = vmax.f32 %v6064_v40, 0.0  ;;  %v12619_v52 = vor.u32 %v14528_v13, %v12616_v14  ;;  %v12552_v40 = vld [vmem:[#allocation9 + $0x250] sm:$0xf0]  ;;  %v14600_v13 = vld [vmem:[#allocation9 + $0x504] sm:$0xf] }
 0x3d4   :  { %7992 = vmatpush.bf16.msra.mxu1 %v12411_v51  ;;  %7979 = vmatpush.bf16.msra.mxu0 %v12267_v24  ;;  %v14620_v51 = vld [vmem:[#allocation9 + $0x5a4] sm:$0xf]  ;;  %v12555_v28 = vor.u32 %v14512_v62, %v12552_v40  ;;  %v12904_v14 = vld [vmem:[#allocation9 + $0x510] sm:$0xf0]  ;;  %v12302_v62 = vld [vmem:[#allocation9 + $0x48] sm:$0xf] }
 0x3d5   :  { %v15784_v23 = vpack.c.bf16 %v6303_v34, %v6295_v10  ;;  %v14524_v24 = vld [vmem:[#allocation9 + $0x2a4] sm:$0xf]  ;;  %v12987_v53 = vor.u32 %v14620_v51, %v12984_v39  ;;  %v12920_v10 = vld [vmem:[#allocation9 + $0x530] sm:$0xf0]  ;;  %v12907_v44 = vor.u32 %v14600_v13, %v12904_v14  ;;  %v14451_v40 = vld [vmem:[#allocation9 + $0x54] sm:$0xf0] }
 0x3d6   :  { %7908 = vmatpush.bf16.msra.mxu3 %v12663_v26  ;;  %7950 = vmatpush.bf16.msrb.mxu2 %v13047_v21  ;;  %v12603_v55 = vor.u32 %v14524_v24, %v12600_v38  ;;  %v14520_v26 = vld [vmem:[#allocation9 + $0x284] sm:$0xf]  ;;  %v12776_v21 = vld [vmem:[#allocation9 + $0x410] sm:$0xf0]  ;;  %v12923_v32 = vor.u32 %v14604_v36, %v12920_v10  ;;  %v13270_v24 = vld [vmem:[#allocation9 + $0x7e0] sm:$0xf] }
 0x3d7   :  { %7980 = vmatmul.bf16.vlgmr.msra.gmra.mxu0 %v15722_v9  ;;  %7938 = vmatmul.bf16.vlgmr.msrb.gmra.mxu1 %v15784_v23  ;;  %v12587_v42 = vor.u32 %v14520_v26, %v12584_v25  ;;  %v14508_v34 = vld [vmem:[#allocation9 + $0x224] sm:$0xf]  ;;  %v12520_v51 = vld [vmem:[#allocation9 + $0x210] sm:$0xf0]  ;;  %v14694_v38 = vld [vmem:[#allocation9 + $0x7ec] sm:$0xf0]  ;;  %v6091_v26 = vpop.f32.mrf.mxu1 }
 0x3d8   :  { %8028 = vmatpush.bf16.msrb.mxu0 %v12891_v19  ;;  %7993 = vmatpush.bf16.msra.mxu1 %v12395_v49  ;;  %v14616_v19 = vld [vmem:[#allocation9 + $0x584] sm:$0xf]  ;;  %v6077_v4 = vpop.f32.mrf.mxu0  ;;  %v12494_v25 = vld [vmem:[#allocation9 + $0x1c8] sm:$0xf]  ;;  %v14491_v36 = vld [vmem:[#allocation9 + $0x194] sm:$0xf0] }
 0x3d9   :  { %v12971_v46 = vor.u32 %v14616_v19, %v12968_v31  ;;  %v14612_v49 = vld [vmem:[#allocation9 + $0x564] sm:$0xf]  ;;  %v13271_v19 = vor.u32 %v14694_v38, %v13270_v24  ;;  %v2824_v31 = vperm.slane %v15717_v6, 6  ;;  %v12495_v41 = vor.u32 %v14499_v43, %v12494_v25  ;;  %v12446_v14 = vld [vmem:[#allocation9 + $0x168] sm:$0xf] }
 0x3da   :  { %7909 = vmatpush.bf16.msra.mxu3 %v12647_v2  ;;  %7951 = vmatpush.bf16.msrb.mxu2 %v13031_v29  ;;  %v12955_v2 = vor.u32 %v14612_v49, %v12952_v18  ;;  %v12366_v29 = vld [vmem:[#allocation9 + $0xc8] sm:$0xf]  ;;  %v14455_v18 = vld [vmem:[#allocation9 + $0x74] sm:$0xf0]  ;;  %v13190_v43 = vld [vmem:[#allocation9 + $0x740] sm:$0xf] }
 0x3db   :  { %v12367_v56 = vor.u32 %v14467_v33, %v12366_v29  ;;  %v12318_v49 = vld [vmem:[#allocation9 + $0x68] sm:$0xf]  ;;  %v6076_v17 = vadd.f32 %v15788_v0, %v2824_v31  ;;  %v14443_v24 = vld [vmem:[#allocation9 + $0x14] sm:$0xf0] }
 0x3dc   :  { %8029 = vmatpush.bf16.msrb.mxu0 %v12875_v61  ;;  %8042 = vmatpush.bf16.msrb.mxu1 %v13019_v12  ;;  %v14568_v61 = vld [vmem:[#allocation9 + $0x404] sm:$0xf]  ;;  %v6103_v12 = vpop.f32.mrf.mxu2  ;;  %v12319_v63 = vor.u32 %v14455_v18, %v12318_v49  ;;  %v12462_v33 = vld [vmem:[#allocation9 + $0x188] sm:$0xf] }
 0x3dd   :  { %7910 = vmatmul.bf16.vlgmr.msra.gmra.mxu3 %v15782_v57  ;;  %v12779_v16 = vor.u32 %v14568_v61, %v12776_v21  ;;  %v6117_v60 = vpop.f32.mrf.mxu3  ;;  %v12478_v21 = vld [vmem:[#allocation9 + $0x1a8] sm:$0xf]  ;;  %v12463_v13 = vor.u32 %v14491_v36, %v12462_v33  ;;  %v13144_v33 = vld [vmem:[#allocation9 + $0x6f0] sm:$0xf0] }
 0x3de   :  { %8000 = vmatpush.bf16.msra.mxu2 %v12635_v35  ;;  %v12539_v35 = vor.u32 %v14508_v34, %v12536_v37  ;;  %7958 = vmatpush.bf16.msrb.mxu3 %v13271_v19  ;;  %v12303_v34 = vor.u32 %v14451_v40, %v12302_v62  ;;  %v13222_v37 = vld [vmem:[#allocation9 + $0x780] sm:$0xf]  ;;  %v13022_v36 = vld [vmem:[#allocation9 + $0x5e8] sm:$0xf] }
 0x3e0   :  { %8030 = vmatpush.bf16.msrb.mxu0 %v12859_v20  ;;  %8043 = vmatpush.bf16.msrb.mxu1 %v13003_v54  ;;  %v12939_v20 = vor.u32 %v14608_v11, %v12936_v45  ;;  %v14504_v54 = vld [vmem:[#allocation9 + $0x204] sm:$0xf]  ;;  %v6131_v61 = vpop.f32.mrf.mxu0  ;;  %v6078_v11 = vadd.f32 %v6077_v4, %v2824_v31  ;;  %v14686_v45 = vld [vmem:[#allocation9 + $0x7ac] sm:$0xf0]  ;;  %v12430_v31 = vld [vmem:[#allocation9 + $0x148] sm:$0xf] }
 0x3e2   :  { %8001 = vmatpush.bf16.msra.mxu2 %v12619_v52  ;;  %v14503_v52 = vld [vmem:[#allocation9 + $0x1f4] sm:$0xf0] }
 0x3e4   :  { %8031 = vmatpush.bf16.msrb.mxu0 %v12843_v48  ;;  %8044 = vmatpush.bf16.msrb.mxu1 %v12987_v53  ;;  %v14463_v48 = vld [vmem:[#allocation9 + $0xb4] sm:$0xf0]  ;;  %v6105_v6 = vpop.f32.mrf.mxu2 }
 0x3e5   :  { %v12351_v39 = vor.u32 %v14463_v48, %v12350_v5  ;;  %v14459_v53 = vld [vmem:[#allocation9 + $0x94] sm:$0xf0]  ;;  %v6119_v29 = vpop.f32.mrf.mxu3 }
 0x3e6   :  { %8002 = vmatpush.bf16.msra.mxu2 %v12603_v55  ;;  %v12334_v55 = vld [vmem:[#allocation9 + $0x88] sm:$0xf] }
 0x3e7   :  { %7994 = vmatmul.bf16.vlgmr.msra.gmra.mxu1 %v15628_v27  ;;  %v12335_v1 = vor.u32 %v14459_v53, %v12334_v55  ;;  %v12894_v55 = vld [vmem:[#allocation9 + $0x4e8] sm:$0xf]  ;;  %v14599_v53 = vld [vmem:[#allocation9 + $0x4f4] sm:$0xf0] }
 0x3e8   :  { %8032 = vmatpush.bf16.msrb.mxu0 %v12827_v3  ;;  %8045 = vmatpush.bf16.msrb.mxu1 %v12971_v46  ;;  %v12523_v3 = vor.u32 %v14504_v54, %v12520_v51  ;;  %v14690_v46 = vld [vmem:[#allocation9 + $0x7cc] sm:$0xf0]  ;;  %v13206_v54 = vld [vmem:[#allocation9 + $0x760] sm:$0xf] }
 0x3e9   :  { %v14678_v51 = vld [vmem:[#allocation9 + $0x76c] sm:$0xf0] }
 0x3ea   :  { %8003 = vmatpush.bf16.msra.mxu2 %v12587_v42  ;;  %v13254_v42 = vld [vmem:[#allocation9 + $0x7c0] sm:$0xf]  ;;  %v13207_v38 = vor.u32 %v14678_v51, %v13206_v54  ;;  %v14656_v54 = vld [vmem:[#allocation9 + $0x6c4] sm:$0xf] }
 0x3ec   :  { %8033 = vmatpush.bf16.msrb.mxu0 %v12811_v59  ;;  %8046 = vmatpush.bf16.msrb.mxu1 %v12955_v2  ;;  %v12511_v59 = vor.u32 %v14503_v52, %v12510_v30  ;;  %v6090_v2 = vadd.f32 %v6089_v50, %v6076_v17  ;;  %v14487_v30 = vld [vmem:[#allocation9 + $0x174] sm:$0xf0]  ;;  %v12878_v17 = vld [vmem:[#allocation9 + $0x4c8] sm:$0xf] }
 0x3ee   :  { %8004 = vmatpush.bf16.msra.mxu2 %v12571_v58  ;;  %v14495_v58 = vld [vmem:[#allocation9 + $0x1b4] sm:$0xf0]  ;;  %v6104_v0 = vadd.f32 %v6103_v12, %v6090_v2  ;;  %v6159_v12 = vpop.f32.mrf.mxu2  ;;  %v14670_v2 = vld [vmem:[#allocation9 + $0x72c] sm:$0xf0] }
 0x3f0   :  { %8034 = vmatpush.bf16.msrb.mxu0 %v12795_v7  ;;  %8047 = vmatpush.bf16.msrb.mxu1 %v12939_v20  ;;  %v13255_v7 = vor.u32 %v14690_v46, %v13254_v42  ;;  %v6145_v20 = vpop.f32.mrf.mxu1  ;;  %v6118_v10 = vadd.f32 %v6117_v60, %v6104_v0  ;;  %v12895_v46 = vor.u32 %v14599_v53, %v12894_v55  ;;  %v12862_v0 = vld [vmem:[#allocation9 + $0x4a8] sm:$0xf]  ;;  %v12744_v55 = vld [vmem:[#allocation9 + $0x3d0] sm:$0xf0] }
 0x3f1   :  { %v12830_v53 = vld [vmem:[#allocation9 + $0x468] sm:$0xf] }
 0x3f2   :  { %8005 = vmatpush.bf16.msra.mxu2 %v12555_v28  ;;  %7959 = vmatpush.bf16.msrb.mxu3 %v13255_v7  ;;  %v12479_v28 = vor.u32 %v14495_v58, %v12478_v21  ;;  %v6132_v4 = vadd.f32 %v6131_v61, %v6118_v10  ;;  %v12414_v61 = vld [vmem:[#allocation9 + $0x128] sm:$0xf]  ;;  %v13174_v58 = vld [vmem:[#allocation9 + $0x720] sm:$0xf]  ;;  %v14631_v10 = vld [vmem:[#allocation9 + $0x5f4] sm:$0xf0] }
 0x3f4   :  { %8035 = vmatpush.bf16.msrb.mxu0 %v12779_v16  ;;  %8048 = vmatpush.bf16.msrb.mxu1 %v12923_v32  ;;  %v13239_v16 = vor.u32 %v14686_v45, %v13238_v22  ;;  %v14447_v32 = vld [vmem:[#allocation9 + $0x34] sm:$0xf0]  ;;  %v12398_v22 = vld [vmem:[#allocation9 + $0x108] sm:$0xf]  ;;  %v13175_v45 = vor.u32 %v14670_v2, %v13174_v58  ;;  %v13096_v58 = vld [vmem:[#allocation9 + $0x690] sm:$0xf0] }
 0x3f5   :  { %v12974_v2 = vld [vmem:[#allocation9 + $0x588] sm:$0xf] }
 0x3f6   :  { %8006 = vmatpush.bf16.msra.mxu2 %v12539_v35  ;;  %7960 = vmatpush.bf16.msrb.mxu3 %v13239_v16  ;;  %v12286_v35 = vld [vmem:[#allocation9 + $0x28] sm:$0xf] }
 0x3f7   :  { %8036 = vmatmul.bf16.vlgmr.msrb.gmra.mxu0 %v15756_v15  ;;  %v12287_v52 = vor.u32 %v14447_v32, %v12286_v35  ;;  %v12846_v35 = vld [vmem:[#allocation9 + $0x488] sm:$0xf]  ;;  %v14587_v32 = vld [vmem:[#allocation9 + $0x494] sm:$0xf0] }
 0x3f8   :  { %8084 = vmatpush.bf16.msra.mxu0 %v12383_v8  ;;  %8049 = vmatpush.bf16.msrb.mxu1 %v12907_v44  ;;  %v6092_v8 = vadd.f32 %v6091_v26, %v6078_v11  ;;  %v12447_v44 = vor.u32 %v14487_v30, %v12446_v14  ;;  %v6146_v26 = vadd.f32 %v6145_v20, %v6132_v4  ;;  %v6147_v42 = vpop.f32.mrf.mxu1  ;;  %v6161_v11 = vpop.f32.mrf.mxu2  ;;  %v14564_v14 = vld [vmem:[#allocation9 + $0x3e4] sm:$0xf]  ;;  %v12760_v30 = vld [vmem:[#allocation9 + $0x3f0] sm:$0xf0] }
 0x3f9   :  { %v12763_v51 = vor.u32 %v14564_v14, %v12760_v30  ;;  %v14469_v14 = vld [vmem:[#allocation9 + $0xec] sm:$0xf]  ;;  %v12384_v30 = vld [vmem:[#allocation9 + $0xf8] sm:$0xf0] }
 0x3fa   :  { %8007 = vmatpush.bf16.msra.mxu2 %v12523_v3  ;;  %v6106_v50 = vadd.f32 %v6105_v6, %v6092_v8  ;;  %v12270_v3 = vld [vmem:[#allocation9 + $0x8] sm:$0xf]  ;;  %v14479_v6 = vld [vmem:[#allocation9 + $0x134] sm:$0xf0]  ;;  %v6160_v21 = vadd.f32 %v6159_v12, %v6146_v26 }
 0x3fb   :  { %8050 = vmatmul.bf16.vlgmr.msrb.gmra.mxu1 %v15784_v23  ;;  %v12271_v25 = vor.u32 %v14443_v24, %v12270_v3  ;;  %v12415_v16 = vor.u32 %v14479_v6, %v12414_v61  ;;  %v14475_v8 = vld [vmem:[#allocation9 + $0x114] sm:$0xf0]  ;;  %v13128_v3 = vld [vmem:[#allocation9 + $0x6d0] sm:$0xf0]  ;;  %v13006_v24 = vld [vmem:[#allocation9 + $0x5c8] sm:$0xf] }
 0x3fc   :  { %8085 = vmatpush.bf16.msra.mxu0 %v12367_v56  ;;  %8098 = vmatpush.bf16.msra.mxu1 %v12511_v59  ;;  %v14682_v56 = vld [vmem:[#allocation9 + $0x78c] sm:$0xf0]  ;;  %v6120_v48 = vadd.f32 %v6119_v29, %v6106_v50  ;;  %v6173_v19 = vpop.f32.mrf.mxu3  ;;  %v14483_v59 = vld [vmem:[#allocation9 + $0x154] sm:$0xf0]  ;;  %v14660_v29 = vld [vmem:[#allocation9 + $0x6e4] sm:$0xf]  ;;  %v12399_v12 = vor.u32 %v14475_v8, %v12398_v22 }
 0x3fd   :  { %v13223_v5 = vor.u32 %v14682_v56, %v13222_v37  ;;  %v12431_v7 = vor.u32 %v14483_v59, %v12430_v31  ;;  %v6174_v40 = vadd.f32 %v6173_v19, %v6160_v21  ;;  %v14666_v37 = vld [vmem:[#allocation9 + $0x70c] sm:$0xf0]  ;;  %v13147_v4 = vor.u32 %v14660_v29, %v13144_v33  ;;  %v14583_v19 = vld [vmem:[#allocation9 + $0x474] sm:$0xf0]  ;;  %v14648_v21 = vld [vmem:[#allocation9 + $0x684] sm:$0xf] }
 0x3fe   :  { %v13131_v59 = vor.u32 %v14656_v54, %v13128_v3  ;;  %v14552_v22 = vld [vmem:[#allocation9 + $0x384] sm:$0xf]  ;;  %v13099_v8 = vor.u32 %v14648_v21, %v13096_v58  ;;  %v12958_v29 = vld [vmem:[#allocation9 + $0x568] sm:$0xf]  ;;  %v14615_v33 = vld [vmem:[#allocation9 + $0x574] sm:$0xf0]  ;;  %v12387_v3 = vor.u32 %v14469_v14, %v12384_v30 }
 0x3ff   :  { %7961 = vmatpush.bf16.msrb.mxu3 %v13223_v5  ;;  %v12680_v54 = vld [vmem:[#allocation9 + $0x350] sm:$0xf0]  ;;  %v12352_v21 = vld [vmem:[#allocation9 + $0xb8] sm:$0xf0]  ;;  %v12638_v58 = vld [vmem:[#allocation9 + $0x2e8] sm:$0xf] }
 0x400   :  { %8086 = vmatpush.bf16.msra.mxu0 %v12351_v39  ;;  %8099 = vmatpush.bf16.msra.mxu1 %v12495_v41  ;;  %v6133_v39 = vpop.f32.mrf.mxu0  ;;  %v14595_v41 = vld [vmem:[#allocation9 + $0x4d4] sm:$0xf0]  ;;  %v12606_v30 = vld [vmem:[#allocation9 + $0x2a8] sm:$0xf] }
 0x401   :  { %v6134_v60 = vadd.f32 %v6133_v39, %v6120_v48  ;;  %v6296_v48 = vmax.f32 %v6174_v40, 0.0  ;;  %v14575_v40 = vld [vmem:[#allocation9 + $0x434] sm:$0xf0] }
 0x403   :  { %7962 = vmatpush.bf16.msrb.mxu3 %v13207_v38  ;;  %v6148_v18 = vadd.f32 %v6147_v42, %v6134_v60  ;;  %v14627_v38 = vld [vmem:[#allocation9 + $0x5d4] sm:$0xf0]  ;;  %v12847_v60 = vor.u32 %v14587_v32, %v12846_v35 }
 0x404   :  { %8087 = vmatpush.bf16.msra.mxu0 %v12335_v1  ;;  %8100 = vmatpush.bf16.msra.mxu1 %v12479_v28  ;;  %v14674_v1 = vld [vmem:[#allocation9 + $0x74c] sm:$0xf0]  ;;  %v14591_v28 = vld [vmem:[#allocation9 + $0x4b4] sm:$0xf0]  ;;  %v6175_v20 = vpop.f32.mrf.mxu3  ;;  %v13007_v26 = vor.u32 %v14627_v38, %v13006_v24  ;;  %v15803_v38 = vpop.f32.mrf.mxu1 }
 0x405   :  { %v13191_v49 = vor.u32 %v14674_v1, %v13190_v43  ;;  %v6162_v62 = vadd.f32 %v6161_v11, %v6148_v18  ;;  %v12863_v56 = vor.u32 %v14591_v28, %v12862_v0  ;;  %v13112_v43 = vld [vmem:[#allocation9 + $0x6b0] sm:$0xf0]  ;;  %v12990_v1 = vld [vmem:[#allocation9 + $0x5a8] sm:$0xf]  ;;  %v14623_v42 = vld [vmem:[#allocation9 + $0x5b4] sm:$0xf0]  ;;  %v12831_v18 = vor.u32 %v14583_v19, %v12830_v53 }
 0x406   :  { %v12991_v6 = vor.u32 %v14623_v42, %v12990_v1  ;;  %v14619_v11 = vld [vmem:[#allocation9 + $0x594] sm:$0xf0]  ;;  %v14644_v28 = vld [vmem:[#allocation9 + $0x664] sm:$0xf]  ;;  %v14465_v53 = vld [vmem:[#allocation9 + $0xcc] sm:$0xf] }
 0x407   :  { %7963 = vmatpush.bf16.msrb.mxu3 %v13191_v49  ;;  %v6176_v50 = vadd.f32 %v6175_v20, %v6162_v62  ;;  %v12728_v49 = vld [vmem:[#allocation9 + $0x3b0] sm:$0xf0]  ;;  %v12798_v62 = vld [vmem:[#allocation9 + $0x428] sm:$0xf]  ;;  %v12975_v0 = vor.u32 %v14619_v11, %v12974_v2  ;;  %v14571_v35 = vld [vmem:[#allocation9 + $0x414] sm:$0xf0] }
 0x408   :  { %8088 = vmatpush.bf16.msra.mxu0 %v12319_v63  ;;  %8101 = vmatpush.bf16.msra.mxu1 %v12463_v13  ;;  %v12879_v63 = vor.u32 %v14595_v41, %v12878_v17  ;;  %v14579_v17 = vld [vmem:[#allocation9 + $0x454] sm:$0xf0]  ;;  %v13080_v20 = vld [vmem:[#allocation9 + $0x670] sm:$0xf0]  ;;  %v12368_v19 = vld [vmem:[#allocation9 + $0xd8] sm:$0xf0] }
 0x409   :  { %v6304_v13 = vmax.f32 %v6176_v50, 0.0  ;;  %v14548_v50 = vld [vmem:[#allocation9 + $0x364] sm:$0xf]  ;;  %v12371_v1 = vor.u32 %v14465_v53, %v12368_v19  ;;  %v14535_v2 = vld [vmem:[#allocation9 + $0x2f4] sm:$0xf0] }
 0x40a   :  { %v14632_v42 = vld [vmem:[#allocation9 + $0x604] sm:$0xf]  ;;  %v14501_v11 = vld [vmem:[#allocation9 + $0x1ec] sm:$0xf] }
 0x40b   :  { %7964 = vmatpush.bf16.msrb.mxu3 %v13175_v45  ;;  %v15796_v39 = vpack.c.bf16 %v6304_v13, %v6296_v48  ;;  %v12712_v45 = vld [vmem:[#allocation9 + $0x390] sm:$0xf0]  ;;  %v13083_v48 = vor.u32 %v14644_v28, %v13080_v20  ;;  %v12959_v13 = vor.u32 %v14615_v33, %v12958_v29  ;;  %v12639_v33 = vor.u32 %v14535_v2, %v12638_v58  ;;  %v14445_v58 = vld [vmem:[#allocation9 + $0x2c] sm:$0xf]  ;;  %v12288_v2 = vld [vmem:[#allocation9 + $0x38] sm:$0xf0] }
 0x40c   :  { %8089 = vmatpush.bf16.msra.mxu0 %v12303_v34  ;;  %8102 = vmatpush.bf16.msra.mxu1 %v12447_v44  ;;  %v13158_v34 = vld [vmem:[#allocation9 + $0x700] sm:$0xf]  ;;  %v14560_v44 = vld [vmem:[#allocation9 + $0x3c4] sm:$0xf] }
 0x40d   :  { %v13159_v5 = vor.u32 %v14666_v37, %v13158_v34  ;;  %7952 = vmatmul.bf16.vlgmr.msrb.gmra.mxu2 %v15796_v39  ;;  %v12747_v31 = vor.u32 %v14560_v44, %v12744_v55  ;;  %v14640_v34 = vld [vmem:[#allocation9 + $0x644] sm:$0xf]  ;;  %v13064_v37 = vld [vmem:[#allocation9 + $0x650] sm:$0xf0] }
 0x40e   :  { %8056 = vmatpush.bf16.msrb.mxu2 %v13147_v4  ;;  %v14611_v4 = vld [vmem:[#allocation9 + $0x554] sm:$0xf0]  ;;  %v14636_v55 = vld [vmem:[#allocation9 + $0x624] sm:$0xf] }
 0x40f   :  { %7965 = vmatpush.bf16.msrb.mxu3 %v13159_v5  ;;  %v15800_v5 = vpop.f32.mrf.mxu0 }
 0x410   :  { %8090 = vmatpush.bf16.msra.mxu0 %v12287_v52  ;;  %8103 = vmatpush.bf16.msra.mxu1 %v12431_v7  ;;  %v13023_v52 = vor.u32 %v14631_v10, %v13022_v36  ;;  %v12814_v7 = vld [vmem:[#allocation9 + $0x448] sm:$0xf]  ;;  %v12799_v36 = vor.u32 %v14575_v40, %v12798_v62  ;;  %v12696_v10 = vld [vmem:[#allocation9 + $0x370] sm:$0xf0] }
 0x411   :  { %v12699_v32 = vor.u32 %v14548_v50, %v12696_v10  ;;  %v12648_v62 = vld [vmem:[#allocation9 + $0x310] sm:$0xf0]  ;;  %v12622_v50 = vld [vmem:[#allocation9 + $0x2c8] sm:$0xf]  ;;  %v14457_v10 = vld [vmem:[#allocation9 + $0x8c] sm:$0xf] }
 0x412   :  { %8057 = vmatpush.bf16.msrb.mxu2 %v13131_v59  ;;  %v12926_v59 = vld [vmem:[#allocation9 + $0x528] sm:$0xf] }
 0x413   :  { %8014 = vmatpush.bf16.msra.mxu3 %v12763_v51 }
 0x414   :  { %8091 = vmatpush.bf16.msra.mxu0 %v12271_v25  ;;  %8104 = vmatpush.bf16.msra.mxu1 %v12415_v16  ;;  %v14652_v25 = vld [vmem:[#allocation9 + $0x6a4] sm:$0xf]  ;;  %v12715_v16 = vor.u32 %v14552_v22, %v12712_v45  ;;  %v12512_v22 = vld [vmem:[#allocation9 + $0x1f8] sm:$0xf0] }
 0x415   :  { %v13115_v61 = vor.u32 %v14652_v25, %v13112_v43  ;;  %v14540_v25 = vld [vmem:[#allocation9 + $0x324] sm:$0xf]  ;;  %v12664_v43 = vld [vmem:[#allocation9 + $0x330] sm:$0xf0] }
 0x416   :  { %v14536_v45 = vld [vmem:[#allocation9 + $0x304] sm:$0xf] }
 0x417   :  { %8092 = vmatmul.bf16.vlgmr.msra.gmra.mxu0 %v15722_v9  ;;  %8015 = vmatpush.bf16.msra.mxu3 %v12747_v31  ;;  %v13048_v31 = vld [vmem:[#allocation9 + $0x630] sm:$0xf0] }
 0x418   :  { %8140 = vmatpush.bf16.msrb.mxu0 %v12895_v46  ;;  %8105 = vmatpush.bf16.msra.mxu1 %v12399_v12  ;;  %v14556_v46 = vld [vmem:[#allocation9 + $0x3a4] sm:$0xf]  ;;  %v12942_v12 = vld [vmem:[#allocation9 + $0x548] sm:$0xf] }
 0x419   :  { %v12731_v41 = vor.u32 %v14556_v46, %v12728_v49  ;;  %8058 = vmatpush.bf16.msrb.mxu2 %v13115_v61  ;;  %v12943_v44 = vor.u32 %v14611_v4, %v12942_v12  ;;  %v13032_v46 = vld [vmem:[#allocation9 + $0x610] sm:$0xf0]  ;;  %v12910_v49 = vld [vmem:[#allocation9 + $0x508] sm:$0xf]  ;;  %v14603_v61 = vld [vmem:[#allocation9 + $0x514] sm:$0xf0] }
 0x41a   :  { %v13035_v20 = vor.u32 %v14632_v42, %v13032_v46  ;;  %v12911_v29 = vor.u32 %v14603_v61, %v12910_v49  ;;  %v14453_v4 = vld [vmem:[#allocation9 + $0x6c] sm:$0xf]  ;;  %v14523_v46 = vld [vmem:[#allocation9 + $0x294] sm:$0xf0] }
 0x41b   :  { %8106 = vmatmul.bf16.vlgmr.msra.gmra.mxu1 %v15628_v27  ;;  %8016 = vmatpush.bf16.msra.mxu3 %v12731_v41  ;;  %v14489_v49 = vld [vmem:[#allocation9 + $0x18c] sm:$0xf] }
 0x41c   :  { %8141 = vmatpush.bf16.msrb.mxu0 %v12879_v63  ;;  %8154 = vmatpush.bf16.msrb.mxu1 %v13023_v52  ;;  %v12815_v63 = vor.u32 %v14579_v17, %v12814_v7  ;;  %v14544_v52 = vld [vmem:[#allocation9 + $0x344] sm:$0xf]  ;;  %v6215_v7 = vpop.f32.mrf.mxu2  ;;  %v13051_v17 = vor.u32 %v14636_v55, %v13048_v31 }
 0x41d   :  { %8059 = vmatpush.bf16.msrb.mxu2 %v13099_v8  ;;  %v12683_v24 = vor.u32 %v14544_v52, %v12680_v54  ;;  %v14820_v8 = vld [vmem:[#allocation7] sm:$0xff] }
 0x41e   :  { %8008 = vmatmul.bf16.vlgmr.msra.gmra.mxu2 %v15762_v47  ;;  %v12320_v52 = vld [vmem:[#allocation9 + $0x78] sm:$0xf0] }
 0x41f   :  { %8017 = vmatpush.bf16.msra.mxu3 %v12715_v16  ;;  %v12651_v16 = vor.u32 %v14536_v45, %v12648_v62  ;;  %v12323_v53 = vor.u32 %v14453_v4, %v12320_v52  ;;  %v12448_v45 = vld [vmem:[#allocation9 + $0x178] sm:$0xf0]  ;;  %v14511_v4 = vld [vmem:[#allocation9 + $0x234] sm:$0xf0] }
 0x420   :  { %8142 = vmatpush.bf16.msrb.mxu0 %v12863_v56  ;;  %8155 = vmatpush.bf16.msrb.mxu1 %v13007_v26  ;;  %v12782_v56 = vld [vmem:[#allocation9 + $0x408] sm:$0xf]  ;;  %v14607_v26 = vld [vmem:[#allocation9 + $0x534] sm:$0xf0]  ;;  %v6229_v28 = vpop.f32.mrf.mxu3 }
 0x421   :  { %v12783_v51 = vor.u32 %v14571_v35, %v12782_v56  ;;  %8060 = vmatpush.bf16.msrb.mxu2 %v13083_v48  ;;  %v12927_v41 = vor.u32 %v14607_v26, %v12926_v59  ;;  %v14531_v56 = vld [vmem:[#allocation9 + $0x2d4] sm:$0xf0]  ;;  %v14497_v35 = vld [vmem:[#allocation9 + $0x1cc] sm:$0xf]  ;;  %v12590_v26 = vld [vmem:[#allocation9 + $0x288] sm:$0xf] }
 0x422   :  { %v12623_v12 = vor.u32 %v14531_v56, %v12622_v50  ;;  %v14515_v50 = vld [vmem:[#allocation9 + $0x254] sm:$0xf0]  ;;  %v14597_v56 = vld [vmem:[#allocation9 + $0x4ec] sm:$0xf] }
 0x423   :  { %8018 = vmatpush.bf16.msra.mxu3 %v12699_v32  ;;  %v12496_v32 = vld [vmem:[#allocation9 + $0x1d8] sm:$0xf0] }
 0x424   :  { %8143 = vmatpush.bf16.msrb.mxu0 %v12847_v60  ;;  %8156 = vmatpush.bf16.msrb.mxu1 %v12991_v6  ;;  %v13067_v60 = vor.u32 %v14640_v34, %v13064_v37  ;;  %v14461_v6 = vld [vmem:[#allocation9 + $0xac] sm:$0xf]  ;;  %v12336_v34 = vld [vmem:[#allocation9 + $0x98] sm:$0xf0]  ;;  %v6203_v37 = vpop.f32.mrf.mxu1  ;;  %v12499_v14 = vor.u32 %v14497_v35, %v12496_v32 }
 0x425   :  { %v12355_v40 = vor.u32 %v14461_v6, %v12352_v21  ;;  %v12339_v48 = vor.u32 %v14457_v10, %v12336_v34  ;;  %v12574_v21 = vld [vmem:[#allocation9 + $0x268] sm:$0xf]  ;;  %v14481_v10 = vld [vmem:[#allocation9 + $0x14c] sm:$0xf]  ;;  %v12432_v34 = vld [vmem:[#allocation9 + $0x158] sm:$0xf0] }
 0x426   :  { %8061 = vmatpush.bf16.msrb.mxu2 %v13067_v60  ;;  %v14493_v60 = vld [vmem:[#allocation9 + $0x1ac] sm:$0xf]  ;;  %v12896_v35 = vld [vmem:[#allocation9 + $0x4f8] sm:$0xf0] }
 0x427   :  { %8019 = vmatpush.bf16.msra.mxu3 %v12683_v24  ;;  %v14527_v24 = vld [vmem:[#allocation9 + $0x2b4] sm:$0xf0]  ;;  %v12899_v52 = vor.u32 %v14597_v56, %v12896_v35  ;;  %v13240_v35 = vld [vmem:[#allocation9 + $0x7b0] sm:$0xf0] }
 0x428   :  { %8144 = vmatpush.bf16.msrb.mxu0 %v12831_v18  ;;  %8157 = vmatpush.bf16.msrb.mxu1 %v12975_v0  ;;  %v12667_v18 = vor.u32 %v14540_v25, %v12664_v43  ;;  %v2825_v0 = vperm.slane %v14820_v8, 7  ;;  %v12607_v31 = vor.u32 %v14527_v24, %v12606_v30  ;;  %v14449_v25 = vld [vmem:[#allocation9 + $0x4c] sm:$0xf]  ;;  %v12304_v43 = vld [vmem:[#allocation9 + $0x58] sm:$0xf0]  ;;  %v6231_v42 = vpop.f32.mrf.mxu3 }
 0x429   :  { %v12542_v30 = vld [vmem:[#allocation9 + $0x228] sm:$0xf]  ;;  %v14593_v24 = vld [vmem:[#allocation9 + $0x4cc] sm:$0xf] }
 0x42a   :  { %8062 = vmatpush.bf16.msrb.mxu2 %v13051_v17 }
 0x42b   :  { %8020 = vmatpush.bf16.msra.mxu3 %v12667_v18 }
 0x42c   :  { %8145 = vmatpush.bf16.msrb.mxu0 %v12815_v63  ;;  %8158 = vmatpush.bf16.msrb.mxu1 %v12959_v13  ;;  %v6189_v63 = vpop.f32.mrf.mxu0  ;;  %v6188_v13 = vadd.f32 %v15800_v5, %v2825_v0 }
 0x42d   :  { %v6190_v54 = vadd.f32 %v6189_v63, %v2825_v0  ;;  %v14519_v63 = vld [vmem:[#allocation9 + $0x274] sm:$0xf0] }
 0x42e   :  { %8063 = vmatpush.bf16.msrb.mxu2 %v13035_v20  ;;  %v6202_v55 = vadd.f32 %v15803_v38, %v6188_v13  ;;  %v12464_v38 = vld [vmem:[#allocation9 + $0x198] sm:$0xf0]  ;;  %v12575_v0 = vor.u32 %v14519_v63, %v12574_v21  ;;  %v12558_v20 = vld [vmem:[#allocation9 + $0x248] sm:$0xf] }
 0x42f   :  { %8021 = vmatpush.bf16.msra.mxu3 %v12651_v16  ;;  %v6204_v5 = vadd.f32 %v6203_v37, %v6190_v54  ;;  %v12467_v6 = vor.u32 %v14489_v49, %v12464_v38  ;;  %v12291_v16 = vor.u32 %v14445_v58, %v12288_v2  ;;  %v14477_v54 = vld [vmem:[#allocation9 + $0x12c] sm:$0xf]  ;;  %v13150_v49 = vld [vmem:[#allocation9 + $0x6e8] sm:$0xf]  ;;  %v14663_v38 = vld [vmem:[#allocation9 + $0x6f4] sm:$0xf0] }
 0x430   :  { %8146 = vmatpush.bf16.msrb.mxu0 %v12799_v36  ;;  %8159 = vmatpush.bf16.msrb.mxu1 %v12943_v44  ;;  %v12515_v36 = vor.u32 %v14501_v11, %v12512_v22  ;;  %v12480_v44 = vld [vmem:[#allocation9 + $0x1b8] sm:$0xf0]  ;;  %v6216_v19 = vadd.f32 %v6215_v7, %v6202_v55  ;;  %v12591_v7 = vor.u32 %v14523_v46, %v12590_v26  ;;  %v14485_v22 = vld [vmem:[#allocation9 + $0x16c] sm:$0xf]  ;;  %v14692_v46 = vld [vmem:[#allocation9 + $0x7e4] sm:$0xf] }
 0x431   :  { %8064 = vmatmul.bf16.vlgmr.msrb.gmra.mxu2 %v15796_v39  ;;  %v12483_v59 = vor.u32 %v14493_v60, %v12480_v44  ;;  %v12880_v60 = vld [vmem:[#allocation9 + $0x4d8] sm:$0xf0]  ;;  %v12543_v55 = vor.u32 %v14511_v4, %v12542_v30  ;;  %v14629_v58 = vld [vmem:[#allocation9 + $0x5ec] sm:$0xf] }
 0x432   :  { %8112 = vmatpush.bf16.msra.mxu2 %v12639_v33  ;;  %v6230_v17 = vadd.f32 %v6229_v28, %v6216_v19  ;;  %v12451_v28 = vor.u32 %v14485_v22, %v12448_v45  ;;  %v12272_v33 = vld [vmem:[#allocation9 + $0x18] sm:$0xf0]  ;;  %v12883_v26 = vor.u32 %v14593_v24, %v12880_v60  ;;  %v14688_v45 = vld [vmem:[#allocation9 + $0x7c4] sm:$0xf]  ;;  %v13224_v24 = vld [vmem:[#allocation9 + $0x790] sm:$0xf0] }
 0x433   :  { %v13024_v2 = vld [vmem:[#allocation9 + $0x5f8] sm:$0xf0]  ;;  %v14577_v60 = vld [vmem:[#allocation9 + $0x44c] sm:$0xf] }
 0x434   :  { %8147 = vmatpush.bf16.msrb.mxu0 %v12783_v51  ;;  %8160 = vmatpush.bf16.msrb.mxu1 %v12927_v41  ;;  %v6243_v51 = vpop.f32.mrf.mxu0  ;;  %v12307_v41 = vor.u32 %v14449_v25, %v12304_v43  ;;  %v14507_v25 = vld [vmem:[#allocation9 + $0x214] sm:$0xf0]  ;;  %v14473_v43 = vld [vmem:[#allocation9 + $0x10c] sm:$0xf] }
 0x435   :  { %v6244_v62 = vadd.f32 %v6243_v51, %v6230_v17  ;;  %v12416_v51 = vld [vmem:[#allocation9 + $0x138] sm:$0xf0]  ;;  %v14589_v17 = vld [vmem:[#allocation9 + $0x4ac] sm:$0xf] }
 0x436   :  { %8113 = vmatpush.bf16.msra.mxu2 %v12623_v12  ;;  %v12559_v12 = vor.u32 %v14515_v50, %v12558_v20  ;;  %v12419_v19 = vor.u32 %v14477_v54, %v12416_v51  ;;  %v14625_v20 = vld [vmem:[#allocation9 + $0x5cc] sm:$0xf]  ;;  %v13102_v54 = vld [vmem:[#allocation9 + $0x688] sm:$0xf]  ;;  %v14651_v51 = vld [vmem:[#allocation9 + $0x694] sm:$0xf0] }
 0x437   :  { %8148 = vmatmul.bf16.vlgmr.msrb.gmra.mxu0 %v15756_v15 }
 0x438   :  { %8196 = vmatpush.bf16.msra.mxu0 %v12387_v3  ;;  %8161 = vmatpush.bf16.msrb.mxu1 %v12911_v29  ;;  %v6217_v3 = vpop.f32.mrf.mxu2  ;;  %v14441_v29 = vld [vmem:[#allocation9 + $0xc] sm:$0xf] }
 0x439   :  { %v6218_v18 = vadd.f32 %v6217_v3, %v6204_v5 }
 0x43a   :  { %8114 = vmatpush.bf16.msra.mxu2 %v12607_v31  ;;  %v12526_v31 = vld [vmem:[#allocation9 + $0x208] sm:$0xf] }
 0x43b   :  { %8162 = vmatmul.bf16.vlgmr.msrb.gmra.mxu1 %v15784_v23  ;;  %v6232_v61 = vadd.f32 %v6231_v42, %v6218_v18  ;;  %v13272_v18 = vld [vmem:[#allocation9 + $0x7f0] sm:$0xf0] }
 0x43c   :  { %8197 = vmatpush.bf16.msra.mxu0 %v12371_v1  ;;  %8210 = vmatpush.bf16.msra.mxu1 %v12515_v36  ;;  %v6257_v1 = vpop.f32.mrf.mxu1  ;;  %v13275_v22 = vor.u32 %v14692_v46, %v13272_v18  ;;  %v14613_v46 = vld [vmem:[#allocation9 + $0x56c] sm:$0xf] }
 0x43d   :  { %v6258_v37 = vadd.f32 %v6257_v1, %v6244_v62  ;;  %v12400_v1 = vld [vmem:[#allocation9 + $0x118] sm:$0xf0]  ;;  %v13134_v62 = vld [vmem:[#allocation9 + $0x6c8] sm:$0xf] }
 0x43e   :  { %8115 = vmatpush.bf16.msra.mxu2 %v12591_v7  ;;  %v12403_v21 = vor.u32 %v14473_v43, %v12400_v1  ;;  %v13208_v43 = vld [vmem:[#allocation9 + $0x770] sm:$0xf0]  ;;  %v14573_v1 = vld [vmem:[#allocation9 + $0x42c] sm:$0xf] }
 0x440   :  { %8198 = vmatpush.bf16.msra.mxu0 %v12355_v40  ;;  %8211 = vmatpush.bf16.msra.mxu1 %v12499_v14  ;;  %v6271_v11 = vpop.f32.mrf.mxu2  ;;  %v6245_v40 = vpop.f32.mrf.mxu0  ;;  %v12435_v14 = vor.u32 %v14481_v10, %v12432_v34  ;;  %v14684_v10 = vld [vmem:[#allocation9 + $0x7a4] sm:$0xf]  ;;  %v13118_v34 = vld [vmem:[#allocation9 + $0x6a8] sm:$0xf] }
 0x441   :  { %v6246_v8 = vadd.f32 %v6245_v40, %v6232_v61  ;;  %v6285_v36 = vpop.f32.mrf.mxu3  ;;  %v6272_v3 = vadd.f32 %v6271_v11, %v6258_v37  ;;  %v13151_v11 = vor.u32 %v14663_v38, %v13150_v49  ;;  %v14659_v40 = vld [vmem:[#allocation9 + $0x6d4] sm:$0xf0]  ;;  %v13243_v30 = vor.u32 %v14684_v10, %v13240_v35  ;;  %v12960_v49 = vld [vmem:[#allocation9 + $0x578] sm:$0xf0]  ;;  %v13160_v10 = vld [vmem:[#allocation9 + $0x710] sm:$0xf0] }
 0x442   :  { %8116 = vmatpush.bf16.msra.mxu2 %v12575_v0  ;;  %v14585_v0 = vld [vmem:[#allocation9 + $0x48c] sm:$0xf]  ;;  %v14655_v37 = vld [vmem:[#allocation9 + $0x6b4] sm:$0xf0] }
 0x443   :  { %v14601_v35 = vld [vmem:[#allocation9 + $0x50c] sm:$0xf] }
 0x444   :  { %8199 = vmatpush.bf16.msra.mxu0 %v12339_v48  ;;  %8212 = vmatpush.bf16.msra.mxu1 %v12483_v59  ;;  %v6259_v32 = vpop.f32.mrf.mxu1  ;;  %v12275_v48 = vor.u32 %v14441_v29, %v12272_v33  ;;  %v13008_v29 = vld [vmem:[#allocation9 + $0x5d8] sm:$0xf0]  ;;  %v13135_v33 = vor.u32 %v14659_v40, %v13134_v62  ;;  %v13054_v40 = vld [vmem:[#allocation9 + $0x628] sm:$0xf] }
 0x445   :  { %v6260_v13 = vadd.f32 %v6259_v32, %v6246_v8  ;;  %v13256_v8 = vld [vmem:[#allocation9 + $0x7d0] sm:$0xf0]  ;;  %v13011_v56 = vor.u32 %v14625_v20, %v13008_v29  ;;  %v14581_v32 = vld [vmem:[#allocation9 + $0x46c] sm:$0xf]  ;;  %v12928_v29 = vld [vmem:[#allocation9 + $0x538] sm:$0xf0] }
 0x446   :  { %8117 = vmatpush.bf16.msra.mxu2 %v12559_v12  ;;  %v12992_v12 = vld [vmem:[#allocation9 + $0x5b8] sm:$0xf0]  ;;  %v14605_v20 = vld [vmem:[#allocation9 + $0x52c] sm:$0xf] }
 0x448   :  { %8200 = vmatpush.bf16.msra.mxu0 %v12323_v53  ;;  %8213 = vmatpush.bf16.msra.mxu1 %v12467_v6  ;;  %v6273_v44 = vpop.f32.mrf.mxu2  ;;  %v6286_v53 = vadd.f32 %v6285_v36, %v6272_v3  ;;  %v12527_v6 = vor.u32 %v14507_v25, %v12526_v31  ;;  %v13259_v36 = vor.u32 %v14688_v45, %v13256_v8  ;;  %v14676_v31 = vld [vmem:[#allocation9 + $0x764] sm:$0xf] }
 0x449   :  { %v6274_v5 = vadd.f32 %v6273_v44, %v6260_v13  ;;  %v6287_v59 = vpop.f32.mrf.mxu3  ;;  %v14621_v13 = vld [vmem:[#allocation9 + $0x5ac] sm:$0xf]  ;;  %v12816_v44 = vld [vmem:[#allocation9 + $0x458] sm:$0xf0]  ;;  %v13211_v18 = vor.u32 %v14676_v31, %v13208_v43  ;;  %v12718_v43 = vld [vmem:[#allocation9 + $0x388] sm:$0xf] }
 0x44a   :  { %v6297_v61 = vmax.f32 %v6286_v53, 0.0  ;;  %8118 = vmatpush.bf16.msra.mxu2 %v12543_v55  ;;  %v12995_v3 = vor.u32 %v14621_v13, %v12992_v12  ;;  %v14617_v55 = vld [vmem:[#allocation9 + $0x58c] sm:$0xf]  ;;  %v12912_v13 = vld [vmem:[#allocation9 + $0x518] sm:$0xf0] }
 0x44b   :  { %v6288_v42 = vadd.f32 %v6287_v59, %v6274_v5  ;;  %v12976_v5 = vld [vmem:[#allocation9 + $0x598] sm:$0xf0]  ;;  %v13086_v59 = vld [vmem:[#allocation9 + $0x668] sm:$0xf] }
 0x44c   :  { %8201 = vmatpush.bf16.msra.mxu0 %v12307_v41  ;;  %8214 = vmatpush.bf16.msra.mxu1 %v12451_v28  ;;  %v12864_v41 = vld [vmem:[#allocation9 + $0x4b8] sm:$0xf0]  ;;  %v12979_v25 = vor.u32 %v14617_v55, %v12976_v5  ;;  %v12766_v12 = vld [vmem:[#allocation9 + $0x3e8] sm:$0xf] }
 0x44d   :  { %v6305_v7 = vmax.f32 %v6288_v42, 0.0  ;;  %v12848_v28 = vld [vmem:[#allocation9 + $0x498] sm:$0xf0] }
 0x44e   :  { %8119 = vmatpush.bf16.msra.mxu2 %v12527_v6  ;;  %v12851_v50 = vor.u32 %v14585_v0, %v12848_v28  ;;  %v12800_v42 = vld [vmem:[#allocation9 + $0x438] sm:$0xf0]  ;;  %v12963_v6 = vor.u32 %v14613_v46, %v12960_v49  ;;  %v14668_v0 = vld [vmem:[#allocation9 + $0x724] sm:$0xf]  ;;  %v13176_v28 = vld [vmem:[#allocation9 + $0x730] sm:$0xf0] }
 0x44f   :  { %v15811_v63 = vpack.c.bf16 %v6305_v7, %v6297_v61  ;;  %v13070_v61 = vld [vmem:[#allocation9 + $0x648] sm:$0xf]  ;;  %v14643_v7 = vld [vmem:[#allocation9 + $0x654] sm:$0xf0]  ;;  %v14517_v49 = vld [vmem:[#allocation9 + $0x26c] sm:$0xf] }
 0x450   :  { %8202 = vmatpush.bf16.msra.mxu0 %v12291_v16  ;;  %8215 = vmatpush.bf16.msra.mxu1 %v12435_v14  ;;  %v13027_v16 = vor.u32 %v14629_v58, %v13024_v2  ;;  %v13119_v14 = vor.u32 %v14655_v37, %v13118_v34  ;;  %v14569_v58 = vld [vmem:[#allocation9 + $0x40c] sm:$0xf]  ;;  %v12784_v2 = vld [vmem:[#allocation9 + $0x418] sm:$0xf0]  ;;  %v13038_v34 = vld [vmem:[#allocation9 + $0x608] sm:$0xf] }
 0x451   :  { %7966 = vmatmul.bf16.vlgmr.msrb.gmra.mxu3 %v15811_v63  ;;  %8120 = vmatmul.bf16.vlgmr.msra.gmra.mxu2 %v15762_v47  ;;  %v12787_v62 = vor.u32 %v14569_v58, %v12784_v2  ;;  %v14635_v37 = vld [vmem:[#allocation9 + $0x614] sm:$0xf0] }
 0x452   :  { %8168 = vmatpush.bf16.msrb.mxu2 %v13151_v11  ;;  %8070 = vmatpush.bf16.msrb.mxu3 %v13275_v22  ;;  %v14609_v11 = vld [vmem:[#allocation9 + $0x54c] sm:$0xf]  ;;  %v12944_v22 = vld [vmem:[#allocation9 + $0x558] sm:$0xf0] }
 0x453   :  { %v12947_v8 = vor.u32 %v14609_v11, %v12944_v22  ;;  %v14509_v11 = vld [vmem:[#allocation9 + $0x22c] sm:$0xf]  ;;  %v12544_v22 = vld [vmem:[#allocation9 + $0x238] sm:$0xf0] }
 0x454   :  { %8203 = vmatpush.bf16.msra.mxu0 %v12275_v48  ;;  %8216 = vmatpush.bf16.msra.mxu1 %v12419_v19  ;;  %v12832_v48 = vld [vmem:[#allocation9 + $0x478] sm:$0xf0]  ;;  %v12819_v19 = vor.u32 %v14577_v60, %v12816_v44  ;;  %v12750_v60 = vld [vmem:[#allocation9 + $0x3c8] sm:$0xf]  ;;  %v14563_v44 = vld [vmem:[#allocation9 + $0x3d4] sm:$0xf0] }
 0x455   :  { %v12835_v4 = vor.u32 %v14581_v32, %v12832_v48  ;;  %v14533_v32 = vld [vmem:[#allocation9 + $0x2ec] sm:$0xf]  ;;  %v12640_v48 = vld [vmem:[#allocation9 + $0x2f8] sm:$0xf0]  ;;  %v12751_v5 = vor.u32 %v14563_v44, %v12750_v60  ;;  %v13230_v60 = vld [vmem:[#allocation9 + $0x788] sm:$0xf] }
 0x456   :  { %8169 = vmatpush.bf16.msrb.mxu2 %v13135_v33  ;;  %8071 = vmatpush.bf16.msrb.mxu3 %v13259_v36  ;;  %v14664_v36 = vld [vmem:[#allocation9 + $0x704] sm:$0xf]  ;;  %v14683_v44 = vld [vmem:[#allocation9 + $0x794] sm:$0xf0] }
 0x457   :  { %8204 = vmatmul.bf16.vlgmr.msra.gmra.mxu0 %v15722_v9  ;;  %v12867_v9 = vor.u32 %v14589_v17, %v12864_v41  ;;  %v12803_v17 = vor.u32 %v14573_v1, %v12800_v42  ;;  %v14672_v41 = vld [vmem:[#allocation9 + $0x744] sm:$0xf]  ;;  %v14555_v1 = vld [vmem:[#allocation9 + $0x394] sm:$0xf0] }
 0x458   :  { %8252 = vmatpush.bf16.msrb.mxu0 %v12899_v52  ;;  %8217 = vmatpush.bf16.msra.mxu1 %v12403_v21  ;;  %v14680_v52 = vld [vmem:[#allocation9 + $0x784] sm:$0xf]  ;;  %v13192_v21 = vld [vmem:[#allocation9 + $0x750] sm:$0xf0]  ;;  %v12719_v46 = vor.u32 %v14555_v1, %v12718_v43  ;;  %v14641_v43 = vld [vmem:[#allocation9 + $0x64c] sm:$0xf] }
 0x459   :  { %v13227_v53 = vor.u32 %v14680_v52, %v13224_v24  ;;  %v13195_v45 = vor.u32 %v14672_v41, %v13192_v21  ;;  %v12643_v52 = vor.u32 %v14533_v32, %v12640_v48  ;;  %v12624_v24 = vld [vmem:[#allocation9 + $0x2d8] sm:$0xf0]  ;;  %v14547_v21 = vld [vmem:[#allocation9 + $0x354] sm:$0xf0]  ;;  %v13262_v32 = vld [vmem:[#allocation9 + $0x7c8] sm:$0xf] }
 0x45a   :  { %8170 = vmatpush.bf16.msrb.mxu2 %v13119_v14  ;;  %8072 = vmatpush.bf16.msrb.mxu3 %v13243_v30  ;;  %v14567_v14 = vld [vmem:[#allocation9 + $0x3f4] sm:$0xf0]  ;;  %v13039_v30 = vor.u32 %v14635_v37, %v13038_v34  ;;  %v13072_v1 = vld [vmem:[#allocation9 + $0x658] sm:$0xf0] }
 0x45b   :  { %8218 = vmatmul.bf16.vlgmr.msra.gmra.mxu1 %v15628_v27  ;;  %v13103_v27 = vor.u32 %v14651_v51, %v13102_v54  ;;  %v12915_v54 = vor.u32 %v14601_v35, %v12912_v13  ;;  %v12767_v51 = vor.u32 %v14567_v14, %v12766_v12  ;;  %v13136_v35 = vld [vmem:[#allocation9 + $0x6d8] sm:$0xf0]  ;;  %v14691_v48 = vld [vmem:[#allocation9 + $0x7d4] sm:$0xf0]  ;;  %v14653_v14 = vld [vmem:[#allocation9 + $0x6ac] sm:$0xf] }
 0x45c   :  { %8253 = vmatpush.bf16.msrb.mxu0 %v12883_v26  ;;  %8266 = vmatpush.bf16.msrb.mxu1 %v13027_v16  ;;  %v14647_v26 = vld [vmem:[#allocation9 + $0x674] sm:$0xf0]  ;;  %v13263_v12 = vor.u32 %v14691_v48, %v13262_v32  ;;  %v14557_v32 = vld [vmem:[#allocation9 + $0x3ac] sm:$0xf]  ;;  %v12736_v48 = vld [vmem:[#allocation9 + $0x3b8] sm:$0xf0] }
 0x45d   :  { %v13087_v38 = vor.u32 %v14647_v26, %v13086_v59  ;;  %v14639_v16 = vld [vmem:[#allocation9 + $0x634] sm:$0xf0]  ;;  %v14521_v26 = vld [vmem:[#allocation9 + $0x28c] sm:$0xf] }
 0x45e   :  { %8171 = vmatpush.bf16.msrb.mxu2 %v13103_v27  ;;  %8073 = vmatpush.bf16.msrb.mxu3 %v13227_v53  ;;  %v13055_v33 = vor.u32 %v14639_v16, %v13054_v40  ;;  %v12608_v27 = vld [vmem:[#allocation9 + $0x2b8] sm:$0xf0]  ;;  %v12734_v53 = vld [vmem:[#allocation9 + $0x3a8] sm:$0xf] }
 0x45f   :  { %v12654_v16 = vld [vmem:[#allocation9 + $0x308] sm:$0xf] }
 0x460   :  { %8254 = vmatpush.bf16.msrb.mxu0 %v12867_v9  ;;  %8267 = vmatpush.bf16.msrb.mxu1 %v13011_v56  ;;  %v13071_v9 = vor.u32 %v14643_v7, %v13070_v61  ;;  %v12931_v56 = vor.u32 %v14605_v20, %v12928_v29  ;;  %v14513_v61 = vld [vmem:[#allocation9 + $0x24c] sm:$0xf]  ;;  %v12560_v7 = vld [vmem:[#allocation9 + $0x258] sm:$0xf0] }
 0x461   :  { %8022 = vmatmul.bf16.vlgmr.msra.gmra.mxu3 %v15782_v57  ;;  %v12563_v58 = vor.u32 %v14513_v61, %v12560_v7  ;;  %v14661_v20 = vld [vmem:[#allocation9 + $0x6ec] sm:$0xf]  ;;  %v13152_v29 = vld [vmem:[#allocation9 + $0x6f8] sm:$0xf0] }
 0x462   :  { %8172 = vmatpush.bf16.msrb.mxu2 %v13087_v38  ;;  %8074 = vmatpush.bf16.msrb.mxu3 %v13211_v18  ;;  %v12576_v38 = vld [vmem:[#allocation9 + $0x278] sm:$0xf0]  ;;  %v12702_v18 = vld [vmem:[#allocation9 + $0x368] sm:$0xf]  ;;  %v13155_v34 = vor.u32 %v14661_v20, %v13152_v29  ;;  %v14637_v61 = vld [vmem:[#allocation9 + $0x62c] sm:$0xf] }
 0x463   :  { %v12579_v41 = vor.u32 %v14517_v49, %v12576_v38  ;;  %v13334_v49 = vld [vmem:[#allocation12 + $0x60] sm:$0xf]  ;;  %v14709_v38 = vld [vmem:[#allocation12 + $0x64] sm:$0xf0]  ;;  %v13056_v7 = vld [vmem:[#allocation9 + $0x638] sm:$0xf0] }
 0x464   :  { %8255 = vmatpush.bf16.msrb.mxu0 %v12851_v50  ;;  %8268 = vmatpush.bf16.msrb.mxu1 %v12995_v3  ;;  %v13179_v50 = vor.u32 %v14668_v0, %v13176_v28  ;;  %v14529_v3 = vld [vmem:[#allocation9 + $0x2cc] sm:$0xf]  ;;  %v12528_v0 = vld [vmem:[#allocation9 + $0x218] sm:$0xf0]  ;;  %v14539_v28 = vld [vmem:[#allocation9 + $0x314] sm:$0xf0] }
 0x465   :  { %v12627_v55 = vor.u32 %v14529_v3, %v12624_v24  ;;  %v14649_v3 = vld [vmem:[#allocation9 + $0x68c] sm:$0xf]  ;;  %v13104_v24 = vld [vmem:[#allocation9 + $0x698] sm:$0xf0] }
 0x466   :  { %8173 = vmatpush.bf16.msrb.mxu2 %v13071_v9  ;;  %8075 = vmatpush.bf16.msrb.mxu3 %v13195_v45  ;;  %v12670_v9 = vld [vmem:[#allocation9 + $0x328] sm:$0xf]  ;;  %v14543_v45 = vld [vmem:[#allocation9 + $0x334] sm:$0xf0] }
 0x467   :  { %v12671_v40 = vor.u32 %v14543_v45, %v12670_v9  ;;  %v13166_v9 = vld [vmem:[#allocation9 + $0x708] sm:$0xf]  ;;  %v14633_v45 = vld [vmem:[#allocation9 + $0x60c] sm:$0xf] }
 0x468   :  { %8256 = vmatpush.bf16.msrb.mxu0 %v12835_v4  ;;  %8269 = vmatpush.bf16.msrb.mxu1 %v12979_v25  ;;  %v13163_v4 = vor.u32 %v14664_v36, %v13160_v10  ;;  %v12592_v25 = vld [vmem:[#allocation9 + $0x298] sm:$0xf0]  ;;  %v14695_v36 = vld [vmem:[#allocation9 + $0x7f4] sm:$0xf0]  ;;  %v12655_v10 = vor.u32 %v14539_v28, %v12654_v16  ;;  %v13318_v16 = vld [vmem:[#allocation12 + $0x40] sm:$0xf] }
 0x469   :  { %v12595_v42 = vor.u32 %v14521_v26, %v12592_v25  ;;  %v12768_v28 = vld [vmem:[#allocation9 + $0x3f8] sm:$0xf0] }
 0x46a   :  { %8174 = vmatpush.bf16.msrb.mxu2 %v13055_v33  ;;  %8076 = vmatpush.bf16.msrb.mxu3 %v13179_v50  ;;  %v13278_v33 = vld [vmem:[#allocation9 + $0x7e8] sm:$0xf] }
 0x46b   :  { %v13279_v37 = vor.u32 %v14695_v36, %v13278_v33 }
 0x46c   :  { %8257 = vmatpush.bf16.msrb.mxu0 %v12819_v19  ;;  %8270 = vmatpush.bf16.msrb.mxu1 %v12963_v6  ;;  %v14559_v19 = vld [vmem:[#allocation9 + $0x3b4] sm:$0xf0]  ;;  %v12686_v6 = vld [vmem:[#allocation9 + $0x348] sm:$0xf] }
 0x46d   :  { %v12735_v59 = vor.u32 %v14559_v19, %v12734_v53  ;;  %v12687_v2 = vor.u32 %v14547_v21, %v12686_v6  ;;  %v13088_v53 = vld [vmem:[#allocation9 + $0x678] sm:$0xf0]  ;;  %v13342_v19 = vld [vmem:[#allocation12 + $0x70] sm:$0xf]  ;;  %v14671_v6 = vld [vmem:[#allocation9 + $0x734] sm:$0xf0] }
 0x46e   :  { %8175 = vmatpush.bf16.msrb.mxu2 %v13039_v30  ;;  %8077 = vmatpush.bf16.msrb.mxu3 %v13163_v4  ;;  %v13120_v30 = vld [vmem:[#allocation9 + $0x6b8] sm:$0xf0]  ;;  %v13246_v4 = vld [vmem:[#allocation9 + $0x7a8] sm:$0xf]  ;;  %v13326_v21 = vld [vmem:[#allocation12 + $0x50] sm:$0xf] }
 0x470   :  { %8258 = vmatpush.bf16.msrb.mxu0 %v12803_v17  ;;  %8271 = vmatpush.bf16.msrb.mxu1 %v12947_v8  ;;  %v14551_v17 = vld [vmem:[#allocation9 + $0x374] sm:$0xf0]  ;;  %v14505_v8 = vld [vmem:[#allocation9 + $0x20c] sm:$0xf] }
 0x471   :  { %8176 = vmatmul.bf16.vlgmr.msrb.gmra.mxu2 %v15796_v39  ;;  %8078 = vmatmul.bf16.vlgmr.msrb.gmra.mxu3 %v15811_v63  ;;  %v12531_v50 = vor.u32 %v14505_v8, %v12528_v0  ;;  %v14705_v8 = vld [vmem:[#allocation12 + $0x44] sm:$0xf0] }
 0x472   :  { %8224 = vmatpush.bf16.msra.mxu2 %v12643_v52  ;;  %8126 = vmatpush.bf16.msra.mxu3 %v12767_v51  ;;  %v14687_v52 = vld [vmem:[#allocation9 + $0x7b4] sm:$0xf0]  ;;  %v14565_v0 = vld [vmem:[#allocation9 + $0x3ec] sm:$0xf]  ;;  %v13319_v20 = vor.u32 %v14705_v8, %v13318_v16  ;;  %v14723_v16 = vld [vmem:[#allocation12 + $0xd4] sm:$0xf0] }
 0x473   :  { %v13247_v51 = vor.u32 %v14687_v52, %v13246_v4  ;;  %v12771_v36 = vor.u32 %v14565_v0, %v12768_v28  ;;  %v14553_v4 = vld [vmem:[#allocation9 + $0x38c] sm:$0xf]  ;;  %v12720_v52 = vld [vmem:[#allocation9 + $0x398] sm:$0xf0]  ;;  %v14704_v28 = vld [vmem:[#allocation12 + $0x44] sm:$0xf] }
 0x474   :  { %8259 = vmatpush.bf16.msrb.mxu0 %v12787_v62  ;;  %8272 = vmatpush.bf16.msrb.mxu1 %v12931_v56  ;;  %v12547_v62 = vor.u32 %v14509_v11, %v12544_v22  ;;  %v14657_v56 = vld [vmem:[#allocation9 + $0x6cc] sm:$0xf]  ;;  %v13059_v11 = vor.u32 %v14637_v61, %v13056_v7  ;;  %v13280_v8 = vld [vmem:[#allocation9 + $0x7f8] sm:$0xf0] }
 0x475   :  { %v13139_v13 = vor.u32 %v14657_v56, %v13136_v35  ;;  %v14725_v61 = vld [vmem:[#allocation12 + $0xe4] sm:$0xf0] }
 0x476   :  { %8225 = vmatpush.bf16.msra.mxu2 %v12627_v55  ;;  %8127 = vmatpush.bf16.msra.mxu3 %v12751_v5  ;;  %v13107_v55 = vor.u32 %v14649_v3, %v13104_v24  ;;  %v13231_v5 = vor.u32 %v14683_v44, %v13230_v60  ;;  %v12723_v24 = vor.u32 %v14553_v4, %v12720_v52  ;;  %v14549_v60 = vld [vmem:[#allocation9 + $0x36c] sm:$0xf]  ;;  %v15825_v44 = vpop.f32.mrf.mxu0 }
 0x477   :  { %8260 = vmatmul.bf16.vlgmr.msrb.gmra.mxu0 %v15756_v15  ;;  %v14525_v15 = vld [vmem:[#allocation9 + $0x2ac] sm:$0xf] }
 0x478   :  { %8273 = vmatpush.bf16.msrb.mxu1 %v12915_v54  ;;  %v12611_v31 = vor.u32 %v14525_v15, %v12608_v27  ;;  %v13123_v54 = vor.u32 %v14653_v14, %v13120_v30  ;;  %v13214_v15 = vld [vmem:[#allocation9 + $0x768] sm:$0xf]  ;;  %v14645_v27 = vld [vmem:[#allocation9 + $0x66c] sm:$0xf]  ;;  %v12739_v30 = vor.u32 %v14557_v32, %v12736_v48  ;;  %v13264_v32 = vld [vmem:[#allocation9 + $0x7d8] sm:$0xf0] }
 0x479   :  { %v13091_v26 = vor.u32 %v14645_v27, %v13088_v53  ;;  %v14710_v53 = vld [vmem:[#allocation12 + $0x74] sm:$0xf] }
 0x47a   :  { %8226 = vmatpush.bf16.msra.mxu2 %v12611_v31  ;;  %8128 = vmatpush.bf16.msra.mxu3 %v12735_v59  ;;  %v14711_v31 = vld [vmem:[#allocation12 + $0x74] sm:$0xf0] }
 0x47b   :  { %8274 = vmatmul.bf16.vlgmr.msrb.gmra.mxu1 %v15784_v23  ;;  %v12703_v23 = vor.u32 %v14551_v17, %v12702_v18  ;;  %v13343_v59 = vor.u32 %v14711_v31, %v13342_v19  ;;  %v13075_v18 = vor.u32 %v14641_v43, %v13072_v1  ;;  %v13335_v17 = vor.u32 %v14709_v38, %v13334_v49  ;;  %v13406_v43 = vld [vmem:[#allocation12 + $0xf0] sm:$0xf]  ;;  %v14727_v1 = vld [vmem:[#allocation12 + $0xf4] sm:$0xf0]  ;;  %v13336_v49 = vld [vmem:[#allocation12 + $0x68] sm:$0xf0] }
 0x47d   :  { %8710 = vmatpush.bf16.msra.mxu0 %v13343_v59  ;;  %v14545_v59 = vld [vmem:[#allocation9 + $0x34c] sm:$0xf] }
 0x47e   :  { %8227 = vmatpush.bf16.msra.mxu2 %v12595_v42  ;;  %8129 = vmatpush.bf16.msra.mxu3 %v12719_v46  ;;  %v13198_v42 = vld [vmem:[#allocation9 + $0x748] sm:$0xf]  ;;  %v14675_v46 = vld [vmem:[#allocation9 + $0x754] sm:$0xf0] }
 0x481   :  { %8711 = vmatpush.bf16.msra.mxu0 %v13335_v17  ;;  %v14541_v17 = vld [vmem:[#allocation9 + $0x32c] sm:$0xf] }
 0x482   :  { %8228 = vmatpush.bf16.msra.mxu2 %v12579_v41  ;;  %8130 = vmatpush.bf16.msra.mxu3 %v12703_v23  ;;  %v13199_v41 = vor.u32 %v14675_v46, %v13198_v42  ;;  %v13182_v23 = vld [vmem:[#allocation9 + $0x728] sm:$0xf]  ;;  %v13407_v42 = vor.u32 %v14727_v1, %v13406_v43  ;;  %v14681_v43 = vld [vmem:[#allocation9 + $0x78c] sm:$0xf] }
 0x483   :  { %v13183_v22 = vor.u32 %v14671_v6, %v13182_v23  ;;  %v14708_v46 = vld [vmem:[#allocation12 + $0x64] sm:$0xf]  ;;  %v13398_v23 = vld [vmem:[#allocation12 + $0xe0] sm:$0xf]  ;;  %v14706_v6 = vld [vmem:[#allocation12 + $0x54] sm:$0xf] }
 0x484   :  { %v13339_v38 = vor.u32 %v14708_v46, %v13336_v49  ;;  %8724 = vmatpush.bf16.msra.mxu1 %v13407_v42  ;;  %v13399_v7 = vor.u32 %v14725_v61, %v13398_v23  ;;  %v13232_v46 = vld [vmem:[#allocation9 + $0x798] sm:$0xf0]  ;;  %v14698_v49 = vld [vmem:[#allocation12 + $0x14] sm:$0xf] }
 0x485   :  { %v13235_v61 = vor.u32 %v14681_v43, %v13232_v46 }
 0x486   :  { %8229 = vmatpush.bf16.msra.mxu2 %v12563_v58  ;;  %8131 = vmatpush.bf16.msra.mxu3 %v12687_v2  ;;  %v14707_v58 = vld [vmem:[#allocation12 + $0x54] sm:$0xf0] }
 0x487   :  { %v13327_v2 = vor.u32 %v14707_v58, %v13326_v21  ;;  %v13328_v21 = vld [vmem:[#allocation12 + $0x58] sm:$0xf0]  ;;  %v7871_v58 = vpop.f32.mrf.mxu0 }
 0x488   :  { %8725 = vmatpush.bf16.msra.mxu1 %v13399_v7  ;;  %v14677_v7 = vld [vmem:[#allocation9 + $0x76c] sm:$0xf] }
 0x489   :  { %8712 = vmatpush.bf16.msra.mxu0 %v13327_v2 }
 0x48a   :  { %8230 = vmatpush.bf16.msra.mxu2 %v12547_v62  ;;  %8132 = vmatpush.bf16.msra.mxu3 %v12671_v40  ;;  %v13040_v62 = vld [vmem:[#allocation9 + $0x618] sm:$0xf0]  ;;  %v14667_v40 = vld [vmem:[#allocation9 + $0x714] sm:$0xf0] }
 0x48b   :  { %v13043_v29 = vor.u32 %v14633_v45, %v13040_v62  ;;  %v13167_v33 = vor.u32 %v14667_v40, %v13166_v9  ;;  %v14537_v9 = vld [vmem:[#allocation9 + $0x30c] sm:$0xf]  ;;  %v12656_v45 = vld [vmem:[#allocation9 + $0x318] sm:$0xf0]  ;;  %v13390_v40 = vld [vmem:[#allocation12 + $0xd0] sm:$0xf] }
 0x48c   :  { %v14693_v62 = vld [vmem:[#allocation9 + $0x7ec] sm:$0xf]  ;;  %v13391_v0 = vor.u32 %v14723_v16, %v13390_v40 }
 0x48d   :  { %8713 = vmatpush.bf16.msra.mxu0 %v13319_v20  ;;  %v13320_v20 = vld [vmem:[#allocation12 + $0x48] sm:$0xf0]  ;;  %v14673_v16 = vld [vmem:[#allocation9 + $0x74c] sm:$0xf] }
 0x48e   :  { %8231 = vmatpush.bf16.msra.mxu2 %v12531_v50  ;;  %8133 = vmatpush.bf16.msra.mxu3 %v12655_v10  ;;  %v14561_v50 = vld [vmem:[#allocation9 + $0x3cc] sm:$0xf]  ;;  %v12752_v10 = vld [vmem:[#allocation9 + $0x3d8] sm:$0xf0] }
 0x48f   :  { %v12755_v35 = vor.u32 %v14561_v50, %v12752_v10  ;;  %v12659_v50 = vor.u32 %v14537_v9, %v12656_v45  ;;  %8726 = vmatpush.bf16.msra.mxu1 %v13391_v0  ;;  %v7911_v10 = vpop.f32.mrf.mxu3  ;;  %v14696_v9 = vld [vmem:[#allocation12 + $0x4] sm:$0xf]  ;;  %v13288_v45 = vld [vmem:[#allocation12 + $0x8] sm:$0xf0]  ;;  %v14713_v0 = vld [vmem:[#allocation12 + $0x84] sm:$0xf0] }
 0x491   :  { %8232 = vmatmul.bf16.vlgmr.msra.gmra.mxu2 %v15762_v47  ;;  %8134 = vmatmul.bf16.vlgmr.msra.gmra.mxu3 %v15782_v57  ;;  %v14679_v47 = vld [vmem:[#allocation9 + $0x774] sm:$0xf0] }
 0x492   :  { %8280 = vmatpush.bf16.msrb.mxu2 %v13155_v34  ;;  %8182 = vmatpush.bf16.msrb.mxu3 %v13279_v37  ;;  %v13215_v25 = vor.u32 %v14679_v47, %v13214_v15  ;;  %v13310_v34 = vld [vmem:[#allocation12 + $0x30] sm:$0xf]  ;;  %v14703_v37 = vld [vmem:[#allocation12 + $0x34] sm:$0xf0]  ;;  %v14697_v15 = vld [vmem:[#allocation12 + $0x4] sm:$0xf0] }
 0x493   :  { %v13311_v56 = vor.u32 %v14703_v37, %v13310_v34  ;;  %v13344_v47 = vld [vmem:[#allocation12 + $0x78] sm:$0xf0]  ;;  %v13283_v34 = vor.u32 %v14693_v62, %v13280_v8  ;;  %v14689_v37 = vld [vmem:[#allocation9 + $0x7cc] sm:$0xf]  ;;  %v13291_v62 = vor.u32 %v14696_v9, %v13288_v45  ;;  %v13350_v8 = vld [vmem:[#allocation12 + $0x80] sm:$0xf] }
 0x494   :  { %v13347_v19 = vor.u32 %v14710_v53, %v13344_v47 }
 0x495   :  { %8714 = vmatpush.bf16.msra.mxu0 %v13311_v56  ;;  %v13382_v56 = vld [vmem:[#allocation12 + $0xc0] sm:$0xf] }
 0x496   :  { %8281 = vmatpush.bf16.msrb.mxu2 %v13139_v13  ;;  %8183 = vmatpush.bf16.msrb.mxu3 %v13263_v12  ;;  %v13302_v13 = vld [vmem:[#allocation12 + $0x20] sm:$0xf]  ;;  %v14701_v12 = vld [vmem:[#allocation12 + $0x24] sm:$0xf0] }
 0x497   :  { %v13303_v14 = vor.u32 %v14701_v12, %v13302_v13  ;;  %v14702_v13 = vld [vmem:[#allocation12 + $0x34] sm:$0xf]  ;;  %v13312_v12 = vld [vmem:[#allocation12 + $0x38] sm:$0xf0] }
 0x498   :  { %v13315_v4 = vor.u32 %v14702_v13, %v13312_v12  ;;  %v13184_v13 = vld [vmem:[#allocation9 + $0x738] sm:$0xf0]  ;;  %v14724_v12 = vld [vmem:[#allocation12 + $0xe4] sm:$0xf] }
 0x499   :  { %8715 = vmatpush.bf16.msra.mxu0 %v13303_v14  ;;  %v7925_v14 = vpop.f32.mrf.mxu0 }
 0x49a   :  { %8282 = vmatpush.bf16.msrb.mxu2 %v13123_v54  ;;  %8184 = vmatpush.bf16.msrb.mxu3 %v13247_v51  ;;  %v13294_v54 = vld [vmem:[#allocation12 + $0x10] sm:$0xf]  ;;  %v14699_v51 = vld [vmem:[#allocation12 + $0x14] sm:$0xf0] }
 0x49b   :  { %v13295_v3 = vor.u32 %v14699_v51, %v13294_v54  ;;  %v14685_v54 = vld [vmem:[#allocation9 + $0x7ac] sm:$0xf]  ;;  %v13267_v51 = vor.u32 %v14689_v37, %v13264_v32 }
 0x49c   :  { %v14669_v32 = vld [vmem:[#allocation9 + $0x72c] sm:$0xf] }
 0x49d   :  { %8716 = vmatpush.bf16.msra.mxu0 %v13295_v3  ;;  %v13248_v3 = vld [vmem:[#allocation9 + $0x7b8] sm:$0xf0] }
 0x49e   :  { %8283 = vmatpush.bf16.msrb.mxu2 %v13107_v55  ;;  %8185 = vmatpush.bf16.msrb.mxu3 %v13231_v5  ;;  %v12704_v55 = vld [vmem:[#allocation9 + $0x378] sm:$0xf0]  ;;  %v13286_v5 = vld [vmem:[#allocation12] sm:$0xf] }
 0x49f   :  { %v13287_v27 = vor.u32 %v14697_v15, %v13286_v5  ;;  %v12707_v31 = vor.u32 %v14549_v60, %v12704_v55  ;;  %v14719_v60 = vld [vmem:[#allocation12 + $0xb4] sm:$0xf0]  ;;  %v14700_v5 = vld [vmem:[#allocation12 + $0x24] sm:$0xf]  ;;  %v13304_v15 = vld [vmem:[#allocation12 + $0x28] sm:$0xf0] }
 0x4a0   :  { %v13307_v47 = vor.u32 %v14700_v5, %v13304_v15  ;;  %v13168_v5 = vld [vmem:[#allocation9 + $0x718] sm:$0xf0]  ;;  %v14722_v15 = vld [vmem:[#allocation12 + $0xd4] sm:$0xf] }
 0x4a1   :  { %8717 = vmatpush.bf16.msra.mxu0 %v13287_v27  ;;  %v13366_v27 = vld [vmem:[#allocation12 + $0xa0] sm:$0xf] }
 0x4a2   :  { %8284 = vmatpush.bf16.msrb.mxu2 %v13091_v26  ;;  %8186 = vmatpush.bf16.msrb.mxu3 %v13215_v25  ;;  %v15829_v26 = vpop.f32.mrf.mxu2  ;;  %v12688_v25 = vld [vmem:[#allocation9 + $0x358] sm:$0xf0] }
 0x4a5   :  { %8766 = vmatpush.bf16.msrb.mxu0 %v13347_v19  ;;  %v14717_v19 = vld [vmem:[#allocation12 + $0xa4] sm:$0xf0] }
 0x4a6   :  { %8285 = vmatpush.bf16.msrb.mxu2 %v13075_v18  ;;  %8187 = vmatpush.bf16.msrb.mxu3 %v13199_v41  ;;  %v12691_v18 = vor.u32 %v14545_v59, %v12688_v25  ;;  %v12672_v41 = vld [vmem:[#allocation9 + $0x338] sm:$0xf0]  ;;  %v13367_v59 = vor.u32 %v14717_v19, %v13366_v27  ;;  %v13251_v25 = vor.u32 %v14685_v54, %v13248_v3  ;;  %v13392_v27 = vld [vmem:[#allocation12 + $0xd8] sm:$0xf0] }
 0x4a7   :  { %v13187_v3 = vor.u32 %v14669_v32, %v13184_v13  ;;  %v14741_v32 = vld [vmem:[#allocation12 + $0x164] sm:$0xf0] }
 0x4a9   :  { %8767 = vmatpush.bf16.msrb.mxu0 %v13339_v38  ;;  %v13296_v38 = vld [vmem:[#allocation12 + $0x18] sm:$0xf0] }
 0x4aa   :  { %8286 = vmatpush.bf16.msrb.mxu2 %v13059_v11  ;;  %8188 = vmatpush.bf16.msrb.mxu3 %v13183_v22  ;;  %v13331_v11 = vor.u32 %v14706_v6, %v13328_v21  ;;  %v12675_v22 = vor.u32 %v14541_v17, %v12672_v41  ;;  %v13299_v17 = vor.u32 %v14698_v49, %v13296_v38  ;;  %v13358_v6 = vld [vmem:[#allocation12 + $0x90] sm:$0xf]  ;;  %v14715_v21 = vld [vmem:[#allocation12 + $0x94] sm:$0xf0] }
 0x4ad   :  { %8768 = vmatpush.bf16.msrb.mxu0 %v13331_v11  ;;  %v13216_v11 = vld [vmem:[#allocation9 + $0x778] sm:$0xf0] }
 0x4ae   :  { %8287 = vmatpush.bf16.msrb.mxu2 %v13043_v29  ;;  %8189 = vmatpush.bf16.msrb.mxu3 %v13167_v33  ;;  %v7899_v29 = vpop.f32.mrf.mxu2  ;;  %v13323_v33 = vor.u32 %v14704_v28, %v13320_v20  ;;  %v13200_v20 = vld [vmem:[#allocation9 + $0x758] sm:$0xf0] }
 0x4b1   :  { %8288 = vmatmul.bf16.vlgmr.msrb.gmra.mxu2 %v15796_v39  ;;  %8190 = vmatmul.bf16.vlgmr.msrb.gmra.mxu3 %v15811_v63  ;;  %v15827_v39 = vpop.f32.mrf.mxu1 }
 0x4b2   :  { %8238 = vmatpush.bf16.msra.mxu3 %v12771_v36  ;;  %v15833_v36 = vld [vmem:[#allocation10] sm:$0xf]  ;;  %8769 = vmatpush.bf16.msrb.mxu0 %v13323_v33  ;;  %v13351_v33 = vor.u32 %v14713_v0, %v13350_v8 }
 0x4b3   :  { %v6572_v52 = vperm.slane %v15833_v36, 0  ;;  %v6573_v38 = vperm.slane %v15833_v36, 1 }
 0x4b5   :  { %v7872_v42 = vadd.f32 %v7871_v58, %v6572_v52 }
 0x4b6   :  { %8239 = vmatpush.bf16.msra.mxu3 %v12755_v35  ;;  %v14721_v35 = vld [vmem:[#allocation12 + $0xc4] sm:$0xf0]  ;;  %8770 = vmatpush.bf16.msrb.mxu0 %v13315_v4  ;;  %v15838_v53 = vpop.f32.mrf.mxu2  ;;  %v13400_v4 = vld [vmem:[#allocation12 + $0xe8] sm:$0xf0] }
 0x4b7   :  { %v13383_v48 = vor.u32 %v14721_v35, %v13382_v56  ;;  %v13203_v35 = vor.u32 %v14673_v16, %v13200_v20  ;;  %v14712_v20 = vld [vmem:[#allocation12 + $0x84] sm:$0xf] }
 0x4b9   :  { %v15831_v2 = vpop.f32.mrf.mxu1  ;;  %8727 = vmatpush.bf16.msra.mxu1 %v13383_v48 }
 0x4ba   :  { %8240 = vmatpush.bf16.msra.mxu3 %v12739_v30  ;;  %8771 = vmatpush.bf16.msrb.mxu0 %v13307_v47 }
 0x4be   :  { %8241 = vmatpush.bf16.msra.mxu3 %v12723_v24  ;;  %v13374_v24 = vld [vmem:[#allocation12 + $0xb0] sm:$0xf]  ;;  %8772 = vmatpush.bf16.msrb.mxu0 %v13299_v17  ;;  %v14718_v17 = vld [vmem:[#allocation12 + $0xb4] sm:$0xf] }
 0x4bf   :  { %v13375_v55 = vor.u32 %v14719_v60, %v13374_v24  ;;  %v14665_v24 = vld [vmem:[#allocation9 + $0x70c] sm:$0xf] }
 0x4c1   :  { %v15835_v30 = vpop.f32.mrf.mxu1  ;;  %8728 = vmatpush.bf16.msra.mxu1 %v13375_v55 }
 0x4c2   :  { %8242 = vmatpush.bf16.msra.mxu3 %v12707_v31  ;;  %v7870_v31 = vadd.f32 %v15825_v44, %v6572_v52  ;;  %v7927_v44 = vpop.f32.mrf.mxu0  ;;  %8773 = vmatpush.bf16.msrb.mxu0 %v13291_v62 }
 0x4c4   :  { %v7884_v1 = vadd.f32 %v15827_v39, %v7870_v31 }
 0x4c5   :  { %8729 = vmatpush.bf16.msra.mxu1 %v13367_v59  ;;  %v13171_v59 = vor.u32 %v14665_v24, %v13168_v5  ;;  %v13446_v5 = vld [vmem:[#allocation12 + $0x140] sm:$0xf] }
 0x4c6   :  { %8243 = vmatpush.bf16.msra.mxu3 %v12691_v18  ;;  %v7913_v18 = vpop.f32.mrf.mxu3  ;;  %v7898_v41 = vadd.f32 %v15829_v26, %v7884_v1  ;;  %v13219_v26 = vor.u32 %v14677_v7, %v13216_v11  ;;  %v13384_v1 = vld [vmem:[#allocation12 + $0xc8] sm:$0xf0] }
 0x4c8   :  { %v7912_v58 = vadd.f32 %v7911_v10, %v7898_v41  ;;  %v14716_v41 = vld [vmem:[#allocation12 + $0xa4] sm:$0xf] }
 0x4c9   :  { %v7941_v23 = vpop.f32.mrf.mxu1 }
 0x4ca   :  { %8244 = vmatpush.bf16.msra.mxu3 %v12675_v22  ;;  %v13359_v22 = vor.u32 %v14715_v21, %v13358_v6  ;;  %v7926_v28 = vadd.f32 %v7925_v14, %v7912_v58  ;;  %v7981_v56 = vpop.f32.mrf.mxu0  ;;  %v13403_v14 = vor.u32 %v14724_v12, %v13400_v4  ;;  %v13360_v58 = vld [vmem:[#allocation12 + $0x98] sm:$0xf0] }
 0x4cb   :  { %v7982_v21 = vadd.f32 %v7981_v56, %v6573_v38 }
 0x4cc   :  { %8730 = vmatpush.bf16.msra.mxu1 %v13359_v22  ;;  %v7940_v48 = vadd.f32 %v15835_v30, %v7926_v28  ;;  %v13395_v30 = vor.u32 %v14722_v15, %v13392_v27  ;;  %v14743_v28 = vld [vmem:[#allocation12 + $0x174] sm:$0xf0]  ;;  %v14737_v15 = vld [vmem:[#allocation12 + $0x144] sm:$0xf0] }
 0x4ce   :  { %8245 = vmatpush.bf16.msra.mxu3 %v12659_v50  ;;  %v14726_v50 = vld [vmem:[#allocation12 + $0xf4] sm:$0xf]  ;;  %v7954_v54 = vadd.f32 %v15838_v53, %v7940_v48  ;;  %v14720_v53 = vld [vmem:[#allocation12 + $0xc4] sm:$0xf] }
 0x4cf   :  { %v13387_v46 = vor.u32 %v14720_v53, %v13384_v1  ;;  %v13430_v53 = vld [vmem:[#allocation12 + $0x120] sm:$0xf]  ;;  %v14733_v1 = vld [vmem:[#allocation12 + $0x124] sm:$0xf0] }
 0x4d0   :  { %8731 = vmatpush.bf16.msra.mxu1 %v13351_v33 }
 0x4d1   :  { %8246 = vmatmul.bf16.vlgmr.msra.gmra.mxu3 %v15782_v57  ;;  %v7886_v57 = vadd.f32 %v15831_v2, %v7872_v42  ;;  %v7955_v2 = vpop.f32.mrf.mxu2  ;;  %v7995_v52 = vpop.f32.mrf.mxu1 }
 0x4d2   :  { %8294 = vmatpush.bf16.msrb.mxu3 %v13283_v34  ;;  %v7983_v42 = vpop.f32.mrf.mxu0  ;;  %v7996_v9 = vadd.f32 %v7995_v52, %v7982_v21  ;;  %v13464_v21 = vld [vmem:[#allocation12 + $0x168] sm:$0xf0] }
 0x4d3   :  { %v7900_v39 = vadd.f32 %v7899_v29, %v7886_v57  ;;  %v13408_v29 = vld [vmem:[#allocation12 + $0xf8] sm:$0xf0]  ;;  %v7984_v22 = vadd.f32 %v7983_v42, %v6573_v38  ;;  %v14731_v38 = vld [vmem:[#allocation12 + $0x114] sm:$0xf0] }
 0x4d4   :  { %v7967_v10 = vpop.f32.mrf.mxu3  ;;  %v13411_v34 = vor.u32 %v14726_v50, %v13408_v29  ;;  %v13376_v57 = vld [vmem:[#allocation12 + $0xb8] sm:$0xf0]  ;;  %v13352_v29 = vld [vmem:[#allocation12 + $0x88] sm:$0xf0] }
 0x4d5   :  { %v7914_v40 = vadd.f32 %v7913_v18, %v7900_v39  ;;  %v7968_v55 = vadd.f32 %v7967_v10, %v7954_v54  ;;  %v14714_v39 = vld [vmem:[#allocation12 + $0x94] sm:$0xf]  ;;  %v14739_v54 = vld [vmem:[#allocation12 + $0x154] sm:$0xf0] }
 0x4d6   :  { %8295 = vmatpush.bf16.msrb.mxu3 %v13267_v51  ;;  %8780 = vmatpush.bf16.msrb.mxu1 %v13411_v34  ;;  %v13363_v45 = vor.u32 %v14714_v39, %v13360_v58  ;;  %v13355_v34 = vor.u32 %v14712_v20, %v13352_v29  ;;  %v14732_v20 = vld [vmem:[#allocation12 + $0x124] sm:$0xf] }
 0x4d7   :  { %v7928_v37 = vadd.f32 %v7927_v44, %v7914_v40 }
 0x4d9   :  { %v7942_v51 = vadd.f32 %v7941_v23, %v7928_v37  ;;  %v8009_v47 = vpop.f32.mrf.mxu2  ;;  %v7997_v18 = vpop.f32.mrf.mxu1  ;;  %v13379_v23 = vor.u32 %v14718_v17, %v13376_v57  ;;  %v13414_v17 = vld [vmem:[#allocation12 + $0x100] sm:$0xf]  ;;  %v14729_v57 = vld [vmem:[#allocation12 + $0x104] sm:$0xf0] }
 0x4da   :  { %8296 = vmatpush.bf16.msrb.mxu3 %v13251_v25  ;;  %8781 = vmatpush.bf16.msrb.mxu1 %v13403_v14  ;;  %v8308_v25 = vmax.f32 %v7968_v55, 0.0  ;;  %v8037_v11 = vpop.f32.mrf.mxu0  ;;  %v7998_v62 = vadd.f32 %v7997_v18, %v7984_v22  ;;  %v8010_v40 = vadd.f32 %v8009_v47, %v7996_v9  ;;  %v13454_v14 = vld [vmem:[#allocation12 + $0x150] sm:$0xf]  ;;  %v13447_v47 = vor.u32 %v14737_v15, %v13446_v5  ;;  %v13456_v22 = vld [vmem:[#allocation12 + $0x158] sm:$0xf0] }
 0x4db   :  { %v7956_v60 = vadd.f32 %v7955_v2, %v7942_v51  ;;  %v13455_v51 = vor.u32 %v14739_v54, %v13454_v14  ;;  %v13534_v5 = vld [vmem:[#allocation12 + $0x1f0] sm:$0xf]  ;;  %v14759_v15 = vld [vmem:[#allocation12 + $0x1f4] sm:$0xf0] }
 0x4dc   :  { %v7969_v19 = vpop.f32.mrf.mxu3 }
 0x4dd   :  { %v7970_v31 = vadd.f32 %v7969_v19, %v7956_v60  ;;  %v13438_v19 = vld [vmem:[#allocation12 + $0x130] sm:$0xf] }
 0x4de   :  { %8297 = vmatpush.bf16.msrb.mxu3 %v13235_v61  ;;  %8782 = vmatpush.bf16.msrb.mxu1 %v13395_v30  ;;  %v13368_v61 = vld [vmem:[#allocation12 + $0xa8] sm:$0xf0]  ;;  %v14735_v30 = vld [vmem:[#allocation12 + $0x134] sm:$0xf0] }
 0x4df   :  { %v8312_v43 = vmax.f32 %v7970_v31, 0.0  ;;  %v13371_v6 = vor.u32 %v14716_v41, %v13368_v61  ;;  %v13415_v41 = vor.u32 %v14729_v57, %v13414_v17 }
 0x4e1   :  { %v8316_v49 = vpack.c.bf16 %v8312_v43, %v8308_v25  ;;  %v8011_v7 = vpop.f32.mrf.mxu2  ;;  %v8051_v2 = vpop.f32.mrf.mxu1 }
 0x4e2   :  { %8298 = vmatpush.bf16.msrb.mxu3 %v13219_v26  ;;  %8783 = vmatpush.bf16.msrb.mxu1 %v13387_v46  ;;  %v8012_v16 = vadd.f32 %v8011_v7, %v7998_v62  ;;  %v8039_v37 = vpop.f32.mrf.mxu0  ;;  %v13431_v46 = vor.u32 %v14733_v1, %v13430_v53  ;;  %v14736_v62 = vld [vmem:[#allocation12 + $0x144] sm:$0xf] }
 0x4e3   :  { %8718 = vmatmul.bf16.vlgmr.msra.gmra.mxu0 %v8316_v49 }
 0x4e4   :  { %v8023_v44 = vpop.f32.mrf.mxu3 }
 0x4e5   :  { %v8024_v8 = vadd.f32 %v8023_v44, %v8010_v40  ;;  %v14742_v44 = vld [vmem:[#allocation12 + $0x174] sm:$0xf]  ;;  %v13448_v40 = vld [vmem:[#allocation12 + $0x148] sm:$0xf0] }
 0x4e6   :  { %8299 = vmatpush.bf16.msrb.mxu3 %v13203_v35  ;;  %8784 = vmatpush.bf16.msrb.mxu1 %v13379_v23  ;;  %v13462_v35 = vld [vmem:[#allocation12 + $0x160] sm:$0xf]  ;;  %v13472_v23 = vld [vmem:[#allocation12 + $0x178] sm:$0xf0] }
 0x4e7   :  { %v8038_v10 = vadd.f32 %v8037_v11, %v8024_v8  ;;  %v13463_v13 = vor.u32 %v14741_v32, %v13462_v35  ;;  %v13475_v61 = vor.u32 %v14742_v44, %v13472_v23  ;;  %v14738_v11 = vld [vmem:[#allocation12 + $0x154] sm:$0xf]  ;;  %v13510_v23 = vld [vmem:[#allocation12 + $0x1c0] sm:$0xf] }
 0x4e8   :  { %v13459_v9 = vor.u32 %v14738_v11, %v13456_v22  ;;  %v14734_v8 = vld [vmem:[#allocation12 + $0x134] sm:$0xf] }
 0x4e9   :  { %v8065_v33 = vpop.f32.mrf.mxu2  ;;  %v8052_v12 = vadd.f32 %v8051_v2, %v8038_v10  ;;  %v8053_v4 = vpop.f32.mrf.mxu1  ;;  %v13451_v2 = vor.u32 %v14736_v62, %v13448_v40  ;;  %v14730_v10 = vld [vmem:[#allocation12 + $0x114] sm:$0xf]  ;;  %v14749_v62 = vld [vmem:[#allocation12 + $0x1a4] sm:$0xf0] }
 0x4ea   :  { %8300 = vmatpush.bf16.msrb.mxu3 %v13187_v3  ;;  %8785 = vmatpush.bf16.msrb.mxu1 %v13371_v6  ;;  %v8093_v7 = vpop.f32.mrf.mxu0  ;;  %v14740_v6 = vld [vmem:[#allocation12 + $0x164] sm:$0xf] }
 0x4eb   :  { %v8066_v3 = vadd.f32 %v8065_v33, %v8052_v12  ;;  %v13467_v39 = vor.u32 %v14740_v6, %v13464_v21  ;;  %v13432_v33 = vld [vmem:[#allocation12 + $0x128] sm:$0xf0]  ;;  %v14728_v12 = vld [vmem:[#allocation12 + $0x104] sm:$0xf]  ;;  %v13502_v21 = vld [vmem:[#allocation12 + $0x1b0] sm:$0xf] }
 0x4ec   :  { %v8025_v26 = vpop.f32.mrf.mxu3  ;;  %v13435_v29 = vor.u32 %v14732_v20, %v13432_v33  ;;  %v14758_v20 = vld [vmem:[#allocation12 + $0x1f4] sm:$0xf]  ;;  %v13536_v33 = vld [vmem:[#allocation12 + $0x1f8] sm:$0xf0] }
 0x4ed   :  { %v8026_v0 = vadd.f32 %v8025_v26, %v8012_v16 }
 0x4ee   :  { %8301 = vmatpush.bf16.msrb.mxu3 %v13171_v59  ;;  %8786 = vmatpush.bf16.msrb.mxu1 %v13363_v45  ;;  %v13439_v59 = vor.u32 %v14735_v30, %v13438_v19 }
 0x4ef   :  { %v8040_v56 = vadd.f32 %v8039_v37, %v8026_v0  ;;  %v13440_v0 = vld [vmem:[#allocation12 + $0x138] sm:$0xf0] }
 0x4f1   :  { %8302 = vmatmul.bf16.vlgmr.msrb.gmra.mxu3 %v15811_v63  ;;  %v13470_v63 = vld [vmem:[#allocation12 + $0x170] sm:$0xf]  ;;  %v8054_v52 = vadd.f32 %v8053_v4, %v8040_v56  ;;  %v8067_v24 = vpop.f32.mrf.mxu2  ;;  %v8107_v58 = vpop.f32.mrf.mxu1  ;;  %v13416_v4 = vld [vmem:[#allocation12 + $0x108] sm:$0xf0] }
 0x4f2   :  { %v13471_v50 = vor.u32 %v14743_v28, %v13470_v63  ;;  %8787 = vmatpush.bf16.msrb.mxu1 %v13355_v34  ;;  %v8095_v26 = vpop.f32.mrf.mxu0  ;;  %v6574_v63 = vperm.slane %v15833_v36, 2  ;;  %v13443_v28 = vor.u32 %v14734_v8, %v13440_v0  ;;  %v13424_v34 = vld [vmem:[#allocation12 + $0x118] sm:$0xf0]  ;;  %v13478_v8 = vld [vmem:[#allocation12 + $0x180] sm:$0xf] }
 0x4f3   :  { %8774 = vmatmul.bf16.vlgmr.msrb.gmra.mxu0 %v8316_v49  ;;  %v8068_v55 = vadd.f32 %v8067_v24, %v8054_v52  ;;  %v13422_v49 = vld [vmem:[#allocation12 + $0x110] sm:$0xf] }
 0x4f4   :  { %8738 = vmatpush.bf16.msra.mxu2 %v13471_v50  ;;  %v8079_v48 = vpop.f32.mrf.mxu3  ;;  %v13423_v18 = vor.u32 %v14731_v38, %v13422_v49  ;;  %v8094_v37 = vadd.f32 %v8093_v7, %v6574_v63  ;;  %v8096_v32 = vadd.f32 %v8095_v26, %v6574_v63  ;;  %v13518_v49 = vld [vmem:[#allocation12 + $0x1d0] sm:$0xf]  ;;  %v14755_v38 = vld [vmem:[#allocation12 + $0x1d4] sm:$0xf0]  ;;  %v14745_v63 = vld [vmem:[#allocation12 + $0x184] sm:$0xf0] }
 0x4f5   :  { %v8080_v60 = vadd.f32 %v8079_v48, %v8066_v3  ;;  %v13486_v26 = vld [vmem:[#allocation12 + $0x190] sm:$0xf] }
 0x4f6   :  { %v8108_v48 = vadd.f32 %v8107_v58, %v8094_v37 }
 0x4f7   :  { %v8309_v25 = vmax.f32 %v8080_v60, 0.0  ;;  %v13419_v60 = vor.u32 %v14728_v12, %v13416_v4  ;;  %v14752_v12 = vld [vmem:[#allocation12 + $0x1c4] sm:$0xf]  ;;  %v13512_v4 = vld [vmem:[#allocation12 + $0x1c8] sm:$0xf0] }
 0x4f8   :  { %8739 = vmatpush.bf16.msra.mxu2 %v13463_v13  ;;  %v13427_v13 = vor.u32 %v14730_v10, %v13424_v34  ;;  %v14756_v10 = vld [vmem:[#allocation12 + $0x1e4] sm:$0xf]  ;;  %v13528_v34 = vld [vmem:[#allocation12 + $0x1e8] sm:$0xf0] }
 0x4f9   :  { %v8121_v45 = vpop.f32.mrf.mxu2  ;;  %v8109_v50 = vpop.f32.mrf.mxu1  ;;  %v13531_v37 = vor.u32 %v14756_v10, %v13528_v34  ;;  %v14761_v10 = vld [vmem:[#allocation15 + $0x8] sm:$0xff] }
 0x4fa   :  { %v8149_v56 = vpop.f32.mrf.mxu0  ;;  %v8110_v52 = vadd.f32 %v8109_v50, %v8096_v32  ;;  %v8122_v14 = vadd.f32 %v8121_v45, %v8108_v48  ;;  %v13494_v45 = vld [vmem:[#allocation12 + $0x1a0] sm:$0xf]  ;;  %v13539_v50 = vor.u32 %v14758_v20, %v13536_v33  ;;  %v13520_v32 = vld [vmem:[#allocation12 + $0x1d8] sm:$0xf0]  ;;  %v14773_v34 = vld [vmem:[#allocation15 + $0x68] sm:$0xff] }
 0x4fb   :  { %v14763_v20 = vld [vmem:[#allocation15 + $0x18] sm:$0xff] }
 0x4fc   :  { %8740 = vmatpush.bf16.msra.mxu2 %v13455_v51  ;;  %v8081_v27 = vpop.f32.mrf.mxu3  ;;  %v14775_v33 = vld [vmem:[#allocation15 + $0x78] sm:$0xff] }
 0x4fd   :  { %v8082_v31 = vadd.f32 %v8081_v27, %v8068_v55 }
 0x4ff   :  { %v8313_v43 = vmax.f32 %v8082_v31, 0.0 }
 0x500   :  { %8741 = vmatpush.bf16.msra.mxu2 %v13447_v47  ;;  %v13535_v47 = vor.u32 %v14759_v15, %v13534_v5  ;;  %v14748_v5 = vld [vmem:[#allocation12 + $0x1a4] sm:$0xf]  ;;  %v13496_v15 = vld [vmem:[#allocation12 + $0x1a8] sm:$0xf0] }
 0x501   :  { %v8317_v42 = vpack.c.bf16 %v8313_v43, %v8309_v25  ;;  %v8123_v35 = vpop.f32.mrf.mxu2  ;;  %v8163_v54 = vpop.f32.mrf.mxu1  ;;  %v14757_v25 = vld [vmem:[#allocation12 + $0x1e4] sm:$0xf0] }
 0x502   :  { %v8124_v3 = vadd.f32 %v8123_v35, %v8110_v52  ;;  %v8151_v30 = vpop.f32.mrf.mxu0  ;;  %8752 = vmatpush.bf16.msra.mxu3 %v13535_v47  ;;  %v14754_v35 = vld [vmem:[#allocation12 + $0x1d4] sm:$0xf]  ;;  %v13515_v52 = vor.u32 %v14752_v12, %v13512_v4  ;;  %v14769_v4 = vld [vmem:[#allocation15 + $0x48] sm:$0xff] }
 0x503   :  { %8732 = vmatmul.bf16.vlgmr.msra.gmra.mxu1 %v8317_v42  ;;  %v13523_v48 = vor.u32 %v14754_v35, %v13520_v32  ;;  %v14746_v47 = vld [vmem:[#allocation12 + $0x194] sm:$0xf]  ;;  %v14771_v35 = vld [vmem:[#allocation15 + $0x58] sm:$0xff] }
 0x504   :  { %8742 = vmatpush.bf16.msra.mxu2 %v13439_v59  ;;  %v13526_v59 = vld [vmem:[#allocation12 + $0x1e0] sm:$0xf]  ;;  %8974 = vmatpush.bf16.msra.mxu1 %v14775_v33 }
 0x505   :  { %v13527_v53 = vor.u32 %v14757_v25, %v13526_v59 }
 0x507   :  { %8753 = vmatpush.bf16.msra.mxu3 %v13527_v53 }
 0x508   :  { %8743 = vmatpush.bf16.msra.mxu2 %v13431_v46 }
 0x509   :  { %v8177_v27 = vpop.f32.mrf.mxu2 }
 0x50c   :  { %8744 = vmatpush.bf16.msra.mxu2 %v13423_v18  ;;  %v13519_v18 = vor.u32 %v14755_v38, %v13518_v49 }
 0x50e   :  { %8754 = vmatpush.bf16.msra.mxu3 %v13519_v18  ;;  %v14744_v18 = vld [vmem:[#allocation12 + $0x184] sm:$0xf] }
 0x510   :  { %8745 = vmatpush.bf16.msra.mxu2 %v13415_v41 }
 0x511   :  { %v8179_v57 = vpop.f32.mrf.mxu2 }
 0x513   :  { %8788 = vmatmul.bf16.vlgmr.msrb.gmra.mxu1 %v8317_v42  ;;  %v8165_v42 = vpop.f32.mrf.mxu1 }
 0x514   :  { %8794 = vmatpush.bf16.msrb.mxu2 %v13475_v61  ;;  %v8135_v16 = vpop.f32.mrf.mxu3  ;;  %v14753_v61 = vld [vmem:[#allocation12 + $0x1c4] sm:$0xf0] }
 0x515   :  { %v8136_v24 = vadd.f32 %v8135_v16, %v8122_v14  ;;  %v13511_v6 = vor.u32 %v14753_v61, %v13510_v23  ;;  %v14747_v16 = vld [vmem:[#allocation12 + $0x194] sm:$0xf0] }
 0x516   :  { %v13487_v0 = vor.u32 %v14747_v16, %v13486_v26 }
 0x517   :  { %v8150_v19 = vadd.f32 %v8149_v56, %v8136_v24  ;;  %8755 = vmatpush.bf16.msra.mxu3 %v13511_v6  ;;  %v6575_v24 = vperm.slane %v15833_v36, 3 }
 0x518   :  { %8795 = vmatpush.bf16.msrb.mxu2 %v13467_v39  ;;  %v14751_v39 = vld [vmem:[#allocation12 + $0x1b4] sm:$0xf0] }
 0x519   :  { %v8164_v1 = vadd.f32 %v8163_v54, %v8150_v19  ;;  %v13503_v11 = vor.u32 %v14751_v39, %v13502_v21  ;;  %v13488_v19 = vld [vmem:[#allocation12 + $0x198] sm:$0xf0] }
 0x51a   :  { %v13491_v53 = vor.u32 %v14746_v47, %v13488_v19 }
 0x51b   :  { %v8178_v17 = vadd.f32 %v8177_v27, %v8164_v1  ;;  %8756 = vmatpush.bf16.msra.mxu3 %v13503_v11  ;;  %v8219_v56 = vpop.f32.mrf.mxu1  ;;  %v13499_v27 = vor.u32 %v14748_v5, %v13496_v15 }
 0x51c   :  { %8796 = vmatpush.bf16.msrb.mxu2 %v13459_v9  ;;  %v8137_v51 = vpop.f32.mrf.mxu3 }
 0x51d   :  { %v8138_v55 = vadd.f32 %v8137_v51, %v8124_v3  ;;  %v14750_v51 = vld [vmem:[#allocation12 + $0x1b4] sm:$0xf]  ;;  %v13504_v3 = vld [vmem:[#allocation12 + $0x1b8] sm:$0xf0] }
 0x51f   :  { %v8152_v31 = vadd.f32 %v8151_v30, %v8138_v55 }
 0x520   :  { %8797 = vmatpush.bf16.msrb.mxu2 %v13451_v2  ;;  %v13495_v2 = vor.u32 %v14749_v62, %v13494_v45 }
 0x521   :  { %v8166_v46 = vadd.f32 %v8165_v42, %v8152_v31 }
 0x522   :  { %8757 = vmatpush.bf16.msra.mxu3 %v13495_v2 }
 0x523   :  { %v8180_v44 = vadd.f32 %v8179_v57, %v8166_v46  ;;  %v8221_v55 = vpop.f32.mrf.mxu1 }
 0x524   :  { %8798 = vmatpush.bf16.msrb.mxu2 %v13443_v28  ;;  %v13479_v28 = vor.u32 %v14745_v63, %v13478_v8  ;;  %v14767_v8 = vld [vmem:[#allocation15 + $0x38] sm:$0xff]  ;;  %v14765_v63 = vld [vmem:[#allocation15 + $0x28] sm:$0xff] }
 0x525   :  { %8960 = vmatpush.bf16.msra.mxu0 %v14767_v8  ;;  %v14776_v8 = vld [vmem:[#allocation18] sm:$0xff] }
 0x526   :  { %8758 = vmatpush.bf16.msra.mxu3 %v13487_v0  ;;  %v14766_v0 = vld [vmem:[#allocation15 + $0x30] sm:$0xff] }
 0x528   :  { %8799 = vmatpush.bf16.msrb.mxu2 %v13435_v29  ;;  %v8205_v29 = vpop.f32.mrf.mxu0 }
 0x529   :  { %v8206_v30 = vadd.f32 %v8205_v29, %v6575_v24  ;;  %8961 = vmatpush.bf16.msra.mxu0 %v14766_v0  ;;  %v14774_v29 = vld [vmem:[#allocation15 + $0x70] sm:$0xff]  ;;  %v14791_v0 = vld [vmem:[#allocation21 + $0x38] sm:$0xff] }
 0x52a   :  { %8759 = vmatpush.bf16.msra.mxu3 %v13479_v28  ;;  %v14764_v28 = vld [vmem:[#allocation15 + $0x20] sm:$0xff]  ;;  %8975 = vmatpush.bf16.msra.mxu1 %v14774_v29 }
 0x52b   :  { %v8275_v46 = vpop.f32.mrf.mxu1  ;;  %v14814_v29 = vld [vmem:[#allocation16] ss:$0 sm:$0xff] }
 0x52c   :  { %8800 = vmatpush.bf16.msrb.mxu2 %v13427_v13  ;;  %v8233_v13 = vpop.f32.mrf.mxu2 }
 0x52d   :  { %8962 = vmatpush.bf16.msra.mxu0 %v14765_v63  ;;  %v14790_v63 = vld [vmem:[#allocation21 + $0x30] sm:$0xff] }
 0x52e   :  { %8808 = vmatpush.bf16.msrb.mxu3 %v13539_v50  ;;  %v14762_v50 = vld [vmem:[#allocation15 + $0x10] sm:$0xff]  ;;  %8976 = vmatpush.bf16.msra.mxu1 %v14773_v34 }
 0x530   :  { %8801 = vmatpush.bf16.msrb.mxu2 %v13419_v60  ;;  %v8207_v14 = vpop.f32.mrf.mxu0  ;;  %v13507_v60 = vor.u32 %v14750_v51, %v13504_v3 }
 0x531   :  { %v8208_v25 = vadd.f32 %v8207_v14, %v6575_v24  ;;  %8963 = vmatpush.bf16.msra.mxu0 %v14764_v28  ;;  %v14768_v14 = vld [vmem:[#allocation15 + $0x40] sm:$0xff]  ;;  %v14789_v28 = vld [vmem:[#allocation21 + $0x28] sm:$0xff] }
 0x532   :  { %8809 = vmatpush.bf16.msrb.mxu3 %v13531_v37  ;;  %v14760_v37 = vld [vmem:[#allocation15] sm:$0xff] }
 0x533   :  { %v8222_v1 = vadd.f32 %v8221_v55, %v8208_v25  ;;  %v8277_v39 = vpop.f32.mrf.mxu1 }
 0x534   :  { %v8191_v43 = vpop.f32.mrf.mxu3  ;;  %v8235_v59 = vpop.f32.mrf.mxu2 }
 0x535   :  { %v8192_v41 = vadd.f32 %v8191_v43, %v8178_v17  ;;  %v8220_v43 = vadd.f32 %v8219_v56, %v8206_v30  ;;  %v8236_v36 = vadd.f32 %v8235_v59, %v8222_v1  ;;  %v13480_v17 = vld [vmem:[#allocation12 + $0x188] sm:$0xf0]  ;;  %8964 = vmatpush.bf16.msra.mxu0 %v14763_v20  ;;  %v14772_v56 = vld [vmem:[#allocation15 + $0x60] sm:$0xff] }
 0x536   :  { %8810 = vmatpush.bf16.msrb.mxu3 %v13523_v48  ;;  %v13483_v57 = vor.u32 %v14744_v18, %v13480_v17  ;;  %8977 = vmatpush.bf16.msra.mxu1 %v14772_v56  ;;  %v14770_v48 = vld [vmem:[#allocation15 + $0x50] sm:$0xff]  ;;  %v14788_v20 = vld [vmem:[#allocation21 + $0x20] sm:$0xff] }
 0x537   :  { %v8310_v22 = vmax.f32 %v8192_v41, 0.0  ;;  %v8234_v42 = vadd.f32 %v8233_v13, %v8220_v43 }
 0x538   :  { %v8261_v31 = vpop.f32.mrf.mxu0 }
 0x539   :  { %8965 = vmatpush.bf16.msra.mxu0 %v14762_v50 }
 0x53a   :  { %8811 = vmatpush.bf16.msrb.mxu3 %v13515_v52  ;;  %8978 = vmatpush.bf16.msra.mxu1 %v14771_v35  ;;  %v8384_v52 = vld [vmem:[#allocation13] sm:$0x3] }
 0x53b   :  { %v8386_v51 = vperm.slane %v8384_v52, 0 }
 0x53c   :  { %v8193_v7 = vpop.f32.mrf.mxu3 }
 0x53d   :  { %v8194_v58 = vadd.f32 %v8193_v7, %v8180_v44  ;;  %v8289_v44 = vpop.f32.mrf.mxu2  ;;  %8966 = vmatpush.bf16.msra.mxu0 %v14761_v10 }
 0x53e   :  { %8812 = vmatpush.bf16.msrb.mxu3 %v13507_v60  ;;  %8979 = vmatpush.bf16.msra.mxu1 %v14770_v48 }
 0x53f   :  { %v8314_v9 = vmax.f32 %v8194_v58, 0.0 }
 0x540   :  { %v8263_v61 = vpop.f32.mrf.mxu0 }
 0x541   :  { %v8318_v40 = vpack.c.bf16 %v8314_v9, %v8310_v22  ;;  %8967 = vmatpush.bf16.msra.mxu0 %v14760_v37 }
 0x542   :  { %8813 = vmatpush.bf16.msrb.mxu3 %v13499_v27  ;;  %8980 = vmatpush.bf16.msra.mxu1 %v14769_v4  ;;  %v14787_v4 = vld [vmem:[#allocation21 + $0x18] sm:$0xff] }
 0x543   :  { %8746 = vmatmul.bf16.vlgmr.msra.gmra.mxu2 %v8318_v40 }
 0x545   :  { %v8291_v22 = vpop.f32.mrf.mxu2 }
 0x546   :  { %8814 = vmatpush.bf16.msrb.mxu3 %v13491_v53  ;;  %8981 = vmatpush.bf16.msra.mxu1 %v14768_v14  ;;  %v14785_v14 = vld [vmem:[#allocation21 + $0x8] sm:$0xff] }
 0x54a   :  { %8815 = vmatpush.bf16.msrb.mxu3 %v13483_v57 }
 0x553   :  { %8802 = vmatmul.bf16.vlgmr.msrb.gmra.mxu2 %v8318_v40 }
 0x554   :  { %v8247_v54 = vpop.f32.mrf.mxu3 }
 0x555   :  { %v8248_v38 = vadd.f32 %v8247_v54, %v8234_v42 }
 0x557   :  { %v8262_v23 = vadd.f32 %v8261_v31, %v8248_v38 }
 0x559   :  { %v8276_v21 = vadd.f32 %v8275_v46, %v8262_v23  ;;  %v8387_v46 = vperm.slane %v8384_v52, 1  ;;  %v14786_v52 = vld [vmem:[#allocation21 + $0x10] sm:$0xff] }
 0x55b   :  { %v8290_v11 = vadd.f32 %v8289_v44, %v8276_v21 }
 0x55c   :  { %v8249_v49 = vpop.f32.mrf.mxu3 }
 0x55d   :  { %v8250_v41 = vadd.f32 %v8249_v49, %v8236_v36 }
 0x55f   :  { %v8264_v7 = vadd.f32 %v8263_v61, %v8250_v41 }
 0x560   :  { %v8719_v32 = vpop.f32.mrf.mxu0 }
 0x561   :  { %v8278_v58 = vadd.f32 %v8277_v39, %v8264_v7  ;;  %v8720_v55 = vadd.f32 %v8719_v32, %v8386_v51 }
 0x563   :  { %v8292_v45 = vadd.f32 %v8291_v22, %v8278_v58 }
 0x568   :  { %v8721_v54 = vpop.f32.mrf.mxu0 }
 0x569   :  { %v8722_v5 = vadd.f32 %v8721_v54, %v8386_v51  ;;  %v14784_v54 = vld [vmem:[#allocation21] sm:$0xff] }
 0x570   :  { %v8775_v19 = vpop.f32.mrf.mxu0 }
 0x571   :  { %v8776_v18 = vadd.f32 %v8775_v19, %v8387_v46 }
 0x574   :  { %v8303_v6 = vpop.f32.mrf.mxu3 }
 0x575   :  { %v8304_v9 = vadd.f32 %v8303_v6, %v8290_v11 }
 0x577   :  { %v8311_v2 = vmax.f32 %v8304_v9, 0.0  ;;  %v14783_v9 = vld [vmem:[#allocation18 + $0x38] sm:$0xff] }
 0x578   :  { %v8777_v36 = vpop.f32.mrf.mxu0  ;;  %9059 = vmatpush.bf16.msra.mxu2 %v14783_v9 }
 0x579   :  { %v8778_v57 = vadd.f32 %v8777_v36, %v8387_v46 }
 0x57c   :  { %v8305_v62 = vpop.f32.mrf.mxu3 }
 0x57d   :  { %v8306_v40 = vadd.f32 %v8305_v62, %v8292_v45  ;;  %v14782_v45 = vld [vmem:[#allocation18 + $0x30] sm:$0xff]  ;;  %v14781_v62 = vld [vmem:[#allocation18 + $0x28] sm:$0xff] }
 0x57e   :  { %9060 = vmatpush.bf16.msra.mxu2 %v14782_v45 }
 0x57f   :  { %v8315_v26 = vmax.f32 %v8306_v40, 0.0  ;;  %v14780_v40 = vld [vmem:[#allocation18 + $0x20] sm:$0xff] }
 0x580   :  { %v8733_v13 = vpop.f32.mrf.mxu1 }
 0x581   :  { %v8319_v16 = vpack.c.bf16 %v8315_v26, %v8311_v2  ;;  %v8734_v15 = vadd.f32 %v8733_v13, %v8720_v55  ;;  %v14779_v2 = vld [vmem:[#allocation18 + $0x18] sm:$0xff]  ;;  %v14778_v26 = vld [vmem:[#allocation18 + $0x10] sm:$0xff] }
 0x582   :  { %9061 = vmatpush.bf16.msra.mxu2 %v14781_v62 }
 0x583   :  { %8760 = vmatmul.bf16.vlgmr.msra.gmra.mxu3 %v8319_v16 }
 0x584   :  { %9144 = vmatpush.bf16.msra.mxu3 %v14791_v0 }
 0x586   :  { %9062 = vmatpush.bf16.msra.mxu2 %v14780_v40 }
 0x588   :  { %v8735_v3 = vpop.f32.mrf.mxu1  ;;  %9145 = vmatpush.bf16.msra.mxu3 %v14790_v63 }
 0x589   :  { %v8736_v27 = vadd.f32 %v8735_v3, %v8722_v5  ;;  %v14815_v3 = vld [vmem:[#allocation19] ss:$0 sm:$0xff] }
 0x58a   :  { %9063 = vmatpush.bf16.msra.mxu2 %v14779_v2 }
 0x58c   :  { %9146 = vmatpush.bf16.msra.mxu3 %v14789_v28 }
 0x58e   :  { %9064 = vmatpush.bf16.msra.mxu2 %v14778_v26 }
 0x590   :  { %v8789_v59 = vpop.f32.mrf.mxu1  ;;  %9147 = vmatpush.bf16.msra.mxu3 %v14788_v20 }
 0x591   :  { %v8790_v41 = vadd.f32 %v8789_v59, %v8776_v18 }
 0x593   :  { %8816 = vmatmul.bf16.vlgmr.msrb.gmra.mxu3 %v8319_v16  ;;  %v14777_v16 = vld [vmem:[#allocation18 + $0x8] sm:$0xff] }
 0x594   :  { %9065 = vmatpush.bf16.msra.mxu2 %v14777_v16  ;;  %9148 = vmatpush.bf16.msra.mxu3 %v14787_v4 }
 0x598   :  { %v8791_v17 = vpop.f32.mrf.mxu1  ;;  %9066 = vmatpush.bf16.msra.mxu2 %v14776_v8  ;;  %9149 = vmatpush.bf16.msra.mxu3 %v14786_v52 }
 0x599   :  { %v8792_v23 = vadd.f32 %v8791_v17, %v8778_v57 }
 0x59c   :  { %9150 = vmatpush.bf16.msra.mxu3 %v14785_v14 }
 0x5a0   :  { %9151 = vmatpush.bf16.msra.mxu3 %v14784_v54 }
 0x5c6   :  { %v8747_v12 = vpop.f32.mrf.mxu2 }
 0x5c7   :  { %v8748_v47 = vadd.f32 %v8747_v12, %v8734_v15 }
 0x5ce   :  { %v8749_v24 = vpop.f32.mrf.mxu2 }
 0x5cf   :  { %v8750_v30 = vadd.f32 %v8749_v24, %v8736_v27 }
 0x5d6   :  { %v8803_v53 = vpop.f32.mrf.mxu2 }
 0x5d7   :  { %v8804_v61 = vadd.f32 %v8803_v53, %v8790_v41 }
 0x5de   :  { %v8805_v44 = vpop.f32.mrf.mxu2 }
 0x5df   :  { %v8806_v7 = vadd.f32 %v8805_v44, %v8792_v23 }
 0x606   :  { %v8761_v60 = vpop.f32.mrf.mxu3 }
 0x607   :  { %v8762_v31 = vadd.f32 %v8761_v60, %v8748_v47  ;;  %v14816_v47 = vld [vmem:[#allocation22] ss:$0 sm:$0xff] }
 0x609   :  { %v8822_v1 = vmax.f32 %v8762_v31, 0.0 }
 0x60e   :  { %v8763_v25 = vpop.f32.mrf.mxu3 }
 0x60f   :  { %v8764_v43 = vadd.f32 %v8763_v25, %v8750_v30 }
 0x611   :  { %v8824_v42 = vmax.f32 %v8764_v43, 0.0 }
 0x613   :  { %v8826_v49 = vpack.c.bf16 %v8824_v42, %v8822_v1 }
 0x615   :  { %8968 = vmatmul.bf16.vlgmr.msra.gmra.mxu0 %v8826_v49 }
 0x616   :  { %v8817_v38 = vpop.f32.mrf.mxu3 }
 0x617   :  { %v8818_v6 = vadd.f32 %v8817_v38, %v8804_v61 }
 0x619   :  { %v8823_v58 = vmax.f32 %v8818_v6, 0.0 }
 0x61e   :  { %v8819_v21 = vpop.f32.mrf.mxu3 }
 0x61f   :  { %v8820_v39 = vadd.f32 %v8819_v21, %v8806_v7 }
 0x621   :  { %v8825_v11 = vmax.f32 %v8820_v39, 0.0 }
 0x623   :  { %v8827_v22 = vpack.c.bf16 %v8825_v11, %v8823_v58 }
 0x625   :  { %8982 = vmatmul.bf16.vlgmr.msra.gmra.mxu1 %v8827_v22 }
 0x692   :  { %v8969_v33 = vpop.f32.mrf.mxu0 }
 0x693   :  { %v8970_v34 = vadd.f32 %v14814_v29, %v8969_v33 }
 0x69a   :  { %v8971_v10 = vpop.f32.mrf.mxu0 }
 0x69b   :  { %v8972_v37 = vadd.f32 %v14814_v29, %v8971_v10 }
 0x6a2   :  { %v8983_v50 = vpop.f32.mrf.mxu1 }
 0x6a3   :  { %v8984_v56 = vadd.f32 %v8983_v50, %v8970_v34 }
 0x6a5   :  { %v8988_v48 = vmax.f32 %v8984_v56, 0.0 }
 0x6aa   :  { %v8985_v35 = vpop.f32.mrf.mxu1 }
 0x6ab   :  { %v8986_v32 = vadd.f32 %v8985_v35, %v8972_v37 }
 0x6ad   :  { %v8989_v13 = vmax.f32 %v8986_v32, 0.0 }
 0x6af   :  { %v8990_v12 = vpack.c.bf16 %v8989_v13, %v8988_v48 }
 0x6b1   :  { %9067 = vmatmul.bf16.vlgmr.msra.gmra.mxu2 %v8990_v12 }
 0x734   :  { %v9068_v51 = vpop.f32.mrf.mxu2 }
 0x735   :  { %v9069_v24 = vadd.f32 %v14815_v3, %v9068_v51 }
 0x737   :  { %v9073_v5 = vmax.f32 %v9069_v24, 0.0 }
 0x73c   :  { %v9070_v60 = vpop.f32.mrf.mxu2 }
 0x73d   :  { %v9071_v55 = vadd.f32 %v14815_v3, %v9070_v60 }
 0x73f   :  { %v9074_v15 = vmax.f32 %v9071_v55, 0.0 }
 0x741   :  { %v9075_v27 = vpack.c.bf16 %v9074_v15, %v9073_v5 }
 0x743   :  { %9152 = vmatmul.bf16.vlgmr.msra.gmra.mxu3 %v9075_v27 }
 0x7c6   :  { %v9153_v19 = vpop.f32.mrf.mxu3 }
 0x7c7   :  { %v9154_v30 = vadd.f32 %v14816_v47, %v9153_v19 }
 0x7c9   :  { %9158 = vst [vmem:[%s15872_s15] sm:$0xff] %v9154_v30 }
 0x7ce   :  { %v9155_v31 = vpop.f32.mrf.mxu3 }
 0x7cf   :  { %v9156_v59 = vadd.f32 %v14816_v47, %v9155_v31 }
 0x7d1   :  { %9159 = vst [vmem:[%s15872_s15 + $0x8] sm:$0xff] %v9156_v59 }
 0x7d2   :  { %9164 = vsyncpa [#allocation3], 1 }
 0x7d3   :  { %9165 = vsyncpa [#allocation5], 1 }
 0x7d4   :  { %9166 = vsyncpa [#allocation8], 1 }
 0x7d5   :  { %9167 = vsyncpa [#allocation11], 1 }
 0x7d6   :  { %9168 = vsyncpa [#allocation14], 1 }
 0x7d7   :  { %9169 = vsyncpa [#allocation17], 1 }
 0x7d8   :  { %9170 = vsyncpa [#allocation20], 1 }
 0x7d9   :  { %9171 = vsyncpa [#allocation23], 1 }

</bundles_post_ra>
